<compile_context>
chip_gen: v7x
topology: tpu7x:2x2x1
jax: 0.10.0
libtpu: 0.0.40
codegen_flags: <defaults>
</compile_context>

<pallas_src>
import functools

import jax
import jax.numpy as jnp
from jax.experimental import pallas as pl
from jax.experimental.pallas import tpu as pltpu

IMAGE_SIZE = 218 * 178  # 38804
H1 = 4096
H2 = 1024
OUT = 1

TK1 = 1024   # layer-1 K tile (38804 -> padded to 38912 = 38 * 1024)
TN1 = 2048   # layer-1 N tile (2 parallel blocks over N=4096)
TK2 = 1024   # layer-2 K tile (4096 = 4 * 1024)


def _stable_sigmoid(x):
    """Numerically stable sigmoid: never exponentiates a positive number."""
    z = jnp.exp(-jnp.abs(x))
    return jnp.where(x >= 0.0, 1.0 / (1.0 + z), z / (1.0 + z))


# ----------------------------------------------------------------------------
# Kernel 1: y = leaky_relu(x @ w + b)   (used for the 38804 -> 4096 layer)
# Grid = (M_blocks, N_blocks, K_blocks); K is the reduction axis (arbitrary).
# ----------------------------------------------------------------------------
def _linear_lrelu_kernel(x_ref, w_ref, b_ref, o_ref, acc_ref, *, alpha):
    k = pl.program_id(2)

    @pl.when(k == 0)
    def _():
        acc_ref[...] = jnp.zeros_like(acc_ref)

    # bf16 x bf16 -> f32 accumulate on the MXU.
    acc_ref[...] += jnp.dot(
        x_ref[...].astype(jnp.bfloat16),
        w_ref[...],
        preferred_element_type=jnp.float32,
    )

    @pl.when(k == pl.num_programs(2) - 1)
    def _():
        y = acc_ref[...] + b_ref[...]          # (M, tn) + (1, tn)
        o_ref[...] = jnp.where(y >= 0.0, y, alpha * y).astype(o_ref.dtype)


def linear_leaky_relu(x, w_bf16, b, *, alpha=0.2, tk=TK1, tn=TN1):
    """x: (M, K) f32, w: (K, N) bf16, b: (N,) f32 -> (M, N) f32."""
    M, K = x.shape
    K2, N = w_bf16.shape
    assert K == K2 and b.shape == (N,)
    assert K % tk == 0 and N % tn == 0

    grid = (1, N // tn, K // tk)
    cost = pl.CostEstimate(
        flops=2 * M * K * N,
        transcendentals=0,
        bytes_accessed=K * N * 2 + M * K * 4 + N * 4 + M * N * 4,
    )

    kernel = functools.partial(_linear_lrelu_kernel, alpha=alpha)
    return pl.pallas_call(
        kernel,
        out_shape=jax.ShapeDtypeStruct((M, N), jnp.float32),
        grid_spec=pltpu.PrefetchScalarGridSpec(
            num_scalar_prefetch=0,
            grid=grid,
            in_specs=[
                pl.BlockSpec((M, tk), lambda i, j, k: (i, k)),
                pl.BlockSpec((tk, tn), lambda i, j, k: (k, j)),
                pl.BlockSpec((1, tn), lambda i, j, k: (0, j)),
            ],
            out_specs=pl.BlockSpec((M, tn), lambda i, j, k: (i, j)),
            scratch_shapes=[pltpu.VMEM((M, tn), jnp.float32)],
        ),
        compiler_params=pltpu.CompilerParams(
            dimension_semantics=("parallel", "parallel", "arbitrary"),
            vmem_limit_bytes=32 * 1024 * 1024,
        ),
        cost_estimate=cost,
    )(x, w_bf16, b.reshape(1, N))


# ----------------------------------------------------------------------------
# Kernel 2: fused tail
#   h2     = leaky_relu(h1 @ w2 + b2)            (4096 -> 1024)
#   out    = sigmoid(sum(h2 * w3_row, -1) + b3)  (1024 -> 1, VPU + lane reduce)
# Grid = (K_blocks,) over the 4096 contraction; the tiny head runs in the
# epilogue, so no separate lane-width-1 matmul kernel is launched.
# ----------------------------------------------------------------------------
def _tail_kernel(h1_ref, w2_ref, b2_ref, w3_ref, b3_ref, o_ref, acc_ref, *, alpha):
    k = pl.program_id(0)

    @pl.when(k == 0)
    def _():
        acc_ref[...] = jnp.zeros_like(acc_ref)

    acc_ref[...] += jnp.dot(
        h1_ref[...].astype(jnp.bfloat16),
        w2_ref[...],
        preferred_element_type=jnp.float32,
    )

    @pl.when(k == pl.num_programs(0) - 1)
    def _():
        h2 = acc_ref[...] + b2_ref[...]                     # (M, 1024)
        h2 = jnp.where(h2 >= 0.0, h2, alpha * h2)
        logits = jnp.sum(h2 * w3_ref[...], axis=-1, keepdims=True) + b3_ref[...]
        o_ref[...] = _stable_sigmoid(logits).astype(o_ref.dtype)


def mlp_tail(h1, w2_bf16, b2, w3_row, b3, *, alpha=0.2, tk=TK2):
    """h1: (M, 4096) f32, w2: (4096, 1024) bf16, b2: (1024,), w3_row: (1, 1024),
    b3: (1,) -> (M, 1) f32 probabilities."""
    M, K = h1.shape
    K2, N = w2_bf16.shape
    assert K == K2 and K % tk == 0
    assert b2.shape == (N,) and w3_row.shape == (1, N) and b3.shape == (OUT,)

    grid = (K // tk,)
    cost = pl.CostEstimate(
        flops=2 * M * K * N + 2 * M * N,
        transcendentals=M,
        bytes_accessed=K * N * 2 + M * K * 4 + 2 * N * 4 + M * 4,
    )

    kernel = functools.partial(_tail_kernel, alpha=alpha)
    return pl.pallas_call(
        kernel,
        out_shape=jax.ShapeDtypeStruct((M, OUT), jnp.float32),
        grid_spec=pltpu.PrefetchScalarGridSpec(
            num_scalar_prefetch=0,
            grid=grid,
            in_specs=[
                pl.BlockSpec((M, tk), lambda k: (0, k)),
                pl.BlockSpec((tk, N), lambda k: (k, 0)),
                pl.BlockSpec((1, N), lambda k: (0, 0)),
                pl.BlockSpec((1, N), lambda k: (0, 0)),
                pl.BlockSpec((1, 1), lambda k: (0, 0)),
            ],
            out_specs=pl.BlockSpec((M, OUT), lambda k: (0, 0)),
            scratch_shapes=[pltpu.VMEM((M, N), jnp.float32)],
        ),
        compiler_params=pltpu.CompilerParams(
            dimension_semantics=("arbitrary",),
            vmem_limit_bytes=32 * 1024 * 1024,
        ),
        cost_estimate=cost,
    )(h1, w2_bf16, b2.reshape(1, N), w3_row, b3.reshape(1, 1))


# ----------------------------------------------------------------------------
# Params
# ----------------------------------------------------------------------------
def init_params(key):
    """Deterministic torch-like (uniform +/- 1/sqrt(fan_in)) init, f32."""

    def lin(k, fan_in, fan_out):
        kw, kb = jax.random.split(k)
        bound = 1.0 / float(jnp.sqrt(float(fan_in)))
        w = jax.random.uniform(kw, (fan_in, fan_out), jnp.float32, -bound, bound)
        b = jax.random.uniform(kb, (fan_out,), jnp.float32, -bound, bound)
        return w, b

    k1, k2, k3 = jax.random.split(key, 3)
    return {
        "l1": lin(k1, IMAGE_SIZE, H1),
        "l2": lin(k2, H1, H2),
        "l3": lin(k3, H2, OUT),
    }


def prepare_params(raw, *, tk1=TK1):
    """One-time prep: pad w1's K axis to a tile multiple, cast big weights to
    bf16, lay out the 1024->1 head as a (1, 1024) row for the fused epilogue."""
    w1, b1 = raw["l1"]
    w2, b2 = raw["l2"]
    w3, b3 = raw["l3"]

    K = w1.shape[0]
    k_pad = ((K + tk1 - 1) // tk1) * tk1
    if k_pad != K:
        w1 = jnp.pad(w1, ((0, k_pad - K), (0, 0)))  # zeros contribute nothing

    return {
        "w1": w1.astype(jnp.bfloat16),          # (38912, 4096) bf16
        "b1": b1.astype(jnp.float32),
        "w2": w2.astype(jnp.bfloat16),          # (4096, 1024) bf16
        "b2": b2.astype(jnp.float32),
        "w3_row": w3.astype(jnp.float32).T,     # (1, 1024) f32
        "b3": b3.astype(jnp.float32),           # (1,)
    }


# ----------------------------------------------------------------------------
# Forward
# ----------------------------------------------------------------------------
def discriminator_forward(params, x):
    # input.view(-1, image_size)
    x = x.reshape(-1, IMAGE_SIZE).astype(jnp.float32)
    k_pad = params["w1"].shape[0]               # static under jit
    if k_pad != IMAGE_SIZE:
        # Only the tiny activation (batch x 108 extra cols) is padded per call;
        # the big weight was padded once at prep time.
        x = jnp.pad(x, ((0, 0), (0, k_pad - IMAGE_SIZE)))

    h1 = linear_leaky_relu(x, params["w1"], params["b1"], alpha=0.2)
    out = mlp_tail(
        h1, params["w2"], params["b2"], params["w3_row"], params["b3"], alpha=0.2
    )
    return out  # (batch, 1), values in (0, 1)


if __name__ == "__main__":
    key = jax.random.PRNGKey(0)
    pkey, xkey = jax.random.split(key)

    params = prepare_params(init_params(pkey))

    # Small batch of "images" with the module's spatial size (218 x 178).
    batch = 2
    x = jax.random.normal(xkey, (batch, 218, 178), dtype=jnp.float32)

    fwd = jax.jit(discriminator_forward)
    y = jax.block_until_ready(fwd(params, x))

    assert y.shape == (batch, 1), y.shape
    assert bool(jnp.all(jnp.isfinite(y)))
    assert bool(jnp.all((y > 0.0) & (y < 1.0)))

    print("KERNEL_OK")
</pallas_src>

<mosaic_0001>
module attributes {stable_mosaic.version = 11 : i64} {
  func.func @_linear_lrelu_kernel(%arg0: i32, %arg1: i32, %arg2: i32, %arg3: memref<2x1024xf32, #tpu.memory_space<vmem>>, %arg4: memref<1024x2048xbf16, #tpu.memory_space<vmem>>, %arg5: memref<1x2048xf32, #tpu.memory_space<vmem>>, %arg6: memref<2x2048xf32, #tpu.memory_space<vmem>>, %arg7: memref<2x2048xf32, #tpu.memory_space<vmem>>) attributes {dimension_semantics = [#tpu.dimension_semantics<parallel>, #tpu.dimension_semantics<parallel>, #tpu.dimension_semantics<arbitrary>], iteration_bounds = array<i64: 1, 2, 38>, scalar_prefetch = 0 : i64, scratch_operands = 1 : i64, tpu.core_type = #tpu.core_type<tc>, window_params = [{transform_indices = @transform_0, window_bounds = array<i64: 2, 1024>}, {transform_indices = @transform_1, window_bounds = array<i64: 1024, 2048>}, {transform_indices = @transform_2, window_bounds = array<i64: 1, 2048>}, {transform_indices = @transform_3, window_bounds = array<i64: 2, 2048>}]} {
    %c0_i32 = arith.constant 0 : i32
    %0 = arith.cmpi eq, %arg2, %c0_i32 : i32
    %1 = arith.extui %0 : i1 to i32
    %c0_i32_0 = arith.constant 0 : i32
    %2 = arith.cmpi ne, %1, %c0_i32_0 : i32
    scf.if %2 {
      %cst_9 = arith.constant 0.000000e+00 : f32
      %13 = vector.broadcast %cst_9 : f32 to vector<2x2048xf32>
      %c0_10 = arith.constant 0 : index
      %c0_11 = arith.constant 0 : index
      %14 = vector.load %arg7[%c0_10, %c0_11] : memref<2x2048xf32, #tpu.memory_space<vmem>>, vector<2x2048xf32>
      tpu.vector_store %arg7[%c0_10, %c0_11], %13 {strides = array<i32>} : memref<2x2048xf32, #tpu.memory_space<vmem>>, vector<2x2048xf32>,
    } else {
    }
    %c0 = arith.constant 0 : index
    %c0_1 = arith.constant 0 : index
    %3 = vector.load %arg7[%c0, %c0_1] : memref<2x2048xf32, #tpu.memory_space<vmem>>, vector<2x2048xf32>
    %c0_2 = arith.constant 0 : index
    %c0_3 = arith.constant 0 : index
    %4 = vector.load %arg3[%c0_2, %c0_3] : memref<2x1024xf32, #tpu.memory_space<vmem>>, vector<2x1024xf32>
    %5 = arith.truncf %4 : vector<2x1024xf32> to vector<2x1024xbf16>
    %c0_4 = arith.constant 0 : index
    %c0_5 = arith.constant 0 : index
    %6 = vector.load %arg4[%c0_4, %c0_5] : memref<1024x2048xbf16, #tpu.memory_space<vmem>>, vector<1024x2048xbf16>
    %cst = arith.constant dense<0.000000e+00> : vector<2x2048xf32>
    %7 = tpu.matmul %5, %6, %cst {dimension_numbers = #tpu.dot_dimension_numbers<[1], [0], [0], [1], [0, 0, 1, 1], [], []>} : vector<2x1024xbf16>, vector<1024x2048xbf16>, vector<2x2048xf32> -> vector<2x2048xf32>
    %8 = arith.addf %3, %7 : vector<2x2048xf32>
    %c0_6 = arith.constant 0 : index
    %c0_7 = arith.constant 0 : index
    %9 = vector.load %arg7[%c0_6, %c0_7] : memref<2x2048xf32, #tpu.memory_space<vmem>>, vector<2x2048xf32>
    tpu.vector_store %arg7[%c0_6, %c0_7], %8 {strides = array<i32>} : memref<2x2048xf32, #tpu.memory_space<vmem>>, vector<2x2048xf32>,
    %c37_i32 = arith.constant 37 : i32
    %10 = arith.cmpi eq, %arg2, %c37_i32 : i32
    %11 = arith.extui %10 : i1 to i32
    %c0_i32_8 = arith.constant 0 : i32
    %12 = arith.cmpi ne, %11, %c0_i32_8 : i32
    scf.if %12 {
      %c0_9 = arith.constant 0 : index
      %c0_10 = arith.constant 0 : index
      %13 = vector.load %arg7[%c0_9, %c0_10] : memref<2x2048xf32, #tpu.memory_space<vmem>>, vector<2x2048xf32>
      %c0_11 = arith.constant 0 : index
      %c0_12 = arith.constant 0 : index
      %14 = vector.load %arg5[%c0_11, %c0_12] : memref<1x2048xf32, #tpu.memory_space<vmem>>, vector<1x2048xf32>
      %15 = vector.broadcast %14 : vector<1x2048xf32> to vector<2x2048xf32>
      %16 = arith.addf %13, %15 : vector<2x2048xf32>
      %cst_13 = arith.constant 0.000000e+00 : f32
      %17 = vector.broadcast %cst_13 : f32 to vector<2x2048xf32>
      %18 = arith.cmpf oge, %16, %17 : vector<2x2048xf32>
      %cst_14 = arith.constant 2.000000e-01 : f32
      %19 = vector.broadcast %cst_14 : f32 to vector<2x2048xf32>
      %20 = arith.mulf %19, %16 : vector<2x2048xf32>
      %21 = arith.select %18, %16, %20 : vector<2x2048xi1>, vector<2x2048xf32>
      %c0_15 = arith.constant 0 : index
      %c0_16 = arith.constant 0 : index
      %22 = vector.load %arg6[%c0_15, %c0_16] : memref<2x2048xf32, #tpu.memory_space<vmem>>, vector<2x2048xf32>
      tpu.vector_store %arg6[%c0_15, %c0_16], %21 {strides = array<i32>} : memref<2x2048xf32, #tpu.memory_space<vmem>>, vector<2x2048xf32>,
    } else {
    }
    return
  }
  func.func @transform_0(%arg0: i32, %arg1: i32, %arg2: i32) -> (i32, i32) {
    %c0_i32 = arith.constant 0 : i32
    return %arg0, %arg2 : i32, i32
  }
  func.func @transform_1(%arg0: i32, %arg1: i32, %arg2: i32) -> (i32, i32) {
    %c0_i32 = arith.constant 0 : i32
    return %arg2, %arg1 : i32, i32
  }
  func.func @transform_2(%arg0: i32, %arg1: i32, %arg2: i32) -> (i32, i32) {
    %c0_i32 = arith.constant 0 : i32
    %c0_i32_0 = arith.constant 0 : i32
    return %c0_i32, %arg1 : i32, i32
  }
  func.func @transform_3(%arg0: i32, %arg1: i32, %arg2: i32) -> (i32, i32) {
    %c0_i32 = arith.constant 0 : i32
    return %arg0, %arg1 : i32, i32
  }
}

module attributes {stable_mosaic.version = 11 : i64} {
  func.func @_tail_kernel(%arg0: i32, %arg1: memref<2x1024xf32, #tpu.memory_space<vmem>>, %arg2: memref<1024x1024xbf16, #tpu.memory_space<vmem>>, %arg3: memref<1x1024xf32, #tpu.memory_space<vmem>>, %arg4: memref<1x1024xf32, #tpu.memory_space<vmem>>, %arg5: memref<1x1xf32, #tpu.memory_space<vmem>>, %arg6: memref<2x1xf32, #tpu.memory_space<vmem>>, %arg7: memref<2x1024xf32, #tpu.memory_space<vmem>>) attributes {dimension_semantics = [#tpu.dimension_semantics<arbitrary>], iteration_bounds = array<i64: 4>, scalar_prefetch = 0 : i64, scratch_operands = 1 : i64, tpu.core_type = #tpu.core_type<tc>, window_params = [{transform_indices = @transform_0, window_bounds = array<i64: 2, 1024>}, {transform_indices = @transform_1, window_bounds = array<i64: 1024, 1024>}, {pipeline_mode = #tpu.pipeline_mode<synchronous>, transform_indices = @transform_2, window_bounds = array<i64: 1, 1024>}, {pipeline_mode = #tpu.pipeline_mode<synchronous>, transform_indices = @transform_3, window_bounds = array<i64: 1, 1024>}, {pipeline_mode = #tpu.pipeline_mode<synchronous>, transform_indices = @transform_4, window_bounds = array<i64: 1, 1>}, {pipeline_mode = #tpu.pipeline_mode<synchronous>, transform_indices = @transform_5, window_bounds = array<i64: 2, 1>}]} {
    %c0_i32 = arith.constant 0 : i32
    %0 = arith.cmpi eq, %arg0, %c0_i32 : i32
    %1 = arith.extui %0 : i1 to i32
    %c0_i32_0 = arith.constant 0 : i32
    %2 = arith.cmpi ne, %1, %c0_i32_0 : i32
    scf.if %2 {
      %cst_9 = arith.constant 0.000000e+00 : f32
      %13 = vector.broadcast %cst_9 : f32 to vector<2x1024xf32>
      %c0_10 = arith.constant 0 : index
      %c0_11 = arith.constant 0 : index
      %14 = vector.load %arg7[%c0_10, %c0_11] : memref<2x1024xf32, #tpu.memory_space<vmem>>, vector<2x1024xf32>
      tpu.vector_store %arg7[%c0_10, %c0_11], %13 {strides = array<i32>} : memref<2x1024xf32, #tpu.memory_space<vmem>>, vector<2x1024xf32>,
    } else {
    }
    %c0 = arith.constant 0 : index
    %c0_1 = arith.constant 0 : index
    %3 = vector.load %arg7[%c0, %c0_1] : memref<2x1024xf32, #tpu.memory_space<vmem>>, vector<2x1024xf32>
    %c0_2 = arith.constant 0 : index
    %c0_3 = arith.constant 0 : index
    %4 = vector.load %arg1[%c0_2, %c0_3] : memref<2x1024xf32, #tpu.memory_space<vmem>>, vector<2x1024xf32>
    %5 = arith.truncf %4 : vector<2x1024xf32> to vector<2x1024xbf16>
    %c0_4 = arith.constant 0 : index
    %c0_5 = arith.constant 0 : index
    %6 = vector.load %arg2[%c0_4, %c0_5] : memref<1024x1024xbf16, #tpu.memory_space<vmem>>, vector<1024x1024xbf16>
    %cst = arith.constant dense<0.000000e+00> : vector<2x1024xf32>
    %7 = tpu.matmul %5, %6, %cst {dimension_numbers = #tpu.dot_dimension_numbers<[1], [0], [0], [1], [0, 0, 1, 1], [], []>} : vector<2x1024xbf16>, vector<1024x1024xbf16>, vector<2x1024xf32> -> vector<2x1024xf32>
    %8 = arith.addf %3, %7 : vector<2x1024xf32>
    %c0_6 = arith.constant 0 : index
    %c0_7 = arith.constant 0 : index
    %9 = vector.load %arg7[%c0_6, %c0_7] : memref<2x1024xf32, #tpu.memory_space<vmem>>, vector<2x1024xf32>
    tpu.vector_store %arg7[%c0_6, %c0_7], %8 {strides = array<i32>} : memref<2x1024xf32, #tpu.memory_space<vmem>>, vector<2x1024xf32>,
    %c3_i32 = arith.constant 3 : i32
    %10 = arith.cmpi eq, %arg0, %c3_i32 : i32
    %11 = arith.extui %10 : i1 to i32
    %c0_i32_8 = arith.constant 0 : i32
    %12 = arith.cmpi ne, %11, %c0_i32_8 : i32
    scf.if %12 {
      %c0_9 = arith.constant 0 : index
      %c0_10 = arith.constant 0 : index
      %13 = vector.load %arg7[%c0_9, %c0_10] : memref<2x1024xf32, #tpu.memory_space<vmem>>, vector<2x1024xf32>
      %c0_11 = arith.constant 0 : index
      %c0_12 = arith.constant 0 : index
      %14 = vector.load %arg3[%c0_11, %c0_12] : memref<1x1024xf32, #tpu.memory_space<vmem>>, vector<1x1024xf32>
      %15 = vector.broadcast %14 : vector<1x1024xf32> to vector<2x1024xf32>
      %16 = arith.addf %13, %15 : vector<2x1024xf32>
      %cst_13 = arith.constant 0.000000e+00 : f32
      %17 = vector.broadcast %cst_13 : f32 to vector<2x1024xf32>
      %18 = arith.cmpf oge, %16, %17 : vector<2x1024xf32>
      %cst_14 = arith.constant 2.000000e-01 : f32
      %19 = vector.broadcast %cst_14 : f32 to vector<2x1024xf32>
      %20 = arith.mulf %19, %16 : vector<2x1024xf32>
      %21 = arith.select %18, %16, %20 : vector<2x1024xi1>, vector<2x1024xf32>
      %c0_15 = arith.constant 0 : index
      %c0_16 = arith.constant 0 : index
      %22 = vector.load %arg4[%c0_15, %c0_16] : memref<1x1024xf32, #tpu.memory_space<vmem>>, vector<1x1024xf32>
      %23 = vector.broadcast %22 : vector<1x1024xf32> to vector<2x1024xf32>
      %24 = arith.mulf %21, %23 : vector<2x1024xf32>
      %cst_17 = arith.constant dense<0.000000e+00> : vector<2xf32>
      %25 = vector.multi_reduction <add>, %24, %cst_17 [1] : vector<2x1024xf32> to vector<2xf32>
      %26 = vector.shape_cast %25 : vector<2xf32> to vector<2x1xf32>
      %c0_18 = arith.constant 0 : index
      %c0_19 = arith.constant 0 : index
      %27 = vector.load %arg5[%c0_18, %c0_19] : memref<1x1xf32, #tpu.memory_space<vmem>>, vector<1x1xf32>
      %28 = vector.broadcast %27 : vector<1x1xf32> to vector<2x1xf32>
      %29 = arith.addf %26, %28 : vector<2x1xf32>
      %30 = math.absf %29 : vector<2x1xf32>
      %cst_20 = arith.constant 0.000000e+00 : f32
      %31 = vector.broadcast %cst_20 : f32 to vector<2x1xf32>
      %32 = arith.subf %31, %30 : vector<2x1xf32>
      %33 = math.exp %32 : vector<2x1xf32>
      %cst_21 = arith.constant 0.000000e+00 : f32
      %34 = vector.broadcast %cst_21 : f32 to vector<2x1xf32>
      %35 = arith.cmpf oge, %29, %34 : vector<2x1xf32>
      %cst_22 = arith.constant 1.000000e+00 : f32
      %36 = vector.broadcast %cst_22 : f32 to vector<2x1xf32>
      %37 = arith.addf %36, %33 : vector<2x1xf32>
      %cst_23 = arith.constant 1.000000e+00 : f32
      %38 = vector.broadcast %cst_23 : f32 to vector<2x1xf32>
      %39 = arith.divf %38, %37 : vector<2x1xf32>
      %cst_24 = arith.constant 1.000000e+00 : f32
      %40 = vector.broadcast %cst_24 : f32 to vector<2x1xf32>
      %41 = arith.addf %40, %33 : vector<2x1xf32>
      %42 = arith.divf %33, %41 : vector<2x1xf32>
      %43 = arith.select %35, %39, %42 : vector<2x1xi1>, vector<2x1xf32>
      %c0_25 = arith.constant 0 : index
      %c0_26 = arith.constant 0 : index
      %44 = vector.load %arg6[%c0_25, %c0_26] : memref<2x1xf32, #tpu.memory_space<vmem>>, vector<2x1xf32>
      tpu.vector_store %arg6[%c0_25, %c0_26], %43 {strides = array<i32>} : memref<2x1xf32, #tpu.memory_space<vmem>>, vector<2x1xf32>,
    } else {
    }
    return
  }
  func.func @transform_0(%arg0: i32) -> (i32, i32) {
    %c0_i32 = arith.constant 0 : i32
    %c0_i32_0 = arith.constant 0 : i32
    return %c0_i32, %arg0 : i32, i32
  }
  func.func @transform_1(%arg0: i32) -> (i32, i32) {
    %c0_i32 = arith.constant 0 : i32
    %c0_i32_0 = arith.constant 0 : i32
    return %arg0, %c0_i32 : i32, i32
  }
  func.func @transform_2(%arg0: i32) -> (i32, i32) {
    %c0_i32 = arith.constant 0 : i32
    %c0_i32_0 = arith.constant 0 : i32
    %c0_i32_1 = arith.constant 0 : i32
    return %c0_i32, %c0_i32_0 : i32, i32
  }
  func.func @transform_3(%arg0: i32) -> (i32, i32) {
    %c0_i32 = arith.constant 0 : i32
    %c0_i32_0 = arith.constant 0 : i32
    %c0_i32_1 = arith.constant 0 : i32
    return %c0_i32, %c0_i32_0 : i32, i32
  }
  func.func @transform_4(%arg0: i32) -> (i32, i32) {
    %c0_i32 = arith.constant 0 : i32
    %c0_i32_0 = arith.constant 0 : i32
    %c0_i32_1 = arith.constant 0 : i32
    return %c0_i32, %c0_i32_0 : i32, i32
  }
  func.func @transform_5(%arg0: i32) -> (i32, i32) {
    %c0_i32 = arith.constant 0 : i32
    %c0_i32_0 = arith.constant 0 : i32
    %c0_i32_1 = arith.constant 0 : i32
    return %c0_i32, %c0_i32_0 : i32, i32
  }
}

</mosaic_0001>

<bundles_post_ra>
// kernel: discriminator_forward.3
= control target key start
LH: loop header
LB: loop body
LE: loop exit
PB: predicated region body
PF: predicated region fallthrough
CT: control target
= control target key end

     0   :  { %s4989_s20 = smov 0   ;;  %s5662_s0 = inlined_call_operand.vmem [shape: f32[2,4096], index: 0, kind: input, shape index: {}]   ;;  %s5663_s1 = inlined_call_operand.vmem [shape: bf16[4096,1024], index: 1, kind: input, shape index: {}]   ;;  %s5664_s2 = inlined_call_operand.vmem [shape: f32[1,1024], index: 2, kind: input, shape index: {}]   ;;  %s5665_s3 = inlined_call_operand.vmem [shape: f32[1,1024], index: 3, kind: input, shape index: {}]   ;;  %s5666_s4 = inlined_call_operand.<no memory space> [shape: f32[1,1], index: 4, kind: input, shape index: {}]   ;;  %s5667_s5 = inlined_call_operand.vmem [shape: f32[2,1], index: 5, kind: output, shape index: {}]  }
   0x1   :  { %v10_v0 = vstv %s5666_s4 }
   0x2   :  { %11 = vst [vmem:[#allocation3] sm:$0x1] %v10_v0 }
   0x3 LB: > { %s4995_s21 = sadd.s32 4294967295, %s4952_s20   ;;  %p4358_p0 = scmp.ge.s32.totalorder %s4952_s20, 1  ;;  %s4952_s20 = sphi %s4989_s20, %s17_s20  }
   0x4   : > { %p197_p1 = scmp.lt.s32.totalorder %s4952_s20, 5 }
   0x6   : > { %p198_p2 = pnand %p4358_p0, %p197_p1 }
   0x7   : > { %s4359_s4 = sshll.u32 (!%p198_p2), %s4995_s21, 3  ;;  %s4361_s22 = sshll.u32 (!%p198_p2), %s4995_s21, 7 }
   0x8   : > { %201 = sbr.rel (%p198_p2) target bundleno = 966 (0x3c6), region = 40  ;;  %p227_p3 = scmp.lt.s32.totalorder (!%p198_p2), %s4359_s4, 31 }
   0x9   : > { %p233_p4 = scmp.lt.s32.totalorder (!%p198_p2), %s4361_s22, 511  ;;  %p4364_p5 = scmp.ne.s32.totalorder (!%p198_p2), %s4995_s21, 0 }
   0xf   : > { %s5669_s4 = smov (!%p227_p3, %s4359_s4), 31  ;;  %s5671_s22 = smov (!%p233_p4, %s4361_s22), 511 }
  0x10   : > { %s4360_s23 = sshll.u32 %s5669_s4, 1  ;;  %s4881_s27 = sshll.u32 %s5671_s22, 5  ;;  %v4954_v1 = vmov (!%p4364_p5), 0.0  }
  0x11   : > { %s5004_s26 = scalar_lea.vmem %s5662_s0, %s4360_s23  ;;  %s5009_s30 = scalar_lea.vmem %s5663_s1, %s4881_s27  ;;  %243 = vst [vmem:[#allocation2] sm:$0xff] (!%p4364_p5), %v4954_v1  ;;  %244 = vst [vmem:[#allocation2 + $0x8] sm:$0xff] (!%p4364_p5), %v4954_v1 }
  0x12   : > { %242 = sbr.rel (%p4364_p5) target bundleno = 25 (0x19), region = 44 }
  0x19 PF: > { %v301_v2 = vld [vmem:[%s5009_s30] sm:$0xff]  ;;  %v302_v4 = vld [vmem:[%s5009_s30 + $0x8] sm:$0xff]  ;;  %v4955_v34 = vmov 1983009808   ;;  %v255_v36 = vlaneseq  ;;  %p4877_p6 = scmp.ne.s32.totalorder %s4995_s21, 3 }
  0x1a   : > { %v305_v3 = vld [vmem:[%s5009_s30 + $0x20] sm:$0xff]  ;;  %v306_v6 = vld [vmem:[%s5009_s30 + $0x28] sm:$0xff]  ;;  %v253_v35 = vunpack.c.l.s4 %v4955_v34  ;;  %vm4277_vm2 = vcmask (!%p4877_p6), 1041408   ;;  %vm4313_vm3 = vcmask (!%p4877_p6), 1024  }
  0x1b   : > { %v4366_v5 = vcombine.high %v301_v2, %v305_v3  ;;  %v4365_v7 = vcombine.low %v301_v2, %v305_v3  ;;  %v309_v8 = vld [vmem:[%s5009_s30 + $0x40] sm:$0xff]  ;;  %v4368_v10 = vcombine.high %v302_v4, %v306_v6  ;;  %v4367_v11 = vcombine.low %v302_v4, %v306_v6  ;;  %v310_v13 = vld [vmem:[%s5009_s30 + $0x48] sm:$0xff] }
  0x1c   : > { %v313_v9 = vld [vmem:[%s5009_s30 + $0x60] sm:$0xff]  ;;  %v314_v14 = vld [vmem:[%s5009_s30 + $0x68] sm:$0xff]  ;;  %v254_v45 = vunpack.c.0.s8 %v253_v35  ;;  %v5034_v46 = vshrl.u32 %v255_v36, 7 }
  0x1d   : > { %v4374_v12 = vcombine.high %v309_v8, %v313_v9  ;;  %v317_v15 = vld [vmem:[%s5009_s30 + $0x80] sm:$0xff]  ;;  %3373 = vmatprep.subr.bf16.mxu0 %v4366_v5  ;;  %v4376_v16 = vcombine.high %v310_v13, %v314_v14  ;;  %v318_v18 = vld [vmem:[%s5009_s30 + $0x88] sm:$0xff]  ;;  %3537 = vmatprep.subr.bf16.mxu1 %v4368_v10  ;;  %v4373_v20 = vcombine.low %v309_v8, %v313_v9 }
  0x1e   : > { %v321_v17 = vld [vmem:[%s5009_s30 + $0xa0] sm:$0xff]  ;;  %v322_v19 = vld [vmem:[%s5009_s30 + $0xa8] sm:$0xff]  ;;  %3374 = vmatpush1.bf16.msra.mxu0 %v4365_v7  ;;  %3538 = vmatpush1.bf16.msra.mxu1 %v4367_v11  ;;  %v4375_v21 = vcombine.low %v310_v13, %v314_v14  ;;  %v5041_v55 = vsub.s32 %v254_v45, %v5034_v46 }
  0x1f   : > { %3375 = vmatprep.subr.bf16.mxu0 %v4374_v12  ;;  %v4382_v22 = vcombine.high %v317_v15, %v321_v17  ;;  %3539 = vmatprep.subr.bf16.mxu1 %v4376_v16  ;;  %v4384_v23 = vcombine.high %v318_v18, %v322_v19  ;;  %v325_v24 = vld [vmem:[%s5009_s30 + $0xc0] sm:$0xff]  ;;  %v326_v26 = vld [vmem:[%s5009_s30 + $0xc8] sm:$0xff]  ;;  %v4381_v28 = vcombine.low %v317_v15, %v321_v17 }
  0x20   : > { %v329_v25 = vld [vmem:[%s5009_s30 + $0xe0] sm:$0xff]  ;;  %v330_v27 = vld [vmem:[%s5009_s30 + $0xe8] sm:$0xff]  ;;  %v4383_v29 = vcombine.low %v318_v18, %v322_v19 }
  0x21   : > { %v4390_v30 = vcombine.high %v325_v24, %v329_v25  ;;  %v4392_v31 = vcombine.high %v326_v26, %v330_v27  ;;  %v333_v32 = vld [vmem:[%s5009_s30 + $0x100] sm:$0xff]  ;;  %v334_v37 = vld [vmem:[%s5009_s30 + $0x108] sm:$0xff]  ;;  %v4389_v39 = vcombine.low %v325_v24, %v329_v25  ;;  %v4391_v40 = vcombine.low %v326_v26, %v330_v27 }
  0x22   : > { %3376 = vmatpush1.bf16.msra.mxu0 %v4373_v20  ;;  %3540 = vmatpush1.bf16.msra.mxu1 %v4375_v21  ;;  %v337_v33 = vld [vmem:[%s5009_s30 + $0x120] sm:$0xff]  ;;  %v338_v38 = vld [vmem:[%s5009_s30 + $0x128] sm:$0xff] }
  0x23   : > { %3377 = vmatprep.subr.bf16.mxu0 %v4382_v22  ;;  %3541 = vmatprep.subr.bf16.mxu1 %v4384_v23  ;;  %v4398_v41 = vcombine.high %v333_v32, %v337_v33  ;;  %v4400_v42 = vcombine.high %v334_v37, %v338_v38  ;;  %v341_v43 = vld [vmem:[%s5009_s30 + $0x140] sm:$0xff]  ;;  %v342_v47 = vld [vmem:[%s5009_s30 + $0x148] sm:$0xff]  ;;  %v4397_v49 = vcombine.low %v333_v32, %v337_v33 }
  0x24   : > { %v345_v44 = vld [vmem:[%s5009_s30 + $0x160] sm:$0xff]  ;;  %v346_v48 = vld [vmem:[%s5009_s30 + $0x168] sm:$0xff]  ;;  %v4399_v50 = vcombine.low %v334_v37, %v338_v38 }
  0x25   : > { %v4406_v51 = vcombine.high %v341_v43, %v345_v44  ;;  %v4408_v52 = vcombine.high %v342_v47, %v346_v48  ;;  %v349_v53 = vld [vmem:[%s5009_s30 + $0x180] sm:$0xff]  ;;  %v350_v56 = vld [vmem:[%s5009_s30 + $0x188] sm:$0xff]  ;;  %v4405_v58 = vcombine.low %v341_v43, %v345_v44  ;;  %v4407_v59 = vcombine.low %v342_v47, %v346_v48 }
  0x26   : > { %3378 = vmatpush1.bf16.msra.mxu0 %v4381_v28  ;;  %3542 = vmatpush1.bf16.msra.mxu1 %v4383_v29  ;;  %v353_v54 = vld [vmem:[%s5009_s30 + $0x1a0] sm:$0xff]  ;;  %v354_v57 = vld [vmem:[%s5009_s30 + $0x1a8] sm:$0xff] }
  0x27   : > { %3379 = vmatprep.subr.bf16.mxu0 %v4390_v30  ;;  %3543 = vmatprep.subr.bf16.mxu1 %v4392_v31  ;;  %v4414_v60 = vcombine.high %v349_v53, %v353_v54  ;;  %v5046_v61 = vld [vmem:[%s5004_s26] sm:$0xff]  ;;  %v4416_v62 = vcombine.high %v350_v56, %v354_v57  ;;  %v358_v2 = vld [vmem:[%s5009_s30 + $0x1c8] sm:$0xff]  ;;  %v4413_v4 = vcombine.low %v349_v53, %v353_v54 }
  0x28   : > { %v357_v63 = vld [vmem:[%s5009_s30 + $0x1c0] sm:$0xff]  ;;  %v5052_v1 = vrot.slane %v5046_v61, %v5041_v55  ;;  %v362_v3 = vld [vmem:[%s5009_s30 + $0x1e8] sm:$0xff]  ;;  %v4415_v6 = vcombine.low %v350_v56, %v354_v57 }
  0x29   : > { %v361_v0 = vld [vmem:[%s5009_s30 + $0x1e0] sm:$0xff]  ;;  %v4424_v8 = vcombine.high %v358_v2, %v362_v3  ;;  %v366_v12 = vld [vmem:[%s5009_s30 + $0x208] sm:$0xff]  ;;  %v4423_v15 = vcombine.low %v358_v2, %v362_v3 }
  0x2a   : > { %3380 = vmatpush1.bf16.msra.mxu0 %v4389_v39  ;;  %3544 = vmatpush1.bf16.msra.mxu1 %v4391_v40  ;;  %v266_v5 = vcombine.high %v5052_v1, %v5052_v1  ;;  %v4422_v7 = vcombine.high %v357_v63, %v361_v0  ;;  %v365_v9 = vld [vmem:[%s5009_s30 + $0x200] sm:$0xff]  ;;  %v370_v13 = vld [vmem:[%s5009_s30 + $0x228] sm:$0xff]  ;;  %v4421_v14 = vcombine.low %v357_v63, %v361_v0 }
  0x2b   : > { %3381 = vmatprep.subr.bf16.mxu0 %v4398_v41  ;;  %3545 = vmatprep.subr.bf16.mxu1 %v4400_v42  ;;  %v369_v10 = vld [vmem:[%s5009_s30 + $0x220] sm:$0xff]  ;;  %v4432_v17 = vcombine.high %v366_v12, %v370_v13  ;;  %v374_v20 = vld [vmem:[%s5009_s30 + $0x248] sm:$0xff]  ;;  %v4431_v23 = vcombine.low %v366_v12, %v370_v13 }
  0x2c   : > { %v5060_v11 = vpack.c.bf16 %v266_v5, %v266_v5  ;;  %v4430_v16 = vcombine.high %v365_v9, %v369_v10  ;;  %v373_v18 = vld [vmem:[%s5009_s30 + $0x240] sm:$0xff]  ;;  %v378_v21 = vld [vmem:[%s5009_s30 + $0x268] sm:$0xff]  ;;  %v4429_v22 = vcombine.low %v365_v9, %v369_v10 }
  0x2d   : > { %v377_v19 = vld [vmem:[%s5009_s30 + $0x260] sm:$0xff]  ;;  %v4440_v25 = vcombine.high %v374_v20, %v378_v21  ;;  %v382_v28 = vld [vmem:[%s5009_s30 + $0x288] sm:$0xff]  ;;  %v4439_v31 = vcombine.low %v374_v20, %v378_v21 }
  0x2e   : > { %3382 = vmatpush1.bf16.msra.mxu0 %v4397_v49  ;;  %3546 = vmatpush1.bf16.msra.mxu1 %v4399_v50  ;;  %v4438_v24 = vcombine.high %v373_v18, %v377_v19  ;;  %v381_v26 = vld [vmem:[%s5009_s30 + $0x280] sm:$0xff]  ;;  %v386_v29 = vld [vmem:[%s5009_s30 + $0x2a8] sm:$0xff]  ;;  %v4437_v30 = vcombine.low %v373_v18, %v377_v19 }
  0x2f   : > { %3383 = vmatprep.subr.bf16.mxu0 %v4406_v51  ;;  %3547 = vmatprep.subr.bf16.mxu1 %v4408_v52  ;;  %v385_v27 = vld [vmem:[%s5009_s30 + $0x2a0] sm:$0xff]  ;;  %v4448_v33 = vcombine.high %v382_v28, %v386_v29  ;;  %v390_v36 = vld [vmem:[%s5009_s30 + $0x2c8] sm:$0xff]  ;;  %v4447_v39 = vcombine.low %v382_v28, %v386_v29 }
  0x30   : > { %3405 = vmatprep.mubr.bf16.mxu0 %v5060_v11  ;;  %3569 = vmatprep.mubr.bf16.mxu1 %v5060_v11  ;;  %v4446_v32 = vcombine.high %v381_v26, %v385_v27  ;;  %v389_v34 = vld [vmem:[%s5009_s30 + $0x2c0] sm:$0xff]  ;;  %v394_v37 = vld [vmem:[%s5009_s30 + $0x2e8] sm:$0xff]  ;;  %v4445_v38 = vcombine.low %v381_v26, %v385_v27  ;;  %v5109_v27 = vpack.c.bf16 %v5052_v1, %v5052_v1 }
  0x31   : > { %v393_v35 = vld [vmem:[%s5009_s30 + $0x2e0] sm:$0xff]  ;;  %v4456_v41 = vcombine.high %v390_v36, %v394_v37  ;;  %v398_v44 = vld [vmem:[%s5009_s30 + $0x308] sm:$0xff]  ;;  %v4455_v48 = vcombine.low %v390_v36, %v394_v37 }
  0x32   : > { %3384 = vmatpush1.bf16.msra.mxu0 %v4405_v58  ;;  %3548 = vmatpush1.bf16.msra.mxu1 %v4407_v59  ;;  %v4454_v40 = vcombine.high %v389_v34, %v393_v35  ;;  %v397_v42 = vld [vmem:[%s5009_s30 + $0x300] sm:$0xff]  ;;  %v402_v45 = vld [vmem:[%s5009_s30 + $0x328] sm:$0xff]  ;;  %v4453_v47 = vcombine.low %v389_v34, %v393_v35 }
  0x33   : > { %3385 = vmatprep.subr.bf16.mxu0 %v4414_v60  ;;  %3549 = vmatprep.subr.bf16.mxu1 %v4416_v62  ;;  %v401_v43 = vld [vmem:[%s5009_s30 + $0x320] sm:$0xff]  ;;  %v4464_v50 = vcombine.high %v398_v44, %v402_v45  ;;  %v406_v53 = vld [vmem:[%s5009_s30 + $0x348] sm:$0xff]  ;;  %v4463_v57 = vcombine.low %v398_v44, %v402_v45 }
  0x34   : > { %v4462_v49 = vcombine.high %v397_v42, %v401_v43  ;;  %v405_v51 = vld [vmem:[%s5009_s30 + $0x340] sm:$0xff]  ;;  %v410_v54 = vld [vmem:[%s5009_s30 + $0x368] sm:$0xff]  ;;  %v4461_v56 = vcombine.low %v397_v42, %v401_v43 }
  0x35   : > { %v409_v52 = vld [vmem:[%s5009_s30 + $0x360] sm:$0xff]  ;;  %v4472_v59 = vcombine.high %v406_v53, %v410_v54  ;;  %v414_v63 = vld [vmem:[%s5009_s30 + $0x388] sm:$0xff]  ;;  %v4471_v3 = vcombine.low %v406_v53, %v410_v54 }
  0x36   : > { %3386 = vmatpush1.bf16.msra.mxu0 %v4413_v4  ;;  %3550 = vmatpush1.bf16.msra.mxu1 %v4415_v6  ;;  %v4470_v58 = vcombine.high %v405_v51, %v409_v52  ;;  %v413_v60 = vld [vmem:[%s5009_s30 + $0x380] sm:$0xff]  ;;  %v418_v0 = vld [vmem:[%s5009_s30 + $0x3a8] sm:$0xff]  ;;  %v4469_v2 = vcombine.low %v405_v51, %v409_v52 }
  0x37   : > { %3387 = vmatprep.subr.bf16.mxu0 %v4422_v7  ;;  %3551 = vmatprep.subr.bf16.mxu1 %v4424_v8  ;;  %v417_v62 = vld [vmem:[%s5009_s30 + $0x3a0] sm:$0xff]  ;;  %v4480_v5 = vcombine.high %v414_v63, %v418_v0  ;;  %v251_v8 = vcombine.high %v5046_v61, %v5046_v61  ;;  %v422_v9 = vld [vmem:[%s5009_s30 + $0x3c8] sm:$0xff]  ;;  %v4479_v13 = vcombine.low %v414_v63, %v418_v0 }
  0x38   : > { %v4478_v4 = vcombine.high %v413_v60, %v417_v62  ;;  %v421_v6 = vld [vmem:[%s5009_s30 + $0x3c0] sm:$0xff]  ;;  %v426_v10 = vld [vmem:[%s5009_s30 + $0x3e8] sm:$0xff]  ;;  %v4477_v12 = vcombine.low %v413_v60, %v417_v62 }
  0x39   : > { %v425_v7 = vld [vmem:[%s5009_s30 + $0x3e0] sm:$0xff]  ;;  %v5099_v18 = vrot.slane %v251_v8, %v5041_v55  ;;  %v430_v61 = vld [vmem:[%s5009_s30 + $0x408] sm:$0xff]  ;;  %v4487_v21 = vcombine.low %v422_v9, %v426_v10 }
  0x3a   : > { %3388 = vmatpush1.bf16.msra.mxu0 %v4421_v14  ;;  %3552 = vmatpush1.bf16.msra.mxu1 %v4423_v15  ;;  %v4486_v14 = vcombine.high %v421_v6, %v425_v7  ;;  %v4488_v15 = vcombine.high %v422_v9, %v426_v10  ;;  %v434_v19 = vld [vmem:[%s5009_s30 + $0x428] sm:$0xff]  ;;  %v4485_v20 = vcombine.low %v421_v6, %v425_v7  ;;  %v445_v34 = vld [vmem:[%s5009_s30 + $0x480] sm:$0xff] }
  0x3b   : > { %3389 = vmatprep.subr.bf16.mxu0 %v4430_v16  ;;  %3553 = vmatprep.subr.bf16.mxu1 %v4432_v17  ;;  %v429_v16 = vld [vmem:[%s5009_s30 + $0x400] sm:$0xff]  ;;  %v267_v26 = vcombine.high %v5099_v18, %v5099_v18  ;;  %v438_v28 = vld [vmem:[%s5009_s30 + $0x448] sm:$0xff] }
  0x3c   : > { %v433_v17 = vld [vmem:[%s5009_s30 + $0x420] sm:$0xff]  ;;  %v442_v29 = vld [vmem:[%s5009_s30 + $0x468] sm:$0xff] }
  0x3d   : > { %v449_v35 = vld [vmem:[%s5009_s30 + $0x4a0] sm:$0xff]  ;;  %v5115_v36 = vpack.c.bf16 %v267_v26, %v267_v26  ;;  %v446_v1 = vld [vmem:[%s5009_s30 + $0x488] sm:$0xff] }
  0x3e   : > { %3390 = vmatpush1.bf16.msra.mxu0 %v4429_v22  ;;  %3554 = vmatpush1.bf16.msra.mxu1 %v4431_v23  ;;  %v4494_v22 = vcombine.high %v429_v16, %v433_v17  ;;  %v4496_v23 = vcombine.high %v430_v61, %v434_v19  ;;  %v450_v37 = vld [vmem:[%s5009_s30 + $0x4a8] sm:$0xff]  ;;  %v453_v42 = vld [vmem:[%s5009_s30 + $0x4c0] sm:$0xff] }
  0x3f   : > { %3391 = vmatprep.subr.bf16.mxu0 %v4438_v24  ;;  %3555 = vmatprep.subr.bf16.mxu1 %v4440_v25  ;;  %v437_v24 = vld [vmem:[%s5009_s30 + $0x440] sm:$0xff]  ;;  %v454_v44 = vld [vmem:[%s5009_s30 + $0x4c8] sm:$0xff] }
  0x40   : > { %v441_v25 = vld [vmem:[%s5009_s30 + $0x460] sm:$0xff]  ;;  %v458_v45 = vld [vmem:[%s5009_s30 + $0x4e8] sm:$0xff] }
  0x41   : > { %v457_v43 = vld [vmem:[%s5009_s30 + $0x4e0] sm:$0xff]  ;;  %v462_v53 = vld [vmem:[%s5009_s30 + $0x508] sm:$0xff] }
  0x42   : > { %3392 = vmatpush1.bf16.msra.mxu0 %v4437_v30  ;;  %3556 = vmatpush1.bf16.msra.mxu1 %v4439_v31  ;;  %v4493_v30 = vcombine.low %v429_v16, %v433_v17  ;;  %v4495_v31 = vcombine.low %v430_v61, %v434_v19  ;;  %v461_v51 = vld [vmem:[%s5009_s30 + $0x500] sm:$0xff]  ;;  %v466_v54 = vld [vmem:[%s5009_s30 + $0x528] sm:$0xff] }
  0x43   : > { %3393 = vmatprep.subr.bf16.mxu0 %v4446_v32  ;;  %3557 = vmatprep.subr.bf16.mxu1 %v4448_v33  ;;  %v4502_v32 = vcombine.high %v437_v24, %v441_v25  ;;  %v4504_v33 = vcombine.high %v438_v28, %v442_v29  ;;  %v465_v52 = vld [vmem:[%s5009_s30 + $0x520] sm:$0xff]  ;;  %v470_v63 = vld [vmem:[%s5009_s30 + $0x548] sm:$0xff] }
  0x44   : > { %v469_v60 = vld [vmem:[%s5009_s30 + $0x540] sm:$0xff]  ;;  %v474_v0 = vld [vmem:[%s5009_s30 + $0x568] sm:$0xff] }
  0x45   : > { %v473_v62 = vld [vmem:[%s5009_s30 + $0x560] sm:$0xff]  ;;  %v478_v8 = vld [vmem:[%s5009_s30 + $0x588] sm:$0xff] }
  0x46   : > { %3394 = vmatpush1.bf16.msra.mxu0 %v4445_v38  ;;  %3558 = vmatpush1.bf16.msra.mxu1 %v4447_v39  ;;  %v4501_v38 = vcombine.low %v437_v24, %v441_v25  ;;  %v4503_v39 = vcombine.low %v438_v28, %v442_v29  ;;  %v477_v6 = vld [vmem:[%s5009_s30 + $0x580] sm:$0xff]  ;;  %v482_v9 = vld [vmem:[%s5009_s30 + $0x5a8] sm:$0xff]  ;;  %v4533_v10 = vcombine.low %v469_v60, %v473_v62 }
  0x47   : > { %3395 = vmatprep.subr.bf16.mxu0 %v4454_v40  ;;  %3559 = vmatprep.subr.bf16.mxu1 %v4456_v41  ;;  %v4510_v40 = vcombine.high %v445_v34, %v449_v35  ;;  %v4512_v41 = vcombine.high %v446_v1, %v450_v37  ;;  %v481_v7 = vld [vmem:[%s5009_s30 + $0x5a0] sm:$0xff]  ;;  %v486_v17 = vld [vmem:[%s5009_s30 + $0x5c8] sm:$0xff] }
  0x48   : > { %v489_v16 = vld [vmem:[%s5009_s30 + $0x5e0] sm:$0xff]  ;;  %v490_v61 = vld [vmem:[%s5009_s30 + $0x5e8] sm:$0xff]  ;;  %v4541_v19 = vcombine.low %v477_v6, %v481_v7 }
  0x49   : > { %v497_v24 = vld [vmem:[%s5009_s30 + $0x620] sm:$0xff]  ;;  %v494_v25 = vld [vmem:[%s5009_s30 + $0x608] sm:$0xff]  ;;  %v4551_v29 = vcombine.low %v486_v17, %v490_v61 }
  0x4a   : > { %3396 = vmatpush1.bf16.msra.mxu0 %v4453_v47  ;;  %3560 = vmatpush1.bf16.msra.mxu1 %v4455_v48  ;;  %v4509_v47 = vcombine.low %v445_v34, %v449_v35  ;;  %v4511_v48 = vcombine.low %v446_v1, %v450_v37  ;;  %v498_v26 = vld [vmem:[%s5009_s30 + $0x628] sm:$0xff] }
  0x4b   : > { %3397 = vmatprep.subr.bf16.mxu0 %v4462_v49  ;;  %3561 = vmatprep.subr.bf16.mxu1 %v4464_v50  ;;  %v4518_v49 = vcombine.high %v453_v42, %v457_v43  ;;  %v4520_v50 = vcombine.high %v454_v44, %v458_v45  ;;  %v502_v34 = vld [vmem:[%s5009_s30 + $0x648] sm:$0xff]  ;;  %v4559_v37 = vcombine.low %v494_v25, %v498_v26 }
  0x4c   : > { %v506_v35 = vld [vmem:[%s5009_s30 + $0x668] sm:$0xff] }
  0x4e   : > { %3398 = vmatpush1.bf16.msra.mxu0 %v4461_v56  ;;  %3562 = vmatpush1.bf16.msra.mxu1 %v4463_v57  ;;  %v4517_v56 = vcombine.low %v453_v42, %v457_v43  ;;  %v4519_v57 = vcombine.low %v454_v44, %v458_v45  ;;  %v510_v42 = vld [vmem:[%s5009_s30 + $0x688] sm:$0xff]  ;;  %v4567_v45 = vcombine.low %v502_v34, %v506_v35 }
  0x4f   : > { %3399 = vmatprep.subr.bf16.mxu0 %v4470_v58  ;;  %3563 = vmatprep.subr.bf16.mxu1 %v4472_v59  ;;  %v4526_v58 = vcombine.high %v461_v51, %v465_v52  ;;  %v4528_v59 = vcombine.high %v462_v53, %v466_v54  ;;  %v514_v43 = vld [vmem:[%s5009_s30 + $0x6a8] sm:$0xff] }
  0x52   : > { %3400 = vmatpush1.bf16.msra.mxu0 %v4469_v2  ;;  %3564 = vmatpush1.bf16.msra.mxu1 %v4471_v3  ;;  %v4525_v2 = vcombine.low %v461_v51, %v465_v52  ;;  %v4527_v3 = vcombine.low %v462_v53, %v466_v54  ;;  %v518_v51 = vld [vmem:[%s5009_s30 + $0x6c8] sm:$0xff]  ;;  %v4575_v54 = vcombine.low %v510_v42, %v514_v43 }
  0x53   : > { %3401 = vmatprep.subr.bf16.mxu0 %v4478_v4  ;;  %3565 = vmatprep.subr.bf16.mxu1 %v4480_v5  ;;  %v4534_v4 = vcombine.high %v469_v60, %v473_v62  ;;  %v4536_v5 = vcombine.high %v470_v63, %v474_v0  ;;  %v522_v52 = vld [vmem:[%s5009_s30 + $0x6e8] sm:$0xff] }
  0x54   : > { %v526_v60 = vld [vmem:[%s5009_s30 + $0x708] sm:$0xff] }
  0x55   : > { %v530_v62 = vld [vmem:[%s5009_s30 + $0x728] sm:$0xff] }
  0x56   : > { %3402 = vmatpush1.bf16.msra.mxu0 %v4477_v12  ;;  %3566 = vmatpush1.bf16.msra.mxu1 %v4479_v13  ;;  %v4535_v12 = vcombine.low %v470_v63, %v474_v0  ;;  %v4542_v13 = vcombine.high %v477_v6, %v481_v7  ;;  %v4583_v0 = vcombine.low %v518_v51, %v522_v52  ;;  %v534_v6 = vld [vmem:[%s5009_s30 + $0x748] sm:$0xff] }
  0x57   : > { %3403 = vmatprep.subr.bf16.mxu0 %v4486_v14  ;;  %3567 = vmatprep.subr.bf16.mxu1 %v4488_v15  ;;  %v4544_v14 = vcombine.high %v478_v8, %v482_v9  ;;  %v485_v15 = vld [vmem:[%s5009_s30 + $0x5c0] sm:$0xff]  ;;  %v538_v7 = vld [vmem:[%s5009_s30 + $0x768] sm:$0xff] }
  0x58   : > { %v4549_v28 = vcombine.low %v485_v15, %v489_v16 }
  0x5a   : > { %3404 = vmatpush1.bf16.msra.mxu0 %v4485_v20  ;;  %3568 = vmatpush1.bf16.msra.mxu1 %v4487_v21  ;;  %v4543_v20 = vcombine.low %v478_v8, %v482_v9  ;;  %v4550_v21 = vcombine.high %v485_v15, %v489_v16  ;;  %v4591_v9 = vcombine.low %v526_v60, %v530_v62  ;;  %v542_v15 = vld [vmem:[%s5009_s30 + $0x788] sm:$0xff] }
  0x5b   : > { %3414 = vmatprep.subr.bf16.mxu0 %v4494_v22  ;;  %3578 = vmatprep.subr.bf16.mxu1 %v4496_v23  ;;  %v4552_v22 = vcombine.high %v486_v17, %v490_v61  ;;  %v493_v23 = vld [vmem:[%s5009_s30 + $0x600] sm:$0xff]  ;;  %v546_v16 = vld [vmem:[%s5009_s30 + $0x7a8] sm:$0xff]  ;;  %v4599_v61 = vcombine.low %v534_v6, %v538_v7 }
  0x5c   : > { %v4557_v1 = vcombine.low %v493_v23, %v497_v24 }
  0x5d   : > { %3406 = vmatmul.mubr.bf16.vlgmr.msra.gmra.mrb[0].mxu0 %v5109_v27  ;;  %3570 = vmatmul.mubr.bf16.vlgmr.msra.gmra.mrb[0].mxu1 %v5109_v27 }
  0x5e   : > { %3415 = vmatpush1.bf16.msra.mxu0 %v4493_v30  ;;  %3579 = vmatpush1.bf16.msra.mxu1 %v4495_v31  ;;  %v4558_v30 = vcombine.high %v493_v23, %v497_v24  ;;  %v4560_v31 = vcombine.high %v494_v25, %v498_v26  ;;  %v550_v23 = vld [vmem:[%s5009_s30 + $0x7c8] sm:$0xff] }
  0x5f   : > { %3416 = vmatprep.subr.bf16.mxu0 %v4502_v32  ;;  %3580 = vmatprep.subr.bf16.mxu1 %v4504_v33  ;;  %v501_v32 = vld [vmem:[%s5009_s30 + $0x640] sm:$0xff]  ;;  %v554_v24 = vld [vmem:[%s5009_s30 + $0x7e8] sm:$0xff] }
  0x60   : > { %3446 = vmatprep.mubr.bf16.mxu0 %v5115_v36  ;;  %3610 = vmatprep.mubr.bf16.mxu1 %v5115_v36  ;;  %v505_v33 = vld [vmem:[%s5009_s30 + $0x660] sm:$0xff]  ;;  %v5176_v25 = vld [vmem:[%s5004_s26 + $0x8] sm:$0xff] }
  0x61   : > { %v4565_v44 = vcombine.low %v501_v32, %v505_v33 }
  0x62   : > { %3417 = vmatpush1.bf16.msra.mxu0 %v4501_v38  ;;  %3581 = vmatpush1.bf16.msra.mxu1 %v4503_v39  ;;  %v4566_v38 = vcombine.high %v501_v32, %v505_v33  ;;  %v4568_v39 = vcombine.high %v502_v34, %v506_v35  ;;  %v561_v32 = vld [vmem:[%s5009_s30 + $0x820] sm:$0xff]  ;;  %v5182_v33 = vrot.slane %v5176_v25, %v5041_v55  ;;  %v558_v34 = vld [vmem:[%s5009_s30 + $0x808] sm:$0xff] }
  0x63   : > { %3418 = vmatprep.subr.bf16.mxu0 %v4510_v40  ;;  %3582 = vmatprep.subr.bf16.mxu1 %v4512_v41  ;;  %v509_v40 = vld [vmem:[%s5009_s30 + $0x680] sm:$0xff]  ;;  %v562_v35 = vld [vmem:[%s5009_s30 + $0x828] sm:$0xff] }
  0x64   : > { %v513_v41 = vld [vmem:[%s5009_s30 + $0x6a0] sm:$0xff] }
  0x65   : > { %v4573_v53 = vcombine.low %v509_v40, %v513_v41 }
  0x66   : > { %3419 = vmatpush1.bf16.msra.mxu0 %v4509_v47  ;;  %3583 = vmatpush1.bf16.msra.mxu1 %v4511_v48  ;;  %v4574_v47 = vcombine.high %v509_v40, %v513_v41  ;;  %v4576_v48 = vcombine.high %v510_v42, %v514_v43  ;;  %v565_v40 = vld [vmem:[%s5009_s30 + $0x840] sm:$0xff]  ;;  %v283_v42 = vcombine.high %v5182_v33, %v5182_v33 }
  0x67   : > { %3420 = vmatprep.subr.bf16.mxu0 %v4518_v49  ;;  %3584 = vmatprep.subr.bf16.mxu1 %v4520_v50  ;;  %v517_v49 = vld [vmem:[%s5009_s30 + $0x6c0] sm:$0xff]  ;;  %v5192_v43 = vpack.c.bf16 %v5099_v18, %v5099_v18  ;;  %v574_v18 = vld [vmem:[%s5009_s30 + $0x888] sm:$0xff] }
  0x68   : > { %v521_v50 = vld [vmem:[%s5009_s30 + $0x6e0] sm:$0xff] }
  0x69   : > { %v4581_v63 = vcombine.low %v517_v49, %v521_v50  ;;  %v569_v41 = vld [vmem:[%s5009_s30 + $0x860] sm:$0xff] }
  0x6a   : > { %3421 = vmatpush1.bf16.msra.mxu0 %v4517_v56  ;;  %3585 = vmatpush1.bf16.msra.mxu1 %v4519_v57  ;;  %v4582_v56 = vcombine.high %v517_v49, %v521_v50  ;;  %v4584_v57 = vcombine.high %v518_v51, %v522_v52  ;;  %v4630_v49 = vcombine.high %v565_v40, %v569_v41  ;;  %v573_v51 = vld [vmem:[%s5009_s30 + $0x880] sm:$0xff] }
  0x6b   : > { %3422 = vmatprep.subr.bf16.mxu0 %v4526_v58  ;;  %3586 = vmatprep.subr.bf16.mxu1 %v4528_v59  ;;  %v525_v58 = vld [vmem:[%s5009_s30 + $0x700] sm:$0xff] }
  0x6c   : > { %v529_v59 = vld [vmem:[%s5009_s30 + $0x720] sm:$0xff] }
  0x6d   : > { %v4589_v8 = vcombine.low %v525_v58, %v529_v59  ;;  %v577_v52 = vld [vmem:[%s5009_s30 + $0x8a0] sm:$0xff] }
  0x6e   : > { %3423 = vmatpush1.bf16.msra.mxu0 %v4525_v2  ;;  %3587 = vmatpush1.bf16.msra.mxu1 %v4527_v3  ;;  %v4590_v2 = vcombine.high %v525_v58, %v529_v59  ;;  %v4592_v3 = vcombine.high %v526_v60, %v530_v62  ;;  %v4638_v58 = vcombine.high %v573_v51, %v577_v52  ;;  %v581_v60 = vld [vmem:[%s5009_s30 + $0x8c0] sm:$0xff] }
  0x6f   : > { %3424 = vmatprep.subr.bf16.mxu0 %v4534_v4  ;;  %3588 = vmatprep.subr.bf16.mxu1 %v4536_v5  ;;  %v533_v4 = vld [vmem:[%s5009_s30 + $0x740] sm:$0xff] }
  0x70   : > { %v537_v5 = vld [vmem:[%s5009_s30 + $0x760] sm:$0xff] }
  0x71   : > { %v4597_v17 = vcombine.low %v533_v4, %v537_v5  ;;  %v585_v62 = vld [vmem:[%s5009_s30 + $0x8e0] sm:$0xff] }
  0x72   : > { %3425 = vmatpush1.bf16.msra.mxu0 %v4533_v10  ;;  %3589 = vmatpush1.bf16.msra.mxu1 %v4535_v12  ;;  %v4598_v10 = vcombine.high %v533_v4, %v537_v5  ;;  %v4600_v12 = vcombine.high %v534_v6, %v538_v7  ;;  %v4646_v4 = vcombine.high %v581_v60, %v585_v62  ;;  %v589_v6 = vld [vmem:[%s5009_s30 + $0x900] sm:$0xff] }
  0x73   : > { %3426 = vmatprep.subr.bf16.mxu0 %v4542_v13  ;;  %3590 = vmatprep.subr.bf16.mxu1 %v4544_v14  ;;  %v541_v13 = vld [vmem:[%s5009_s30 + $0x780] sm:$0xff] }
  0x74   : > { %v545_v14 = vld [vmem:[%s5009_s30 + $0x7a0] sm:$0xff] }
  0x75   : > { %v4605_v26 = vcombine.low %v541_v13, %v545_v14  ;;  %v593_v7 = vld [vmem:[%s5009_s30 + $0x920] sm:$0xff] }
  0x76   : > { %3427 = vmatpush1.bf16.msra.mxu0 %v4541_v19  ;;  %3591 = vmatpush1.bf16.msra.mxu1 %v4543_v20  ;;  %v4606_v19 = vcombine.high %v541_v13, %v545_v14  ;;  %v4608_v20 = vcombine.high %v542_v15, %v546_v16  ;;  %v4654_v13 = vcombine.high %v589_v6, %v593_v7 }
  0x77   : > { %3428 = vmatprep.subr.bf16.mxu0 %v4550_v21  ;;  %3592 = vmatprep.subr.bf16.mxu1 %v4552_v22  ;;  %v549_v21 = vld [vmem:[%s5009_s30 + $0x7c0] sm:$0xff] }
  0x78   : > { %v553_v22 = vld [vmem:[%s5009_s30 + $0x7e0] sm:$0xff] }
  0x7a   : > { %3429 = vmatpush1.bf16.msra.mxu0 %v4549_v28  ;;  %3593 = vmatpush1.bf16.msra.mxu1 %v4551_v29  ;;  %v4607_v28 = vcombine.low %v542_v15, %v546_v16  ;;  %v4614_v29 = vcombine.high %v549_v21, %v553_v22  ;;  %v597_v15 = vld [vmem:[%s5009_s30 + $0x940] sm:$0xff] }
  0x7b   : > { %3430 = vmatprep.subr.bf16.mxu0 %v4558_v30  ;;  %3594 = vmatprep.subr.bf16.mxu1 %v4560_v31  ;;  %v4616_v30 = vcombine.high %v550_v23, %v554_v24  ;;  %v557_v31 = vld [vmem:[%s5009_s30 + $0x800] sm:$0xff] }
  0x7c   : > { %v601_v16 = vld [vmem:[%s5009_s30 + $0x960] sm:$0xff] }
  0x7e   : > { %3431 = vmatpush1.bf16.msra.mxu0 %v4557_v1  ;;  %3595 = vmatpush1.bf16.msra.mxu1 %v4559_v37  ;;  %v4613_v1 = vcombine.low %v549_v21, %v553_v22  ;;  %v4615_v37 = vcombine.low %v550_v23, %v554_v24  ;;  %v4662_v21 = vcombine.high %v597_v15, %v601_v16  ;;  %v605_v23 = vld [vmem:[%s5009_s30 + $0x980] sm:$0xff] }
  0x7f   : > { %3432 = vmatprep.subr.bf16.mxu0 %v4566_v38  ;;  %3596 = vmatprep.subr.bf16.mxu1 %v4568_v39  ;;  %v4622_v38 = vcombine.high %v557_v31, %v561_v32  ;;  %v4624_v39 = vcombine.high %v558_v34, %v562_v35  ;;  %v609_v24 = vld [vmem:[%s5009_s30 + $0x9a0] sm:$0xff] }
  0x82   : > { %3433 = vmatpush1.bf16.msra.mxu0 %v4565_v44  ;;  %3597 = vmatpush1.bf16.msra.mxu1 %v4567_v45  ;;  %v566_v44 = vld [vmem:[%s5009_s30 + $0x848] sm:$0xff] }
  0x83   : > { %3434 = vmatprep.subr.bf16.mxu0 %v4574_v47  ;;  %3598 = vmatprep.subr.bf16.mxu1 %v4576_v48  ;;  %v570_v45 = vld [vmem:[%s5009_s30 + $0x868] sm:$0xff]  ;;  %v4621_v47 = vcombine.low %v557_v31, %v561_v32  ;;  %v4623_v48 = vcombine.low %v558_v34, %v562_v35  ;;  %v4670_v31 = vcombine.high %v605_v23, %v609_v24  ;;  %v613_v34 = vld [vmem:[%s5009_s30 + $0x9c0] sm:$0xff] }
  0x84   : > { %v4632_v50 = vcombine.high %v566_v44, %v570_v45  ;;  %v617_v35 = vld [vmem:[%s5009_s30 + $0x9e0] sm:$0xff] }
  0x86   : > { %3435 = vmatpush1.bf16.msra.mxu0 %v4573_v53  ;;  %3599 = vmatpush1.bf16.msra.mxu1 %v4575_v54  ;;  %v5198_v53 = vpack.c.bf16 %v283_v42, %v283_v42  ;;  %v578_v54 = vld [vmem:[%s5009_s30 + $0x8a8] sm:$0xff]  ;;  %v621_v42 = vld [vmem:[%s5009_s30 + $0xa00] sm:$0xff] }
  0x87   : > { %3436 = vmatprep.subr.bf16.mxu0 %v4582_v56  ;;  %3600 = vmatprep.subr.bf16.mxu1 %v4584_v57  ;;  %v4629_v56 = vcombine.low %v565_v40, %v569_v41  ;;  %v4631_v57 = vcombine.low %v566_v44, %v570_v45  ;;  %v4640_v59 = vcombine.high %v574_v18, %v578_v54  ;;  %v625_v44 = vld [vmem:[%s5009_s30 + $0xa20] sm:$0xff]  ;;  %v622_v45 = vld [vmem:[%s5009_s30 + $0xa08] sm:$0xff] }
  0x88   : > { %v4678_v40 = vcombine.high %v613_v34, %v617_v35 }
  0x8a   : > { %3437 = vmatpush1.bf16.msra.mxu0 %v4581_v63  ;;  %3601 = vmatpush1.bf16.msra.mxu1 %v4583_v0  ;;  %v582_v63 = vld [vmem:[%s5009_s30 + $0x8c8] sm:$0xff] }
  0x8b   : > { %3438 = vmatprep.subr.bf16.mxu0 %v4590_v2  ;;  %3602 = vmatprep.subr.bf16.mxu1 %v4592_v3  ;;  %v586_v0 = vld [vmem:[%s5009_s30 + $0x8e8] sm:$0xff]  ;;  %v4637_v2 = vcombine.low %v573_v51, %v577_v52  ;;  %v4639_v3 = vcombine.low %v574_v18, %v578_v54  ;;  %v629_v52 = vld [vmem:[%s5009_s30 + $0xa40] sm:$0xff] }
  0x8c   : > { %v4648_v5 = vcombine.high %v582_v63, %v586_v0  ;;  %v633_v18 = vld [vmem:[%s5009_s30 + $0xa60] sm:$0xff]  ;;  %v630_v54 = vld [vmem:[%s5009_s30 + $0xa48] sm:$0xff] }
  0x8e   : > { %3439 = vmatpush1.bf16.msra.mxu0 %v4589_v8  ;;  %3603 = vmatpush1.bf16.msra.mxu1 %v4591_v9  ;;  %v590_v8 = vld [vmem:[%s5009_s30 + $0x908] sm:$0xff] }
  0x8f   : > { %3440 = vmatprep.subr.bf16.mxu0 %v4598_v10  ;;  %3604 = vmatprep.subr.bf16.mxu1 %v4600_v12  ;;  %v594_v9 = vld [vmem:[%s5009_s30 + $0x928] sm:$0xff]  ;;  %v4645_v10 = vcombine.low %v581_v60, %v585_v62  ;;  %v4647_v12 = vcombine.low %v582_v63, %v586_v0  ;;  %v637_v62 = vld [vmem:[%s5009_s30 + $0xa80] sm:$0xff] }
  0x90   : > { %v4656_v14 = vcombine.high %v590_v8, %v594_v9  ;;  %v641_v63 = vld [vmem:[%s5009_s30 + $0xaa0] sm:$0xff]  ;;  %v638_v0 = vld [vmem:[%s5009_s30 + $0xa88] sm:$0xff] }
  0x92   : > { %3441 = vmatpush1.bf16.msra.mxu0 %v4597_v17  ;;  %3605 = vmatpush1.bf16.msra.mxu1 %v4599_v61  ;;  %v598_v17 = vld [vmem:[%s5009_s30 + $0x948] sm:$0xff] }
  0x93   : > { %3442 = vmatprep.subr.bf16.mxu0 %v4606_v19  ;;  %3606 = vmatprep.subr.bf16.mxu1 %v4608_v20  ;;  %v602_v61 = vld [vmem:[%s5009_s30 + $0x968] sm:$0xff]  ;;  %v4653_v19 = vcombine.low %v589_v6, %v593_v7  ;;  %v4655_v20 = vcombine.low %v590_v8, %v594_v9  ;;  %v645_v7 = vld [vmem:[%s5009_s30 + $0xac0] sm:$0xff] }
  0x94   : > { %v4664_v22 = vcombine.high %v598_v17, %v602_v61  ;;  %v649_v8 = vld [vmem:[%s5009_s30 + $0xae0] sm:$0xff]  ;;  %v646_v9 = vld [vmem:[%s5009_s30 + $0xac8] sm:$0xff] }
  0x96   : > { %3443 = vmatpush1.bf16.msra.mxu0 %v4605_v26  ;;  %3607 = vmatpush1.bf16.msra.mxu1 %v4607_v28  ;;  %v606_v26 = vld [vmem:[%s5009_s30 + $0x988] sm:$0xff] }
  0x97   : > { %3444 = vmatprep.subr.bf16.mxu0 %v4614_v29  ;;  %3608 = vmatprep.subr.bf16.mxu1 %v4616_v30  ;;  %v610_v28 = vld [vmem:[%s5009_s30 + $0x9a8] sm:$0xff]  ;;  %v4661_v29 = vcombine.low %v597_v15, %v601_v16  ;;  %v4663_v30 = vcombine.low %v598_v17, %v602_v61  ;;  %v653_v16 = vld [vmem:[%s5009_s30 + $0xb00] sm:$0xff] }
  0x98   : > { %v4672_v32 = vcombine.high %v606_v26, %v610_v28  ;;  %v657_v17 = vld [vmem:[%s5009_s30 + $0xb20] sm:$0xff]  ;;  %v654_v61 = vld [vmem:[%s5009_s30 + $0xb08] sm:$0xff] }
  0x9a   : > { %3445 = vmatpush1.bf16.msra.mxu0 %v4613_v1  ;;  %3609 = vmatpush1.bf16.msra.mxu1 %v4615_v37  ;;  %v614_v1 = vld [vmem:[%s5009_s30 + $0x9c8] sm:$0xff] }
  0x9b   : > { %3455 = vmatprep.subr.bf16.mxu0 %v4622_v38  ;;  %3619 = vmatprep.subr.bf16.mxu1 %v4624_v39  ;;  %v618_v37 = vld [vmem:[%s5009_s30 + $0x9e8] sm:$0xff]  ;;  %v4669_v38 = vcombine.low %v605_v23, %v609_v24  ;;  %v4671_v39 = vcombine.low %v606_v26, %v610_v28  ;;  %v661_v24 = vld [vmem:[%s5009_s30 + $0xb40] sm:$0xff] }
  0x9c   : > { %v4680_v41 = vcombine.high %v614_v1, %v618_v37  ;;  %v665_v26 = vld [vmem:[%s5009_s30 + $0xb60] sm:$0xff]  ;;  %v662_v28 = vld [vmem:[%s5009_s30 + $0xb48] sm:$0xff] }
  0x9d   : > { %3447 = vmatmul.mubr.bf16.vlgmr.msra.gmra.mrb[0].mxu0 %v5192_v43  ;;  %3611 = vmatmul.mubr.bf16.vlgmr.msra.gmra.mrb[0].mxu1 %v5192_v43 }
  0x9e   : > { %3456 = vmatpush1.bf16.msra.mxu0 %v4621_v47  ;;  %3620 = vmatpush1.bf16.msra.mxu1 %v4623_v48  ;;  %v626_v47 = vld [vmem:[%s5009_s30 + $0xa28] sm:$0xff]  ;;  %v4677_v48 = vcombine.low %v613_v34, %v617_v35  ;;  %v669_v35 = vld [vmem:[%s5009_s30 + $0xb80] sm:$0xff] }
  0x9f   : > { %3457 = vmatprep.subr.bf16.mxu0 %v4630_v49  ;;  %3621 = vmatprep.subr.bf16.mxu1 %v4632_v50  ;;  %v4679_v49 = vcombine.low %v614_v1, %v618_v37  ;;  %v4686_v50 = vcombine.high %v621_v42, %v625_v44  ;;  %v4688_v51 = vcombine.high %v622_v45, %v626_v47  ;;  %v673_v1 = vld [vmem:[%s5009_s30 + $0xba0] sm:$0xff]  ;;  %v670_v37 = vld [vmem:[%s5009_s30 + $0xb88] sm:$0xff] }
  0xa0   : > { %3487 = vmatprep.mubr.bf16.mxu0 %v5198_v53  ;;  %3651 = vmatprep.mubr.bf16.mxu1 %v5198_v53 }
  0xa2   : > { %3458 = vmatpush1.bf16.msra.mxu0 %v4629_v56  ;;  %3622 = vmatpush1.bf16.msra.mxu1 %v4631_v57  ;;  %v634_v56 = vld [vmem:[%s5009_s30 + $0xa68] sm:$0xff]  ;;  %v4685_v57 = vcombine.low %v621_v42, %v625_v44  ;;  %v677_v44 = vld [vmem:[%s5009_s30 + $0xbc0] sm:$0xff] }
  0xa3   : > { %3459 = vmatprep.subr.bf16.mxu0 %v4638_v58  ;;  %3623 = vmatprep.subr.bf16.mxu1 %v4640_v59  ;;  %v4687_v58 = vcombine.low %v622_v45, %v626_v47  ;;  %v4694_v59 = vcombine.high %v629_v52, %v633_v18  ;;  %v4696_v60 = vcombine.high %v630_v54, %v634_v56  ;;  %v681_v45 = vld [vmem:[%s5009_s30 + $0xbe0] sm:$0xff] }
  0xa4   : > { %v268_v47 = vcombine.high %v5176_v25, %v5176_v25  ;;  %v686_v25 = vld [vmem:[%s5009_s30 + $0xc08] sm:$0xff] }
  0xa6   : > { %3460 = vmatpush1.bf16.msra.mxu0 %v4637_v2  ;;  %3624 = vmatpush1.bf16.msra.mxu1 %v4639_v3  ;;  %v642_v2 = vld [vmem:[%s5009_s30 + $0xaa8] sm:$0xff]  ;;  %v4693_v3 = vcombine.low %v629_v52, %v633_v18  ;;  %v4742_v52 = vcombine.high %v677_v44, %v681_v45 }
  0xa7   : > { %3461 = vmatprep.subr.bf16.mxu0 %v4646_v4  ;;  %3625 = vmatprep.subr.bf16.mxu1 %v4648_v5  ;;  %v4695_v4 = vcombine.low %v630_v54, %v634_v56  ;;  %v4702_v5 = vcombine.high %v637_v62, %v641_v63  ;;  %v4704_v6 = vcombine.high %v638_v0, %v642_v2  ;;  %v685_v54 = vld [vmem:[%s5009_s30 + $0xc00] sm:$0xff] }
  0xa8   : > { %v689_v56 = vld [vmem:[%s5009_s30 + $0xc20] sm:$0xff] }
  0xaa   : > { %3462 = vmatpush1.bf16.msra.mxu0 %v4645_v10  ;;  %3626 = vmatpush1.bf16.msra.mxu1 %v4647_v12  ;;  %v650_v10 = vld [vmem:[%s5009_s30 + $0xae8] sm:$0xff]  ;;  %v4701_v12 = vcombine.low %v637_v62, %v641_v63  ;;  %v4750_v62 = vcombine.high %v685_v54, %v689_v56 }
  0xab   : > { %3463 = vmatprep.subr.bf16.mxu0 %v4654_v13  ;;  %3627 = vmatprep.subr.bf16.mxu1 %v4656_v14  ;;  %v4703_v13 = vcombine.low %v638_v0, %v642_v2  ;;  %v4710_v14 = vcombine.high %v645_v7, %v649_v8  ;;  %v4712_v15 = vcombine.high %v646_v9, %v650_v10  ;;  %v693_v0 = vld [vmem:[%s5009_s30 + $0xc40] sm:$0xff] }
  0xac   : > { %v697_v2 = vld [vmem:[%s5009_s30 + $0xc60] sm:$0xff] }
  0xae   : > { %3464 = vmatpush1.bf16.msra.mxu0 %v4653_v19  ;;  %3628 = vmatpush1.bf16.msra.mxu1 %v4655_v20  ;;  %v658_v19 = vld [vmem:[%s5009_s30 + $0xb28] sm:$0xff]  ;;  %v4709_v20 = vcombine.low %v645_v7, %v649_v8  ;;  %v4749_v7 = vcombine.low %v685_v54, %v689_v56 }
  0xaf   : > { %3465 = vmatprep.subr.bf16.mxu0 %v4662_v21  ;;  %3629 = vmatprep.subr.bf16.mxu1 %v4664_v22  ;;  %v4711_v21 = vcombine.low %v646_v9, %v650_v10  ;;  %v4718_v22 = vcombine.high %v653_v16, %v657_v17  ;;  %v4720_v23 = vcombine.high %v654_v61, %v658_v19 }
  0xb0   : > { %v4758_v9 = vcombine.high %v693_v0, %v697_v2 }
  0xb2   : > { %3466 = vmatpush1.bf16.msra.mxu0 %v4661_v29  ;;  %3630 = vmatpush1.bf16.msra.mxu1 %v4663_v30  ;;  %v666_v29 = vld [vmem:[%s5009_s30 + $0xb68] sm:$0xff]  ;;  %v4717_v30 = vcombine.low %v653_v16, %v657_v17  ;;  %v4757_v16 = vcombine.low %v693_v0, %v697_v2 }
  0xb3   : > { %3467 = vmatprep.subr.bf16.mxu0 %v4670_v31  ;;  %3631 = vmatprep.subr.bf16.mxu1 %v4672_v32  ;;  %v4719_v31 = vcombine.low %v654_v61, %v658_v19  ;;  %v4726_v32 = vcombine.high %v661_v24, %v665_v26  ;;  %v4728_v34 = vcombine.high %v662_v28, %v666_v29 }
  0xb6   : > { %3468 = vmatpush1.bf16.msra.mxu0 %v4669_v38  ;;  %3632 = vmatpush1.bf16.msra.mxu1 %v4671_v39  ;;  %v674_v38 = vld [vmem:[%s5009_s30 + $0xba8] sm:$0xff]  ;;  %v4725_v39 = vcombine.low %v661_v24, %v665_v26 }
  0xb7   : > { %3469 = vmatprep.subr.bf16.mxu0 %v4678_v40  ;;  %3633 = vmatprep.subr.bf16.mxu1 %v4680_v41  ;;  %v4727_v40 = vcombine.low %v662_v28, %v666_v29  ;;  %v4734_v41 = vcombine.high %v669_v35, %v673_v1  ;;  %v4736_v42 = vcombine.high %v670_v37, %v674_v38 }
  0xba   : > { %3470 = vmatpush1.bf16.msra.mxu0 %v4677_v48  ;;  %3634 = vmatpush1.bf16.msra.mxu1 %v4679_v49  ;;  %v678_v48 = vld [vmem:[%s5009_s30 + $0xbc8] sm:$0xff] }
  0xbb   : > { %3471 = vmatprep.subr.bf16.mxu0 %v4686_v50  ;;  %3635 = vmatprep.subr.bf16.mxu1 %v4688_v51  ;;  %v682_v49 = vld [vmem:[%s5009_s30 + $0xbe8] sm:$0xff]  ;;  %v4733_v50 = vcombine.low %v669_v35, %v673_v1  ;;  %v4735_v51 = vcombine.low %v670_v37, %v674_v38 }
  0xbc   : > { %v4744_v18 = vcombine.high %v678_v48, %v682_v49 }
  0xbe   : > { %3472 = vmatpush1.bf16.msra.mxu0 %v4685_v57  ;;  %3636 = vmatpush1.bf16.msra.mxu1 %v4687_v58  ;;  %v5263_v57 = vrot.slane %v268_v47, %v5041_v55  ;;  %v690_v58 = vld [vmem:[%s5009_s30 + $0xc28] sm:$0xff] }
  0xbf   : > { %3473 = vmatprep.subr.bf16.mxu0 %v4694_v59  ;;  %3637 = vmatprep.subr.bf16.mxu1 %v4696_v60  ;;  %v4741_v59 = vcombine.low %v677_v44, %v681_v45  ;;  %v4743_v60 = vcombine.low %v678_v48, %v682_v49  ;;  %v4752_v63 = vcombine.high %v686_v25, %v690_v58  ;;  %v733_v49 = vld [vmem:[%s5009_s30 + $0xd80] sm:$0xff] }
  0xc0   : > { %v4751_v8 = vcombine.low %v686_v25, %v690_v58  ;;  %v741_v58 = vld [vmem:[%s5009_s30 + $0xdc0] sm:$0xff] }
  0xc2   : > { %3474 = vmatpush1.bf16.msra.mxu0 %v4693_v3  ;;  %3638 = vmatpush1.bf16.msra.mxu1 %v4695_v4  ;;  %v284_v3 = vcombine.high %v5263_v57, %v5263_v57  ;;  %v5273_v4 = vpack.c.bf16 %v5182_v33, %v5182_v33  ;;  %v702_v33 = vld [vmem:[%s5009_s30 + $0xc88] sm:$0xff] }
  0xc3   : > { %3475 = vmatprep.subr.bf16.mxu0 %v4702_v5  ;;  %3639 = vmatprep.subr.bf16.mxu1 %v4704_v6  ;;  %v694_v5 = vld [vmem:[%s5009_s30 + $0xc48] sm:$0xff] }
  0xc4   : > { %v698_v6 = vld [vmem:[%s5009_s30 + $0xc68] sm:$0xff] }
  0xc5   : > { %v4760_v10 = vcombine.high %v694_v5, %v698_v6  ;;  %v4759_v17 = vcombine.low %v694_v5, %v698_v6  ;;  %v749_v5 = vld [vmem:[%s5009_s30 + $0xe00] sm:$0xff] }
  0xc6   : > { %3476 = vmatpush1.bf16.msra.mxu0 %v4701_v12  ;;  %3640 = vmatpush1.bf16.msra.mxu1 %v4703_v13  ;;  %v701_v12 = vld [vmem:[%s5009_s30 + $0xc80] sm:$0xff] }
  0xc7   : > { %3477 = vmatprep.subr.bf16.mxu0 %v4710_v14  ;;  %3641 = vmatprep.subr.bf16.mxu1 %v4712_v15  ;;  %v705_v13 = vld [vmem:[%s5009_s30 + $0xca0] sm:$0xff]  ;;  %v5279_v14 = vpack.c.bf16 %v284_v3, %v284_v3  ;;  %v706_v15 = vld [vmem:[%s5009_s30 + $0xca8] sm:$0xff] }
  0xc8   : > { %v4766_v61 = vcombine.high %v701_v12, %v705_v13  ;;  %v4768_v19 = vcombine.high %v702_v33, %v706_v15  ;;  %v4765_v24 = vcombine.low %v701_v12, %v705_v13  ;;  %v4767_v26 = vcombine.low %v702_v33, %v706_v15  ;;  %v753_v6 = vld [vmem:[%s5009_s30 + $0xe20] sm:$0xff] }
  0xc9   : > { %v4814_v12 = vcombine.high %v749_v5, %v753_v6  ;;  %v757_v33 = vld [vmem:[%s5009_s30 + $0xe40] sm:$0xff] }
  0xca   : > { %3478 = vmatpush1.bf16.msra.mxu0 %v4709_v20  ;;  %3642 = vmatpush1.bf16.msra.mxu1 %v4711_v21  ;;  %v709_v20 = vld [vmem:[%s5009_s30 + $0xcc0] sm:$0xff] }
  0xcb   : > { %3479 = vmatprep.subr.bf16.mxu0 %v4718_v22  ;;  %3643 = vmatprep.subr.bf16.mxu1 %v4720_v23  ;;  %v713_v21 = vld [vmem:[%s5009_s30 + $0xce0] sm:$0xff]  ;;  %v710_v22 = vld [vmem:[%s5009_s30 + $0xcc8] sm:$0xff] }
  0xcc   : > { %v714_v23 = vld [vmem:[%s5009_s30 + $0xce8] sm:$0xff]  ;;  %v4774_v28 = vcombine.high %v709_v20, %v713_v21  ;;  %v4773_v35 = vcombine.low %v709_v20, %v713_v21  ;;  %v761_v15 = vld [vmem:[%s5009_s30 + $0xe60] sm:$0xff] }
  0xcd   : > { %v4776_v29 = vcombine.high %v710_v22, %v714_v23  ;;  %v4775_v1 = vcombine.low %v710_v22, %v714_v23  ;;  %v4822_v20 = vcombine.high %v757_v33, %v761_v15  ;;  %v765_v22 = vld [vmem:[%s5009_s30 + $0xe80] sm:$0xff] }
  0xce   : > { %3480 = vmatpush1.bf16.msra.mxu0 %v4717_v30  ;;  %3644 = vmatpush1.bf16.msra.mxu1 %v4719_v31  ;;  %v717_v30 = vld [vmem:[%s5009_s30 + $0xd00] sm:$0xff] }
  0xcf   : > { %3481 = vmatprep.subr.bf16.mxu0 %v4726_v32  ;;  %3645 = vmatprep.subr.bf16.mxu1 %v4728_v34  ;;  %v721_v31 = vld [vmem:[%s5009_s30 + $0xd20] sm:$0xff]  ;;  %v718_v32 = vld [vmem:[%s5009_s30 + $0xd08] sm:$0xff] }
  0xd0   : > { %v722_v34 = vld [vmem:[%s5009_s30 + $0xd28] sm:$0xff]  ;;  %v4782_v37 = vcombine.high %v717_v30, %v721_v31  ;;  %v4781_v44 = vcombine.low %v717_v30, %v721_v31  ;;  %v769_v23 = vld [vmem:[%s5009_s30 + $0xea0] sm:$0xff] }
  0xd1   : > { %v4784_v38 = vcombine.high %v718_v32, %v722_v34  ;;  %v4783_v45 = vcombine.low %v718_v32, %v722_v34  ;;  %v4830_v30 = vcombine.high %v765_v22, %v769_v23  ;;  %v773_v32 = vld [vmem:[%s5009_s30 + $0xec0] sm:$0xff] }
  0xd2   : > { %3482 = vmatpush1.bf16.msra.mxu0 %v4725_v39  ;;  %3646 = vmatpush1.bf16.msra.mxu1 %v4727_v40  ;;  %v725_v39 = vld [vmem:[%s5009_s30 + $0xd40] sm:$0xff] }
  0xd3   : > { %3483 = vmatprep.subr.bf16.mxu0 %v4734_v41  ;;  %3647 = vmatprep.subr.bf16.mxu1 %v4736_v42  ;;  %v729_v40 = vld [vmem:[%s5009_s30 + $0xd60] sm:$0xff]  ;;  %v726_v41 = vld [vmem:[%s5009_s30 + $0xd48] sm:$0xff] }
  0xd4   : > { %v730_v42 = vld [vmem:[%s5009_s30 + $0xd68] sm:$0xff]  ;;  %v4790_v47 = vcombine.high %v725_v39, %v729_v40  ;;  %v777_v34 = vld [vmem:[%s5009_s30 + $0xee0] sm:$0xff] }
  0xd5   : > { %v4792_v48 = vcombine.high %v726_v41, %v730_v42  ;;  %v4791_v54 = vcombine.low %v726_v41, %v730_v42  ;;  %v781_v41 = vld [vmem:[%s5009_s30 + $0xf00] sm:$0xff] }
  0xd6   : > { %3484 = vmatpush1.bf16.msra.mxu0 %v4733_v50  ;;  %3648 = vmatpush1.bf16.msra.mxu1 %v4735_v51  ;;  %v737_v50 = vld [vmem:[%s5009_s30 + $0xda0] sm:$0xff]  ;;  %v734_v51 = vld [vmem:[%s5009_s30 + $0xd88] sm:$0xff] }
  0xd7   : > { %3485 = vmatprep.subr.bf16.mxu0 %v4742_v52  ;;  %3649 = vmatprep.subr.bf16.mxu1 %v4744_v18  ;;  %v738_v52 = vld [vmem:[%s5009_s30 + $0xda8] sm:$0xff]  ;;  %v4789_v18 = vcombine.low %v725_v39, %v729_v40  ;;  %v4798_v56 = vcombine.high %v733_v49, %v737_v50  ;;  %v4838_v39 = vcombine.high %v773_v32, %v777_v34  ;;  %v785_v42 = vld [vmem:[%s5009_s30 + $0xf20] sm:$0xff] }
  0xd8   : > { %v4800_v25 = vcombine.high %v734_v51, %v738_v52  ;;  %v4799_v0 = vcombine.low %v734_v51, %v738_v52  ;;  %v789_v51 = vld [vmem:[%s5009_s30 + $0xf40] sm:$0xff] }
  0xd9   : > { %v793_v52 = vld [vmem:[%s5009_s30 + $0xf60] sm:$0xff] }
  0xda   : > { %3486 = vmatpush1.bf16.msra.mxu0 %v4741_v59  ;;  %3650 = vmatpush1.bf16.msra.mxu1 %v4743_v60  ;;  %v745_v59 = vld [vmem:[%s5009_s30 + $0xde0] sm:$0xff]  ;;  %v742_v60 = vld [vmem:[%s5009_s30 + $0xdc8] sm:$0xff] }
  0xdb   : > { %3496 = vmatprep.subr.bf16.mxu0 %v4750_v62  ;;  %3660 = vmatprep.subr.bf16.mxu1 %v4752_v63  ;;  %v746_v62 = vld [vmem:[%s5009_s30 + $0xde8] sm:$0xff]  ;;  %v4797_v63 = vcombine.low %v733_v49, %v737_v50  ;;  %v4806_v2 = vcombine.high %v741_v58, %v745_v59  ;;  %v4846_v49 = vcombine.high %v781_v41, %v785_v42 }
  0xdc   : > { %v4808_v3 = vcombine.high %v742_v60, %v746_v62 }
  0xdd   : > { %3488 = vmatmul.mubr.bf16.vlgmr.msra.gmra.mrb[0].mxu0 %v5273_v4  ;;  %3652 = vmatmul.mubr.bf16.vlgmr.msra.gmra.mrb[0].mxu1 %v5273_v4 }
  0xde   : > { %3497 = vmatpush1.bf16.msra.mxu0 %v4749_v7  ;;  %3661 = vmatpush1.bf16.msra.mxu1 %v4751_v8  ;;  %v750_v7 = vld [vmem:[%s5009_s30 + $0xe08] sm:$0xff] }
  0xdf   : > { %3498 = vmatprep.subr.bf16.mxu0 %v4758_v9  ;;  %3662 = vmatprep.subr.bf16.mxu1 %v4760_v10  ;;  %v754_v8 = vld [vmem:[%s5009_s30 + $0xe28] sm:$0xff]  ;;  %v4805_v9 = vcombine.low %v741_v58, %v745_v59  ;;  %v4807_v10 = vcombine.low %v742_v60, %v746_v62  ;;  %v4854_v58 = vcombine.high %v789_v51, %v793_v52  ;;  %v797_v60 = vld [vmem:[%s5009_s30 + $0xf80] sm:$0xff] }
  0xe0   : > { %3528 = vmatprep.mubr.bf16.mxu0 %v5279_v14  ;;  %3692 = vmatprep.mubr.bf16.mxu1 %v5279_v14  ;;  %v4816_v13 = vcombine.high %v750_v7, %v754_v8  ;;  %v801_v62 = vld [vmem:[%s5009_s30 + $0xfa0] sm:$0xff] }
  0xe2   : > { %3499 = vmatpush1.bf16.msra.mxu0 %v4757_v16  ;;  %3663 = vmatpush1.bf16.msra.mxu1 %v4759_v17  ;;  %v758_v16 = vld [vmem:[%s5009_s30 + $0xe48] sm:$0xff] }
  0xe3   : > { %3500 = vmatprep.subr.bf16.mxu0 %v4766_v61  ;;  %3664 = vmatprep.subr.bf16.mxu1 %v4768_v19  ;;  %v762_v17 = vld [vmem:[%s5009_s30 + $0xe68] sm:$0xff]  ;;  %v4813_v61 = vcombine.low %v749_v5, %v753_v6  ;;  %v4815_v19 = vcombine.low %v750_v7, %v754_v8  ;;  %v4862_v5 = vcombine.high %v797_v60, %v801_v62  ;;  %v805_v7 = vld [vmem:[%s5009_s30 + $0xfc0] sm:$0xff] }
  0xe4   : > { %v4824_v21 = vcombine.high %v758_v16, %v762_v17  ;;  %v809_v8 = vld [vmem:[%s5009_s30 + $0xfe0] sm:$0xff] }
  0xe6   : > { %3501 = vmatpush1.bf16.msra.mxu0 %v4765_v24  ;;  %3665 = vmatpush1.bf16.msra.mxu1 %v4767_v26  ;;  %v766_v24 = vld [vmem:[%s5009_s30 + $0xe88] sm:$0xff] }
  0xe7   : > { %3502 = vmatprep.subr.bf16.mxu0 %v4774_v28  ;;  %3666 = vmatprep.subr.bf16.mxu1 %v4776_v29  ;;  %v770_v26 = vld [vmem:[%s5009_s30 + $0xea8] sm:$0xff]  ;;  %v4821_v28 = vcombine.low %v757_v33, %v761_v15  ;;  %v4823_v29 = vcombine.low %v758_v16, %v762_v17  ;;  %v4870_v33 = vcombine.high %v805_v7, %v809_v8  ;;  %v303_v16 = vld [vmem:[%s5009_s30 + $0x10] sm:$0xff] }
  0xe8   : > { %v4832_v31 = vcombine.high %v766_v24, %v770_v26  ;;  %v307_v17 = vld [vmem:[%s5009_s30 + $0x30] sm:$0xff] }
  0xea   : > { %3503 = vmatpush1.bf16.msra.mxu0 %v4773_v35  ;;  %3667 = vmatpush1.bf16.msra.mxu1 %v4775_v1  ;;  %v774_v35 = vld [vmem:[%s5009_s30 + $0xec8] sm:$0xff] }
  0xeb   : > { %3504 = vmatprep.subr.bf16.mxu0 %v4782_v37  ;;  %3668 = vmatprep.subr.bf16.mxu1 %v4784_v38  ;;  %v778_v1 = vld [vmem:[%s5009_s30 + $0xee8] sm:$0xff]  ;;  %v4829_v37 = vcombine.low %v765_v22, %v769_v23  ;;  %v4831_v38 = vcombine.low %v766_v24, %v770_v26  ;;  %v4370_v22 = vcombine.high %v303_v16, %v307_v17  ;;  %v311_v24 = vld [vmem:[%s5009_s30 + $0x50] sm:$0xff] }
  0xec   : > { %v4840_v40 = vcombine.high %v774_v35, %v778_v1  ;;  %v315_v26 = vld [vmem:[%s5009_s30 + $0x70] sm:$0xff] }
  0xee   : > { %3505 = vmatpush1.bf16.msra.mxu0 %v4781_v44  ;;  %3669 = vmatpush1.bf16.msra.mxu1 %v4783_v45  ;;  %v782_v44 = vld [vmem:[%s5009_s30 + $0xf08] sm:$0xff] }
  0xef   : > { %3506 = vmatprep.subr.bf16.mxu0 %v4790_v47  ;;  %3670 = vmatprep.subr.bf16.mxu1 %v4792_v48  ;;  %v786_v45 = vld [vmem:[%s5009_s30 + $0xf28] sm:$0xff]  ;;  %v4837_v47 = vcombine.low %v773_v32, %v777_v34  ;;  %v4839_v48 = vcombine.low %v774_v35, %v778_v1  ;;  %v4378_v34 = vcombine.high %v311_v24, %v315_v26  ;;  %v319_v1 = vld [vmem:[%s5009_s30 + $0x90] sm:$0xff] }
  0xf0   : > { %v4848_v50 = vcombine.high %v782_v44, %v786_v45 }
  0xf2   : > { %3507 = vmatpush1.bf16.msra.mxu0 %v4789_v18  ;;  %3671 = vmatpush1.bf16.msra.mxu1 %v4791_v54  ;;  %v790_v18 = vld [vmem:[%s5009_s30 + $0xf48] sm:$0xff] }
  0xf3   : > { %3508 = vmatprep.subr.bf16.mxu0 %v4798_v56  ;;  %3672 = vmatprep.subr.bf16.mxu1 %v4800_v25  ;;  %v794_v54 = vld [vmem:[%s5009_s30 + $0xf68] sm:$0xff]  ;;  %v4845_v56 = vcombine.low %v781_v41, %v785_v42  ;;  %v4847_v25 = vcombine.low %v782_v44, %v786_v45  ;;  %v327_v44 = vld [vmem:[%s5009_s30 + $0xd0] sm:$0xff] }
  0xf4   : > { %v4856_v59 = vcombine.high %v790_v18, %v794_v54  ;;  %v331_v45 = vld [vmem:[%s5009_s30 + $0xf0] sm:$0xff] }
  0xf6   : > { %3509 = vmatpush1.bf16.msra.mxu0 %v4797_v63  ;;  %3673 = vmatpush1.bf16.msra.mxu1 %v4799_v0  ;;  %v798_v63 = vld [vmem:[%s5009_s30 + $0xf88] sm:$0xff] }
  0xf7   : > { %3510 = vmatprep.subr.bf16.mxu0 %v4806_v2  ;;  %3674 = vmatprep.subr.bf16.mxu1 %v4808_v3  ;;  %v802_v0 = vld [vmem:[%s5009_s30 + $0xfa8] sm:$0xff]  ;;  %v4853_v2 = vcombine.low %v789_v51, %v793_v52  ;;  %v4855_v3 = vcombine.low %v790_v18, %v794_v54  ;;  %v4394_v51 = vcombine.high %v327_v44, %v331_v45  ;;  %v335_v18 = vld [vmem:[%s5009_s30 + $0x110] sm:$0xff] }
  0xf8   : > { %v4864_v6 = vcombine.high %v798_v63, %v802_v0  ;;  %v339_v54 = vld [vmem:[%s5009_s30 + $0x130] sm:$0xff] }
  0xfa   : > { %3511 = vmatpush1.bf16.msra.mxu0 %v4805_v9  ;;  %3675 = vmatpush1.bf16.msra.mxu1 %v4807_v10  ;;  %v806_v9 = vld [vmem:[%s5009_s30 + $0xfc8] sm:$0xff] }
  0xfb   : > { %3512 = vmatprep.subr.bf16.mxu0 %v4814_v12  ;;  %3676 = vmatprep.subr.bf16.mxu1 %v4816_v13  ;;  %v810_v10 = vld [vmem:[%s5009_s30 + $0xfe8] sm:$0xff]  ;;  %v4861_v12 = vcombine.low %v797_v60, %v801_v62  ;;  %v4863_v13 = vcombine.low %v798_v63, %v802_v0  ;;  %v343_v62 = vld [vmem:[%s5009_s30 + $0x150] sm:$0xff]  ;;  %v344_v0 = vld [vmem:[%s5009_s30 + $0x158] sm:$0xff] }
  0xfc   : > { %v4872_v15 = vcombine.high %v806_v9, %v810_v10  ;;  %v347_v63 = vld [vmem:[%s5009_s30 + $0x170] sm:$0xff] }
  0xfe   : > { %3513 = vmatpush1.bf16.msra.mxu0 %v4813_v61  ;;  %3677 = vmatpush1.bf16.msra.mxu1 %v4815_v19  ;;  %v304_v61 = vld [vmem:[%s5009_s30 + $0x18] sm:$0xff] }
  0xff   : > { %3514 = vmatprep.subr.bf16.mxu0 %v4822_v20  ;;  %3678 = vmatprep.subr.bf16.mxu1 %v4824_v21  ;;  %v308_v19 = vld [vmem:[%s5009_s30 + $0x38] sm:$0xff]  ;;  %v4869_v20 = vcombine.low %v805_v7, %v809_v8  ;;  %v4871_v21 = vcombine.low %v806_v9, %v810_v10  ;;  %v351_v8 = vld [vmem:[%s5009_s30 + $0x190] sm:$0xff] }
 0x100   : > { %v4372_v23 = vcombine.high %v304_v61, %v308_v19  ;;  %v4371_v32 = vcombine.low %v304_v61, %v308_v19  ;;  %v355_v9 = vld [vmem:[%s5009_s30 + $0x1b0] sm:$0xff]  ;;  %v352_v10 = vld [vmem:[%s5009_s30 + $0x198] sm:$0xff] }
 0x101   : > { %v363_v61 = vld [vmem:[%s5009_s30 + $0x1f0] sm:$0xff]  ;;  %v360_v19 = vld [vmem:[%s5009_s30 + $0x1d8] sm:$0xff] }
 0x102   : > { %3515 = vmatpush1.bf16.msra.mxu0 %v4821_v28  ;;  %3679 = vmatpush1.bf16.msra.mxu1 %v4823_v29  ;;  %v5347_v28 = vpack.c.bf16 %v5263_v57, %v5263_v57  ;;  %v312_v29 = vld [vmem:[%s5009_s30 + $0x58] sm:$0xff] }
 0x103   : > { %3516 = vmatprep.subr.bf16.mxu0 %v4830_v30  ;;  %3680 = vmatprep.subr.bf16.mxu1 %v4832_v31  ;;  %v316_v30 = vld [vmem:[%s5009_s30 + $0x78] sm:$0xff]  ;;  %v4369_v31 = vcombine.low %v303_v16, %v307_v17  ;;  %v359_v17 = vld [vmem:[%s5009_s30 + $0x1d0] sm:$0xff] }
 0x104   : > { %v4380_v35 = vcombine.high %v312_v29, %v316_v30  ;;  %v320_v57 = vld [vmem:[%s5009_s30 + $0x98] sm:$0xff] }
 0x106   : > { %3517 = vmatpush1.bf16.msra.mxu0 %v4829_v37  ;;  %3681 = vmatpush1.bf16.msra.mxu1 %v4831_v38  ;;  %v323_v37 = vld [vmem:[%s5009_s30 + $0xb0] sm:$0xff]  ;;  %v324_v38 = vld [vmem:[%s5009_s30 + $0xb8] sm:$0xff] }
 0x107   : > { %3518 = vmatprep.subr.bf16.mxu0 %v4838_v39  ;;  %3682 = vmatprep.subr.bf16.mxu1 %v4840_v40  ;;  %v4377_v39 = vcombine.low %v311_v24, %v315_v26  ;;  %v4379_v40 = vcombine.low %v312_v29, %v316_v30  ;;  %v4386_v41 = vcombine.high %v319_v1, %v323_v37  ;;  %v367_v26 = vld [vmem:[%s5009_s30 + $0x210] sm:$0xff]  ;;  %v368_v30 = vld [vmem:[%s5009_s30 + $0x218] sm:$0xff] }
 0x108   : > { %v4388_v42 = vcombine.high %v320_v57, %v324_v38  ;;  %v371_v29 = vld [vmem:[%s5009_s30 + $0x230] sm:$0xff] }
 0x10a   : > { %3519 = vmatpush1.bf16.msra.mxu0 %v4837_v47  ;;  %3683 = vmatpush1.bf16.msra.mxu1 %v4839_v48  ;;  %v328_v47 = vld [vmem:[%s5009_s30 + $0xd8] sm:$0xff] }
 0x10b   : > { %3520 = vmatprep.subr.bf16.mxu0 %v4846_v49  ;;  %3684 = vmatprep.subr.bf16.mxu1 %v4848_v50  ;;  %v332_v48 = vld [vmem:[%s5009_s30 + $0xf8] sm:$0xff]  ;;  %v4385_v49 = vcombine.low %v319_v1, %v323_v37  ;;  %v4387_v50 = vcombine.low %v320_v57, %v324_v38  ;;  %v375_v37 = vld [vmem:[%s5009_s30 + $0x250] sm:$0xff] }
 0x10c   : > { %v4396_v52 = vcombine.high %v328_v47, %v332_v48  ;;  %v379_v57 = vld [vmem:[%s5009_s30 + $0x270] sm:$0xff]  ;;  %v376_v38 = vld [vmem:[%s5009_s30 + $0x258] sm:$0xff] }
 0x10e   : > { %3521 = vmatpush1.bf16.msra.mxu0 %v4845_v56  ;;  %3685 = vmatpush1.bf16.msra.mxu1 %v4847_v25  ;;  %v336_v56 = vld [vmem:[%s5009_s30 + $0x118] sm:$0xff] }
 0x10f   : > { %3522 = vmatprep.subr.bf16.mxu0 %v4854_v58  ;;  %3686 = vmatprep.subr.bf16.mxu1 %v4856_v59  ;;  %v340_v25 = vld [vmem:[%s5009_s30 + $0x138] sm:$0xff]  ;;  %v4393_v58 = vcombine.low %v327_v44, %v331_v45  ;;  %v4402_v59 = vcombine.high %v335_v18, %v339_v54  ;;  %v383_v45 = vld [vmem:[%s5009_s30 + $0x290] sm:$0xff] }
 0x110   : > { %v4404_v60 = vcombine.high %v336_v56, %v340_v25 }
 0x112   : > { %3523 = vmatpush1.bf16.msra.mxu0 %v4853_v2  ;;  %3687 = vmatpush1.bf16.msra.mxu1 %v4855_v3  ;;  %v348_v2 = vld [vmem:[%s5009_s30 + $0x178] sm:$0xff]  ;;  %v4401_v3 = vcombine.low %v335_v18, %v339_v54  ;;  %v391_v54 = vld [vmem:[%s5009_s30 + $0x2d0] sm:$0xff] }
 0x113   : > { %3524 = vmatprep.subr.bf16.mxu0 %v4862_v5  ;;  %3688 = vmatprep.subr.bf16.mxu1 %v4864_v6  ;;  %v4403_v5 = vcombine.low %v336_v56, %v340_v25  ;;  %v4410_v6 = vcombine.high %v343_v62, %v347_v63  ;;  %v4412_v7 = vcombine.high %v344_v0, %v348_v2  ;;  %v395_v56 = vld [vmem:[%s5009_s30 + $0x2f0] sm:$0xff]  ;;  %v392_v25 = vld [vmem:[%s5009_s30 + $0x2d8] sm:$0xff] }
 0x116   : > { %3525 = vmatpush1.bf16.msra.mxu0 %v4861_v12  ;;  %3689 = vmatpush1.bf16.msra.mxu1 %v4863_v13  ;;  %v356_v12 = vld [vmem:[%s5009_s30 + $0x1b8] sm:$0xff]  ;;  %v4409_v13 = vcombine.low %v343_v62, %v347_v63  ;;  %v399_v63 = vld [vmem:[%s5009_s30 + $0x310] sm:$0xff] }
 0x117   : > { %3526 = vmatprep.subr.bf16.mxu0 %v4870_v33  ;;  %3690 = vmatprep.subr.bf16.mxu1 %v4872_v15  ;;  %v4411_v33 = vcombine.low %v344_v0, %v348_v2  ;;  %v4418_v15 = vcombine.high %v351_v8, %v355_v9  ;;  %v4420_v16 = vcombine.high %v352_v10, %v356_v12  ;;  %v403_v0 = vld [vmem:[%s5009_s30 + $0x330] sm:$0xff]  ;;  %v400_v2 = vld [vmem:[%s5009_s30 + $0x318] sm:$0xff] }
 0x11a   : > { %3527 = vmatpush1.bf16.msra.mxu0 %v4869_v20  ;;  %3691 = vmatpush1.bf16.msra.mxu1 %v4871_v21  ;;  %v364_v20 = vld [vmem:[%s5009_s30 + $0x1f8] sm:$0xff]  ;;  %v4417_v21 = vcombine.low %v351_v8, %v355_v9  ;;  %v407_v9 = vld [vmem:[%s5009_s30 + $0x350] sm:$0xff] }
 0x11b   : > { %3701 = vmatprep.subr.bf16.mxu0 %v4370_v22  ;;  %3865 = vmatprep.subr.bf16.mxu1 %v4372_v23  ;;  %v4419_v22 = vcombine.low %v352_v10, %v356_v12  ;;  %v4426_v23 = vcombine.high %v359_v17, %v363_v61  ;;  %v4428_v24 = vcombine.high %v360_v19, %v364_v20  ;;  %v411_v10 = vld [vmem:[%s5009_s30 + $0x370] sm:$0xff]  ;;  %v408_v12 = vld [vmem:[%s5009_s30 + $0x358] sm:$0xff] }
 0x11d   : > { %3529 = vmatmul.mubr.bf16.vlgmr.msra.gmra.mrb[0].mxu0 %v5347_v28  ;;  %3693 = vmatmul.mubr.bf16.vlgmr.msra.gmra.mrb[0].mxu1 %v5347_v28 }
 0x11e   : > { %3702 = vmatpush1.bf16.msra.mxu0 %v4369_v31  ;;  %3866 = vmatpush1.bf16.msra.mxu1 %v4371_v32  ;;  %v372_v31 = vld [vmem:[%s5009_s30 + $0x238] sm:$0xff]  ;;  %v4425_v32 = vcombine.low %v359_v17, %v363_v61  ;;  %v415_v61 = vld [vmem:[%s5009_s30 + $0x390] sm:$0xff] }
 0x11f   : > { %3703 = vmatprep.subr.bf16.mxu0 %v4378_v34  ;;  %3867 = vmatprep.subr.bf16.mxu1 %v4380_v35  ;;  %v4427_v34 = vcombine.low %v360_v19, %v364_v20  ;;  %v4434_v35 = vcombine.high %v367_v26, %v371_v29  ;;  %v4436_v1 = vcombine.high %v368_v30, %v372_v31  ;;  %v419_v19 = vld [vmem:[%s5009_s30 + $0x3b0] sm:$0xff]  ;;  %v416_v20 = vld [vmem:[%s5009_s30 + $0x398] sm:$0xff] }
 0x120   : > { %3733 = vmatprep.mubr.bf16.mxu0 %v5060_v11  ;;  %3897 = vmatprep.mubr.bf16.mxu1 %v5060_v11  ;;  %v4395_v11 = vcombine.low %v328_v47, %v332_v48  ;;  %v387_v47 = vld [vmem:[%s5009_s30 + $0x2b0] sm:$0xff]  ;;  %v384_v48 = vld [vmem:[%s5009_s30 + $0x298] sm:$0xff] }
 0x122   : > { %3704 = vmatpush1.bf16.msra.mxu0 %v4377_v39  ;;  %3868 = vmatpush1.bf16.msra.mxu1 %v4379_v40  ;;  %v380_v39 = vld [vmem:[%s5009_s30 + $0x278] sm:$0xff]  ;;  %v4433_v40 = vcombine.low %v367_v26, %v371_v29  ;;  %v423_v29 = vld [vmem:[%s5009_s30 + $0x3d0] sm:$0xff] }
 0x123   : > { %3705 = vmatprep.subr.bf16.mxu0 %v4386_v41  ;;  %3869 = vmatprep.subr.bf16.mxu1 %v4388_v42  ;;  %v4435_v41 = vcombine.low %v368_v30, %v372_v31  ;;  %v4442_v42 = vcombine.high %v375_v37, %v379_v57  ;;  %v4444_v44 = vcombine.high %v376_v38, %v380_v39  ;;  %v427_v30 = vld [vmem:[%s5009_s30 + $0x3f0] sm:$0xff]  ;;  %v424_v31 = vld [vmem:[%s5009_s30 + $0x3d8] sm:$0xff] }
 0x126   : > { %3706 = vmatpush1.bf16.msra.mxu0 %v4385_v49  ;;  %3870 = vmatpush1.bf16.msra.mxu1 %v4387_v50  ;;  %v388_v49 = vld [vmem:[%s5009_s30 + $0x2b8] sm:$0xff]  ;;  %v4441_v50 = vcombine.low %v375_v37, %v379_v57  ;;  %v431_v57 = vld [vmem:[%s5009_s30 + $0x410] sm:$0xff] }
 0x127   : > { %3707 = vmatprep.subr.bf16.mxu0 %v4394_v51  ;;  %3871 = vmatprep.subr.bf16.mxu1 %v4396_v52  ;;  %v4443_v51 = vcombine.low %v376_v38, %v380_v39  ;;  %v4450_v52 = vcombine.high %v383_v45, %v387_v47  ;;  %v4452_v18 = vcombine.high %v384_v48, %v388_v49  ;;  %v435_v38 = vld [vmem:[%s5009_s30 + $0x430] sm:$0xff]  ;;  %v432_v39 = vld [vmem:[%s5009_s30 + $0x418] sm:$0xff] }
 0x12a   : > { %3708 = vmatpush1.bf16.msra.mxu0 %v4393_v58  ;;  %3872 = vmatpush1.bf16.msra.mxu1 %v4395_v11  ;;  %v396_v58 = vld [vmem:[%s5009_s30 + $0x2f8] sm:$0xff]  ;;  %v4449_v11 = vcombine.low %v383_v45, %v387_v47  ;;  %v439_v47 = vld [vmem:[%s5009_s30 + $0x450] sm:$0xff] }
 0x12b   : > { %3709 = vmatprep.subr.bf16.mxu0 %v4402_v59  ;;  %3873 = vmatprep.subr.bf16.mxu1 %v4404_v60  ;;  %v4451_v59 = vcombine.low %v384_v48, %v388_v49  ;;  %v4458_v60 = vcombine.high %v391_v54, %v395_v56  ;;  %v4460_v62 = vcombine.high %v392_v25, %v396_v58  ;;  %v443_v48 = vld [vmem:[%s5009_s30 + $0x470] sm:$0xff]  ;;  %v440_v49 = vld [vmem:[%s5009_s30 + $0x458] sm:$0xff] }
 0x12e   : > { %3710 = vmatpush1.bf16.msra.mxu0 %v4401_v3  ;;  %3874 = vmatpush1.bf16.msra.mxu1 %v4403_v5  ;;  %v404_v3 = vld [vmem:[%s5009_s30 + $0x338] sm:$0xff]  ;;  %v4457_v5 = vcombine.low %v391_v54, %v395_v56  ;;  %v447_v56 = vld [vmem:[%s5009_s30 + $0x490] sm:$0xff] }
 0x12f   : > { %3711 = vmatprep.subr.bf16.mxu0 %v4410_v6  ;;  %3875 = vmatprep.subr.bf16.mxu1 %v4412_v7  ;;  %v4459_v6 = vcombine.low %v392_v25, %v396_v58  ;;  %v4466_v7 = vcombine.high %v399_v63, %v403_v0  ;;  %v4468_v8 = vcombine.high %v400_v2, %v404_v3  ;;  %v451_v25 = vld [vmem:[%s5009_s30 + $0x4b0] sm:$0xff]  ;;  %v448_v58 = vld [vmem:[%s5009_s30 + $0x498] sm:$0xff] }
 0x132   : > { %3712 = vmatpush1.bf16.msra.mxu0 %v4409_v13  ;;  %3876 = vmatpush1.bf16.msra.mxu1 %v4411_v33  ;;  %v412_v13 = vld [vmem:[%s5009_s30 + $0x378] sm:$0xff]  ;;  %v4465_v33 = vcombine.low %v399_v63, %v403_v0  ;;  %v455_v0 = vld [vmem:[%s5009_s30 + $0x4d0] sm:$0xff] }
 0x133   : > { %3713 = vmatprep.subr.bf16.mxu0 %v4418_v15  ;;  %3877 = vmatprep.subr.bf16.mxu1 %v4420_v16  ;;  %v4467_v15 = vcombine.low %v400_v2, %v404_v3  ;;  %v4474_v16 = vcombine.high %v407_v9, %v411_v10  ;;  %v4476_v17 = vcombine.high %v408_v12, %v412_v13  ;;  %v459_v2 = vld [vmem:[%s5009_s30 + $0x4f0] sm:$0xff]  ;;  %v456_v3 = vld [vmem:[%s5009_s30 + $0x4d8] sm:$0xff] }
 0x136   : > { %3714 = vmatpush1.bf16.msra.mxu0 %v4417_v21  ;;  %3878 = vmatpush1.bf16.msra.mxu1 %v4419_v22  ;;  %v420_v21 = vld [vmem:[%s5009_s30 + $0x3b8] sm:$0xff]  ;;  %v4473_v22 = vcombine.low %v407_v9, %v411_v10  ;;  %v463_v9 = vld [vmem:[%s5009_s30 + $0x510] sm:$0xff] }
 0x137   : > { %3715 = vmatprep.subr.bf16.mxu0 %v4426_v23  ;;  %3879 = vmatprep.subr.bf16.mxu1 %v4428_v24  ;;  %v4475_v23 = vcombine.low %v408_v12, %v412_v13  ;;  %v4482_v24 = vcombine.high %v415_v61, %v419_v19  ;;  %v4484_v26 = vcombine.high %v416_v20, %v420_v21  ;;  %v467_v10 = vld [vmem:[%s5009_s30 + $0x530] sm:$0xff]  ;;  %v464_v12 = vld [vmem:[%s5009_s30 + $0x518] sm:$0xff] }
 0x138   : > { %v468_v13 = vld [vmem:[%s5009_s30 + $0x538] sm:$0xff] }
 0x13a   : > { %3716 = vmatpush1.bf16.msra.mxu0 %v4425_v32  ;;  %3880 = vmatpush1.bf16.msra.mxu1 %v4427_v34  ;;  %v428_v32 = vld [vmem:[%s5009_s30 + $0x3f8] sm:$0xff]  ;;  %v4481_v34 = vcombine.low %v415_v61, %v419_v19  ;;  %v475_v61 = vld [vmem:[%s5009_s30 + $0x570] sm:$0xff] }
 0x13b   : > { %3717 = vmatprep.subr.bf16.mxu0 %v4434_v35  ;;  %3881 = vmatprep.subr.bf16.mxu1 %v4436_v1  ;;  %v4483_v35 = vcombine.low %v416_v20, %v420_v21  ;;  %v4490_v1 = vcombine.high %v423_v29, %v427_v30  ;;  %v4492_v37 = vcombine.high %v424_v31, %v428_v32  ;;  %v472_v19 = vld [vmem:[%s5009_s30 + $0x558] sm:$0xff] }
 0x13c   : > { %v476_v20 = vld [vmem:[%s5009_s30 + $0x578] sm:$0xff]  ;;  %v4529_v21 = vcombine.low %v463_v9, %v467_v10 }
 0x13e   : > { %3718 = vmatpush1.bf16.msra.mxu0 %v4433_v40  ;;  %3882 = vmatpush1.bf16.msra.mxu1 %v4435_v41  ;;  %v436_v40 = vld [vmem:[%s5009_s30 + $0x438] sm:$0xff]  ;;  %v4489_v41 = vcombine.low %v423_v29, %v427_v30  ;;  %v483_v29 = vld [vmem:[%s5009_s30 + $0x5b0] sm:$0xff] }
 0x13f   : > { %3719 = vmatprep.subr.bf16.mxu0 %v4442_v42  ;;  %3883 = vmatprep.subr.bf16.mxu1 %v4444_v44  ;;  %v4491_v42 = vcombine.low %v424_v31, %v428_v32  ;;  %v4498_v44 = vcombine.high %v431_v57, %v435_v38  ;;  %v4500_v45 = vcombine.high %v432_v39, %v436_v40  ;;  %v480_v30 = vld [vmem:[%s5009_s30 + $0x598] sm:$0xff] }
 0x140   : > { %v484_v31 = vld [vmem:[%s5009_s30 + $0x5b8] sm:$0xff] }
 0x142   : > { %3720 = vmatpush1.bf16.msra.mxu0 %v4441_v50  ;;  %3884 = vmatpush1.bf16.msra.mxu1 %v4443_v51  ;;  %v444_v50 = vld [vmem:[%s5009_s30 + $0x478] sm:$0xff]  ;;  %v4497_v51 = vcombine.low %v431_v57, %v435_v38  ;;  %v491_v57 = vld [vmem:[%s5009_s30 + $0x5f0] sm:$0xff] }
 0x143   : > { %3721 = vmatprep.subr.bf16.mxu0 %v4450_v52  ;;  %3885 = vmatprep.subr.bf16.mxu1 %v4452_v18  ;;  %v4499_v52 = vcombine.low %v432_v39, %v436_v40  ;;  %v4506_v18 = vcombine.high %v439_v47, %v443_v48  ;;  %v4508_v54 = vcombine.high %v440_v49, %v444_v50  ;;  %v488_v38 = vld [vmem:[%s5009_s30 + $0x5d8] sm:$0xff] }
 0x144   : > { %v492_v39 = vld [vmem:[%s5009_s30 + $0x5f8] sm:$0xff] }
 0x146   : > { %3722 = vmatpush1.bf16.msra.mxu0 %v4449_v11  ;;  %3886 = vmatpush1.bf16.msra.mxu1 %v4451_v59  ;;  %v452_v11 = vld [vmem:[%s5009_s30 + $0x4b8] sm:$0xff]  ;;  %v4505_v59 = vcombine.low %v439_v47, %v443_v48  ;;  %v499_v47 = vld [vmem:[%s5009_s30 + $0x630] sm:$0xff] }
 0x147   : > { %3723 = vmatprep.subr.bf16.mxu0 %v4458_v60  ;;  %3887 = vmatprep.subr.bf16.mxu1 %v4460_v62  ;;  %v4507_v60 = vcombine.low %v440_v49, %v444_v50  ;;  %v4514_v62 = vcombine.high %v447_v56, %v451_v25  ;;  %v4516_v63 = vcombine.high %v448_v58, %v452_v11  ;;  %v496_v48 = vld [vmem:[%s5009_s30 + $0x618] sm:$0xff] }
 0x148   : > { %v500_v49 = vld [vmem:[%s5009_s30 + $0x638] sm:$0xff] }
 0x14a   : > { %3724 = vmatpush1.bf16.msra.mxu0 %v4457_v5  ;;  %3888 = vmatpush1.bf16.msra.mxu1 %v4459_v6  ;;  %v460_v5 = vld [vmem:[%s5009_s30 + $0x4f8] sm:$0xff]  ;;  %v4515_v6 = vcombine.low %v448_v58, %v452_v11 }
 0x14b   : > { %3725 = vmatprep.subr.bf16.mxu0 %v4466_v7  ;;  %3889 = vmatprep.subr.bf16.mxu1 %v4468_v8  ;;  %v4522_v7 = vcombine.high %v455_v0, %v459_v2  ;;  %v4524_v8 = vcombine.high %v456_v3, %v460_v5  ;;  %v508_v58 = vld [vmem:[%s5009_s30 + $0x678] sm:$0xff] }
 0x14e   : > { %3726 = vmatpush1.bf16.msra.mxu0 %v4465_v33  ;;  %3890 = vmatpush1.bf16.msra.mxu1 %v4467_v15  ;;  %v4521_v33 = vcombine.low %v455_v0, %v459_v2  ;;  %v4530_v15 = vcombine.high %v463_v9, %v467_v10  ;;  %v515_v0 = vld [vmem:[%s5009_s30 + $0x6b0] sm:$0xff]  ;;  %v512_v2 = vld [vmem:[%s5009_s30 + $0x698] sm:$0xff] }
 0x14f   : > { %3727 = vmatprep.subr.bf16.mxu0 %v4474_v16  ;;  %3891 = vmatprep.subr.bf16.mxu1 %v4476_v17  ;;  %v4532_v16 = vcombine.high %v464_v12, %v468_v13  ;;  %v471_v17 = vld [vmem:[%s5009_s30 + $0x550] sm:$0xff]  ;;  %v520_v10 = vld [vmem:[%s5009_s30 + $0x6d8] sm:$0xff] }
 0x150   : > { %v4537_v32 = vcombine.low %v471_v17, %v475_v61  ;;  %v523_v9 = vld [vmem:[%s5009_s30 + $0x6f0] sm:$0xff] }
 0x152   : > { %3728 = vmatpush1.bf16.msra.mxu0 %v4473_v22  ;;  %3892 = vmatpush1.bf16.msra.mxu1 %v4475_v23  ;;  %v4531_v22 = vcombine.low %v464_v12, %v468_v13  ;;  %v4538_v23 = vcombine.high %v471_v17, %v475_v61  ;;  %v524_v12 = vld [vmem:[%s5009_s30 + $0x6f8] sm:$0xff]  ;;  %v531_v17 = vld [vmem:[%s5009_s30 + $0x730] sm:$0xff] }
 0x153   : > { %3729 = vmatprep.subr.bf16.mxu0 %v4482_v24  ;;  %3893 = vmatprep.subr.bf16.mxu1 %v4484_v26  ;;  %v4540_v24 = vcombine.high %v472_v19, %v476_v20  ;;  %v479_v26 = vld [vmem:[%s5009_s30 + $0x590] sm:$0xff]  ;;  %v528_v61 = vld [vmem:[%s5009_s30 + $0x718] sm:$0xff] }
 0x154   : > { %v4545_v40 = vcombine.low %v479_v26, %v483_v29 }
 0x156   : > { %3730 = vmatpush1.bf16.msra.mxu0 %v4481_v34  ;;  %3894 = vmatpush1.bf16.msra.mxu1 %v4483_v35  ;;  %v4539_v34 = vcombine.low %v472_v19, %v476_v20  ;;  %v4546_v35 = vcombine.high %v479_v26, %v483_v29  ;;  %v532_v19 = vld [vmem:[%s5009_s30 + $0x738] sm:$0xff]  ;;  %v539_v26 = vld [vmem:[%s5009_s30 + $0x770] sm:$0xff] }
 0x157   : > { %3731 = vmatprep.subr.bf16.mxu0 %v4490_v1  ;;  %3895 = vmatprep.subr.bf16.mxu1 %v4492_v37  ;;  %v4548_v1 = vcombine.high %v480_v30, %v484_v31  ;;  %v487_v37 = vld [vmem:[%s5009_s30 + $0x5d0] sm:$0xff]  ;;  %v536_v29 = vld [vmem:[%s5009_s30 + $0x758] sm:$0xff] }
 0x158   : > { %v4553_v50 = vcombine.low %v487_v37, %v491_v57 }
 0x15a   : > { %3732 = vmatpush1.bf16.msra.mxu0 %v4489_v41  ;;  %3896 = vmatpush1.bf16.msra.mxu1 %v4491_v42  ;;  %v4547_v41 = vcombine.low %v480_v30, %v484_v31  ;;  %v4554_v42 = vcombine.high %v487_v37, %v491_v57  ;;  %v540_v30 = vld [vmem:[%s5009_s30 + $0x778] sm:$0xff]  ;;  %v547_v37 = vld [vmem:[%s5009_s30 + $0x7b0] sm:$0xff] }
 0x15b   : > { %3742 = vmatprep.subr.bf16.mxu0 %v4498_v44  ;;  %3906 = vmatprep.subr.bf16.mxu1 %v4500_v45  ;;  %v4556_v44 = vcombine.high %v488_v38, %v492_v39  ;;  %v495_v45 = vld [vmem:[%s5009_s30 + $0x610] sm:$0xff]  ;;  %v544_v57 = vld [vmem:[%s5009_s30 + $0x798] sm:$0xff] }
 0x15c   : > { %v4561_v11 = vcombine.low %v495_v45, %v499_v47 }
 0x15d   : > { %3734 = vmatmul.mubr.bf16.vlgmr.msra.gmra.mrb[4].mxu0 %v5109_v27  ;;  %3898 = vmatmul.mubr.bf16.vlgmr.msra.gmra.mrb[4].mxu1 %v5109_v27  ;;  %v4513_v27 = vcombine.low %v447_v56, %v451_v25  ;;  %v507_v56 = vld [vmem:[%s5009_s30 + $0x670] sm:$0xff]  ;;  %v504_v25 = vld [vmem:[%s5009_s30 + $0x658] sm:$0xff] }
 0x15e   : > { %3743 = vmatpush1.bf16.msra.mxu0 %v4497_v51  ;;  %3907 = vmatpush1.bf16.msra.mxu1 %v4499_v52  ;;  %v4555_v51 = vcombine.low %v488_v38, %v492_v39  ;;  %v4562_v52 = vcombine.high %v495_v45, %v499_v47  ;;  %v548_v38 = vld [vmem:[%s5009_s30 + $0x7b8] sm:$0xff]  ;;  %v555_v45 = vld [vmem:[%s5009_s30 + $0x7f0] sm:$0xff] }
 0x15f   : > { %3744 = vmatprep.subr.bf16.mxu0 %v4506_v18  ;;  %3908 = vmatprep.subr.bf16.mxu1 %v4508_v54  ;;  %v4564_v18 = vcombine.high %v496_v48, %v500_v49  ;;  %v503_v54 = vld [vmem:[%s5009_s30 + $0x650] sm:$0xff]  ;;  %v552_v47 = vld [vmem:[%s5009_s30 + $0x7d8] sm:$0xff] }
 0x160   : > { %3774 = vmatprep.mubr.bf16.mxu0 %v5115_v36  ;;  %3938 = vmatprep.mubr.bf16.mxu1 %v5115_v36  ;;  %v4523_v36 = vcombine.low %v456_v3, %v460_v5  ;;  %v516_v3 = vld [vmem:[%s5009_s30 + $0x6b8] sm:$0xff]  ;;  %v4569_v5 = vcombine.low %v503_v54, %v507_v56 }
 0x162   : > { %3745 = vmatpush1.bf16.msra.mxu0 %v4505_v59  ;;  %3909 = vmatpush1.bf16.msra.mxu1 %v4507_v60  ;;  %v4563_v59 = vcombine.low %v496_v48, %v500_v49  ;;  %v4570_v60 = vcombine.high %v503_v54, %v507_v56  ;;  %v556_v48 = vld [vmem:[%s5009_s30 + $0x7f8] sm:$0xff]  ;;  %v563_v54 = vld [vmem:[%s5009_s30 + $0x830] sm:$0xff] }
 0x163   : > { %3746 = vmatprep.subr.bf16.mxu0 %v4514_v62  ;;  %3910 = vmatprep.subr.bf16.mxu1 %v4516_v63  ;;  %v4572_v62 = vcombine.high %v504_v25, %v508_v58  ;;  %v511_v63 = vld [vmem:[%s5009_s30 + $0x690] sm:$0xff]  ;;  %v560_v56 = vld [vmem:[%s5009_s30 + $0x818] sm:$0xff] }
 0x164   : > { %v4577_v13 = vcombine.low %v511_v63, %v515_v0 }
 0x166   : > { %3747 = vmatpush1.bf16.msra.mxu0 %v4513_v27  ;;  %3911 = vmatpush1.bf16.msra.mxu1 %v4515_v6  ;;  %v4571_v27 = vcombine.low %v504_v25, %v508_v58  ;;  %v4578_v6 = vcombine.high %v511_v63, %v515_v0  ;;  %v564_v25 = vld [vmem:[%s5009_s30 + $0x838] sm:$0xff]  ;;  %v571_v63 = vld [vmem:[%s5009_s30 + $0x870] sm:$0xff] }
 0x167   : > { %3748 = vmatprep.subr.bf16.mxu0 %v4522_v7  ;;  %3912 = vmatprep.subr.bf16.mxu1 %v4524_v8  ;;  %v4580_v7 = vcombine.high %v512_v2, %v516_v3  ;;  %v519_v8 = vld [vmem:[%s5009_s30 + $0x6d0] sm:$0xff]  ;;  %v568_v0 = vld [vmem:[%s5009_s30 + $0x858] sm:$0xff] }
 0x168   : > { %v4585_v20 = vcombine.low %v519_v8, %v523_v9 }
 0x16a   : > { %3749 = vmatpush1.bf16.msra.mxu0 %v4521_v33  ;;  %3913 = vmatpush1.bf16.msra.mxu1 %v4523_v36  ;;  %v4579_v33 = vcombine.low %v512_v2, %v516_v3  ;;  %v4586_v36 = vcombine.high %v519_v8, %v523_v9  ;;  %v572_v2 = vld [vmem:[%s5009_s30 + $0x878] sm:$0xff]  ;;  %v579_v8 = vld [vmem:[%s5009_s30 + $0x8b0] sm:$0xff] }
 0x16b   : > { %3750 = vmatprep.subr.bf16.mxu0 %v4530_v15  ;;  %3914 = vmatprep.subr.bf16.mxu1 %v4532_v16  ;;  %v4588_v15 = vcombine.high %v520_v10, %v524_v12  ;;  %v527_v16 = vld [vmem:[%s5009_s30 + $0x710] sm:$0xff]  ;;  %v576_v9 = vld [vmem:[%s5009_s30 + $0x898] sm:$0xff] }
 0x16c   : > { %v4593_v31 = vcombine.low %v527_v16, %v531_v17 }
 0x16e   : > { %3751 = vmatpush1.bf16.msra.mxu0 %v4529_v21  ;;  %3915 = vmatpush1.bf16.msra.mxu1 %v4531_v22  ;;  %v4587_v21 = vcombine.low %v520_v10, %v524_v12  ;;  %v4594_v22 = vcombine.high %v527_v16, %v531_v17  ;;  %v580_v10 = vld [vmem:[%s5009_s30 + $0x8b8] sm:$0xff]  ;;  %v587_v16 = vld [vmem:[%s5009_s30 + $0x8f0] sm:$0xff] }
 0x16f   : > { %3752 = vmatprep.subr.bf16.mxu0 %v4538_v23  ;;  %3916 = vmatprep.subr.bf16.mxu1 %v4540_v24  ;;  %v4596_v23 = vcombine.high %v528_v61, %v532_v19  ;;  %v535_v24 = vld [vmem:[%s5009_s30 + $0x750] sm:$0xff]  ;;  %v584_v17 = vld [vmem:[%s5009_s30 + $0x8d8] sm:$0xff] }
 0x170   : > { %v4601_v39 = vcombine.low %v535_v24, %v539_v26 }
 0x172   : > { %3753 = vmatpush1.bf16.msra.mxu0 %v4537_v32  ;;  %3917 = vmatpush1.bf16.msra.mxu1 %v4539_v34  ;;  %v4595_v32 = vcombine.low %v528_v61, %v532_v19  ;;  %v4602_v34 = vcombine.high %v535_v24, %v539_v26  ;;  %v588_v61 = vld [vmem:[%s5009_s30 + $0x8f8] sm:$0xff]  ;;  %v4643_v19 = vcombine.low %v576_v9, %v580_v10 }
 0x173   : > { %3754 = vmatprep.subr.bf16.mxu0 %v4546_v35  ;;  %3918 = vmatprep.subr.bf16.mxu1 %v4548_v1  ;;  %v4604_v35 = vcombine.high %v536_v29, %v540_v30  ;;  %v543_v1 = vld [vmem:[%s5009_s30 + $0x790] sm:$0xff]  ;;  %v592_v24 = vld [vmem:[%s5009_s30 + $0x918] sm:$0xff] }
 0x174   : > { %v4609_v49 = vcombine.low %v543_v1, %v547_v37  ;;  %v596_v26 = vld [vmem:[%s5009_s30 + $0x938] sm:$0xff] }
 0x176   : > { %3755 = vmatpush1.bf16.msra.mxu0 %v4545_v40  ;;  %3919 = vmatpush1.bf16.msra.mxu1 %v4547_v41  ;;  %v4603_v40 = vcombine.low %v536_v29, %v540_v30  ;;  %v4610_v41 = vcombine.high %v543_v1, %v547_v37  ;;  %v604_v1 = vld [vmem:[%s5009_s30 + $0x978] sm:$0xff] }
 0x177   : > { %3756 = vmatprep.subr.bf16.mxu0 %v4554_v42  ;;  %3920 = vmatprep.subr.bf16.mxu1 %v4556_v44  ;;  %v4612_v42 = vcombine.high %v544_v57, %v548_v38  ;;  %v551_v44 = vld [vmem:[%s5009_s30 + $0x7d0] sm:$0xff] }
 0x178   : > { %v4617_v58 = vcombine.low %v551_v44, %v555_v45 }
 0x17a   : > { %3757 = vmatpush1.bf16.msra.mxu0 %v4553_v50  ;;  %3921 = vmatpush1.bf16.msra.mxu1 %v4555_v51  ;;  %v4611_v50 = vcombine.low %v544_v57, %v548_v38  ;;  %v4618_v51 = vcombine.high %v551_v44, %v555_v45  ;;  %v4659_v57 = vcombine.low %v592_v24, %v596_v26  ;;  %v612_v44 = vld [vmem:[%s5009_s30 + $0x9b8] sm:$0xff] }
 0x17b   : > { %3758 = vmatprep.subr.bf16.mxu0 %v4562_v52  ;;  %3922 = vmatprep.subr.bf16.mxu1 %v4564_v18  ;;  %v4620_v52 = vcombine.high %v552_v47, %v556_v48  ;;  %v559_v18 = vld [vmem:[%s5009_s30 + $0x810] sm:$0xff] }
 0x17c   : > { %v4625_v3 = vcombine.low %v559_v18, %v563_v54 }
 0x17e   : > { %3759 = vmatpush1.bf16.msra.mxu0 %v4561_v11  ;;  %3923 = vmatpush1.bf16.msra.mxu1 %v4563_v59  ;;  %v4619_v11 = vcombine.low %v552_v47, %v556_v48  ;;  %v4626_v59 = vcombine.high %v559_v18, %v563_v54  ;;  %v620_v18 = vld [vmem:[%s5009_s30 + $0x9f8] sm:$0xff] }
 0x17f   : > { %3760 = vmatprep.subr.bf16.mxu0 %v4570_v60  ;;  %3924 = vmatprep.subr.bf16.mxu1 %v4572_v62  ;;  %v4628_v60 = vcombine.high %v560_v56, %v564_v25  ;;  %v567_v62 = vld [vmem:[%s5009_s30 + $0x850] sm:$0xff] }
 0x180   : > { %v4633_v12 = vcombine.low %v567_v62, %v571_v63 }
 0x182   : > { %3761 = vmatpush1.bf16.msra.mxu0 %v4569_v5  ;;  %3925 = vmatpush1.bf16.msra.mxu1 %v4571_v27  ;;  %v4627_v5 = vcombine.low %v560_v56, %v564_v25  ;;  %v4634_v27 = vcombine.high %v567_v62, %v571_v63  ;;  %v628_v62 = vld [vmem:[%s5009_s30 + $0xa38] sm:$0xff] }
 0x183   : > { %3762 = vmatprep.subr.bf16.mxu0 %v4578_v6  ;;  %3926 = vmatprep.subr.bf16.mxu1 %v4580_v7  ;;  %v4636_v6 = vcombine.high %v568_v0, %v572_v2  ;;  %v575_v7 = vld [vmem:[%s5009_s30 + $0x890] sm:$0xff] }
 0x186   : > { %3763 = vmatpush1.bf16.msra.mxu0 %v4577_v13  ;;  %3927 = vmatpush1.bf16.msra.mxu1 %v4579_v33  ;;  %v4635_v13 = vcombine.low %v568_v0, %v572_v2  ;;  %v4642_v33 = vcombine.high %v575_v7, %v579_v8 }
 0x187   : > { %3764 = vmatprep.subr.bf16.mxu0 %v4586_v36  ;;  %3928 = vmatprep.subr.bf16.mxu1 %v4588_v15  ;;  %v4644_v36 = vcombine.high %v576_v9, %v580_v10  ;;  %v583_v15 = vld [vmem:[%s5009_s30 + $0x8d0] sm:$0xff] }
 0x188   : > { %v4649_v29 = vcombine.low %v583_v15, %v587_v16 }
 0x18a   : > { %3765 = vmatpush1.bf16.msra.mxu0 %v4585_v20  ;;  %3929 = vmatpush1.bf16.msra.mxu1 %v4587_v21  ;;  %v4650_v20 = vcombine.high %v583_v15, %v587_v16  ;;  %v4652_v21 = vcombine.high %v584_v17, %v588_v61  ;;  %v644_v15 = vld [vmem:[%s5009_s30 + $0xab8] sm:$0xff] }
 0x18b   : > { %3766 = vmatprep.subr.bf16.mxu0 %v4594_v22  ;;  %3930 = vmatprep.subr.bf16.mxu1 %v4596_v23  ;;  %v591_v22 = vld [vmem:[%s5009_s30 + $0x910] sm:$0xff] }
 0x18c   : > { %v595_v23 = vld [vmem:[%s5009_s30 + $0x930] sm:$0xff] }
 0x18d   : > { %v4658_v30 = vcombine.high %v591_v22, %v595_v23  ;;  %v4657_v37 = vcombine.low %v591_v22, %v595_v23  ;;  %v652_v22 = vld [vmem:[%s5009_s30 + $0xaf8] sm:$0xff] }
 0x18e   : > { %3767 = vmatpush1.bf16.msra.mxu0 %v4593_v31  ;;  %3931 = vmatpush1.bf16.msra.mxu1 %v4595_v32  ;;  %v4660_v31 = vcombine.high %v592_v24, %v596_v26  ;;  %v599_v32 = vld [vmem:[%s5009_s30 + $0x950] sm:$0xff] }
 0x18f   : > { %3768 = vmatprep.subr.bf16.mxu0 %v4602_v34  ;;  %3932 = vmatprep.subr.bf16.mxu1 %v4604_v35  ;;  %v603_v34 = vld [vmem:[%s5009_s30 + $0x970] sm:$0xff]  ;;  %v600_v35 = vld [vmem:[%s5009_s30 + $0x958] sm:$0xff] }
 0x190   : > { %v4666_v38 = vcombine.high %v599_v32, %v603_v34  ;;  %v4665_v45 = vcombine.low %v599_v32, %v603_v34  ;;  %v4667_v47 = vcombine.low %v600_v35, %v604_v1  ;;  %v660_v32 = vld [vmem:[%s5009_s30 + $0xb38] sm:$0xff] }
 0x192   : > { %3769 = vmatpush1.bf16.msra.mxu0 %v4601_v39  ;;  %3933 = vmatpush1.bf16.msra.mxu1 %v4603_v40  ;;  %v4668_v39 = vcombine.high %v600_v35, %v604_v1  ;;  %v607_v40 = vld [vmem:[%s5009_s30 + $0x990] sm:$0xff] }
 0x193   : > { %3770 = vmatprep.subr.bf16.mxu0 %v4610_v41  ;;  %3934 = vmatprep.subr.bf16.mxu1 %v4612_v42  ;;  %v611_v41 = vld [vmem:[%s5009_s30 + $0x9b0] sm:$0xff]  ;;  %v608_v42 = vld [vmem:[%s5009_s30 + $0x998] sm:$0xff] }
 0x194   : > { %v4674_v48 = vcombine.high %v607_v40, %v611_v41  ;;  %v4673_v54 = vcombine.low %v607_v40, %v611_v41  ;;  %v4675_v56 = vcombine.low %v608_v42, %v612_v44  ;;  %v668_v40 = vld [vmem:[%s5009_s30 + $0xb78] sm:$0xff] }
 0x196   : > { %3771 = vmatpush1.bf16.msra.mxu0 %v4609_v49  ;;  %3935 = vmatpush1.bf16.msra.mxu1 %v4611_v50  ;;  %v4676_v49 = vcombine.high %v608_v42, %v612_v44  ;;  %v615_v50 = vld [vmem:[%s5009_s30 + $0x9d0] sm:$0xff] }
 0x197   : > { %3772 = vmatprep.subr.bf16.mxu0 %v4618_v51  ;;  %3936 = vmatprep.subr.bf16.mxu1 %v4620_v52  ;;  %v619_v51 = vld [vmem:[%s5009_s30 + $0x9f0] sm:$0xff]  ;;  %v616_v52 = vld [vmem:[%s5009_s30 + $0x9d8] sm:$0xff] }
 0x198   : > { %v4682_v25 = vcombine.high %v615_v50, %v619_v51  ;;  %v4681_v63 = vcombine.low %v615_v50, %v619_v51  ;;  %v4683_v0 = vcombine.low %v616_v52, %v620_v18  ;;  %v676_v50 = vld [vmem:[%s5009_s30 + $0xbb8] sm:$0xff] }
 0x19a   : > { %3773 = vmatpush1.bf16.msra.mxu0 %v4617_v58  ;;  %3937 = vmatpush1.bf16.msra.mxu1 %v4619_v11  ;;  %v4684_v58 = vcombine.high %v616_v52, %v620_v18  ;;  %v623_v11 = vld [vmem:[%s5009_s30 + $0xa10] sm:$0xff] }
 0x19b   : > { %3783 = vmatprep.subr.bf16.mxu0 %v4626_v59  ;;  %3947 = vmatprep.subr.bf16.mxu1 %v4628_v60  ;;  %v627_v59 = vld [vmem:[%s5009_s30 + $0xa30] sm:$0xff]  ;;  %v624_v60 = vld [vmem:[%s5009_s30 + $0xa18] sm:$0xff] }
 0x19c   : > { %v4690_v2 = vcombine.high %v623_v11, %v627_v59  ;;  %v4691_v9 = vcombine.low %v624_v60, %v628_v62 }
 0x19d   : > { %3775 = vmatmul.mubr.bf16.vlgmr.msra.gmra.mrb[4].mxu0 %v5192_v43  ;;  %3939 = vmatmul.mubr.bf16.vlgmr.msra.gmra.mrb[4].mxu1 %v5192_v43  ;;  %v4641_v43 = vcombine.low %v575_v7, %v579_v8  ;;  %v636_v7 = vld [vmem:[%s5009_s30 + $0xa78] sm:$0xff]  ;;  %v4689_v8 = vcombine.low %v623_v11, %v627_v59 }
 0x19e   : > { %3784 = vmatpush1.bf16.msra.mxu0 %v4625_v3  ;;  %3948 = vmatpush1.bf16.msra.mxu1 %v4627_v5  ;;  %v4692_v3 = vcombine.high %v624_v60, %v628_v62  ;;  %v631_v5 = vld [vmem:[%s5009_s30 + $0xa50] sm:$0xff]  ;;  %v684_v11 = vld [vmem:[%s5009_s30 + $0xbf8] sm:$0xff] }
 0x19f   : > { %3785 = vmatprep.subr.bf16.mxu0 %v4634_v27  ;;  %3949 = vmatprep.subr.bf16.mxu1 %v4636_v6  ;;  %v635_v27 = vld [vmem:[%s5009_s30 + $0xa70] sm:$0xff]  ;;  %v632_v6 = vld [vmem:[%s5009_s30 + $0xa58] sm:$0xff] }
 0x1a0   : > { %3815 = vmatprep.mubr.bf16.mxu0 %v5198_v53  ;;  %3979 = vmatprep.mubr.bf16.mxu1 %v5198_v53  ;;  %v4651_v53 = vcombine.low %v584_v17, %v588_v61  ;;  %v4698_v10 = vcombine.high %v631_v5, %v635_v27  ;;  %v4697_v16 = vcombine.low %v631_v5, %v635_v27  ;;  %v692_v5 = vld [vmem:[%s5009_s30 + $0xc38] sm:$0xff] }
 0x1a1   : > { %v4699_v17 = vcombine.low %v632_v6, %v636_v7 }
 0x1a2   : > { %3786 = vmatpush1.bf16.msra.mxu0 %v4633_v12  ;;  %3950 = vmatpush1.bf16.msra.mxu1 %v4635_v13  ;;  %v4700_v12 = vcombine.high %v632_v6, %v636_v7  ;;  %v639_v13 = vld [vmem:[%s5009_s30 + $0xa90] sm:$0xff] }
 0x1a3   : > { %3787 = vmatprep.subr.bf16.mxu0 %v4642_v33  ;;  %3951 = vmatprep.subr.bf16.mxu1 %v4644_v36  ;;  %v643_v33 = vld [vmem:[%s5009_s30 + $0xab0] sm:$0xff]  ;;  %v640_v36 = vld [vmem:[%s5009_s30 + $0xa98] sm:$0xff] }
 0x1a4   : > { %v4706_v61 = vcombine.high %v639_v13, %v643_v33  ;;  %v4705_v23 = vcombine.low %v639_v13, %v643_v33  ;;  %v4707_v24 = vcombine.low %v640_v36, %v644_v15  ;;  %v700_v13 = vld [vmem:[%s5009_s30 + $0xc78] sm:$0xff] }
 0x1a6   : > { %3788 = vmatpush1.bf16.msra.mxu0 %v4641_v43  ;;  %3952 = vmatpush1.bf16.msra.mxu1 %v4643_v19  ;;  %v4708_v43 = vcombine.high %v640_v36, %v644_v15  ;;  %v647_v19 = vld [vmem:[%s5009_s30 + $0xad0] sm:$0xff] }
 0x1a7   : > { %3789 = vmatprep.subr.bf16.mxu0 %v4650_v20  ;;  %3953 = vmatprep.subr.bf16.mxu1 %v4652_v21  ;;  %v651_v20 = vld [vmem:[%s5009_s30 + $0xaf0] sm:$0xff]  ;;  %v648_v21 = vld [vmem:[%s5009_s30 + $0xad8] sm:$0xff] }
 0x1a8   : > { %v4714_v26 = vcombine.high %v647_v19, %v651_v20  ;;  %v4713_v34 = vcombine.low %v647_v19, %v651_v20  ;;  %v4715_v35 = vcombine.low %v648_v21, %v652_v22  ;;  %v708_v19 = vld [vmem:[%s5009_s30 + $0xcb8] sm:$0xff] }
 0x1aa   : > { %3790 = vmatpush1.bf16.msra.mxu0 %v4649_v29  ;;  %3954 = vmatpush1.bf16.msra.mxu1 %v4651_v53  ;;  %v4716_v29 = vcombine.high %v648_v21, %v652_v22  ;;  %v655_v53 = vld [vmem:[%s5009_s30 + $0xb10] sm:$0xff] }
 0x1ab   : > { %3791 = vmatprep.subr.bf16.mxu0 %v4658_v30  ;;  %3955 = vmatprep.subr.bf16.mxu1 %v4660_v31  ;;  %v659_v30 = vld [vmem:[%s5009_s30 + $0xb30] sm:$0xff]  ;;  %v656_v31 = vld [vmem:[%s5009_s30 + $0xb18] sm:$0xff] }
 0x1ac   : > { %v4722_v1 = vcombine.high %v655_v53, %v659_v30  ;;  %v4721_v41 = vcombine.low %v655_v53, %v659_v30  ;;  %v4723_v42 = vcombine.low %v656_v31, %v660_v32  ;;  %v716_v53 = vld [vmem:[%s5009_s30 + $0xcf8] sm:$0xff] }
 0x1ae   : > { %3792 = vmatpush1.bf16.msra.mxu0 %v4657_v37  ;;  %3956 = vmatpush1.bf16.msra.mxu1 %v4659_v57  ;;  %v4724_v37 = vcombine.high %v656_v31, %v660_v32  ;;  %v663_v57 = vld [vmem:[%s5009_s30 + $0xb50] sm:$0xff] }
 0x1af   : > { %3793 = vmatprep.subr.bf16.mxu0 %v4666_v38  ;;  %3957 = vmatprep.subr.bf16.mxu1 %v4668_v39  ;;  %v667_v38 = vld [vmem:[%s5009_s30 + $0xb70] sm:$0xff]  ;;  %v664_v39 = vld [vmem:[%s5009_s30 + $0xb58] sm:$0xff] }
 0x1b0   : > { %v4730_v44 = vcombine.high %v663_v57, %v667_v38  ;;  %v4729_v51 = vcombine.low %v663_v57, %v667_v38  ;;  %v4731_v52 = vcombine.low %v664_v39, %v668_v40 }
 0x1b2   : > { %3794 = vmatpush1.bf16.msra.mxu0 %v4665_v45  ;;  %3958 = vmatpush1.bf16.msra.mxu1 %v4667_v47  ;;  %v4732_v45 = vcombine.high %v664_v39, %v668_v40  ;;  %v671_v47 = vld [vmem:[%s5009_s30 + $0xb90] sm:$0xff] }
 0x1b3   : > { %3795 = vmatprep.subr.bf16.mxu0 %v4674_v48  ;;  %3959 = vmatprep.subr.bf16.mxu1 %v4676_v49  ;;  %v675_v48 = vld [vmem:[%s5009_s30 + $0xbb0] sm:$0xff]  ;;  %v672_v49 = vld [vmem:[%s5009_s30 + $0xb98] sm:$0xff] }
 0x1b4   : > { %v4738_v18 = vcombine.high %v671_v47, %v675_v48  ;;  %v4737_v59 = vcombine.low %v671_v47, %v675_v48  ;;  %v4739_v60 = vcombine.low %v672_v49, %v676_v50  ;;  %v727_v40 = vld [vmem:[%s5009_s30 + $0xd50] sm:$0xff] }
 0x1b6   : > { %3796 = vmatpush1.bf16.msra.mxu0 %v4673_v54  ;;  %3960 = vmatpush1.bf16.msra.mxu1 %v4675_v56  ;;  %v4740_v54 = vcombine.high %v672_v49, %v676_v50  ;;  %v679_v56 = vld [vmem:[%s5009_s30 + $0xbd0] sm:$0xff] }
 0x1b7   : > { %3797 = vmatprep.subr.bf16.mxu0 %v4682_v25  ;;  %3961 = vmatprep.subr.bf16.mxu1 %v4684_v58  ;;  %v683_v25 = vld [vmem:[%s5009_s30 + $0xbf0] sm:$0xff]  ;;  %v680_v58 = vld [vmem:[%s5009_s30 + $0xbd8] sm:$0xff] }
 0x1b8   : > { %v4746_v62 = vcombine.high %v679_v56, %v683_v25  ;;  %v4745_v27 = vcombine.low %v679_v56, %v683_v25  ;;  %v4747_v6 = vcombine.low %v680_v58, %v684_v11  ;;  %v735_v50 = vld [vmem:[%s5009_s30 + $0xd90] sm:$0xff] }
 0x1ba   : > { %3798 = vmatpush1.bf16.msra.mxu0 %v4681_v63  ;;  %3962 = vmatpush1.bf16.msra.mxu1 %v4683_v0  ;;  %v4748_v63 = vcombine.high %v680_v58, %v684_v11  ;;  %v687_v0 = vld [vmem:[%s5009_s30 + $0xc10] sm:$0xff] }
 0x1bb   : > { %3799 = vmatprep.subr.bf16.mxu0 %v4690_v2  ;;  %3963 = vmatprep.subr.bf16.mxu1 %v4692_v3  ;;  %v691_v2 = vld [vmem:[%s5009_s30 + $0xc30] sm:$0xff]  ;;  %v688_v3 = vld [vmem:[%s5009_s30 + $0xc18] sm:$0xff] }
 0x1bc   : > { %v4754_v7 = vcombine.high %v687_v0, %v691_v2  ;;  %v4753_v33 = vcombine.low %v687_v0, %v691_v2  ;;  %v4755_v36 = vcombine.low %v688_v3, %v692_v5  ;;  %v744_v0 = vld [vmem:[%s5009_s30 + $0xdd8] sm:$0xff] }
 0x1bd   : > { %v748_v2 = vld [vmem:[%s5009_s30 + $0xdf8] sm:$0xff] }
 0x1be   : > { %3800 = vmatpush1.bf16.msra.mxu0 %v4689_v8  ;;  %3964 = vmatpush1.bf16.msra.mxu1 %v4691_v9  ;;  %v4756_v8 = vcombine.high %v688_v3, %v692_v5  ;;  %v695_v9 = vld [vmem:[%s5009_s30 + $0xc50] sm:$0xff] }
 0x1bf   : > { %3801 = vmatprep.subr.bf16.mxu0 %v4698_v10  ;;  %3965 = vmatprep.subr.bf16.mxu1 %v4700_v12  ;;  %v699_v10 = vld [vmem:[%s5009_s30 + $0xc70] sm:$0xff]  ;;  %v696_v12 = vld [vmem:[%s5009_s30 + $0xc58] sm:$0xff] }
 0x1c0   : > { %v4762_v15 = vcombine.high %v695_v9, %v699_v10  ;;  %v4761_v20 = vcombine.low %v695_v9, %v699_v10  ;;  %v4763_v21 = vcombine.low %v696_v12, %v700_v13 }
 0x1c2   : > { %3802 = vmatpush1.bf16.msra.mxu0 %v4697_v16  ;;  %3966 = vmatpush1.bf16.msra.mxu1 %v4699_v17  ;;  %v4764_v16 = vcombine.high %v696_v12, %v700_v13  ;;  %v703_v17 = vld [vmem:[%s5009_s30 + $0xc90] sm:$0xff] }
 0x1c3   : > { %3803 = vmatprep.subr.bf16.mxu0 %v4706_v61  ;;  %3967 = vmatprep.subr.bf16.mxu1 %v4708_v43  ;;  %v707_v61 = vld [vmem:[%s5009_s30 + $0xcb0] sm:$0xff]  ;;  %v704_v43 = vld [vmem:[%s5009_s30 + $0xc98] sm:$0xff] }
 0x1c4   : > { %v4770_v22 = vcombine.high %v703_v17, %v707_v61  ;;  %v4771_v30 = vcombine.low %v704_v43, %v708_v19 }
 0x1c6   : > { %3804 = vmatpush1.bf16.msra.mxu0 %v4705_v23  ;;  %3968 = vmatpush1.bf16.msra.mxu1 %v4707_v24  ;;  %v4772_v23 = vcombine.high %v704_v43, %v708_v19  ;;  %v711_v24 = vld [vmem:[%s5009_s30 + $0xcd0] sm:$0xff]  ;;  %v756_v43 = vld [vmem:[%s5009_s30 + $0xe38] sm:$0xff]  ;;  %v245_v19 = vld [vmem:[#allocation2] sm:$0xff] }
 0x1c7   : > { %3805 = vmatprep.subr.bf16.mxu0 %v4714_v26  ;;  %3969 = vmatprep.subr.bf16.mxu1 %v4716_v29  ;;  %v715_v26 = vld [vmem:[%s5009_s30 + $0xcf0] sm:$0xff]  ;;  %v712_v29 = vld [vmem:[%s5009_s30 + $0xcd8] sm:$0xff] }
 0x1c8   : > { %v4778_v31 = vcombine.high %v711_v24, %v715_v26  ;;  %v4780_v32 = vcombine.high %v712_v29, %v716_v53  ;;  %v4777_v57 = vcombine.low %v711_v24, %v715_v26  ;;  %v759_v26 = vld [vmem:[%s5009_s30 + $0xe50] sm:$0xff] }
 0x1ca   : > { %3806 = vmatpush1.bf16.msra.mxu0 %v4713_v34  ;;  %3970 = vmatpush1.bf16.msra.mxu1 %v4715_v35  ;;  %v719_v34 = vld [vmem:[%s5009_s30 + $0xd10] sm:$0xff] }
 0x1cb   : > { %3807 = vmatprep.subr.bf16.mxu0 %v4722_v1  ;;  %3971 = vmatprep.subr.bf16.mxu1 %v4724_v37  ;;  %v723_v35 = vld [vmem:[%s5009_s30 + $0xd30] sm:$0xff]  ;;  %v720_v1 = vld [vmem:[%s5009_s30 + $0xd18] sm:$0xff] }
 0x1cc   : > { %v724_v37 = vld [vmem:[%s5009_s30 + $0xd38] sm:$0xff]  ;;  %v4786_v38 = vcombine.high %v719_v34, %v723_v35 }
 0x1cd   : > { %v4788_v39 = vcombine.high %v720_v1, %v724_v37  ;;  %v4787_v47 = vcombine.low %v720_v1, %v724_v37  ;;  %v767_v1 = vld [vmem:[%s5009_s30 + $0xe90] sm:$0xff] }
 0x1ce   : > { %3808 = vmatpush1.bf16.msra.mxu0 %v4721_v41  ;;  %3972 = vmatpush1.bf16.msra.mxu1 %v4723_v42  ;;  %v731_v41 = vld [vmem:[%s5009_s30 + $0xd70] sm:$0xff]  ;;  %v728_v42 = vld [vmem:[%s5009_s30 + $0xd58] sm:$0xff] }
 0x1cf   : > { %3809 = vmatprep.subr.bf16.mxu0 %v4730_v44  ;;  %3973 = vmatprep.subr.bf16.mxu1 %v4732_v45  ;;  %v732_v44 = vld [vmem:[%s5009_s30 + $0xd78] sm:$0xff]  ;;  %v4785_v45 = vcombine.low %v719_v34, %v723_v35  ;;  %v4794_v48 = vcombine.high %v727_v40, %v731_v41  ;;  %v771_v37 = vld [vmem:[%s5009_s30 + $0xeb0] sm:$0xff] }
 0x1d0   : > { %v4796_v49 = vcombine.high %v728_v42, %v732_v44  ;;  %v4795_v56 = vcombine.low %v728_v42, %v732_v44  ;;  %v775_v42 = vld [vmem:[%s5009_s30 + $0xed0] sm:$0xff] }
 0x1d1   : > { %v779_v44 = vld [vmem:[%s5009_s30 + $0xef0] sm:$0xff] }
 0x1d2   : > { %3810 = vmatpush1.bf16.msra.mxu0 %v4729_v51  ;;  %3974 = vmatpush1.bf16.msra.mxu1 %v4731_v52  ;;  %v739_v51 = vld [vmem:[%s5009_s30 + $0xdb0] sm:$0xff]  ;;  %v736_v52 = vld [vmem:[%s5009_s30 + $0xd98] sm:$0xff] }
 0x1d3   : > { %3811 = vmatprep.subr.bf16.mxu0 %v4738_v18  ;;  %3975 = vmatprep.subr.bf16.mxu1 %v4740_v54  ;;  %v740_v18 = vld [vmem:[%s5009_s30 + $0xdb8] sm:$0xff]  ;;  %v4793_v54 = vcombine.low %v727_v40, %v731_v41  ;;  %v4802_v25 = vcombine.high %v735_v50, %v739_v51  ;;  %v4834_v40 = vcombine.high %v767_v1, %v771_v37 }
 0x1d4   : > { %v4804_v11 = vcombine.high %v736_v52, %v740_v18  ;;  %v4803_v10 = vcombine.low %v736_v52, %v740_v18  ;;  %v783_v52 = vld [vmem:[%s5009_s30 + $0xf10] sm:$0xff] }
 0x1d5   : > { %v787_v18 = vld [vmem:[%s5009_s30 + $0xf30] sm:$0xff] }
 0x1d6   : > { %3812 = vmatpush1.bf16.msra.mxu0 %v4737_v59  ;;  %3976 = vmatpush1.bf16.msra.mxu1 %v4739_v60  ;;  %v743_v59 = vld [vmem:[%s5009_s30 + $0xdd0] sm:$0xff] }
 0x1d7   : > { %3813 = vmatprep.subr.bf16.mxu0 %v4746_v62  ;;  %3977 = vmatprep.subr.bf16.mxu1 %v4748_v63  ;;  %v747_v60 = vld [vmem:[%s5009_s30 + $0xdf0] sm:$0xff] }
 0x1d8   : > { %v4810_v12 = vcombine.high %v743_v59, %v747_v60 }
 0x1da   : > { %3814 = vmatpush1.bf16.msra.mxu0 %v4745_v27  ;;  %3978 = vmatpush1.bf16.msra.mxu1 %v4747_v6  ;;  %v4801_v6 = vcombine.low %v735_v50, %v739_v51  ;;  %v4842_v50 = vcombine.high %v775_v42, %v779_v44 }
 0x1db   : > { %3824 = vmatprep.subr.bf16.mxu0 %v4754_v7  ;;  %3988 = vmatprep.subr.bf16.mxu1 %v4756_v8 }
 0x1dd   : > { %3816 = vmatmul.mubr.bf16.vlgmr.msra.gmra.mrb[4].mxu0 %v5273_v4  ;;  %3980 = vmatmul.mubr.bf16.vlgmr.msra.gmra.mrb[4].mxu1 %v5273_v4  ;;  %v4769_v4 = vcombine.low %v703_v17, %v707_v61  ;;  %v752_v61 = vld [vmem:[%s5009_s30 + $0xe18] sm:$0xff] }
 0x1de   : > { %3825 = vmatpush1.bf16.msra.mxu0 %v4753_v33  ;;  %3989 = vmatpush1.bf16.msra.mxu1 %v4755_v36  ;;  %v4812_v36 = vcombine.high %v744_v0, %v748_v2  ;;  %v4820_v24 = vcombine.high %v752_v61, %v756_v43 }
 0x1df   : > { %3826 = vmatprep.subr.bf16.mxu0 %v4762_v15  ;;  %3990 = vmatprep.subr.bf16.mxu1 %v4764_v16  ;;  %v751_v15 = vld [vmem:[%s5009_s30 + $0xe10] sm:$0xff] }
 0x1e0   : > { %3856 = vmatprep.mubr.bf16.mxu0 %v5279_v14  ;;  %4020 = vmatprep.mubr.bf16.mxu1 %v5279_v14  ;;  %v4779_v14 = vcombine.low %v712_v29, %v716_v53  ;;  %v755_v16 = vld [vmem:[%s5009_s30 + $0xe30] sm:$0xff] }
 0x1e1   : > { %v763_v29 = vld [vmem:[%s5009_s30 + $0xe70] sm:$0xff] }
 0x1e2   : > { %3827 = vmatpush1.bf16.msra.mxu0 %v4761_v20  ;;  %3991 = vmatpush1.bf16.msra.mxu1 %v4763_v21  ;;  %v4809_v20 = vcombine.low %v743_v59, %v747_v60  ;;  %v4826_v34 = vcombine.high %v759_v26, %v763_v29  ;;  %v791_v60 = vld [vmem:[%s5009_s30 + $0xf50] sm:$0xff] }
 0x1e3   : > { %3828 = vmatprep.subr.bf16.mxu0 %v4770_v22  ;;  %3992 = vmatprep.subr.bf16.mxu1 %v4772_v23  ;;  %v4811_v22 = vcombine.low %v744_v0, %v748_v2  ;;  %v4818_v23 = vcombine.high %v751_v15, %v755_v16  ;;  %v796_v0 = vld [vmem:[%s5009_s30 + $0xf78] sm:$0xff]  ;;  %v4849_v2 = vcombine.low %v783_v52, %v787_v18 }
 0x1e6   : > { %3829 = vmatpush1.bf16.msra.mxu0 %v4769_v4  ;;  %3993 = vmatpush1.bf16.msra.mxu1 %v4771_v30  ;;  %v760_v4 = vld [vmem:[%s5009_s30 + $0xe58] sm:$0xff] }
 0x1e7   : > { %3830 = vmatprep.subr.bf16.mxu0 %v4778_v31  ;;  %3994 = vmatprep.subr.bf16.mxu1 %v4780_v32  ;;  %v764_v30 = vld [vmem:[%s5009_s30 + $0xe78] sm:$0xff]  ;;  %v4817_v31 = vcombine.low %v751_v15, %v755_v16  ;;  %v4819_v32 = vcombine.low %v752_v61, %v756_v43  ;;  %v811_v15 = vld [vmem:[%s5009_s30 + $0xff0] sm:$0xff] }
 0x1e8   : > { %v4828_v35 = vcombine.high %v760_v4, %v764_v30  ;;  %v808_v16 = vld [vmem:[%s5009_s30 + $0xfd8] sm:$0xff] }
 0x1ea   : > { %3831 = vmatpush1.bf16.msra.mxu0 %v4777_v57  ;;  %3995 = vmatpush1.bf16.msra.mxu1 %v4779_v14  ;;  %v768_v57 = vld [vmem:[%s5009_s30 + $0xe98] sm:$0xff] }
 0x1eb   : > { %3832 = vmatprep.subr.bf16.mxu0 %v4786_v38  ;;  %3996 = vmatprep.subr.bf16.mxu1 %v4788_v39  ;;  %v772_v14 = vld [vmem:[%s5009_s30 + $0xeb8] sm:$0xff]  ;;  %v4825_v38 = vcombine.low %v759_v26, %v763_v29  ;;  %v4827_v39 = vcombine.low %v760_v4, %v764_v30 }
 0x1ec   : > { %v4836_v41 = vcombine.high %v768_v57, %v772_v14 }
 0x1ee   : > { %3833 = vmatpush1.bf16.msra.mxu0 %v4785_v45  ;;  %3997 = vmatpush1.bf16.msra.mxu1 %v4787_v47  ;;  %v776_v45 = vld [vmem:[%s5009_s30 + $0xed8] sm:$0xff] }
 0x1ef   : > { %3834 = vmatprep.subr.bf16.mxu0 %v4794_v48  ;;  %3998 = vmatprep.subr.bf16.mxu1 %v4796_v49  ;;  %v780_v47 = vld [vmem:[%s5009_s30 + $0xef8] sm:$0xff]  ;;  %v4833_v48 = vcombine.low %v767_v1, %v771_v37  ;;  %v4835_v49 = vcombine.low %v768_v57, %v772_v14  ;;  %v246_v37 = vld [vmem:[#allocation2 + $0x8] sm:$0xff] }
 0x1f0   : > { %v3530_v58 = vpop.f32.mrb[0].mxu0  ;;  %v3694_v62 = vpop.f32.mrb[0].mxu1  ;;  %v4844_v51 = vcombine.high %v776_v45, %v780_v47 }
 0x1f1   : > { %v3532_v63 = vpop.f32.mrb[1].mxu0  ;;  %v3696_v5 = vpop.f32.mrb[1].mxu1 }
 0x1f2   : > { %v4037_v3 = vcombine.low %v3530_v58, %v3532_v63  ;;  %v3534_v27 = vpop.f32.mrb[2].mxu0  ;;  %3835 = vmatpush1.bf16.msra.mxu0 %v4793_v54  ;;  %v4038_v7 = vcombine.low %v3694_v62, %v3696_v5  ;;  %v3698_v8 = vpop.f32.mrb[2].mxu1  ;;  %3999 = vmatpush1.bf16.msra.mxu1 %v4795_v56  ;;  %v784_v54 = vld [vmem:[%s5009_s30 + $0xf18] sm:$0xff]  ;;  %v4843_v58 = vcombine.low %v776_v45, %v780_v47  ;;  %v795_v62 = vld [vmem:[%s5009_s30 + $0xf70] sm:$0xff]  ;;  %v4111_v45 = vsub.s32 (!%p4877_p6), 6, %v5034_v46  ;;  %v4161_v47 = vld [vmem:[%s5665_s3] sm:$0xff] (!%p4877_p6) }
 0x1f3   : > { %v3535_v9 = vpop.f32.mrb[3].mxu0  ;;  %3836 = vmatprep.subr.bf16.mxu0 %v4802_v25  ;;  %v3699_v33 = vpop.f32.mrb[3].mxu1  ;;  %4000 = vmatprep.subr.bf16.mxu1 %v4804_v11  ;;  %v788_v56 = vld [vmem:[%s5009_s30 + $0xf38] sm:$0xff]  ;;  %v4841_v25 = vcombine.low %v775_v42, %v779_v44  ;;  %v4850_v11 = vcombine.high %v783_v52, %v787_v18  ;;  %v4858_v5 = vcombine.high %v791_v60, %v795_v62  ;;  %v4103_v42 = vsub.s32 (!%p4877_p6), 4, %v5034_v46 }
 0x1f4   : > { %v4045_v13 = vrot.slane %v4037_v3, %v5041_v55  ;;  %v4052_v17 = vrot.slane %v4038_v7, %v5041_v55  ;;  %v4852_v59 = vcombine.high %v784_v54, %v788_v56  ;;  %v792_v63 = vld [vmem:[%s5009_s30 + $0xf58] sm:$0xff]  ;;  %v4851_v3 = vcombine.low %v784_v54, %v788_v56  ;;  %v803_v7 = vld [vmem:[%s5009_s30 + $0xfb0] sm:$0xff] }
 0x1f5   : > { %v4860_v27 = vcombine.high %v792_v63, %v796_v0  ;;  %v800_v8 = vld [vmem:[%s5009_s30 + $0xf98] sm:$0xff]  ;;  %v4107_v44 = vsub.s32 (!%p4877_p6), 5, %v5034_v46 }
 0x1f6   : > { %3837 = vmatpush1.bf16.msra.mxu0 %v4801_v6  ;;  %v4053_v21 = vcombine.low %v4045_v13, %v4052_v17  ;;  %4001 = vmatpush1.bf16.msra.mxu1 %v4803_v10  ;;  %v799_v6 = vld [vmem:[%s5009_s30 + $0xf90] sm:$0xff]  ;;  %v804_v9 = vld [vmem:[%s5009_s30 + $0xfb8] sm:$0xff]  ;;  %v4857_v10 = vcombine.low %v791_v60, %v795_v62 }
 0x1f7   : > { %3838 = vmatprep.subr.bf16.mxu0 %v4810_v12  ;;  %4002 = vmatprep.subr.bf16.mxu1 %v4812_v36  ;;  %v4859_v12 = vcombine.low %v792_v63, %v796_v0  ;;  %v4866_v13 = vcombine.high %v799_v6, %v803_v7  ;;  %v4868_v33 = vcombine.high %v800_v8, %v804_v9  ;;  %v807_v36 = vld [vmem:[%s5009_s30 + $0xfd0] sm:$0xff]  ;;  %v812_v17 = vld [vmem:[%s5009_s30 + $0xff8] sm:$0xff] }
 0x1f8   : > { %v4073_v53 = vadd.f32 %v4053_v21, %v245_v19  ;;  %v4865_v61 = vcombine.low %v799_v6, %v803_v7  ;;  %v4867_v43 = vcombine.low %v800_v8, %v804_v9  ;;  %v4874_v19 = vcombine.high %v807_v36, %v811_v15 }
 0x1f9   : > { %v4873_v21 = vcombine.low %v807_v36, %v811_v15  ;;  %v4190_v7 = vrot.slane (!%p4877_p6), %v4161_v47, %v4111_v45 }
 0x1fa   : > { %3839 = vmatpush1.bf16.msra.mxu0 %v4809_v20  ;;  %4075 = vst [vmem:[#allocation2] sm:$0xff] %v4073_v53  ;;  %4003 = vmatpush1.bf16.msra.mxu1 %v4811_v22  ;;  %v4876_v20 = vcombine.high %v808_v16, %v812_v17  ;;  %v4875_v22 = vcombine.low %v808_v16, %v812_v17 }
 0x1fb   : > { %3840 = vmatprep.subr.bf16.mxu0 %v4818_v23  ;;  %4004 = vmatprep.subr.bf16.mxu1 %v4820_v24 }
 0x1fe   : > { %3841 = vmatpush1.bf16.msra.mxu0 %v4817_v31  ;;  %4005 = vmatpush1.bf16.msra.mxu1 %v4819_v32 }
 0x1ff   : > { %3842 = vmatprep.subr.bf16.mxu0 %v4826_v34  ;;  %4006 = vmatprep.subr.bf16.mxu1 %v4828_v35 }
 0x201   : > { %v4081_v9 = vld [vmem:[#allocation2] sm:$0xff] (!%p4877_p6) }
 0x202   : > { %3843 = vmatpush1.bf16.msra.mxu0 %v4825_v38  ;;  %4007 = vmatpush1.bf16.msra.mxu1 %v4827_v39  ;;  %v4087_v38 = vsub.s32 (!%p4877_p6), 0, %v5034_v46  ;;  %v4091_v39 = vsub.s32 (!%p4877_p6), 1, %v5034_v46 }
 0x203   : > { %3844 = vmatprep.subr.bf16.mxu0 %v4834_v40  ;;  %4008 = vmatprep.subr.bf16.mxu1 %v4836_v41  ;;  %v4095_v40 = vsub.s32 (!%p4877_p6), 2, %v5034_v46  ;;  %v4099_v41 = vsub.s32 (!%p4877_p6), 3, %v5034_v46 }
 0x205   : > { %v4174_v63 = vrot.slane (!%p4877_p6), %v4161_v47, %v4095_v40  ;;  %v4178_v0 = vrot.slane (!%p4877_p6), %v4161_v47, %v4099_v41 }
 0x206   : > { %3845 = vmatpush1.bf16.msra.mxu0 %v4833_v48  ;;  %4009 = vmatpush1.bf16.msra.mxu1 %v4835_v49 }
 0x207   : > { %3846 = vmatprep.subr.bf16.mxu0 %v4842_v50  ;;  %4010 = vmatprep.subr.bf16.mxu1 %v4844_v51  ;;  %v4115_v51 = vsub.s32 (!%p4877_p6), 7, %v5034_v46 }
 0x209   : > { %v4194_v8 = vrot.slane (!%p4877_p6), %v4161_v47, %v4115_v51 }
 0x20a   : > { %3847 = vmatpush1.bf16.msra.mxu0 %v4841_v25  ;;  %4011 = vmatpush1.bf16.msra.mxu1 %v4843_v58 }
 0x20b   : > { %3848 = vmatprep.subr.bf16.mxu0 %v4850_v11  ;;  %4012 = vmatprep.subr.bf16.mxu1 %v4852_v59  ;;  %v4166_v11 = vrot.slane (!%p4877_p6), %v4161_v47, %v4087_v38  ;;  %v4170_v59 = vrot.slane (!%p4877_p6), %v4161_v47, %v4091_v39  ;;  %v4213_v16 = vcombine.low (!%p4877_p6), %v4190_v7, %v4194_v8 }
 0x20e   : > { %3849 = vmatpush1.bf16.msra.mxu0 %v4849_v2  ;;  %4013 = vmatpush1.bf16.msra.mxu1 %v4851_v3 }
 0x20f   : > { %3850 = vmatprep.subr.bf16.mxu0 %v4858_v5  ;;  %4014 = vmatprep.subr.bf16.mxu1 %v4860_v27  ;;  %v4182_v5 = vrot.slane (!%p4877_p6), %v4161_v47, %v4103_v42  ;;  %v4186_v27 = vrot.slane (!%p4877_p6), %v4161_v47, %v4107_v44 }
 0x212   : > { %3851 = vmatpush1.bf16.msra.mxu0 %v4857_v10  ;;  %4015 = vmatpush1.bf16.msra.mxu1 %v4859_v12  ;;  %v4195_v12 = vcombine.low (!%p4877_p6), %v4166_v11, %v4170_v59 }
 0x213   : > { %3852 = vmatprep.subr.bf16.mxu0 %v4866_v13  ;;  %4016 = vmatprep.subr.bf16.mxu1 %v4868_v33  ;;  %v4196_v13 = vcombine.low (!%p4877_p6), %v4174_v63, %v4178_v0  ;;  %v4212_v33 = vcombine.low (!%p4877_p6), %v4182_v5, %v4186_v27 }
 0x216   : > { %3853 = vmatpush1.bf16.msra.mxu0 %v4865_v61  ;;  %4017 = vmatpush1.bf16.msra.mxu1 %v4867_v43  ;;  %v4203_v61 = vrot.slane (!%p4877_p6), %v4195_v12, %v5041_v55  ;;  %v4210_v43 = vrot.slane (!%p4877_p6), %v4196_v13, %v5041_v55 }
 0x217   : > { %3854 = vmatprep.subr.bf16.mxu0 %v4874_v19  ;;  %4018 = vmatprep.subr.bf16.mxu1 %v4876_v20  ;;  %v4220_v19 = vrot.slane (!%p4877_p6), %v4212_v33, %v5041_v55 }
 0x21a   : > { %3855 = vmatpush1.bf16.msra.mxu0 %v4873_v21  ;;  %4019 = vmatpush1.bf16.msra.mxu1 %v4875_v22  ;;  %v4227_v21 = vrot.slane (!%p4877_p6), %v4213_v16, %v5041_v55 }
 0x21d   : > { %3857 = vmatmul.mubr.bf16.vlgmr.msra.gmra.mrb[4].mxu0 %v5347_v28  ;;  %4021 = vmatmul.mubr.bf16.vlgmr.msra.gmra.mrb[4].mxu1 %v5347_v28  ;;  %v4083_v28 = vld [vmem:[%s5664_s2] sm:$0xff] (!%p4877_p6) }
 0x21e   : > { %v4088_v48 = vrot.slane (!%p4877_p6), %v4083_v28, %v4087_v38  ;;  %v4092_v49 = vrot.slane (!%p4877_p6), %v4083_v28, %v4091_v39  ;;  %v4096_v50 = vrot.slane (!%p4877_p6), %v4083_v28, %v4095_v40  ;;  %v4100_v52 = vrot.slane (!%p4877_p6), %v4083_v28, %v4099_v41 }
 0x21f   : > { %v4104_v18 = vrot.slane (!%p4877_p6), %v4083_v28, %v4103_v42  ;;  %v4108_v54 = vrot.slane (!%p4877_p6), %v4083_v28, %v4107_v44  ;;  %v4112_v56 = vrot.slane (!%p4877_p6), %v4083_v28, %v4111_v45  ;;  %v4116_v25 = vrot.slane (!%p4877_p6), %v4083_v28, %v4115_v51 }
 0x220   : > { %v4117_v58 = vcombine.low (!%p4877_p6), %v4088_v48, %v4092_v49  ;;  %v4118_v60 = vcombine.low (!%p4877_p6), %v4096_v50, %v4100_v52 }
 0x221   : > { %v4134_v62 = vcombine.low (!%p4877_p6), %v4104_v18, %v4108_v54  ;;  %v4135_v3 = vcombine.low (!%p4877_p6), %v4112_v56, %v4116_v25 }
 0x222   : > { %v4125_v2 = vrot.slane (!%p4877_p6), %v4117_v58, %v5041_v55  ;;  %v4132_v6 = vrot.slane (!%p4877_p6), %v4118_v60, %v5041_v55 }
 0x223   : > { %v4142_v46 = vrot.slane (!%p4877_p6), %v4134_v62, %v5041_v55  ;;  %v4149_v10 = vrot.slane (!%p4877_p6), %v4135_v3, %v5041_v55 }
 0x224   : > { %v4133_v15 = vcombine.low (!%p4877_p6), %v4125_v2, %v4132_v6 }
 0x225   : > { %v4150_v17 = vcombine.low (!%p4877_p6), %v4142_v46, %v4149_v10 }
 0x226   : > { %v4153_v20 = vadd.f32 (!%p4877_p6), %v4133_v15, %v4081_v9 }
 0x228   : > { %vm4155_vm0 = vcmp.ge.f32.partialorder (!%p4877_p6), %v4153_v20, 0.0 }
 0x2f0   : > { %v3858_v23 = vpop.f32.mrb[4].mxu0  ;;  %v4022_v24 = vpop.f32.mrb[4].mxu1 }
 0x2f1   : > { %v3860_v26 = vpop.f32.mrb[5].mxu0  ;;  %v4024_v53 = vpop.f32.mrb[5].mxu1 }
 0x2f2   : > { %v4054_v29 = vcombine.low %v3858_v23, %v3860_v26  ;;  %v3862_v4 = vpop.f32.mrb[6].mxu0  ;;  %v4055_v30 = vcombine.low %v4022_v24, %v4024_v53  ;;  %v4026_v31 = vpop.f32.mrb[6].mxu1  ;;  %v4211_v23 = vcombine.low (!%p4877_p6), %v4203_v61, %v4210_v43  ;;  %v4157_v24 = vmul.f32 (!%p4877_p6), 0.2, %v4153_v20 }
 0x2f3   : > { %v3863_v32 = vpop.f32.mrb[7].mxu0  ;;  %v4027_v35 = vpop.f32.mrb[7].mxu1  ;;  %v4228_v26 = vcombine.low (!%p4877_p6), %v4220_v19, %v4227_v21 }
 0x2f4   : > { %v4062_v34 = vrot.slane %v4054_v29, %v5041_v55  ;;  %v4069_v1 = vrot.slane %v4055_v30, %v5041_v55  ;;  %4080 = sbr.rel (%p4877_p6) target bundleno = 966 (0x3c6), region = 48  ;;  %v4159_v53 = vsel (!%p4877_p6), %vm4155_vm0, %v4153_v20, %v4157_v24 }
 0x2f5   : > { %v4231_v30 = vmul.f32 (!%p4877_p6), %v4211_v23, %v4159_v53 }
 0x2f6   : > { %v4070_v57 = vcombine.low %v4062_v34, %v4069_v1 }
 0x2f7   : > { %v4235_v32 = vcombine.high (!%p4877_p6), %v4231_v30, %v4231_v30  ;;  %v4242_v34 = vrot.slane (!%p4877_p6), %v4231_v30, %v5041_v55 }
 0x2f8   : > { %v4074_v14 = vadd.f32 %v4070_v57, %v246_v37 }
 0x2f9   : > { %v4249_v1 = vrot.slane (!%p4877_p6), %v4235_v32, %v5041_v55  ;;  %v4250_v37 = vcombine.high (!%p4877_p6), %v4242_v34, %v4242_v34 }
 0x2fa   : > { %4076 = vst [vmem:[#allocation2 + $0x8] sm:$0xff] %v4074_v14  ;;  %v4278_v14 = vsel (!%p4877_p6), %vm4277_vm2, %v4242_v34, 0.0 }
 0x2fb   : > { %v4251_v28 = vcombine.high %v4249_v1, %v4249_v1  ;;  %v4279_v38 = vsel %vm4277_vm2, %v4250_v37, 0.0  ;;  %v4281_v39 = vsel %vm4277_vm2, %v4249_v1, 0.0 }
 0x2fc   : > { %v4280_v40 = vadd.f32 %v4279_v38, %v4278_v14 }
 0x2fd   : > { %v4283_v44 = vsel %vm4277_vm2, %v4251_v28, 0.0 }
 0x2fe   : > { %v4282_v45 = vadd.f32 %v4281_v39, %v4280_v40 }
 0x300   : > { %v4284_v48 = vadd.f32 %v4283_v44, %v4282_v45 }
 0x301   : > { %v4082_v36 = vld [vmem:[#allocation2 + $0x8] sm:$0xff] }
 0x302   : > { %v4154_v22 = vadd.f32 %v4150_v17, %v4082_v36 }
 0x304   : > { %vm4156_vm1 = vcmp.ge.f32.partialorder %v4154_v22, 0.0  ;;  %v4158_v29 = vmul.f32 0.2, %v4154_v22 }
 0x306   : > { %v4160_v4 = vsel %vm4156_vm1, %v4154_v22, %v4158_v29 }
 0x307   : > { %v4232_v31 = vmul.f32 %v4228_v26, %v4160_v4 }
 0x309   : > { %v4252_v35 = vcombine.high %v4232_v31, %v4232_v31  ;;  %v4259_v57 = vrot.slane %v4232_v31, %v5041_v55 }
 0x30b   : > { %v4266_v41 = vrot.slane %v4252_v35, %v5041_v55  ;;  %v4267_v42 = vcombine.high %v4259_v57, %v4259_v57  ;;  %v4285_v47 = vsel %vm4277_vm2, %v4259_v57, 0.0  ;;  %v4878_v55 = vld [vmem:[#allocation3] ss:$0 sm:$0xff] }
 0x30c   : > { %v4286_v51 = vadd.f32 %v4285_v47, %v4284_v48 }
 0x30d   : > { %v4268_v49 = vcombine.high %v4266_v41, %v4266_v41  ;;  %v4287_v50 = vsel %vm4277_vm2, %v4267_v42, 0.0  ;;  %v4289_v52 = vsel %vm4277_vm2, %v4266_v41, 0.0 }
 0x30e   : > { %v4288_v18 = vadd.f32 %v4287_v50, %v4286_v51 }
 0x30f   : > { %v4291_v54 = vsel %vm4277_vm2, %v4268_v49, 0.0 }
 0x310   : > { %v4290_v56 = vadd.f32 %v4289_v52, %v4288_v18 }
 0x312   : > { %v4292_v25 = vadd.f32 %v4291_v54, %v4290_v56 }
 0x314   : > { %4293 = vadd.xlane.f32.xlu0 %v4292_v25 }
 0x3a1   : > { %v4294_v58 = vpop.xlane.xlu0 %4293 }
 0x3a2   : > { %v4302_v11 = vadd.f32 %v4878_v55, %v4294_v58 }
 0x3a4   : > { %v4303_v59 = vand.u32 2147483647, %v4302_v11  ;;  %vm4307_vm4 = vcmp.ge.f32.partialorder %v4302_v11, 0.0 }
 0x3a6   : > { %v4304_v60 = vsub.f32 0.0, %v4303_v59 }
 0x3a8   : > { %v4305_v62 = vmul.f32 1.442695, %v4304_v60 }
 0x3aa   : > { %4942 = vpow2.f32 %v4305_v62 }
 0x3b4   : > { %v4943_v63 = vpop.eup %4942 }
 0x3b5   : > { %v4308_v0 = vadd.f32 1.0, %v4943_v63 }
 0x3b7   : > { %4944 = vrcp.f32 %v4308_v0 }
 0x3c1   : > { %v4945_v2 = vpop.eup %4944 }
 0x3c2   : > { %v4311_v3 = vmul.f32 %v4945_v2, %v4943_v63 }
 0x3c4   : > { %v4312_v5 = vsel %vm4307_vm4, %v4945_v2, %v4311_v3 }
 0x3c5   : > { %4314 = vst.msk [vmem:[%s5667_s5] sm:$0x3] %vm4313_vm3, %v4312_v5 }
 0x3c6 PF: > { %s17_s20 = sadd.s32 1, %s4952_s20  }
 0x3c7   : > { %p14_p7 = scmp.ge.s32.totalorder %s17_s20, 6  }
 0x3c9   :  { %16 = sbr.rel (!%p14_p7) target bundleno = 3 (0x3), region = 77 }

// kernel: discriminator_forward.2
= control target key start
LH: loop header
LB: loop body
LE: loop exit
PB: predicated region body
PF: predicated region fallthrough
CT: control target
= control target key end

     0   :  { %s11127_s0 = inlined_call_operand.vmem [shape: f32[2,38912], index: 0, kind: input, shape index: {}]   ;;  %s11128_s1 = inlined_call_operand.hbm [shape: bf16[38912,4096], index: 1, kind: input, shape index: {}]   ;;  %s11129_s2 = inlined_call_operand.hbm [shape: f32[1,4096], index: 2, kind: input, shape index: {}]   ;;  %s11130_s3 = inlined_call_operand.vmem [shape: f32[2,4096], index: 3, kind: output, shape index: {}]  }
   0x1   :  { %11136 = sst [smem:[#allocation10_spill]] %s11128_s1 }
   0x2   :  { %8 = vsyncpa [#allocation4], 0 }
   0x3   :  { %10 = vsyncpa [#allocation4 + $0x1], 0 }
   0x4   :  { %11 = vsyncpa [#allocation6], 0 }
   0x5   :  { %13 = vsyncpa [#allocation6 + $0x1], 0  ;;  %s9666_s12 = smov 0   ;;  %s9668_s13 = smov 0  }
   0x6   :  { %s9670_s14 = smov 0   ;;  %s9672_s15 = smov 0  }
   0x7   :  { %s9674_s16 = smov 0   ;;  %s9676_s17 = smov 0  }
   0x8   :  { %s9678_s18 = smov 0   ;;  %s9680_s19 = smov 0  }
   0x9   :  { %s9682_s20 = smov 0   ;;  %s9684_s21 = smov 0  }
   0xa   :  { %s9686_s22 = smov 0  }
   0xb LB: > { %s31_s23 = sadd.s32 1, %s9629_s20  ;;  %s75_s24 = sadd.s32 1, %s9617_s17  ;;  %s9637_s22 = sphi %s9686_s22, %s19_s22   ;;  %s9633_s21 = sphi %s9684_s21, %s11162_s21   ;;  %s9629_s20 = sphi %s9682_s20, %s11161_s20   ;;  %s9625_s19 = sphi %s9680_s19, %s11160_s19   ;;  %s9621_s18 = sphi %s9678_s18, %s11159_s18   ;;  %s9617_s17 = sphi %s9676_s17, %s11158_s17   ;;  %s9613_s16 = sphi %s9674_s16, %s11157_s16   ;;  %s9609_s15 = sphi %s9672_s15, %s11156_s15   ;;  %s9605_s14 = sphi %s9670_s14, %s11155_s14   ;;  %s9601_s13 = sphi %s9668_s13, %s11154_s13   ;;  %s9597_s12 = sphi %s9666_s12, %s11153_s12  }
   0xc   : > { %p9723_p0 = scmp.ge.s32.totalorder %s31_s23, 38  ;;  %p82_p1 = scmp.ne.s32.totalorder %s9617_s17, %s9613_s16 }
   0xd   : > { %p11132_p2 = scmp.eq.s32.totalorder %s9637_s22, 0  ;;  %p11131_p4 = scmp.lt.s32.totalorder %s9637_s22, 76 }
   0xe   : > { %s11164_s23 = smov (%p9723_p0, %s31_s23), 0  ;;  %s179_s27 = sand.u32 1, %s9617_s17  }
   0xf   : > { %p84_p3 = por %p11132_p2, %p82_p1  ;;  %s70_s26 = ssub.s32 %s9629_s20, %s11164_s23 }
  0x10   : > { %s8235_s28 = sshll.u32 %s179_s27, 13  ;;  %s8237_s29 = sshll.u32 %s9633_s21, 4 }
  0x11   : > { %s9278_s30 = sshll.u32 %s9629_s20, 12  ;;  %s183_s4 = scalar_lea.vmem [#allocation3], %s8235_s28 }
  0x12   : > { %s193_s5 = sshll.u32 %s183_s4, 4  ;;  %s190_s6 = sadd.s32 %s9278_s30, %s8237_s29  ;;  %s9742_s5 = int_to_ptr.vmem [resolvable:$true] %s193_s5 }
  0x13   : > { %s8239_s7 = sshll.u32 %s190_s6, 6  ;;  %p9746_p5 = pnand %p11131_p4, %p84_p3 }
  0x14   : > { %s11139_s1 = sld [smem:[#allocation10_spill]]  ;;  %s9756_s28 = scalar_lea.sflag [#allocation4], %s179_s27 }
  0x15   : > { %p9485_p8 = pneg %p9746_p5 }
  0x1a   : > { %s9753_s11 = scalar_lea.hbm %s11139_s1, %s8239_s7  ;;  %s9488_s6 = scalar_lea.hbm %s11139_s1, 9961472 }
  0x1b   : > { %s9483_s29 = scalar_lea.hbm %s9753_s11, 131072  ;;  %p9489_p11 = scmp.lt.u32.totalorder %s9753_s11, %s11139_s1 }
  0x1c   : > { %p9484_p7 = scmp.ne.s32.totalorder %s9753_s11, %s9483_s29  ;;  %p9490_p12 = scmp.lt.u32.totalorder %s9488_s6, %s9483_s29 }
  0x1d   : > { %p9492_p1 = scmp.lt.u32.totalorder %s9483_s29, %s9753_s11 }
  0x1e   : > { %p9486_p9 = pnand %p9485_p8, %p9484_p7  ;;  %p9491_p13 = por %p9490_p12, %p9489_p11 }
  0x20   : > { %p9487_p10 = pneg %p9486_p9  ;;  %p9493_p3 = por %p9492_p1, %p9491_p13 }
  0x22   : > { %p9494_p4 = pnand %p9493_p3, %p9487_p10 }
  0x24   : > { %9497 = shalt.err (!%p9494_p4)
}
  0x25   : > { %s9498_s27 = scalar_lea.vmem %s9742_s5, 131072  ;;  %s9639_s10 = smov [#allocation3]  }
  0x26   : > { %p9499_p7 = scmp.ne.s32.totalorder %s9742_s5, %s9498_s27  ;;  %s9503_s30 = sshll.u32 %s9639_s10, 4  ;;  %s9504_s30 = int_to_ptr.vmem [resolvable:$false] %s9503_s30 }
  0x27   : > { %s9505_s4 = scalar_lea.vmem %s9504_s30, 262144  ;;  %p9506_p6 = scmp.lt.s32.totalorder %s9742_s5, %s9504_s30 }
  0x28   : > { %p9501_p9 = pnand %p9499_p7, %p9485_p8  ;;  %p9507_p11 = scmp.lt.s32.totalorder %s9505_s4, %s9498_s27 }
  0x2a   : > { %p9502_p2 = pneg %p9501_p9  ;;  %p9508_p12 = por %p9507_p11, %p9506_p6 }
  0x2c   : > { %p9509_p13 = pnand %p9508_p12, %p9502_p2 }
  0x2e   : > { %9512 = shalt.err (!%p9509_p13)
}
  0x2f   : > { %s9640_s29 = smov 2048   ;;  %s9641_s6 = smov 1024  }
  0x30   : > { %s9642_s7 = smov 64   ;;  %p220_p2 = scmp.lt.s32.totalorder %s9637_s22, 77 }
  0x31   : > { %9383 = dma.hbm_to_vmem [thread:$0]  (!%p9746_p5), %s9753_s11, 131072, %s9742_s5, %s9756_s28, %s9640_s29, %s9641_s6, %s9642_s7  }
  0x32   : > { %p11140_p4 = scmp.ge.s32.totalorder %s9637_s22, 1  ;;  %s8231_s27 = sadd.s32 4294967295, %s9637_s22  }
  0x33   : > { %s34_s10 = sadd.s32 1, %s9633_s21  ;;  %p88_p8 = scmp.ne.s32.totalorder %s9613_s16, %s9609_s15 }
  0x34   : > { %p9787_p6 = pnand %p11140_p4, %p220_p2  ;;  %s11166_s10 = smov (!%p9723_p0, %s34_s10), %s9633_s21 }
  0x35   : > { %p9798_p10 = scmp.eq.s32.totalorder %s8231_s27, 0  ;;  %p36_p5 = scmp.ge.s32.totalorder %s11166_s10, 2 }
  0x36   : > { %s101_s5 = sadd.s32 1, %s9605_s14  ;;  %p108_p3 = scmp.ne.s32.totalorder %s9605_s14, %s9601_s13 }
  0x37   : > { %p9805_p1 = por %p9798_p10, %p88_p8  ;;  %s11168_s10 = smov (%p36_p5, %s11166_s10), 0 }
  0x38   : > { %11144 = sst [smem:[#allocation9_spill]] %s11168_s10  ;;  %p11145_p0 = scmp.eq.s32.totalorder %s9637_s22, 0 }
  0x39   : > { %s11143_s11 = scalar_select %p9805_p1, 1, 0 }
  0x3a   : > { %p9815_p7 = por %p108_p3, %p11145_p0  ;;  %p114_p9 = scmp.ne.s32.totalorder %s9601_s13, %s9597_s12 }
  0x3b   : > { %s71_s25 = ssub.s32 %s9633_s21, %s11168_s10  ;;  %s203_s28 = sand.u32 1, %s9605_s14  }
  0x3c   : > { %s72_s30 = sor.u32 %s71_s25, %s70_s26  ;;  %p99_p11 = scmp.eq.s32.totalorder %s71_s25, 0 }
  0x3d   : > { %p73_p12 = scmp.eq.s32.totalorder %s72_s30, 0  ;;  %p9829_p13 = por %p114_p9, %p9798_p10 }
  0x3e   : > { %s9834_s29 = scalar_select %p99_p11, %s9605_s14, %s101_s5  }
  0x3f   : > { %s11147_s4 = scalar_select %p9829_p13, 1, 0 }
  0x40   : > { %s9839_s6 = scalar_select %p73_p12, %s9617_s17, %s75_s24  }
  0x41   : > { %s8240_s7 = sshll.u32 %s203_s28, 4  ;;  %s9279_s27 = sshll.u32 %s9633_s21, 8 }
  0x42   : > { %s9845_s10 = scalar_lea.hbm %s11129_s2, %s9279_s27  ;;  %s207_s26 = scalar_lea.vmem [#allocation5], %s8240_s7 }
  0x43   : > { %s215_s8 = sshll.u32 %s207_s26, 4  ;;  %p11148_p2 = scmp.lt.s32.totalorder %s9637_s22, 76  ;;  %s9847_s8 = int_to_ptr.vmem [resolvable:$true] %s215_s8 }
  0x44   : > { %s204_s5 = scalar_lea.sflag [#allocation6], %s203_s28  ;;  %s9513_s1 = scalar_lea.hbm %s9845_s10, 256 }
  0x45   : > { %p9853_p4 = pnand %p11148_p2, %p9815_p7  ;;  %p9514_p8 = scmp.ne.s32.totalorder %s9845_s10, %s9513_s1 }
  0x46   : > { %s9518_s15 = scalar_lea.hbm %s11129_s2, 512  ;;  %p9519_p0 = scmp.lt.u32.totalorder %s9845_s10, %s11129_s2 }
  0x47   : > { %p9515_p10 = pneg %p9853_p4  ;;  %p9520_p7 = scmp.lt.u32.totalorder %s9518_s15, %s9513_s1 }
  0x48   : > { %p9522_p11 = scmp.lt.u32.totalorder %s9513_s1, %s9845_s10 }
  0x49   : > { %p9516_p5 = pnand %p9515_p10, %p9514_p8  ;;  %p9521_p9 = por %p9520_p7, %p9519_p0 }
  0x4b   : > { %p9517_p3 = pneg %p9516_p5  ;;  %p9523_p12 = por %p9522_p11, %p9521_p9 }
  0x4d   : > { %p9524_p2 = pnand %p9523_p12, %p9517_p3 }
  0x4f   : > { %9527 = shalt.err (!%p9524_p2)
}
  0x50   : > { %s9528_s28 = scalar_lea.vmem %s9847_s8, 256  ;;  %s9643_s12 = smov [#allocation5]  }
  0x51   : > { %p9529_p8 = scmp.ne.s32.totalorder %s9847_s8, %s9528_s28  ;;  %s9533_s26 = sshll.u32 %s9643_s12, 4  ;;  %s9534_s26 = int_to_ptr.vmem [resolvable:$false] %s9533_s26 }
  0x52   : > { %s9535_s25 = scalar_lea.vmem %s9534_s26, 512  ;;  %p9536_p1 = scmp.lt.s32.totalorder %s9847_s8, %s9534_s26 }
  0x53   : > { %p9531_p5 = pnand %p9529_p8, %p9515_p10  ;;  %p9537_p0 = scmp.lt.s32.totalorder %s9535_s25, %s9528_s28 }
  0x55   : > { %p9532_p13 = pneg %p9531_p5  ;;  %p9538_p7 = por %p9537_p0, %p9536_p1 }
  0x57   : > { %p9539_p9 = pnand %p9538_p7, %p9532_p13 }
  0x59   : > { %9542 = shalt.err (!%p9539_p9)
}
  0x5a   : > { %9386 = dma.hbm_to_vmem [thread:$0]  (!%p9853_p4), %s9845_s10, 256, %s9847_s8, %s204_s5  }
  0x5b   : > { %224 = sbr.rel (%p9787_p6) target bundleno = 1379 (0x563), region = 32  ;;  %s226_s1 = sand.u32 (!%p9787_p6), 1, %s9613_s16  }
  0x5c   : > { %s8244_s30 = sshll.u32 (!%p9787_p6), %s226_s1, 13  ;;  %s227_s15 = scalar_lea.sflag (!%p9787_p6), [#allocation4], %s226_s1 }
  0x5d   : > { %s9885_s7 = scalar_lea.vmem (!%p9787_p6), [#allocation3], %s8244_s30  ;;  %p11150_p10 = scmp.ne.s32.totalorder (!%p9787_p6), %s11143_s11, 0 }
  0x62   : > { %9588 = dma.done.wait (%p11150_p10), %s227_s15, 131072  }
  0x63   : > { %9590 = vsyncadd (%p11150_p10), %s227_s15, 4294836224  ;;  %s235_s24 = sand.u32 1, %s9601_s13   ;;  %p11151_p6 = scmp.ne.s32.totalorder %s11147_s4, 0 }
  0x64   : > { %s9892_s27 = sshll.u32 %s235_s24, 4  ;;  %s236_s9 = scalar_lea.sflag [#allocation6], %s235_s24 }
  0x65   : > { %s239_s10 = scalar_lea.vmem [#allocation5], %s9892_s27 }
  0x66   : > { %9592 = dma.done.wait (%p11151_p6), %s236_s9, 256  }
  0x67   : > { %9594 = vsyncadd (%p11151_p6), %s236_s9, 4294967040  ;;  %s8246_s8 = sshll.u32 %s9621_s18, 3  ;;  %s8248_s5 = sshll.u32 %s9625_s19, 4 }
  0x68   : > { %p283_p1 = scmp.lt.s32.totalorder %s8246_s8, 303  ;;  %p296_p13 = scmp.lt.s32.totalorder %s8248_s5, 31 }
  0x69   : > { %p8250_p4 = scmp.ne.s32.totalorder %s9621_s18, 0 }
  0x6a   : > { %s11170_s8 = smov (!%p283_p1, %s8246_s8), 303  ;;  %s11172_s5 = smov (!%p296_p13, %s8248_s5), 31 }
  0x6b   : > { %s8247_s11 = sshll.u32 %s11170_s8, 1  ;;  %s8249_s25 = sshll.u32 %s11172_s5, 1  ;;  %v9644_v0 = vmov (!%p8250_p4), 0.0  }
  0x6c   : > { %s9904_s26 = scalar_lea.vmem %s11127_s0, %s8247_s11  ;;  %s9909_s4 = scalar_lea.vmem %s11130_s3, %s8249_s25  ;;  %307 = vst [vmem:[#allocation2] sm:$0xff] (!%p8250_p4), %v9644_v0  ;;  %308 = vst [vmem:[#allocation2 + $0x8] sm:$0xff] (!%p8250_p4), %v9644_v0 }
  0x6d   : > { %306 = sbr.rel (%p8250_p4) target bundleno = 116 (0x74), region = 44  ;;  %309 = vst [vmem:[#allocation2 + $0x10] sm:$0xff] (!%p8250_p4), %v9644_v0  ;;  %310 = vst [vmem:[#allocation2 + $0x18] sm:$0xff] (!%p8250_p4), %v9644_v0 }
  0x74 PF: > { %v369_v1 = vld [vmem:[%s9885_s7] sm:$0xff]  ;;  %v370_v3 = vld [vmem:[%s9885_s7 + $0x8] sm:$0xff]  ;;  %v9645_v33 = vmov 1983009808   ;;  %v323_v35 = vlaneseq  ;;  %p9275_p3 = scmp.ne.s32.totalorder %s9621_s18, 37 }
  0x75   : > { %v377_v2 = vld [vmem:[%s9885_s7 + $0x40] sm:$0xff]  ;;  %v378_v5 = vld [vmem:[%s9885_s7 + $0x48] sm:$0xff]  ;;  %v321_v34 = vunpack.c.l.s4 %v9645_v33 }
  0x76   : > { %v8252_v4 = vcombine.high %v369_v1, %v377_v2  ;;  %v8251_v6 = vcombine.low %v369_v1, %v377_v2  ;;  %v385_v7 = vld [vmem:[%s9885_s7 + $0x80] sm:$0xff]  ;;  %v8254_v9 = vcombine.high %v370_v3, %v378_v5  ;;  %v8253_v10 = vcombine.low %v370_v3, %v378_v5  ;;  %v386_v12 = vld [vmem:[%s9885_s7 + $0x88] sm:$0xff] }
  0x77   : > { %v393_v8 = vld [vmem:[%s9885_s7 + $0xc0] sm:$0xff]  ;;  %v394_v13 = vld [vmem:[%s9885_s7 + $0xc8] sm:$0xff]  ;;  %v322_v44 = vunpack.c.0.s8 %v321_v34  ;;  %v9934_v45 = vshrl.u32 %v323_v35, 7 }
  0x78   : > { %v8268_v11 = vcombine.high %v385_v7, %v393_v8  ;;  %v401_v14 = vld [vmem:[%s9885_s7 + $0x100] sm:$0xff]  ;;  %6513 = vmatprep.subr.bf16.mxu0 %v8252_v4  ;;  %v8270_v15 = vcombine.high %v386_v12, %v394_v13  ;;  %v402_v17 = vld [vmem:[%s9885_s7 + $0x108] sm:$0xff]  ;;  %6677 = vmatprep.subr.bf16.mxu1 %v8254_v9  ;;  %v8267_v19 = vcombine.low %v385_v7, %v393_v8 }
  0x79   : > { %v409_v16 = vld [vmem:[%s9885_s7 + $0x140] sm:$0xff]  ;;  %v410_v18 = vld [vmem:[%s9885_s7 + $0x148] sm:$0xff]  ;;  %6514 = vmatpush1.bf16.msra.mxu0 %v8251_v6  ;;  %6678 = vmatpush1.bf16.msra.mxu1 %v8253_v10  ;;  %v8269_v20 = vcombine.low %v386_v12, %v394_v13  ;;  %v9941_v54 = vsub.s32 %v322_v44, %v9934_v45 }
  0x7a   : > { %6515 = vmatprep.subr.bf16.mxu0 %v8268_v11  ;;  %v8284_v21 = vcombine.high %v401_v14, %v409_v16  ;;  %6679 = vmatprep.subr.bf16.mxu1 %v8270_v15  ;;  %v8286_v22 = vcombine.high %v402_v17, %v410_v18  ;;  %v417_v23 = vld [vmem:[%s9885_s7 + $0x180] sm:$0xff]  ;;  %v418_v25 = vld [vmem:[%s9885_s7 + $0x188] sm:$0xff]  ;;  %v8283_v27 = vcombine.low %v401_v14, %v409_v16 }
  0x7b   : > { %v425_v24 = vld [vmem:[%s9885_s7 + $0x1c0] sm:$0xff]  ;;  %v426_v26 = vld [vmem:[%s9885_s7 + $0x1c8] sm:$0xff]  ;;  %v8285_v28 = vcombine.low %v402_v17, %v410_v18 }
  0x7c   : > { %v8300_v29 = vcombine.high %v417_v23, %v425_v24  ;;  %v8302_v30 = vcombine.high %v418_v25, %v426_v26  ;;  %v433_v31 = vld [vmem:[%s9885_s7 + $0x200] sm:$0xff]  ;;  %v434_v36 = vld [vmem:[%s9885_s7 + $0x208] sm:$0xff]  ;;  %v8299_v38 = vcombine.low %v417_v23, %v425_v24  ;;  %v8301_v39 = vcombine.low %v418_v25, %v426_v26 }
  0x7d   : > { %6516 = vmatpush1.bf16.msra.mxu0 %v8267_v19  ;;  %6680 = vmatpush1.bf16.msra.mxu1 %v8269_v20  ;;  %v441_v32 = vld [vmem:[%s9885_s7 + $0x240] sm:$0xff]  ;;  %v442_v37 = vld [vmem:[%s9885_s7 + $0x248] sm:$0xff] }
  0x7e   : > { %6517 = vmatprep.subr.bf16.mxu0 %v8284_v21  ;;  %6681 = vmatprep.subr.bf16.mxu1 %v8286_v22  ;;  %v8316_v40 = vcombine.high %v433_v31, %v441_v32  ;;  %v8318_v41 = vcombine.high %v434_v36, %v442_v37  ;;  %v449_v42 = vld [vmem:[%s9885_s7 + $0x280] sm:$0xff]  ;;  %v450_v46 = vld [vmem:[%s9885_s7 + $0x288] sm:$0xff]  ;;  %v8315_v48 = vcombine.low %v433_v31, %v441_v32 }
  0x7f   : > { %v457_v43 = vld [vmem:[%s9885_s7 + $0x2c0] sm:$0xff]  ;;  %v458_v47 = vld [vmem:[%s9885_s7 + $0x2c8] sm:$0xff]  ;;  %v8317_v49 = vcombine.low %v434_v36, %v442_v37 }
  0x80   : > { %v8332_v50 = vcombine.high %v449_v42, %v457_v43  ;;  %v8334_v51 = vcombine.high %v450_v46, %v458_v47  ;;  %v465_v52 = vld [vmem:[%s9885_s7 + $0x300] sm:$0xff]  ;;  %v466_v55 = vld [vmem:[%s9885_s7 + $0x308] sm:$0xff]  ;;  %v8331_v57 = vcombine.low %v449_v42, %v457_v43  ;;  %v8333_v58 = vcombine.low %v450_v46, %v458_v47 }
  0x81   : > { %6518 = vmatpush1.bf16.msra.mxu0 %v8283_v27  ;;  %6682 = vmatpush1.bf16.msra.mxu1 %v8285_v28  ;;  %v473_v53 = vld [vmem:[%s9885_s7 + $0x340] sm:$0xff]  ;;  %v474_v56 = vld [vmem:[%s9885_s7 + $0x348] sm:$0xff] }
  0x82   : > { %6519 = vmatprep.subr.bf16.mxu0 %v8300_v29  ;;  %6683 = vmatprep.subr.bf16.mxu1 %v8302_v30  ;;  %v8348_v59 = vcombine.high %v465_v52, %v473_v53  ;;  %v9946_v60 = vld [vmem:[%s9904_s26] sm:$0xff]  ;;  %v8350_v61 = vcombine.high %v466_v55, %v474_v56  ;;  %v482_v1 = vld [vmem:[%s9885_s7 + $0x388] sm:$0xff]  ;;  %v8347_v3 = vcombine.low %v465_v52, %v473_v53 }
  0x83   : > { %v481_v62 = vld [vmem:[%s9885_s7 + $0x380] sm:$0xff]  ;;  %v9952_v0 = vrot.slane %v9946_v60, %v9941_v54  ;;  %v490_v2 = vld [vmem:[%s9885_s7 + $0x3c8] sm:$0xff]  ;;  %v8349_v5 = vcombine.low %v466_v55, %v474_v56 }
  0x84   : > { %v489_v63 = vld [vmem:[%s9885_s7 + $0x3c0] sm:$0xff]  ;;  %v8366_v7 = vcombine.high %v482_v1, %v490_v2  ;;  %v498_v11 = vld [vmem:[%s9885_s7 + $0x408] sm:$0xff]  ;;  %v8365_v14 = vcombine.low %v482_v1, %v490_v2 }
  0x85   : > { %6520 = vmatpush1.bf16.msra.mxu0 %v8299_v38  ;;  %6684 = vmatpush1.bf16.msra.mxu1 %v8301_v39  ;;  %v334_v4 = vcombine.high %v9952_v0, %v9952_v0  ;;  %v8364_v6 = vcombine.high %v481_v62, %v489_v63  ;;  %v497_v8 = vld [vmem:[%s9885_s7 + $0x400] sm:$0xff]  ;;  %v506_v12 = vld [vmem:[%s9885_s7 + $0x448] sm:$0xff]  ;;  %v8363_v13 = vcombine.low %v481_v62, %v489_v63 }
  0x86   : > { %6521 = vmatprep.subr.bf16.mxu0 %v8316_v40  ;;  %6685 = vmatprep.subr.bf16.mxu1 %v8318_v41  ;;  %v505_v9 = vld [vmem:[%s9885_s7 + $0x440] sm:$0xff]  ;;  %v8382_v16 = vcombine.high %v498_v11, %v506_v12  ;;  %v514_v19 = vld [vmem:[%s9885_s7 + $0x488] sm:$0xff]  ;;  %v8381_v22 = vcombine.low %v498_v11, %v506_v12 }
  0x87   : > { %v9960_v10 = vpack.c.bf16 %v334_v4, %v334_v4  ;;  %v8380_v15 = vcombine.high %v497_v8, %v505_v9  ;;  %v513_v17 = vld [vmem:[%s9885_s7 + $0x480] sm:$0xff]  ;;  %v522_v20 = vld [vmem:[%s9885_s7 + $0x4c8] sm:$0xff]  ;;  %v8379_v21 = vcombine.low %v497_v8, %v505_v9 }
  0x88   : > { %v521_v18 = vld [vmem:[%s9885_s7 + $0x4c0] sm:$0xff]  ;;  %v8398_v24 = vcombine.high %v514_v19, %v522_v20  ;;  %v530_v27 = vld [vmem:[%s9885_s7 + $0x508] sm:$0xff]  ;;  %v8397_v30 = vcombine.low %v514_v19, %v522_v20 }
  0x89   : > { %6522 = vmatpush1.bf16.msra.mxu0 %v8315_v48  ;;  %6686 = vmatpush1.bf16.msra.mxu1 %v8317_v49  ;;  %v8396_v23 = vcombine.high %v513_v17, %v521_v18  ;;  %v529_v25 = vld [vmem:[%s9885_s7 + $0x500] sm:$0xff]  ;;  %v538_v28 = vld [vmem:[%s9885_s7 + $0x548] sm:$0xff]  ;;  %v8395_v29 = vcombine.low %v513_v17, %v521_v18 }
  0x8a   : > { %6523 = vmatprep.subr.bf16.mxu0 %v8332_v50  ;;  %6687 = vmatprep.subr.bf16.mxu1 %v8334_v51  ;;  %v537_v26 = vld [vmem:[%s9885_s7 + $0x540] sm:$0xff]  ;;  %v8414_v32 = vcombine.high %v530_v27, %v538_v28  ;;  %v546_v35 = vld [vmem:[%s9885_s7 + $0x588] sm:$0xff]  ;;  %v8413_v38 = vcombine.low %v530_v27, %v538_v28 }
  0x8b   : > { %6545 = vmatprep.mubr.bf16.mxu0 %v9960_v10  ;;  %6709 = vmatprep.mubr.bf16.mxu1 %v9960_v10  ;;  %v8412_v31 = vcombine.high %v529_v25, %v537_v26  ;;  %v545_v33 = vld [vmem:[%s9885_s7 + $0x580] sm:$0xff]  ;;  %v554_v36 = vld [vmem:[%s9885_s7 + $0x5c8] sm:$0xff]  ;;  %v8411_v37 = vcombine.low %v529_v25, %v537_v26  ;;  %v10009_v26 = vpack.c.bf16 %v9952_v0, %v9952_v0 }
  0x8c   : > { %v553_v34 = vld [vmem:[%s9885_s7 + $0x5c0] sm:$0xff]  ;;  %v8430_v40 = vcombine.high %v546_v35, %v554_v36  ;;  %v562_v43 = vld [vmem:[%s9885_s7 + $0x608] sm:$0xff]  ;;  %v8429_v47 = vcombine.low %v546_v35, %v554_v36 }
  0x8d   : > { %6524 = vmatpush1.bf16.msra.mxu0 %v8331_v57  ;;  %6688 = vmatpush1.bf16.msra.mxu1 %v8333_v58  ;;  %v8428_v39 = vcombine.high %v545_v33, %v553_v34  ;;  %v561_v41 = vld [vmem:[%s9885_s7 + $0x600] sm:$0xff]  ;;  %v570_v44 = vld [vmem:[%s9885_s7 + $0x648] sm:$0xff]  ;;  %v8427_v46 = vcombine.low %v545_v33, %v553_v34 }
  0x8e   : > { %6525 = vmatprep.subr.bf16.mxu0 %v8348_v59  ;;  %6689 = vmatprep.subr.bf16.mxu1 %v8350_v61  ;;  %v569_v42 = vld [vmem:[%s9885_s7 + $0x640] sm:$0xff]  ;;  %v8446_v49 = vcombine.high %v562_v43, %v570_v44  ;;  %v578_v52 = vld [vmem:[%s9885_s7 + $0x688] sm:$0xff]  ;;  %v8445_v56 = vcombine.low %v562_v43, %v570_v44 }
  0x8f   : > { %v8444_v48 = vcombine.high %v561_v41, %v569_v42  ;;  %v577_v50 = vld [vmem:[%s9885_s7 + $0x680] sm:$0xff]  ;;  %v586_v53 = vld [vmem:[%s9885_s7 + $0x6c8] sm:$0xff]  ;;  %v8443_v55 = vcombine.low %v561_v41, %v569_v42 }
  0x90   : > { %v585_v51 = vld [vmem:[%s9885_s7 + $0x6c0] sm:$0xff]  ;;  %v8462_v58 = vcombine.high %v578_v52, %v586_v53  ;;  %v594_v62 = vld [vmem:[%s9885_s7 + $0x708] sm:$0xff]  ;;  %v8461_v2 = vcombine.low %v578_v52, %v586_v53 }
  0x91   : > { %6526 = vmatpush1.bf16.msra.mxu0 %v8347_v3  ;;  %6690 = vmatpush1.bf16.msra.mxu1 %v8349_v5  ;;  %v8460_v57 = vcombine.high %v577_v50, %v585_v51  ;;  %v593_v59 = vld [vmem:[%s9885_s7 + $0x700] sm:$0xff]  ;;  %v602_v63 = vld [vmem:[%s9885_s7 + $0x748] sm:$0xff]  ;;  %v8459_v1 = vcombine.low %v577_v50, %v585_v51 }
  0x92   : > { %6527 = vmatprep.subr.bf16.mxu0 %v8364_v6  ;;  %6691 = vmatprep.subr.bf16.mxu1 %v8366_v7  ;;  %v601_v61 = vld [vmem:[%s9885_s7 + $0x740] sm:$0xff]  ;;  %v8478_v4 = vcombine.high %v594_v62, %v602_v63  ;;  %v319_v7 = vcombine.high %v9946_v60, %v9946_v60  ;;  %v610_v8 = vld [vmem:[%s9885_s7 + $0x788] sm:$0xff]  ;;  %v8477_v12 = vcombine.low %v594_v62, %v602_v63 }
  0x93   : > { %v8476_v3 = vcombine.high %v593_v59, %v601_v61  ;;  %v609_v5 = vld [vmem:[%s9885_s7 + $0x780] sm:$0xff]  ;;  %v618_v9 = vld [vmem:[%s9885_s7 + $0x7c8] sm:$0xff]  ;;  %v8475_v11 = vcombine.low %v593_v59, %v601_v61 }
  0x94   : > { %v617_v6 = vld [vmem:[%s9885_s7 + $0x7c0] sm:$0xff]  ;;  %v9999_v17 = vrot.slane %v319_v7, %v9941_v54  ;;  %v626_v60 = vld [vmem:[%s9885_s7 + $0x808] sm:$0xff]  ;;  %v8493_v20 = vcombine.low %v610_v8, %v618_v9 }
  0x95   : > { %6528 = vmatpush1.bf16.msra.mxu0 %v8363_v13  ;;  %6692 = vmatpush1.bf16.msra.mxu1 %v8365_v14  ;;  %v8492_v13 = vcombine.high %v609_v5, %v617_v6  ;;  %v8494_v14 = vcombine.high %v610_v8, %v618_v9  ;;  %v634_v18 = vld [vmem:[%s9885_s7 + $0x848] sm:$0xff]  ;;  %v8491_v19 = vcombine.low %v609_v5, %v617_v6  ;;  %v657_v33 = vld [vmem:[%s9885_s7 + $0x900] sm:$0xff] }
  0x96   : > { %6529 = vmatprep.subr.bf16.mxu0 %v8380_v15  ;;  %6693 = vmatprep.subr.bf16.mxu1 %v8382_v16  ;;  %v625_v15 = vld [vmem:[%s9885_s7 + $0x800] sm:$0xff]  ;;  %v335_v25 = vcombine.high %v9999_v17, %v9999_v17  ;;  %v642_v27 = vld [vmem:[%s9885_s7 + $0x888] sm:$0xff] }
  0x97   : > { %v633_v16 = vld [vmem:[%s9885_s7 + $0x840] sm:$0xff]  ;;  %v650_v28 = vld [vmem:[%s9885_s7 + $0x8c8] sm:$0xff] }
  0x98   : > { %v665_v34 = vld [vmem:[%s9885_s7 + $0x940] sm:$0xff]  ;;  %v10015_v35 = vpack.c.bf16 %v335_v25, %v335_v25  ;;  %v658_v0 = vld [vmem:[%s9885_s7 + $0x908] sm:$0xff] }
  0x99   : > { %6530 = vmatpush1.bf16.msra.mxu0 %v8379_v21  ;;  %6694 = vmatpush1.bf16.msra.mxu1 %v8381_v22  ;;  %v8508_v21 = vcombine.high %v625_v15, %v633_v16  ;;  %v8510_v22 = vcombine.high %v626_v60, %v634_v18  ;;  %v666_v36 = vld [vmem:[%s9885_s7 + $0x948] sm:$0xff]  ;;  %v673_v41 = vld [vmem:[%s9885_s7 + $0x980] sm:$0xff] }
  0x9a   : > { %6531 = vmatprep.subr.bf16.mxu0 %v8396_v23  ;;  %6695 = vmatprep.subr.bf16.mxu1 %v8398_v24  ;;  %v641_v23 = vld [vmem:[%s9885_s7 + $0x880] sm:$0xff]  ;;  %v674_v43 = vld [vmem:[%s9885_s7 + $0x988] sm:$0xff] }
  0x9b   : > { %v649_v24 = vld [vmem:[%s9885_s7 + $0x8c0] sm:$0xff]  ;;  %v682_v44 = vld [vmem:[%s9885_s7 + $0x9c8] sm:$0xff] }
  0x9c   : > { %v681_v42 = vld [vmem:[%s9885_s7 + $0x9c0] sm:$0xff]  ;;  %v690_v52 = vld [vmem:[%s9885_s7 + $0xa08] sm:$0xff] }
  0x9d   : > { %6532 = vmatpush1.bf16.msra.mxu0 %v8395_v29  ;;  %6696 = vmatpush1.bf16.msra.mxu1 %v8397_v30  ;;  %v8507_v29 = vcombine.low %v625_v15, %v633_v16  ;;  %v8509_v30 = vcombine.low %v626_v60, %v634_v18  ;;  %v689_v50 = vld [vmem:[%s9885_s7 + $0xa00] sm:$0xff]  ;;  %v698_v53 = vld [vmem:[%s9885_s7 + $0xa48] sm:$0xff] }
  0x9e   : > { %6533 = vmatprep.subr.bf16.mxu0 %v8412_v31  ;;  %6697 = vmatprep.subr.bf16.mxu1 %v8414_v32  ;;  %v8524_v31 = vcombine.high %v641_v23, %v649_v24  ;;  %v8526_v32 = vcombine.high %v642_v27, %v650_v28  ;;  %v697_v51 = vld [vmem:[%s9885_s7 + $0xa40] sm:$0xff]  ;;  %v706_v62 = vld [vmem:[%s9885_s7 + $0xa88] sm:$0xff] }
  0x9f   : > { %v705_v59 = vld [vmem:[%s9885_s7 + $0xa80] sm:$0xff]  ;;  %v714_v63 = vld [vmem:[%s9885_s7 + $0xac8] sm:$0xff] }
  0xa0   : > { %v713_v61 = vld [vmem:[%s9885_s7 + $0xac0] sm:$0xff]  ;;  %v722_v7 = vld [vmem:[%s9885_s7 + $0xb08] sm:$0xff] }
  0xa1   : > { %6534 = vmatpush1.bf16.msra.mxu0 %v8411_v37  ;;  %6698 = vmatpush1.bf16.msra.mxu1 %v8413_v38  ;;  %v8523_v37 = vcombine.low %v641_v23, %v649_v24  ;;  %v8525_v38 = vcombine.low %v642_v27, %v650_v28  ;;  %v721_v5 = vld [vmem:[%s9885_s7 + $0xb00] sm:$0xff]  ;;  %v730_v8 = vld [vmem:[%s9885_s7 + $0xb48] sm:$0xff]  ;;  %v8587_v9 = vcombine.low %v705_v59, %v713_v61 }
  0xa2   : > { %6535 = vmatprep.subr.bf16.mxu0 %v8428_v39  ;;  %6699 = vmatprep.subr.bf16.mxu1 %v8430_v40  ;;  %v8540_v39 = vcombine.high %v657_v33, %v665_v34  ;;  %v8542_v40 = vcombine.high %v658_v0, %v666_v36  ;;  %v729_v6 = vld [vmem:[%s9885_s7 + $0xb40] sm:$0xff]  ;;  %v738_v16 = vld [vmem:[%s9885_s7 + $0xb88] sm:$0xff] }
  0xa3   : > { %v745_v15 = vld [vmem:[%s9885_s7 + $0xbc0] sm:$0xff]  ;;  %v746_v60 = vld [vmem:[%s9885_s7 + $0xbc8] sm:$0xff]  ;;  %v8603_v18 = vcombine.low %v721_v5, %v729_v6 }
  0xa4   : > { %v761_v23 = vld [vmem:[%s9885_s7 + $0xc40] sm:$0xff]  ;;  %v754_v24 = vld [vmem:[%s9885_s7 + $0xc08] sm:$0xff]  ;;  %v8621_v28 = vcombine.low %v738_v16, %v746_v60 }
  0xa5   : > { %6536 = vmatpush1.bf16.msra.mxu0 %v8427_v46  ;;  %6700 = vmatpush1.bf16.msra.mxu1 %v8429_v47  ;;  %v8539_v46 = vcombine.low %v657_v33, %v665_v34  ;;  %v8541_v47 = vcombine.low %v658_v0, %v666_v36  ;;  %v762_v25 = vld [vmem:[%s9885_s7 + $0xc48] sm:$0xff] }
  0xa6   : > { %6537 = vmatprep.subr.bf16.mxu0 %v8444_v48  ;;  %6701 = vmatprep.subr.bf16.mxu1 %v8446_v49  ;;  %v8556_v48 = vcombine.high %v673_v41, %v681_v42  ;;  %v8558_v49 = vcombine.high %v674_v43, %v682_v44  ;;  %v770_v33 = vld [vmem:[%s9885_s7 + $0xc88] sm:$0xff]  ;;  %v8637_v36 = vcombine.low %v754_v24, %v762_v25 }
  0xa7   : > { %v778_v34 = vld [vmem:[%s9885_s7 + $0xcc8] sm:$0xff] }
  0xa9   : > { %6538 = vmatpush1.bf16.msra.mxu0 %v8443_v55  ;;  %6702 = vmatpush1.bf16.msra.mxu1 %v8445_v56  ;;  %v8555_v55 = vcombine.low %v673_v41, %v681_v42  ;;  %v8557_v56 = vcombine.low %v674_v43, %v682_v44  ;;  %v786_v41 = vld [vmem:[%s9885_s7 + $0xd08] sm:$0xff]  ;;  %v8653_v44 = vcombine.low %v770_v33, %v778_v34 }
  0xaa   : > { %6539 = vmatprep.subr.bf16.mxu0 %v8460_v57  ;;  %6703 = vmatprep.subr.bf16.mxu1 %v8462_v58  ;;  %v8572_v57 = vcombine.high %v689_v50, %v697_v51  ;;  %v8574_v58 = vcombine.high %v690_v52, %v698_v53  ;;  %v794_v42 = vld [vmem:[%s9885_s7 + $0xd48] sm:$0xff] }
  0xad   : > { %6540 = vmatpush1.bf16.msra.mxu0 %v8459_v1  ;;  %6704 = vmatpush1.bf16.msra.mxu1 %v8461_v2  ;;  %v8571_v1 = vcombine.low %v689_v50, %v697_v51  ;;  %v8573_v2 = vcombine.low %v690_v52, %v698_v53  ;;  %v802_v50 = vld [vmem:[%s9885_s7 + $0xd88] sm:$0xff]  ;;  %v8669_v53 = vcombine.low %v786_v41, %v794_v42 }
  0xae   : > { %6541 = vmatprep.subr.bf16.mxu0 %v8476_v3  ;;  %6705 = vmatprep.subr.bf16.mxu1 %v8478_v4  ;;  %v8588_v3 = vcombine.high %v705_v59, %v713_v61  ;;  %v8590_v4 = vcombine.high %v706_v62, %v714_v63  ;;  %v810_v51 = vld [vmem:[%s9885_s7 + $0xdc8] sm:$0xff] }
  0xaf   : > { %v818_v59 = vld [vmem:[%s9885_s7 + $0xe08] sm:$0xff] }
  0xb0   : > { %v826_v61 = vld [vmem:[%s9885_s7 + $0xe48] sm:$0xff] }
  0xb1   : > { %6542 = vmatpush1.bf16.msra.mxu0 %v8475_v11  ;;  %6706 = vmatpush1.bf16.msra.mxu1 %v8477_v12  ;;  %v8589_v11 = vcombine.low %v706_v62, %v714_v63  ;;  %v8604_v12 = vcombine.high %v721_v5, %v729_v6  ;;  %v8685_v63 = vcombine.low %v802_v50, %v810_v51  ;;  %v834_v5 = vld [vmem:[%s9885_s7 + $0xe88] sm:$0xff] }
  0xb2   : > { %6543 = vmatprep.subr.bf16.mxu0 %v8492_v13  ;;  %6707 = vmatprep.subr.bf16.mxu1 %v8494_v14  ;;  %v8606_v13 = vcombine.high %v722_v7, %v730_v8  ;;  %v737_v14 = vld [vmem:[%s9885_s7 + $0xb80] sm:$0xff]  ;;  %v842_v6 = vld [vmem:[%s9885_s7 + $0xec8] sm:$0xff] }
  0xb3   : > { %v8619_v27 = vcombine.low %v737_v14, %v745_v15 }
  0xb5   : > { %6544 = vmatpush1.bf16.msra.mxu0 %v8491_v19  ;;  %6708 = vmatpush1.bf16.msra.mxu1 %v8493_v20  ;;  %v8605_v19 = vcombine.low %v722_v7, %v730_v8  ;;  %v8620_v20 = vcombine.high %v737_v14, %v745_v15  ;;  %v8701_v8 = vcombine.low %v818_v59, %v826_v61  ;;  %v850_v14 = vld [vmem:[%s9885_s7 + $0xf08] sm:$0xff] }
  0xb6   : > { %6554 = vmatprep.subr.bf16.mxu0 %v8508_v21  ;;  %6718 = vmatprep.subr.bf16.mxu1 %v8510_v22  ;;  %v8622_v21 = vcombine.high %v738_v16, %v746_v60  ;;  %v753_v22 = vld [vmem:[%s9885_s7 + $0xc00] sm:$0xff]  ;;  %v858_v15 = vld [vmem:[%s9885_s7 + $0xf48] sm:$0xff]  ;;  %v8717_v60 = vcombine.low %v834_v5, %v842_v6 }
  0xb7   : > { %v8635_v0 = vcombine.low %v753_v22, %v761_v23 }
  0xb8   : > { %6546 = vmatmul.mubr.bf16.vlgmr.msra.gmra.mrb[0].mxu0 %v10009_v26  ;;  %6710 = vmatmul.mubr.bf16.vlgmr.msra.gmra.mrb[0].mxu1 %v10009_v26 }
  0xb9   : > { %6555 = vmatpush1.bf16.msra.mxu0 %v8507_v29  ;;  %6719 = vmatpush1.bf16.msra.mxu1 %v8509_v30  ;;  %v8636_v29 = vcombine.high %v753_v22, %v761_v23  ;;  %v8638_v30 = vcombine.high %v754_v24, %v762_v25  ;;  %v866_v22 = vld [vmem:[%s9885_s7 + $0xf88] sm:$0xff] }
  0xba   : > { %6556 = vmatprep.subr.bf16.mxu0 %v8524_v31  ;;  %6720 = vmatprep.subr.bf16.mxu1 %v8526_v32  ;;  %v769_v31 = vld [vmem:[%s9885_s7 + $0xc80] sm:$0xff]  ;;  %v874_v23 = vld [vmem:[%s9885_s7 + $0xfc8] sm:$0xff] }
  0xbb   : > { %6586 = vmatprep.mubr.bf16.mxu0 %v10015_v35  ;;  %6750 = vmatprep.mubr.bf16.mxu1 %v10015_v35  ;;  %v777_v32 = vld [vmem:[%s9885_s7 + $0xcc0] sm:$0xff]  ;;  %v10076_v24 = vld [vmem:[%s9904_s26 + $0x8] sm:$0xff] }
  0xbc   : > { %v8651_v43 = vcombine.low %v769_v31, %v777_v32 }
  0xbd   : > { %6557 = vmatpush1.bf16.msra.mxu0 %v8523_v37  ;;  %6721 = vmatpush1.bf16.msra.mxu1 %v8525_v38  ;;  %v8652_v37 = vcombine.high %v769_v31, %v777_v32  ;;  %v8654_v38 = vcombine.high %v770_v33, %v778_v34  ;;  %v889_v31 = vld [vmem:[%s9885_s7 + $0x1040] sm:$0xff]  ;;  %v10082_v32 = vrot.slane %v10076_v24, %v9941_v54  ;;  %v882_v33 = vld [vmem:[%s9885_s7 + $0x1008] sm:$0xff] }
  0xbe   : > { %6558 = vmatprep.subr.bf16.mxu0 %v8540_v39  ;;  %6722 = vmatprep.subr.bf16.mxu1 %v8542_v40  ;;  %v785_v39 = vld [vmem:[%s9885_s7 + $0xd00] sm:$0xff]  ;;  %v890_v34 = vld [vmem:[%s9885_s7 + $0x1048] sm:$0xff] }
  0xbf   : > { %v793_v40 = vld [vmem:[%s9885_s7 + $0xd40] sm:$0xff] }
  0xc0   : > { %v8667_v52 = vcombine.low %v785_v39, %v793_v40 }
  0xc1   : > { %6559 = vmatpush1.bf16.msra.mxu0 %v8539_v46  ;;  %6723 = vmatpush1.bf16.msra.mxu1 %v8541_v47  ;;  %v8668_v46 = vcombine.high %v785_v39, %v793_v40  ;;  %v8670_v47 = vcombine.high %v786_v41, %v794_v42  ;;  %v897_v39 = vld [vmem:[%s9885_s7 + $0x1080] sm:$0xff]  ;;  %v351_v41 = vcombine.high %v10082_v32, %v10082_v32 }
  0xc2   : > { %6560 = vmatprep.subr.bf16.mxu0 %v8556_v48  ;;  %6724 = vmatprep.subr.bf16.mxu1 %v8558_v49  ;;  %v801_v48 = vld [vmem:[%s9885_s7 + $0xd80] sm:$0xff]  ;;  %v10092_v42 = vpack.c.bf16 %v9999_v17, %v9999_v17  ;;  %v914_v17 = vld [vmem:[%s9885_s7 + $0x1108] sm:$0xff] }
  0xc3   : > { %v809_v49 = vld [vmem:[%s9885_s7 + $0xdc0] sm:$0xff] }
  0xc4   : > { %v8683_v62 = vcombine.low %v801_v48, %v809_v49  ;;  %v905_v40 = vld [vmem:[%s9885_s7 + $0x10c0] sm:$0xff] }
  0xc5   : > { %6561 = vmatpush1.bf16.msra.mxu0 %v8555_v55  ;;  %6725 = vmatpush1.bf16.msra.mxu1 %v8557_v56  ;;  %v8684_v55 = vcombine.high %v801_v48, %v809_v49  ;;  %v8686_v56 = vcombine.high %v802_v50, %v810_v51  ;;  %v8780_v48 = vcombine.high %v897_v39, %v905_v40  ;;  %v913_v50 = vld [vmem:[%s9885_s7 + $0x1100] sm:$0xff] }
  0xc6   : > { %6562 = vmatprep.subr.bf16.mxu0 %v8572_v57  ;;  %6726 = vmatprep.subr.bf16.mxu1 %v8574_v58  ;;  %v817_v57 = vld [vmem:[%s9885_s7 + $0xe00] sm:$0xff] }
  0xc7   : > { %v825_v58 = vld [vmem:[%s9885_s7 + $0xe40] sm:$0xff] }
  0xc8   : > { %v8699_v7 = vcombine.low %v817_v57, %v825_v58  ;;  %v921_v51 = vld [vmem:[%s9885_s7 + $0x1140] sm:$0xff] }
  0xc9   : > { %6563 = vmatpush1.bf16.msra.mxu0 %v8571_v1  ;;  %6727 = vmatpush1.bf16.msra.mxu1 %v8573_v2  ;;  %v8700_v1 = vcombine.high %v817_v57, %v825_v58  ;;  %v8702_v2 = vcombine.high %v818_v59, %v826_v61  ;;  %v8796_v57 = vcombine.high %v913_v50, %v921_v51  ;;  %v929_v59 = vld [vmem:[%s9885_s7 + $0x1180] sm:$0xff] }
  0xca   : > { %6564 = vmatprep.subr.bf16.mxu0 %v8588_v3  ;;  %6728 = vmatprep.subr.bf16.mxu1 %v8590_v4  ;;  %v833_v3 = vld [vmem:[%s9885_s7 + $0xe80] sm:$0xff] }
  0xcb   : > { %v841_v4 = vld [vmem:[%s9885_s7 + $0xec0] sm:$0xff] }
  0xcc   : > { %v8715_v16 = vcombine.low %v833_v3, %v841_v4  ;;  %v937_v61 = vld [vmem:[%s9885_s7 + $0x11c0] sm:$0xff] }
  0xcd   : > { %6565 = vmatpush1.bf16.msra.mxu0 %v8587_v9  ;;  %6729 = vmatpush1.bf16.msra.mxu1 %v8589_v11  ;;  %v8716_v9 = vcombine.high %v833_v3, %v841_v4  ;;  %v8718_v11 = vcombine.high %v834_v5, %v842_v6  ;;  %v8812_v3 = vcombine.high %v929_v59, %v937_v61  ;;  %v945_v5 = vld [vmem:[%s9885_s7 + $0x1200] sm:$0xff] }
  0xce   : > { %6566 = vmatprep.subr.bf16.mxu0 %v8604_v12  ;;  %6730 = vmatprep.subr.bf16.mxu1 %v8606_v13  ;;  %v849_v12 = vld [vmem:[%s9885_s7 + $0xf00] sm:$0xff] }
  0xcf   : > { %v857_v13 = vld [vmem:[%s9885_s7 + $0xf40] sm:$0xff] }
  0xd0   : > { %v8731_v25 = vcombine.low %v849_v12, %v857_v13  ;;  %v953_v6 = vld [vmem:[%s9885_s7 + $0x1240] sm:$0xff] }
  0xd1   : > { %6567 = vmatpush1.bf16.msra.mxu0 %v8603_v18  ;;  %6731 = vmatpush1.bf16.msra.mxu1 %v8605_v19  ;;  %v8732_v18 = vcombine.high %v849_v12, %v857_v13  ;;  %v8734_v19 = vcombine.high %v850_v14, %v858_v15  ;;  %v8828_v12 = vcombine.high %v945_v5, %v953_v6 }
  0xd2   : > { %6568 = vmatprep.subr.bf16.mxu0 %v8620_v20  ;;  %6732 = vmatprep.subr.bf16.mxu1 %v8622_v21  ;;  %v865_v20 = vld [vmem:[%s9885_s7 + $0xf80] sm:$0xff] }
  0xd3   : > { %v873_v21 = vld [vmem:[%s9885_s7 + $0xfc0] sm:$0xff] }
  0xd5   : > { %6569 = vmatpush1.bf16.msra.mxu0 %v8619_v27  ;;  %6733 = vmatpush1.bf16.msra.mxu1 %v8621_v28  ;;  %v8733_v27 = vcombine.low %v850_v14, %v858_v15  ;;  %v8748_v28 = vcombine.high %v865_v20, %v873_v21  ;;  %v961_v14 = vld [vmem:[%s9885_s7 + $0x1280] sm:$0xff] }
  0xd6   : > { %6570 = vmatprep.subr.bf16.mxu0 %v8636_v29  ;;  %6734 = vmatprep.subr.bf16.mxu1 %v8638_v30  ;;  %v8750_v29 = vcombine.high %v866_v22, %v874_v23  ;;  %v881_v30 = vld [vmem:[%s9885_s7 + $0x1000] sm:$0xff] }
  0xd7   : > { %v969_v15 = vld [vmem:[%s9885_s7 + $0x12c0] sm:$0xff] }
  0xd9   : > { %6571 = vmatpush1.bf16.msra.mxu0 %v8635_v0  ;;  %6735 = vmatpush1.bf16.msra.mxu1 %v8637_v36  ;;  %v8747_v0 = vcombine.low %v865_v20, %v873_v21  ;;  %v8749_v36 = vcombine.low %v866_v22, %v874_v23  ;;  %v8844_v20 = vcombine.high %v961_v14, %v969_v15  ;;  %v977_v22 = vld [vmem:[%s9885_s7 + $0x1300] sm:$0xff] }
  0xda   : > { %6572 = vmatprep.subr.bf16.mxu0 %v8652_v37  ;;  %6736 = vmatprep.subr.bf16.mxu1 %v8654_v38  ;;  %v8764_v37 = vcombine.high %v881_v30, %v889_v31  ;;  %v8766_v38 = vcombine.high %v882_v33, %v890_v34  ;;  %v985_v23 = vld [vmem:[%s9885_s7 + $0x1340] sm:$0xff] }
  0xdd   : > { %6573 = vmatpush1.bf16.msra.mxu0 %v8651_v43  ;;  %6737 = vmatpush1.bf16.msra.mxu1 %v8653_v44  ;;  %v898_v43 = vld [vmem:[%s9885_s7 + $0x1088] sm:$0xff] }
  0xde   : > { %6574 = vmatprep.subr.bf16.mxu0 %v8668_v46  ;;  %6738 = vmatprep.subr.bf16.mxu1 %v8670_v47  ;;  %v906_v44 = vld [vmem:[%s9885_s7 + $0x10c8] sm:$0xff]  ;;  %v8763_v46 = vcombine.low %v881_v30, %v889_v31  ;;  %v8765_v47 = vcombine.low %v882_v33, %v890_v34  ;;  %v8860_v30 = vcombine.high %v977_v22, %v985_v23  ;;  %v993_v33 = vld [vmem:[%s9885_s7 + $0x1380] sm:$0xff] }
  0xdf   : > { %v8782_v49 = vcombine.high %v898_v43, %v906_v44  ;;  %v1001_v34 = vld [vmem:[%s9885_s7 + $0x13c0] sm:$0xff] }
  0xe1   : > { %6575 = vmatpush1.bf16.msra.mxu0 %v8667_v52  ;;  %6739 = vmatpush1.bf16.msra.mxu1 %v8669_v53  ;;  %v10098_v52 = vpack.c.bf16 %v351_v41, %v351_v41  ;;  %v922_v53 = vld [vmem:[%s9885_s7 + $0x1148] sm:$0xff]  ;;  %v1009_v41 = vld [vmem:[%s9885_s7 + $0x1400] sm:$0xff] }
  0xe2   : > { %6576 = vmatprep.subr.bf16.mxu0 %v8684_v55  ;;  %6740 = vmatprep.subr.bf16.mxu1 %v8686_v56  ;;  %v8779_v55 = vcombine.low %v897_v39, %v905_v40  ;;  %v8781_v56 = vcombine.low %v898_v43, %v906_v44  ;;  %v8798_v58 = vcombine.high %v914_v17, %v922_v53  ;;  %v1017_v43 = vld [vmem:[%s9885_s7 + $0x1440] sm:$0xff]  ;;  %v1010_v44 = vld [vmem:[%s9885_s7 + $0x1408] sm:$0xff] }
  0xe3   : > { %v8876_v39 = vcombine.high %v993_v33, %v1001_v34 }
  0xe5   : > { %6577 = vmatpush1.bf16.msra.mxu0 %v8683_v62  ;;  %6741 = vmatpush1.bf16.msra.mxu1 %v8685_v63  ;;  %v930_v62 = vld [vmem:[%s9885_s7 + $0x1188] sm:$0xff] }
  0xe6   : > { %6578 = vmatprep.subr.bf16.mxu0 %v8700_v1  ;;  %6742 = vmatprep.subr.bf16.mxu1 %v8702_v2  ;;  %v938_v63 = vld [vmem:[%s9885_s7 + $0x11c8] sm:$0xff]  ;;  %v8795_v1 = vcombine.low %v913_v50, %v921_v51  ;;  %v8797_v2 = vcombine.low %v914_v17, %v922_v53  ;;  %v1025_v51 = vld [vmem:[%s9885_s7 + $0x1480] sm:$0xff] }
  0xe7   : > { %v8814_v4 = vcombine.high %v930_v62, %v938_v63  ;;  %v1033_v17 = vld [vmem:[%s9885_s7 + $0x14c0] sm:$0xff]  ;;  %v1026_v53 = vld [vmem:[%s9885_s7 + $0x1488] sm:$0xff] }
  0xe9   : > { %6579 = vmatpush1.bf16.msra.mxu0 %v8699_v7  ;;  %6743 = vmatpush1.bf16.msra.mxu1 %v8701_v8  ;;  %v946_v7 = vld [vmem:[%s9885_s7 + $0x1208] sm:$0xff] }
  0xea   : > { %6580 = vmatprep.subr.bf16.mxu0 %v8716_v9  ;;  %6744 = vmatprep.subr.bf16.mxu1 %v8718_v11  ;;  %v954_v8 = vld [vmem:[%s9885_s7 + $0x1248] sm:$0xff]  ;;  %v8811_v9 = vcombine.low %v929_v59, %v937_v61  ;;  %v8813_v11 = vcombine.low %v930_v62, %v938_v63  ;;  %v1041_v61 = vld [vmem:[%s9885_s7 + $0x1500] sm:$0xff] }
  0xeb   : > { %v8830_v13 = vcombine.high %v946_v7, %v954_v8  ;;  %v1049_v62 = vld [vmem:[%s9885_s7 + $0x1540] sm:$0xff]  ;;  %v1042_v63 = vld [vmem:[%s9885_s7 + $0x1508] sm:$0xff] }
  0xed   : > { %6581 = vmatpush1.bf16.msra.mxu0 %v8715_v16  ;;  %6745 = vmatpush1.bf16.msra.mxu1 %v8717_v60  ;;  %v962_v16 = vld [vmem:[%s9885_s7 + $0x1288] sm:$0xff] }
  0xee   : > { %6582 = vmatprep.subr.bf16.mxu0 %v8732_v18  ;;  %6746 = vmatprep.subr.bf16.mxu1 %v8734_v19  ;;  %v970_v60 = vld [vmem:[%s9885_s7 + $0x12c8] sm:$0xff]  ;;  %v8827_v18 = vcombine.low %v945_v5, %v953_v6  ;;  %v8829_v19 = vcombine.low %v946_v7, %v954_v8  ;;  %v1057_v6 = vld [vmem:[%s9885_s7 + $0x1580] sm:$0xff] }
  0xef   : > { %v8846_v21 = vcombine.high %v962_v16, %v970_v60  ;;  %v1065_v7 = vld [vmem:[%s9885_s7 + $0x15c0] sm:$0xff]  ;;  %v1058_v8 = vld [vmem:[%s9885_s7 + $0x1588] sm:$0xff] }
  0xf1   : > { %6583 = vmatpush1.bf16.msra.mxu0 %v8731_v25  ;;  %6747 = vmatpush1.bf16.msra.mxu1 %v8733_v27  ;;  %v978_v25 = vld [vmem:[%s9885_s7 + $0x1308] sm:$0xff] }
  0xf2   : > { %6584 = vmatprep.subr.bf16.mxu0 %v8748_v28  ;;  %6748 = vmatprep.subr.bf16.mxu1 %v8750_v29  ;;  %v986_v27 = vld [vmem:[%s9885_s7 + $0x1348] sm:$0xff]  ;;  %v8843_v28 = vcombine.low %v961_v14, %v969_v15  ;;  %v8845_v29 = vcombine.low %v962_v16, %v970_v60  ;;  %v1073_v15 = vld [vmem:[%s9885_s7 + $0x1600] sm:$0xff] }
  0xf3   : > { %v8862_v31 = vcombine.high %v978_v25, %v986_v27  ;;  %v1081_v16 = vld [vmem:[%s9885_s7 + $0x1640] sm:$0xff]  ;;  %v1074_v60 = vld [vmem:[%s9885_s7 + $0x1608] sm:$0xff] }
  0xf5   : > { %6585 = vmatpush1.bf16.msra.mxu0 %v8747_v0  ;;  %6749 = vmatpush1.bf16.msra.mxu1 %v8749_v36  ;;  %v994_v0 = vld [vmem:[%s9885_s7 + $0x1388] sm:$0xff] }
  0xf6   : > { %6595 = vmatprep.subr.bf16.mxu0 %v8764_v37  ;;  %6759 = vmatprep.subr.bf16.mxu1 %v8766_v38  ;;  %v1002_v36 = vld [vmem:[%s9885_s7 + $0x13c8] sm:$0xff]  ;;  %v8859_v37 = vcombine.low %v977_v22, %v985_v23  ;;  %v8861_v38 = vcombine.low %v978_v25, %v986_v27  ;;  %v1089_v23 = vld [vmem:[%s9885_s7 + $0x1680] sm:$0xff] }
  0xf7   : > { %v8878_v40 = vcombine.high %v994_v0, %v1002_v36  ;;  %v1097_v25 = vld [vmem:[%s9885_s7 + $0x16c0] sm:$0xff]  ;;  %v1090_v27 = vld [vmem:[%s9885_s7 + $0x1688] sm:$0xff] }
  0xf8   : > { %6587 = vmatmul.mubr.bf16.vlgmr.msra.gmra.mrb[0].mxu0 %v10092_v42  ;;  %6751 = vmatmul.mubr.bf16.vlgmr.msra.gmra.mrb[0].mxu1 %v10092_v42 }
  0xf9   : > { %6596 = vmatpush1.bf16.msra.mxu0 %v8763_v46  ;;  %6760 = vmatpush1.bf16.msra.mxu1 %v8765_v47  ;;  %v1018_v46 = vld [vmem:[%s9885_s7 + $0x1448] sm:$0xff]  ;;  %v8875_v47 = vcombine.low %v993_v33, %v1001_v34  ;;  %v1105_v34 = vld [vmem:[%s9885_s7 + $0x1700] sm:$0xff] }
  0xfa   : > { %6597 = vmatprep.subr.bf16.mxu0 %v8780_v48  ;;  %6761 = vmatprep.subr.bf16.mxu1 %v8782_v49  ;;  %v8877_v48 = vcombine.low %v994_v0, %v1002_v36  ;;  %v8892_v49 = vcombine.high %v1009_v41, %v1017_v43  ;;  %v8894_v50 = vcombine.high %v1010_v44, %v1018_v46  ;;  %v1113_v0 = vld [vmem:[%s9885_s7 + $0x1740] sm:$0xff]  ;;  %v1106_v36 = vld [vmem:[%s9885_s7 + $0x1708] sm:$0xff] }
  0xfb   : > { %6627 = vmatprep.mubr.bf16.mxu0 %v10098_v52  ;;  %6791 = vmatprep.mubr.bf16.mxu1 %v10098_v52 }
  0xfd   : > { %6598 = vmatpush1.bf16.msra.mxu0 %v8779_v55  ;;  %6762 = vmatpush1.bf16.msra.mxu1 %v8781_v56  ;;  %v1034_v55 = vld [vmem:[%s9885_s7 + $0x14c8] sm:$0xff]  ;;  %v8891_v56 = vcombine.low %v1009_v41, %v1017_v43  ;;  %v1121_v43 = vld [vmem:[%s9885_s7 + $0x1780] sm:$0xff] }
  0xfe   : > { %6599 = vmatprep.subr.bf16.mxu0 %v8796_v57  ;;  %6763 = vmatprep.subr.bf16.mxu1 %v8798_v58  ;;  %v8893_v57 = vcombine.low %v1010_v44, %v1018_v46  ;;  %v8908_v58 = vcombine.high %v1025_v51, %v1033_v17  ;;  %v8910_v59 = vcombine.high %v1026_v53, %v1034_v55  ;;  %v1129_v44 = vld [vmem:[%s9885_s7 + $0x17c0] sm:$0xff] }
  0xff   : > { %v336_v46 = vcombine.high %v10076_v24, %v10076_v24  ;;  %v1138_v24 = vld [vmem:[%s9885_s7 + $0x1808] sm:$0xff] }
 0x101   : > { %6600 = vmatpush1.bf16.msra.mxu0 %v8795_v1  ;;  %6764 = vmatpush1.bf16.msra.mxu1 %v8797_v2  ;;  %v1050_v1 = vld [vmem:[%s9885_s7 + $0x1548] sm:$0xff]  ;;  %v8907_v2 = vcombine.low %v1025_v51, %v1033_v17  ;;  %v9004_v51 = vcombine.high %v1121_v43, %v1129_v44 }
 0x102   : > { %6601 = vmatprep.subr.bf16.mxu0 %v8812_v3  ;;  %6765 = vmatprep.subr.bf16.mxu1 %v8814_v4  ;;  %v8909_v3 = vcombine.low %v1026_v53, %v1034_v55  ;;  %v8924_v4 = vcombine.high %v1041_v61, %v1049_v62  ;;  %v8926_v5 = vcombine.high %v1042_v63, %v1050_v1  ;;  %v1137_v53 = vld [vmem:[%s9885_s7 + $0x1800] sm:$0xff] }
 0x103   : > { %v1145_v55 = vld [vmem:[%s9885_s7 + $0x1840] sm:$0xff] }
 0x105   : > { %6602 = vmatpush1.bf16.msra.mxu0 %v8811_v9  ;;  %6766 = vmatpush1.bf16.msra.mxu1 %v8813_v11  ;;  %v1066_v9 = vld [vmem:[%s9885_s7 + $0x15c8] sm:$0xff]  ;;  %v8923_v11 = vcombine.low %v1041_v61, %v1049_v62  ;;  %v9020_v61 = vcombine.high %v1137_v53, %v1145_v55 }
 0x106   : > { %6603 = vmatprep.subr.bf16.mxu0 %v8828_v12  ;;  %6767 = vmatprep.subr.bf16.mxu1 %v8830_v13  ;;  %v8925_v12 = vcombine.low %v1042_v63, %v1050_v1  ;;  %v8940_v13 = vcombine.high %v1057_v6, %v1065_v7  ;;  %v8942_v14 = vcombine.high %v1058_v8, %v1066_v9  ;;  %v1153_v63 = vld [vmem:[%s9885_s7 + $0x1880] sm:$0xff] }
 0x107   : > { %v1161_v1 = vld [vmem:[%s9885_s7 + $0x18c0] sm:$0xff] }
 0x109   : > { %6604 = vmatpush1.bf16.msra.mxu0 %v8827_v18  ;;  %6768 = vmatpush1.bf16.msra.mxu1 %v8829_v19  ;;  %v1082_v18 = vld [vmem:[%s9885_s7 + $0x1648] sm:$0xff]  ;;  %v8939_v19 = vcombine.low %v1057_v6, %v1065_v7  ;;  %v9019_v6 = vcombine.low %v1137_v53, %v1145_v55 }
 0x10a   : > { %6605 = vmatprep.subr.bf16.mxu0 %v8844_v20  ;;  %6769 = vmatprep.subr.bf16.mxu1 %v8846_v21  ;;  %v8941_v20 = vcombine.low %v1058_v8, %v1066_v9  ;;  %v8956_v21 = vcombine.high %v1073_v15, %v1081_v16  ;;  %v8958_v22 = vcombine.high %v1074_v60, %v1082_v18 }
 0x10b   : > { %v9036_v8 = vcombine.high %v1153_v63, %v1161_v1 }
 0x10d   : > { %6606 = vmatpush1.bf16.msra.mxu0 %v8843_v28  ;;  %6770 = vmatpush1.bf16.msra.mxu1 %v8845_v29  ;;  %v1098_v28 = vld [vmem:[%s9885_s7 + $0x16c8] sm:$0xff]  ;;  %v8955_v29 = vcombine.low %v1073_v15, %v1081_v16  ;;  %v9035_v15 = vcombine.low %v1153_v63, %v1161_v1 }
 0x10e   : > { %6607 = vmatprep.subr.bf16.mxu0 %v8860_v30  ;;  %6771 = vmatprep.subr.bf16.mxu1 %v8862_v31  ;;  %v8957_v30 = vcombine.low %v1074_v60, %v1082_v18  ;;  %v8972_v31 = vcombine.high %v1089_v23, %v1097_v25  ;;  %v8974_v33 = vcombine.high %v1090_v27, %v1098_v28 }
 0x111   : > { %6608 = vmatpush1.bf16.msra.mxu0 %v8859_v37  ;;  %6772 = vmatpush1.bf16.msra.mxu1 %v8861_v38  ;;  %v1114_v37 = vld [vmem:[%s9885_s7 + $0x1748] sm:$0xff]  ;;  %v8971_v38 = vcombine.low %v1089_v23, %v1097_v25 }
 0x112   : > { %6609 = vmatprep.subr.bf16.mxu0 %v8876_v39  ;;  %6773 = vmatprep.subr.bf16.mxu1 %v8878_v40  ;;  %v8973_v39 = vcombine.low %v1090_v27, %v1098_v28  ;;  %v8988_v40 = vcombine.high %v1105_v34, %v1113_v0  ;;  %v8990_v41 = vcombine.high %v1106_v36, %v1114_v37 }
 0x115   : > { %6610 = vmatpush1.bf16.msra.mxu0 %v8875_v47  ;;  %6774 = vmatpush1.bf16.msra.mxu1 %v8877_v48  ;;  %v1122_v47 = vld [vmem:[%s9885_s7 + $0x1788] sm:$0xff] }
 0x116   : > { %6611 = vmatprep.subr.bf16.mxu0 %v8892_v49  ;;  %6775 = vmatprep.subr.bf16.mxu1 %v8894_v50  ;;  %v1130_v48 = vld [vmem:[%s9885_s7 + $0x17c8] sm:$0xff]  ;;  %v8987_v49 = vcombine.low %v1105_v34, %v1113_v0  ;;  %v8989_v50 = vcombine.low %v1106_v36, %v1114_v37 }
 0x117   : > { %v9006_v17 = vcombine.high %v1122_v47, %v1130_v48 }
 0x119   : > { %6612 = vmatpush1.bf16.msra.mxu0 %v8891_v56  ;;  %6776 = vmatpush1.bf16.msra.mxu1 %v8893_v57  ;;  %v10163_v56 = vrot.slane %v336_v46, %v9941_v54  ;;  %v1146_v57 = vld [vmem:[%s9885_s7 + $0x1848] sm:$0xff] }
 0x11a   : > { %6613 = vmatprep.subr.bf16.mxu0 %v8908_v58  ;;  %6777 = vmatprep.subr.bf16.mxu1 %v8910_v59  ;;  %v9003_v58 = vcombine.low %v1121_v43, %v1129_v44  ;;  %v9005_v59 = vcombine.low %v1122_v47, %v1130_v48  ;;  %v9022_v62 = vcombine.high %v1138_v24, %v1146_v57  ;;  %v1233_v48 = vld [vmem:[%s9885_s7 + $0x1b00] sm:$0xff] }
 0x11b   : > { %v9021_v7 = vcombine.low %v1138_v24, %v1146_v57  ;;  %v1249_v57 = vld [vmem:[%s9885_s7 + $0x1b80] sm:$0xff] }
 0x11d   : > { %6614 = vmatpush1.bf16.msra.mxu0 %v8907_v2  ;;  %6778 = vmatpush1.bf16.msra.mxu1 %v8909_v3  ;;  %v352_v2 = vcombine.high %v10163_v56, %v10163_v56  ;;  %v10173_v3 = vpack.c.bf16 %v10082_v32, %v10082_v32  ;;  %v1170_v32 = vld [vmem:[%s9885_s7 + $0x1908] sm:$0xff] }
 0x11e   : > { %6615 = vmatprep.subr.bf16.mxu0 %v8924_v4  ;;  %6779 = vmatprep.subr.bf16.mxu1 %v8926_v5  ;;  %v1154_v4 = vld [vmem:[%s9885_s7 + $0x1888] sm:$0xff] }
 0x11f   : > { %v1162_v5 = vld [vmem:[%s9885_s7 + $0x18c8] sm:$0xff] }
 0x120   : > { %v9038_v9 = vcombine.high %v1154_v4, %v1162_v5  ;;  %v9037_v16 = vcombine.low %v1154_v4, %v1162_v5  ;;  %v1265_v4 = vld [vmem:[%s9885_s7 + $0x1c00] sm:$0xff] }
 0x121   : > { %6616 = vmatpush1.bf16.msra.mxu0 %v8923_v11  ;;  %6780 = vmatpush1.bf16.msra.mxu1 %v8925_v12  ;;  %v1169_v11 = vld [vmem:[%s9885_s7 + $0x1900] sm:$0xff] }
 0x122   : > { %6617 = vmatprep.subr.bf16.mxu0 %v8940_v13  ;;  %6781 = vmatprep.subr.bf16.mxu1 %v8942_v14  ;;  %v1177_v12 = vld [vmem:[%s9885_s7 + $0x1940] sm:$0xff]  ;;  %v10179_v13 = vpack.c.bf16 %v352_v2, %v352_v2  ;;  %v1178_v14 = vld [vmem:[%s9885_s7 + $0x1948] sm:$0xff] }
 0x123   : > { %v9052_v60 = vcombine.high %v1169_v11, %v1177_v12  ;;  %v9054_v18 = vcombine.high %v1170_v32, %v1178_v14  ;;  %v9051_v23 = vcombine.low %v1169_v11, %v1177_v12  ;;  %v9053_v25 = vcombine.low %v1170_v32, %v1178_v14  ;;  %v1273_v5 = vld [vmem:[%s9885_s7 + $0x1c40] sm:$0xff] }
 0x124   : > { %v9148_v11 = vcombine.high %v1265_v4, %v1273_v5  ;;  %v1281_v32 = vld [vmem:[%s9885_s7 + $0x1c80] sm:$0xff] }
 0x125   : > { %6618 = vmatpush1.bf16.msra.mxu0 %v8939_v19  ;;  %6782 = vmatpush1.bf16.msra.mxu1 %v8941_v20  ;;  %v1185_v19 = vld [vmem:[%s9885_s7 + $0x1980] sm:$0xff] }
 0x126   : > { %6619 = vmatprep.subr.bf16.mxu0 %v8956_v21  ;;  %6783 = vmatprep.subr.bf16.mxu1 %v8958_v22  ;;  %v1193_v20 = vld [vmem:[%s9885_s7 + $0x19c0] sm:$0xff]  ;;  %v1186_v21 = vld [vmem:[%s9885_s7 + $0x1988] sm:$0xff] }
 0x127   : > { %v1194_v22 = vld [vmem:[%s9885_s7 + $0x19c8] sm:$0xff]  ;;  %v9068_v27 = vcombine.high %v1185_v19, %v1193_v20  ;;  %v9067_v34 = vcombine.low %v1185_v19, %v1193_v20  ;;  %v1289_v14 = vld [vmem:[%s9885_s7 + $0x1cc0] sm:$0xff] }
 0x128   : > { %v9070_v28 = vcombine.high %v1186_v21, %v1194_v22  ;;  %v9069_v0 = vcombine.low %v1186_v21, %v1194_v22  ;;  %v9164_v19 = vcombine.high %v1281_v32, %v1289_v14  ;;  %v1297_v21 = vld [vmem:[%s9885_s7 + $0x1d00] sm:$0xff] }
 0x129   : > { %6620 = vmatpush1.bf16.msra.mxu0 %v8955_v29  ;;  %6784 = vmatpush1.bf16.msra.mxu1 %v8957_v30  ;;  %v1201_v29 = vld [vmem:[%s9885_s7 + $0x1a00] sm:$0xff] }
 0x12a   : > { %6621 = vmatprep.subr.bf16.mxu0 %v8972_v31  ;;  %6785 = vmatprep.subr.bf16.mxu1 %v8974_v33  ;;  %v1209_v30 = vld [vmem:[%s9885_s7 + $0x1a40] sm:$0xff]  ;;  %v1202_v31 = vld [vmem:[%s9885_s7 + $0x1a08] sm:$0xff] }
 0x12b   : > { %v1210_v33 = vld [vmem:[%s9885_s7 + $0x1a48] sm:$0xff]  ;;  %v9084_v36 = vcombine.high %v1201_v29, %v1209_v30  ;;  %v9083_v43 = vcombine.low %v1201_v29, %v1209_v30  ;;  %v1305_v22 = vld [vmem:[%s9885_s7 + $0x1d40] sm:$0xff] }
 0x12c   : > { %v9086_v37 = vcombine.high %v1202_v31, %v1210_v33  ;;  %v9085_v44 = vcombine.low %v1202_v31, %v1210_v33  ;;  %v9180_v29 = vcombine.high %v1297_v21, %v1305_v22  ;;  %v1313_v31 = vld [vmem:[%s9885_s7 + $0x1d80] sm:$0xff] }
 0x12d   : > { %6622 = vmatpush1.bf16.msra.mxu0 %v8971_v38  ;;  %6786 = vmatpush1.bf16.msra.mxu1 %v8973_v39  ;;  %v1217_v38 = vld [vmem:[%s9885_s7 + $0x1a80] sm:$0xff] }
 0x12e   : > { %6623 = vmatprep.subr.bf16.mxu0 %v8988_v40  ;;  %6787 = vmatprep.subr.bf16.mxu1 %v8990_v41  ;;  %v1225_v39 = vld [vmem:[%s9885_s7 + $0x1ac0] sm:$0xff]  ;;  %v1218_v40 = vld [vmem:[%s9885_s7 + $0x1a88] sm:$0xff] }
 0x12f   : > { %v1226_v41 = vld [vmem:[%s9885_s7 + $0x1ac8] sm:$0xff]  ;;  %v9100_v46 = vcombine.high %v1217_v38, %v1225_v39  ;;  %v1321_v33 = vld [vmem:[%s9885_s7 + $0x1dc0] sm:$0xff] }
 0x130   : > { %v9102_v47 = vcombine.high %v1218_v40, %v1226_v41  ;;  %v9101_v53 = vcombine.low %v1218_v40, %v1226_v41  ;;  %v1329_v40 = vld [vmem:[%s9885_s7 + $0x1e00] sm:$0xff] }
 0x131   : > { %6624 = vmatpush1.bf16.msra.mxu0 %v8987_v49  ;;  %6788 = vmatpush1.bf16.msra.mxu1 %v8989_v50  ;;  %v1241_v49 = vld [vmem:[%s9885_s7 + $0x1b40] sm:$0xff]  ;;  %v1234_v50 = vld [vmem:[%s9885_s7 + $0x1b08] sm:$0xff] }
 0x132   : > { %6625 = vmatprep.subr.bf16.mxu0 %v9004_v51  ;;  %6789 = vmatprep.subr.bf16.mxu1 %v9006_v17  ;;  %v1242_v51 = vld [vmem:[%s9885_s7 + $0x1b48] sm:$0xff]  ;;  %v9099_v17 = vcombine.low %v1217_v38, %v1225_v39  ;;  %v9116_v55 = vcombine.high %v1233_v48, %v1241_v49  ;;  %v9196_v38 = vcombine.high %v1313_v31, %v1321_v33  ;;  %v1337_v41 = vld [vmem:[%s9885_s7 + $0x1e40] sm:$0xff] }
 0x133   : > { %v9118_v24 = vcombine.high %v1234_v50, %v1242_v51  ;;  %v9117_v63 = vcombine.low %v1234_v50, %v1242_v51  ;;  %v1345_v50 = vld [vmem:[%s9885_s7 + $0x1e80] sm:$0xff] }
 0x134   : > { %v1353_v51 = vld [vmem:[%s9885_s7 + $0x1ec0] sm:$0xff] }
 0x135   : > { %6626 = vmatpush1.bf16.msra.mxu0 %v9003_v58  ;;  %6790 = vmatpush1.bf16.msra.mxu1 %v9005_v59  ;;  %v1257_v58 = vld [vmem:[%s9885_s7 + $0x1bc0] sm:$0xff]  ;;  %v1250_v59 = vld [vmem:[%s9885_s7 + $0x1b88] sm:$0xff] }
 0x136   : > { %6636 = vmatprep.subr.bf16.mxu0 %v9020_v61  ;;  %6800 = vmatprep.subr.bf16.mxu1 %v9022_v62  ;;  %v1258_v61 = vld [vmem:[%s9885_s7 + $0x1bc8] sm:$0xff]  ;;  %v9115_v62 = vcombine.low %v1233_v48, %v1241_v49  ;;  %v9132_v1 = vcombine.high %v1249_v57, %v1257_v58  ;;  %v9212_v48 = vcombine.high %v1329_v40, %v1337_v41 }
 0x137   : > { %v9134_v2 = vcombine.high %v1250_v59, %v1258_v61 }
 0x138   : > { %6628 = vmatmul.mubr.bf16.vlgmr.msra.gmra.mrb[0].mxu0 %v10173_v3  ;;  %6792 = vmatmul.mubr.bf16.vlgmr.msra.gmra.mrb[0].mxu1 %v10173_v3 }
 0x139   : > { %6637 = vmatpush1.bf16.msra.mxu0 %v9019_v6  ;;  %6801 = vmatpush1.bf16.msra.mxu1 %v9021_v7  ;;  %v1266_v6 = vld [vmem:[%s9885_s7 + $0x1c08] sm:$0xff] }
 0x13a   : > { %6638 = vmatprep.subr.bf16.mxu0 %v9036_v8  ;;  %6802 = vmatprep.subr.bf16.mxu1 %v9038_v9  ;;  %v1274_v7 = vld [vmem:[%s9885_s7 + $0x1c48] sm:$0xff]  ;;  %v9131_v8 = vcombine.low %v1249_v57, %v1257_v58  ;;  %v9133_v9 = vcombine.low %v1250_v59, %v1258_v61  ;;  %v9228_v57 = vcombine.high %v1345_v50, %v1353_v51  ;;  %v1361_v59 = vld [vmem:[%s9885_s7 + $0x1f00] sm:$0xff] }
 0x13b   : > { %6668 = vmatprep.mubr.bf16.mxu0 %v10179_v13  ;;  %6832 = vmatprep.mubr.bf16.mxu1 %v10179_v13  ;;  %v9150_v12 = vcombine.high %v1266_v6, %v1274_v7  ;;  %v1369_v61 = vld [vmem:[%s9885_s7 + $0x1f40] sm:$0xff] }
 0x13d   : > { %6639 = vmatpush1.bf16.msra.mxu0 %v9035_v15  ;;  %6803 = vmatpush1.bf16.msra.mxu1 %v9037_v16  ;;  %v1282_v15 = vld [vmem:[%s9885_s7 + $0x1c88] sm:$0xff] }
 0x13e   : > { %6640 = vmatprep.subr.bf16.mxu0 %v9052_v60  ;;  %6804 = vmatprep.subr.bf16.mxu1 %v9054_v18  ;;  %v1290_v16 = vld [vmem:[%s9885_s7 + $0x1cc8] sm:$0xff]  ;;  %v9147_v60 = vcombine.low %v1265_v4, %v1273_v5  ;;  %v9149_v18 = vcombine.low %v1266_v6, %v1274_v7  ;;  %v9244_v4 = vcombine.high %v1361_v59, %v1369_v61  ;;  %v1377_v6 = vld [vmem:[%s9885_s7 + $0x1f80] sm:$0xff] }
 0x13f   : > { %v9166_v20 = vcombine.high %v1282_v15, %v1290_v16  ;;  %v1385_v7 = vld [vmem:[%s9885_s7 + $0x1fc0] sm:$0xff] }
 0x141   : > { %6641 = vmatpush1.bf16.msra.mxu0 %v9051_v23  ;;  %6805 = vmatpush1.bf16.msra.mxu1 %v9053_v25  ;;  %v1298_v23 = vld [vmem:[%s9885_s7 + $0x1d08] sm:$0xff] }
 0x142   : > { %6642 = vmatprep.subr.bf16.mxu0 %v9068_v27  ;;  %6806 = vmatprep.subr.bf16.mxu1 %v9070_v28  ;;  %v1306_v25 = vld [vmem:[%s9885_s7 + $0x1d48] sm:$0xff]  ;;  %v9163_v27 = vcombine.low %v1281_v32, %v1289_v14  ;;  %v9165_v28 = vcombine.low %v1282_v15, %v1290_v16  ;;  %v9260_v32 = vcombine.high %v1377_v6, %v1385_v7  ;;  %v371_v15 = vld [vmem:[%s9885_s7 + $0x10] sm:$0xff] }
 0x143   : > { %v9182_v30 = vcombine.high %v1298_v23, %v1306_v25  ;;  %v379_v16 = vld [vmem:[%s9885_s7 + $0x50] sm:$0xff] }
 0x145   : > { %6643 = vmatpush1.bf16.msra.mxu0 %v9067_v34  ;;  %6807 = vmatpush1.bf16.msra.mxu1 %v9069_v0  ;;  %v1314_v34 = vld [vmem:[%s9885_s7 + $0x1d88] sm:$0xff] }
 0x146   : > { %6644 = vmatprep.subr.bf16.mxu0 %v9084_v36  ;;  %6808 = vmatprep.subr.bf16.mxu1 %v9086_v37  ;;  %v1322_v0 = vld [vmem:[%s9885_s7 + $0x1dc8] sm:$0xff]  ;;  %v9179_v36 = vcombine.low %v1297_v21, %v1305_v22  ;;  %v9181_v37 = vcombine.low %v1298_v23, %v1306_v25  ;;  %v8256_v21 = vcombine.high %v371_v15, %v379_v16  ;;  %v387_v23 = vld [vmem:[%s9885_s7 + $0x90] sm:$0xff] }
 0x147   : > { %v9198_v39 = vcombine.high %v1314_v34, %v1322_v0  ;;  %v395_v25 = vld [vmem:[%s9885_s7 + $0xd0] sm:$0xff] }
 0x149   : > { %6645 = vmatpush1.bf16.msra.mxu0 %v9083_v43  ;;  %6809 = vmatpush1.bf16.msra.mxu1 %v9085_v44  ;;  %v1330_v43 = vld [vmem:[%s9885_s7 + $0x1e08] sm:$0xff] }
 0x14a   : > { %6646 = vmatprep.subr.bf16.mxu0 %v9100_v46  ;;  %6810 = vmatprep.subr.bf16.mxu1 %v9102_v47  ;;  %v1338_v44 = vld [vmem:[%s9885_s7 + $0x1e48] sm:$0xff]  ;;  %v9195_v46 = vcombine.low %v1313_v31, %v1321_v33  ;;  %v9197_v47 = vcombine.low %v1314_v34, %v1322_v0  ;;  %v8272_v33 = vcombine.high %v387_v23, %v395_v25  ;;  %v403_v0 = vld [vmem:[%s9885_s7 + $0x110] sm:$0xff] }
 0x14b   : > { %v9214_v49 = vcombine.high %v1330_v43, %v1338_v44 }
 0x14d   : > { %6647 = vmatpush1.bf16.msra.mxu0 %v9099_v17  ;;  %6811 = vmatpush1.bf16.msra.mxu1 %v9101_v53  ;;  %v1346_v17 = vld [vmem:[%s9885_s7 + $0x1e88] sm:$0xff] }
 0x14e   : > { %6648 = vmatprep.subr.bf16.mxu0 %v9116_v55  ;;  %6812 = vmatprep.subr.bf16.mxu1 %v9118_v24  ;;  %v1354_v53 = vld [vmem:[%s9885_s7 + $0x1ec8] sm:$0xff]  ;;  %v9211_v55 = vcombine.low %v1329_v40, %v1337_v41  ;;  %v9213_v24 = vcombine.low %v1330_v43, %v1338_v44  ;;  %v419_v43 = vld [vmem:[%s9885_s7 + $0x190] sm:$0xff] }
 0x14f   : > { %v9230_v58 = vcombine.high %v1346_v17, %v1354_v53  ;;  %v427_v44 = vld [vmem:[%s9885_s7 + $0x1d0] sm:$0xff] }
 0x151   : > { %6649 = vmatpush1.bf16.msra.mxu0 %v9115_v62  ;;  %6813 = vmatpush1.bf16.msra.mxu1 %v9117_v63  ;;  %v1362_v62 = vld [vmem:[%s9885_s7 + $0x1f08] sm:$0xff] }
 0x152   : > { %6650 = vmatprep.subr.bf16.mxu0 %v9132_v1  ;;  %6814 = vmatprep.subr.bf16.mxu1 %v9134_v2  ;;  %v1370_v63 = vld [vmem:[%s9885_s7 + $0x1f48] sm:$0xff]  ;;  %v9227_v1 = vcombine.low %v1345_v50, %v1353_v51  ;;  %v9229_v2 = vcombine.low %v1346_v17, %v1354_v53  ;;  %v8304_v50 = vcombine.high %v419_v43, %v427_v44  ;;  %v435_v17 = vld [vmem:[%s9885_s7 + $0x210] sm:$0xff] }
 0x153   : > { %v9246_v5 = vcombine.high %v1362_v62, %v1370_v63  ;;  %v443_v53 = vld [vmem:[%s9885_s7 + $0x250] sm:$0xff] }
 0x155   : > { %6651 = vmatpush1.bf16.msra.mxu0 %v9131_v8  ;;  %6815 = vmatpush1.bf16.msra.mxu1 %v9133_v9  ;;  %v1378_v8 = vld [vmem:[%s9885_s7 + $0x1f88] sm:$0xff] }
 0x156   : > { %6652 = vmatprep.subr.bf16.mxu0 %v9148_v11  ;;  %6816 = vmatprep.subr.bf16.mxu1 %v9150_v12  ;;  %v1386_v9 = vld [vmem:[%s9885_s7 + $0x1fc8] sm:$0xff]  ;;  %v9243_v11 = vcombine.low %v1361_v59, %v1369_v61  ;;  %v9245_v12 = vcombine.low %v1362_v62, %v1370_v63  ;;  %v8320_v59 = vcombine.high %v435_v17, %v443_v53  ;;  %v451_v62 = vld [vmem:[%s9885_s7 + $0x290] sm:$0xff] }
 0x157   : > { %v9262_v14 = vcombine.high %v1378_v8, %v1386_v9  ;;  %v459_v63 = vld [vmem:[%s9885_s7 + $0x2d0] sm:$0xff] }
 0x159   : > { %6653 = vmatpush1.bf16.msra.mxu0 %v9147_v60  ;;  %6817 = vmatpush1.bf16.msra.mxu1 %v9149_v18  ;;  %v372_v60 = vld [vmem:[%s9885_s7 + $0x18] sm:$0xff] }
 0x15a   : > { %6654 = vmatprep.subr.bf16.mxu0 %v9164_v19  ;;  %6818 = vmatprep.subr.bf16.mxu1 %v9166_v20  ;;  %v380_v18 = vld [vmem:[%s9885_s7 + $0x58] sm:$0xff]  ;;  %v9259_v19 = vcombine.low %v1377_v6, %v1385_v7  ;;  %v9261_v20 = vcombine.low %v1378_v8, %v1386_v9  ;;  %v8336_v6 = vcombine.high %v451_v62, %v459_v63  ;;  %v467_v8 = vld [vmem:[%s9885_s7 + $0x310] sm:$0xff] }
 0x15b   : > { %v8258_v22 = vcombine.high %v372_v60, %v380_v18  ;;  %v8257_v31 = vcombine.low %v372_v60, %v380_v18  ;;  %v475_v9 = vld [vmem:[%s9885_s7 + $0x350] sm:$0xff] }
 0x15c   : > { %v483_v60 = vld [vmem:[%s9885_s7 + $0x390] sm:$0xff] }
 0x15d   : > { %6655 = vmatpush1.bf16.msra.mxu0 %v9163_v27  ;;  %6819 = vmatpush1.bf16.msra.mxu1 %v9165_v28  ;;  %v10247_v27 = vpack.c.bf16 %v10163_v56, %v10163_v56  ;;  %v388_v28 = vld [vmem:[%s9885_s7 + $0x98] sm:$0xff]  ;;  %v491_v18 = vld [vmem:[%s9885_s7 + $0x3d0] sm:$0xff] }
 0x15e   : > { %6656 = vmatprep.subr.bf16.mxu0 %v9180_v29  ;;  %6820 = vmatprep.subr.bf16.mxu1 %v9182_v30  ;;  %v396_v29 = vld [vmem:[%s9885_s7 + $0xd8] sm:$0xff]  ;;  %v8255_v30 = vcombine.low %v371_v15, %v379_v16  ;;  %v8352_v15 = vcombine.high %v467_v8, %v475_v9 }
 0x15f   : > { %v8274_v34 = vcombine.high %v388_v28, %v396_v29  ;;  %v404_v56 = vld [vmem:[%s9885_s7 + $0x118] sm:$0xff] }
 0x161   : > { %6657 = vmatpush1.bf16.msra.mxu0 %v9179_v36  ;;  %6821 = vmatpush1.bf16.msra.mxu1 %v9181_v37  ;;  %v411_v36 = vld [vmem:[%s9885_s7 + $0x150] sm:$0xff]  ;;  %v412_v37 = vld [vmem:[%s9885_s7 + $0x158] sm:$0xff] }
 0x162   : > { %6658 = vmatprep.subr.bf16.mxu0 %v9196_v38  ;;  %6822 = vmatprep.subr.bf16.mxu1 %v9198_v39  ;;  %v8271_v38 = vcombine.low %v387_v23, %v395_v25  ;;  %v8273_v39 = vcombine.low %v388_v28, %v396_v29  ;;  %v8288_v40 = vcombine.high %v403_v0, %v411_v36  ;;  %v499_v28 = vld [vmem:[%s9885_s7 + $0x410] sm:$0xff] }
 0x163   : > { %v8290_v41 = vcombine.high %v404_v56, %v412_v37  ;;  %v8368_v23 = vcombine.high %v483_v60, %v491_v18  ;;  %v507_v29 = vld [vmem:[%s9885_s7 + $0x450] sm:$0xff] }
 0x165   : > { %6659 = vmatpush1.bf16.msra.mxu0 %v9195_v46  ;;  %6823 = vmatpush1.bf16.msra.mxu1 %v9197_v47  ;;  %v420_v46 = vld [vmem:[%s9885_s7 + $0x198] sm:$0xff] }
 0x166   : > { %6660 = vmatprep.subr.bf16.mxu0 %v9212_v48  ;;  %6824 = vmatprep.subr.bf16.mxu1 %v9214_v49  ;;  %v428_v47 = vld [vmem:[%s9885_s7 + $0x1d8] sm:$0xff]  ;;  %v8287_v48 = vcombine.low %v403_v0, %v411_v36  ;;  %v8289_v49 = vcombine.low %v404_v56, %v412_v37  ;;  %v8384_v0 = vcombine.high %v499_v28, %v507_v29  ;;  %v515_v56 = vld [vmem:[%s9885_s7 + $0x490] sm:$0xff] }
 0x167   : > { %v8306_v51 = vcombine.high %v420_v46, %v428_v47  ;;  %v523_v37 = vld [vmem:[%s9885_s7 + $0x4d0] sm:$0xff] }
 0x169   : > { %6661 = vmatpush1.bf16.msra.mxu0 %v9211_v55  ;;  %6825 = vmatpush1.bf16.msra.mxu1 %v9213_v24  ;;  %v436_v55 = vld [vmem:[%s9885_s7 + $0x218] sm:$0xff] }
 0x16a   : > { %6662 = vmatprep.subr.bf16.mxu0 %v9228_v57  ;;  %6826 = vmatprep.subr.bf16.mxu1 %v9230_v58  ;;  %v444_v24 = vld [vmem:[%s9885_s7 + $0x258] sm:$0xff]  ;;  %v8303_v57 = vcombine.low %v419_v43, %v427_v44  ;;  %v8305_v58 = vcombine.low %v420_v46, %v428_v47  ;;  %v8400_v43 = vcombine.high %v515_v56, %v523_v37  ;;  %v531_v46 = vld [vmem:[%s9885_s7 + $0x510] sm:$0xff] }
 0x16b   : > { %v8322_v61 = vcombine.high %v436_v55, %v444_v24  ;;  %v539_v47 = vld [vmem:[%s9885_s7 + $0x550] sm:$0xff] }
 0x16d   : > { %6663 = vmatpush1.bf16.msra.mxu0 %v9227_v1  ;;  %6827 = vmatpush1.bf16.msra.mxu1 %v9229_v2  ;;  %v452_v1 = vld [vmem:[%s9885_s7 + $0x298] sm:$0xff] }
 0x16e   : > { %6664 = vmatprep.subr.bf16.mxu0 %v9244_v4  ;;  %6828 = vmatprep.subr.bf16.mxu1 %v9246_v5  ;;  %v460_v2 = vld [vmem:[%s9885_s7 + $0x2d8] sm:$0xff]  ;;  %v8319_v4 = vcombine.low %v435_v17, %v443_v53  ;;  %v8321_v5 = vcombine.low %v436_v55, %v444_v24  ;;  %v8416_v17 = vcombine.high %v531_v46, %v539_v47  ;;  %v547_v55 = vld [vmem:[%s9885_s7 + $0x590] sm:$0xff] }
 0x16f   : > { %v8338_v7 = vcombine.high %v452_v1, %v460_v2  ;;  %v555_v24 = vld [vmem:[%s9885_s7 + $0x5d0] sm:$0xff] }
 0x171   : > { %6665 = vmatpush1.bf16.msra.mxu0 %v9243_v11  ;;  %6829 = vmatpush1.bf16.msra.mxu1 %v9245_v12  ;;  %v468_v11 = vld [vmem:[%s9885_s7 + $0x318] sm:$0xff] }
 0x172   : > { %6666 = vmatprep.subr.bf16.mxu0 %v9260_v32  ;;  %6830 = vmatprep.subr.bf16.mxu1 %v9262_v14  ;;  %v476_v12 = vld [vmem:[%s9885_s7 + $0x358] sm:$0xff]  ;;  %v8335_v32 = vcombine.low %v451_v62, %v459_v63  ;;  %v8337_v14 = vcombine.low %v452_v1, %v460_v2  ;;  %v8432_v62 = vcombine.high %v547_v55, %v555_v24  ;;  %v563_v1 = vld [vmem:[%s9885_s7 + $0x610] sm:$0xff] }
 0x173   : > { %v8354_v16 = vcombine.high %v468_v11, %v476_v12  ;;  %v571_v2 = vld [vmem:[%s9885_s7 + $0x650] sm:$0xff] }
 0x175   : > { %6667 = vmatpush1.bf16.msra.mxu0 %v9259_v19  ;;  %6831 = vmatpush1.bf16.msra.mxu1 %v9261_v20  ;;  %v484_v19 = vld [vmem:[%s9885_s7 + $0x398] sm:$0xff] }
 0x176   : > { %6841 = vmatprep.subr.bf16.mxu0 %v8256_v21  ;;  %7005 = vmatprep.subr.bf16.mxu1 %v8258_v22  ;;  %v492_v20 = vld [vmem:[%s9885_s7 + $0x3d8] sm:$0xff]  ;;  %v8351_v21 = vcombine.low %v467_v8, %v475_v9  ;;  %v8353_v22 = vcombine.low %v468_v11, %v476_v12  ;;  %v8448_v8 = vcombine.high %v563_v1, %v571_v2  ;;  %v579_v11 = vld [vmem:[%s9885_s7 + $0x690] sm:$0xff] }
 0x177   : > { %v8370_v25 = vcombine.high %v484_v19, %v492_v20  ;;  %v587_v12 = vld [vmem:[%s9885_s7 + $0x6d0] sm:$0xff] }
 0x178   : > { %6669 = vmatmul.mubr.bf16.vlgmr.msra.gmra.mrb[0].mxu0 %v10247_v27  ;;  %6833 = vmatmul.mubr.bf16.vlgmr.msra.gmra.mrb[0].mxu1 %v10247_v27 }
 0x179   : > { %6842 = vmatpush1.bf16.msra.mxu0 %v8255_v30  ;;  %7006 = vmatpush1.bf16.msra.mxu1 %v8257_v31  ;;  %v500_v30 = vld [vmem:[%s9885_s7 + $0x418] sm:$0xff] }
 0x17a   : > { %6843 = vmatprep.subr.bf16.mxu0 %v8272_v33  ;;  %7007 = vmatprep.subr.bf16.mxu1 %v8274_v34  ;;  %v508_v31 = vld [vmem:[%s9885_s7 + $0x458] sm:$0xff]  ;;  %v8367_v33 = vcombine.low %v483_v60, %v491_v18  ;;  %v8369_v34 = vcombine.low %v484_v19, %v492_v20  ;;  %v8464_v60 = vcombine.high %v579_v11, %v587_v12  ;;  %v595_v19 = vld [vmem:[%s9885_s7 + $0x710] sm:$0xff] }
 0x17b   : > { %6873 = vmatprep.mubr.bf16.mxu0 %v9960_v10  ;;  %7037 = vmatprep.mubr.bf16.mxu1 %v9960_v10  ;;  %v8386_v36 = vcombine.high %v500_v30, %v508_v31  ;;  %v603_v20 = vld [vmem:[%s9885_s7 + $0x750] sm:$0xff] }
 0x17d   : > { %6844 = vmatpush1.bf16.msra.mxu0 %v8271_v38  ;;  %7008 = vmatpush1.bf16.msra.mxu1 %v8273_v39  ;;  %v516_v38 = vld [vmem:[%s9885_s7 + $0x498] sm:$0xff] }
 0x17e   : > { %6845 = vmatprep.subr.bf16.mxu0 %v8288_v40  ;;  %7009 = vmatprep.subr.bf16.mxu1 %v8290_v41  ;;  %v524_v39 = vld [vmem:[%s9885_s7 + $0x4d8] sm:$0xff]  ;;  %v8383_v40 = vcombine.low %v499_v28, %v507_v29  ;;  %v8385_v41 = vcombine.low %v500_v30, %v508_v31  ;;  %v8480_v28 = vcombine.high %v595_v19, %v603_v20  ;;  %v611_v30 = vld [vmem:[%s9885_s7 + $0x790] sm:$0xff] }
 0x17f   : > { %v8402_v44 = vcombine.high %v516_v38, %v524_v39  ;;  %v619_v31 = vld [vmem:[%s9885_s7 + $0x7d0] sm:$0xff] }
 0x181   : > { %6846 = vmatpush1.bf16.msra.mxu0 %v8287_v48  ;;  %7010 = vmatpush1.bf16.msra.mxu1 %v8289_v49  ;;  %v532_v48 = vld [vmem:[%s9885_s7 + $0x518] sm:$0xff] }
 0x182   : > { %6847 = vmatprep.subr.bf16.mxu0 %v8304_v50  ;;  %7011 = vmatprep.subr.bf16.mxu1 %v8306_v51  ;;  %v540_v49 = vld [vmem:[%s9885_s7 + $0x558] sm:$0xff]  ;;  %v8399_v50 = vcombine.low %v515_v56, %v523_v37  ;;  %v8401_v51 = vcombine.low %v516_v38, %v524_v39  ;;  %v8496_v56 = vcombine.high %v611_v30, %v619_v31  ;;  %v627_v38 = vld [vmem:[%s9885_s7 + $0x810] sm:$0xff] }
 0x183   : > { %v8418_v53 = vcombine.high %v532_v48, %v540_v49  ;;  %v635_v39 = vld [vmem:[%s9885_s7 + $0x850] sm:$0xff] }
 0x185   : > { %6848 = vmatpush1.bf16.msra.mxu0 %v8303_v57  ;;  %7012 = vmatpush1.bf16.msra.mxu1 %v8305_v58  ;;  %v548_v57 = vld [vmem:[%s9885_s7 + $0x598] sm:$0xff] }
 0x186   : > { %6849 = vmatprep.subr.bf16.mxu0 %v8320_v59  ;;  %7013 = vmatprep.subr.bf16.mxu1 %v8322_v61  ;;  %v556_v58 = vld [vmem:[%s9885_s7 + $0x5d8] sm:$0xff]  ;;  %v8415_v59 = vcombine.low %v531_v46, %v539_v47  ;;  %v8417_v61 = vcombine.low %v532_v48, %v540_v49  ;;  %v8512_v46 = vcombine.high %v627_v38, %v635_v39  ;;  %v643_v48 = vld [vmem:[%s9885_s7 + $0x890] sm:$0xff] }
 0x187   : > { %v8434_v63 = vcombine.high %v548_v57, %v556_v58  ;;  %v651_v49 = vld [vmem:[%s9885_s7 + $0x8d0] sm:$0xff] }
 0x189   : > { %6850 = vmatpush1.bf16.msra.mxu0 %v8319_v4  ;;  %7014 = vmatpush1.bf16.msra.mxu1 %v8321_v5  ;;  %v564_v4 = vld [vmem:[%s9885_s7 + $0x618] sm:$0xff] }
 0x18a   : > { %6851 = vmatprep.subr.bf16.mxu0 %v8336_v6  ;;  %7015 = vmatprep.subr.bf16.mxu1 %v8338_v7  ;;  %v572_v5 = vld [vmem:[%s9885_s7 + $0x658] sm:$0xff]  ;;  %v8431_v6 = vcombine.low %v547_v55, %v555_v24  ;;  %v8433_v7 = vcombine.low %v548_v57, %v556_v58  ;;  %v8528_v55 = vcombine.high %v643_v48, %v651_v49  ;;  %v659_v57 = vld [vmem:[%s9885_s7 + $0x910] sm:$0xff] }
 0x18b   : > { %v8450_v9 = vcombine.high %v564_v4, %v572_v5  ;;  %v667_v58 = vld [vmem:[%s9885_s7 + $0x950] sm:$0xff] }
 0x18d   : > { %6852 = vmatpush1.bf16.msra.mxu0 %v8335_v32  ;;  %7016 = vmatpush1.bf16.msra.mxu1 %v8337_v14  ;;  %v580_v32 = vld [vmem:[%s9885_s7 + $0x698] sm:$0xff] }
 0x18e   : > { %6853 = vmatprep.subr.bf16.mxu0 %v8352_v15  ;;  %7017 = vmatprep.subr.bf16.mxu1 %v8354_v16  ;;  %v588_v14 = vld [vmem:[%s9885_s7 + $0x6d8] sm:$0xff]  ;;  %v8447_v15 = vcombine.low %v563_v1, %v571_v2  ;;  %v8449_v16 = vcombine.low %v564_v4, %v572_v5  ;;  %v8544_v1 = vcombine.high %v659_v57, %v667_v58  ;;  %v675_v4 = vld [vmem:[%s9885_s7 + $0x990] sm:$0xff] }
 0x18f   : > { %v8466_v18 = vcombine.high %v580_v32, %v588_v14  ;;  %v683_v5 = vld [vmem:[%s9885_s7 + $0x9d0] sm:$0xff] }
 0x191   : > { %6854 = vmatpush1.bf16.msra.mxu0 %v8351_v21  ;;  %7018 = vmatpush1.bf16.msra.mxu1 %v8353_v22  ;;  %v596_v21 = vld [vmem:[%s9885_s7 + $0x718] sm:$0xff] }
 0x192   : > { %6855 = vmatprep.subr.bf16.mxu0 %v8368_v23  ;;  %7019 = vmatprep.subr.bf16.mxu1 %v8370_v25  ;;  %v604_v22 = vld [vmem:[%s9885_s7 + $0x758] sm:$0xff]  ;;  %v8463_v23 = vcombine.low %v579_v11, %v587_v12  ;;  %v8465_v25 = vcombine.low %v580_v32, %v588_v14  ;;  %v8560_v11 = vcombine.high %v675_v4, %v683_v5  ;;  %v691_v32 = vld [vmem:[%s9885_s7 + $0xa10] sm:$0xff] }
 0x193   : > { %v8482_v29 = vcombine.high %v596_v21, %v604_v22  ;;  %v699_v14 = vld [vmem:[%s9885_s7 + $0xa50] sm:$0xff] }
 0x195   : > { %6856 = vmatpush1.bf16.msra.mxu0 %v8367_v33  ;;  %7020 = vmatpush1.bf16.msra.mxu1 %v8369_v34  ;;  %v612_v33 = vld [vmem:[%s9885_s7 + $0x798] sm:$0xff] }
 0x196   : > { %6857 = vmatprep.subr.bf16.mxu0 %v8384_v0  ;;  %7021 = vmatprep.subr.bf16.mxu1 %v8386_v36  ;;  %v620_v34 = vld [vmem:[%s9885_s7 + $0x7d8] sm:$0xff]  ;;  %v8479_v0 = vcombine.low %v595_v19, %v603_v20  ;;  %v8481_v36 = vcombine.low %v596_v21, %v604_v22  ;;  %v8576_v19 = vcombine.high %v691_v32, %v699_v14  ;;  %v707_v21 = vld [vmem:[%s9885_s7 + $0xa90] sm:$0xff] }
 0x197   : > { %v8498_v37 = vcombine.high %v612_v33, %v620_v34  ;;  %v715_v22 = vld [vmem:[%s9885_s7 + $0xad0] sm:$0xff] }
 0x199   : > { %6858 = vmatpush1.bf16.msra.mxu0 %v8383_v40  ;;  %7022 = vmatpush1.bf16.msra.mxu1 %v8385_v41  ;;  %v628_v40 = vld [vmem:[%s9885_s7 + $0x818] sm:$0xff] }
 0x19a   : > { %6859 = vmatprep.subr.bf16.mxu0 %v8400_v43  ;;  %7023 = vmatprep.subr.bf16.mxu1 %v8402_v44  ;;  %v636_v41 = vld [vmem:[%s9885_s7 + $0x858] sm:$0xff]  ;;  %v8495_v43 = vcombine.low %v611_v30, %v619_v31  ;;  %v8497_v44 = vcombine.low %v612_v33, %v620_v34  ;;  %v8592_v30 = vcombine.high %v707_v21, %v715_v22  ;;  %v723_v33 = vld [vmem:[%s9885_s7 + $0xb10] sm:$0xff] }
 0x19b   : > { %v8514_v47 = vcombine.high %v628_v40, %v636_v41  ;;  %v731_v34 = vld [vmem:[%s9885_s7 + $0xb50] sm:$0xff] }
 0x19d   : > { %6860 = vmatpush1.bf16.msra.mxu0 %v8399_v50  ;;  %7024 = vmatpush1.bf16.msra.mxu1 %v8401_v51  ;;  %v644_v50 = vld [vmem:[%s9885_s7 + $0x898] sm:$0xff] }
 0x19e   : > { %6861 = vmatprep.subr.bf16.mxu0 %v8416_v17  ;;  %7025 = vmatprep.subr.bf16.mxu1 %v8418_v53  ;;  %v652_v51 = vld [vmem:[%s9885_s7 + $0x8d8] sm:$0xff]  ;;  %v8511_v17 = vcombine.low %v627_v38, %v635_v39  ;;  %v8513_v53 = vcombine.low %v628_v40, %v636_v41  ;;  %v8608_v38 = vcombine.high %v723_v33, %v731_v34  ;;  %v739_v40 = vld [vmem:[%s9885_s7 + $0xb90] sm:$0xff] }
 0x19f   : > { %v8530_v24 = vcombine.high %v644_v50, %v652_v51  ;;  %v747_v41 = vld [vmem:[%s9885_s7 + $0xbd0] sm:$0xff] }
 0x1a1   : > { %6862 = vmatpush1.bf16.msra.mxu0 %v8415_v59  ;;  %7026 = vmatpush1.bf16.msra.mxu1 %v8417_v61  ;;  %v660_v59 = vld [vmem:[%s9885_s7 + $0x918] sm:$0xff] }
 0x1a2   : > { %6863 = vmatprep.subr.bf16.mxu0 %v8432_v62  ;;  %7027 = vmatprep.subr.bf16.mxu1 %v8434_v63  ;;  %v668_v61 = vld [vmem:[%s9885_s7 + $0x958] sm:$0xff]  ;;  %v8527_v62 = vcombine.low %v643_v48, %v651_v49  ;;  %v8529_v63 = vcombine.low %v644_v50, %v652_v51  ;;  %v8624_v48 = vcombine.high %v739_v40, %v747_v41  ;;  %v755_v50 = vld [vmem:[%s9885_s7 + $0xc10] sm:$0xff] }
 0x1a3   : > { %v8546_v2 = vcombine.high %v660_v59, %v668_v61  ;;  %v763_v51 = vld [vmem:[%s9885_s7 + $0xc50] sm:$0xff] }
 0x1a5   : > { %6864 = vmatpush1.bf16.msra.mxu0 %v8431_v6  ;;  %7028 = vmatpush1.bf16.msra.mxu1 %v8433_v7  ;;  %v676_v6 = vld [vmem:[%s9885_s7 + $0x998] sm:$0xff] }
 0x1a6   : > { %6865 = vmatprep.subr.bf16.mxu0 %v8448_v8  ;;  %7029 = vmatprep.subr.bf16.mxu1 %v8450_v9  ;;  %v684_v7 = vld [vmem:[%s9885_s7 + $0x9d8] sm:$0xff]  ;;  %v8543_v8 = vcombine.low %v659_v57, %v667_v58  ;;  %v8545_v9 = vcombine.low %v660_v59, %v668_v61  ;;  %v8640_v57 = vcombine.high %v755_v50, %v763_v51  ;;  %v771_v59 = vld [vmem:[%s9885_s7 + $0xc90] sm:$0xff] }
 0x1a7   : > { %v8562_v12 = vcombine.high %v676_v6, %v684_v7  ;;  %v779_v61 = vld [vmem:[%s9885_s7 + $0xcd0] sm:$0xff] }
 0x1a9   : > { %6866 = vmatpush1.bf16.msra.mxu0 %v8447_v15  ;;  %7030 = vmatpush1.bf16.msra.mxu1 %v8449_v16  ;;  %v692_v15 = vld [vmem:[%s9885_s7 + $0xa18] sm:$0xff] }
 0x1aa   : > { %6867 = vmatprep.subr.bf16.mxu0 %v8464_v60  ;;  %7031 = vmatprep.subr.bf16.mxu1 %v8466_v18  ;;  %v700_v16 = vld [vmem:[%s9885_s7 + $0xa58] sm:$0xff]  ;;  %v8559_v60 = vcombine.low %v675_v4, %v683_v5  ;;  %v8561_v18 = vcombine.low %v676_v6, %v684_v7  ;;  %v8656_v4 = vcombine.high %v771_v59, %v779_v61  ;;  %v787_v6 = vld [vmem:[%s9885_s7 + $0xd10] sm:$0xff] }
 0x1ab   : > { %v8578_v20 = vcombine.high %v692_v15, %v700_v16  ;;  %v795_v7 = vld [vmem:[%s9885_s7 + $0xd50] sm:$0xff] }
 0x1ad   : > { %6868 = vmatpush1.bf16.msra.mxu0 %v8463_v23  ;;  %7032 = vmatpush1.bf16.msra.mxu1 %v8465_v25  ;;  %v708_v23 = vld [vmem:[%s9885_s7 + $0xa98] sm:$0xff] }
 0x1ae   : > { %6869 = vmatprep.subr.bf16.mxu0 %v8480_v28  ;;  %7033 = vmatprep.subr.bf16.mxu1 %v8482_v29  ;;  %v716_v25 = vld [vmem:[%s9885_s7 + $0xad8] sm:$0xff]  ;;  %v8575_v28 = vcombine.low %v691_v32, %v699_v14  ;;  %v8577_v29 = vcombine.low %v692_v15, %v700_v16  ;;  %v8672_v32 = vcombine.high %v787_v6, %v795_v7  ;;  %v803_v15 = vld [vmem:[%s9885_s7 + $0xd90] sm:$0xff] }
 0x1af   : > { %v8594_v31 = vcombine.high %v708_v23, %v716_v25  ;;  %v811_v16 = vld [vmem:[%s9885_s7 + $0xdd0] sm:$0xff] }
 0x1b1   : > { %6870 = vmatpush1.bf16.msra.mxu0 %v8479_v0  ;;  %7034 = vmatpush1.bf16.msra.mxu1 %v8481_v36  ;;  %v724_v0 = vld [vmem:[%s9885_s7 + $0xb18] sm:$0xff] }
 0x1b2   : > { %6871 = vmatprep.subr.bf16.mxu0 %v8496_v56  ;;  %7035 = vmatprep.subr.bf16.mxu1 %v8498_v37  ;;  %v732_v36 = vld [vmem:[%s9885_s7 + $0xb58] sm:$0xff]  ;;  %v8591_v56 = vcombine.low %v707_v21, %v715_v22  ;;  %v8593_v37 = vcombine.low %v708_v23, %v716_v25  ;;  %v8688_v21 = vcombine.high %v803_v15, %v811_v16  ;;  %v819_v23 = vld [vmem:[%s9885_s7 + $0xe10] sm:$0xff] }
 0x1b3   : > { %v8610_v39 = vcombine.high %v724_v0, %v732_v36  ;;  %v827_v25 = vld [vmem:[%s9885_s7 + $0xe50] sm:$0xff] }
 0x1b5   : > { %6872 = vmatpush1.bf16.msra.mxu0 %v8495_v43  ;;  %7036 = vmatpush1.bf16.msra.mxu1 %v8497_v44  ;;  %v740_v43 = vld [vmem:[%s9885_s7 + $0xb98] sm:$0xff] }
 0x1b6   : > { %6882 = vmatprep.subr.bf16.mxu0 %v8512_v46  ;;  %7046 = vmatprep.subr.bf16.mxu1 %v8514_v47  ;;  %v748_v44 = vld [vmem:[%s9885_s7 + $0xbd8] sm:$0xff]  ;;  %v8607_v46 = vcombine.low %v723_v33, %v731_v34  ;;  %v8609_v47 = vcombine.low %v724_v0, %v732_v36  ;;  %v8704_v33 = vcombine.high %v819_v23, %v827_v25  ;;  %v835_v0 = vld [vmem:[%s9885_s7 + $0xe90] sm:$0xff] }
 0x1b7   : > { %v8626_v49 = vcombine.high %v740_v43, %v748_v44  ;;  %v843_v36 = vld [vmem:[%s9885_s7 + $0xed0] sm:$0xff] }
 0x1b8   : > { %6874 = vmatmul.mubr.bf16.vlgmr.msra.gmra.mrb[4].mxu0 %v10009_v26  ;;  %7038 = vmatmul.mubr.bf16.vlgmr.msra.gmra.mrb[4].mxu1 %v10009_v26 }
 0x1b9   : > { %6883 = vmatpush1.bf16.msra.mxu0 %v8511_v17  ;;  %7047 = vmatpush1.bf16.msra.mxu1 %v8513_v53  ;;  %v756_v17 = vld [vmem:[%s9885_s7 + $0xc18] sm:$0xff] }
 0x1ba   : > { %6884 = vmatprep.subr.bf16.mxu0 %v8528_v55  ;;  %7048 = vmatprep.subr.bf16.mxu1 %v8530_v24  ;;  %v764_v53 = vld [vmem:[%s9885_s7 + $0xc58] sm:$0xff]  ;;  %v8623_v55 = vcombine.low %v739_v40, %v747_v41  ;;  %v8625_v24 = vcombine.low %v740_v43, %v748_v44  ;;  %v8720_v40 = vcombine.high %v835_v0, %v843_v36  ;;  %v851_v43 = vld [vmem:[%s9885_s7 + $0xf10] sm:$0xff] }
 0x1bb   : > { %6914 = vmatprep.mubr.bf16.mxu0 %v10015_v35  ;;  %7078 = vmatprep.mubr.bf16.mxu1 %v10015_v35  ;;  %v8642_v58 = vcombine.high %v756_v17, %v764_v53  ;;  %v859_v44 = vld [vmem:[%s9885_s7 + $0xf50] sm:$0xff] }
 0x1bd   : > { %6885 = vmatpush1.bf16.msra.mxu0 %v8527_v62  ;;  %7049 = vmatpush1.bf16.msra.mxu1 %v8529_v63  ;;  %v772_v62 = vld [vmem:[%s9885_s7 + $0xc98] sm:$0xff] }
 0x1be   : > { %6886 = vmatprep.subr.bf16.mxu0 %v8544_v1  ;;  %7050 = vmatprep.subr.bf16.mxu1 %v8546_v2  ;;  %v780_v63 = vld [vmem:[%s9885_s7 + $0xcd8] sm:$0xff]  ;;  %v8639_v1 = vcombine.low %v755_v50, %v763_v51  ;;  %v8641_v2 = vcombine.low %v756_v17, %v764_v53  ;;  %v8736_v50 = vcombine.high %v851_v43, %v859_v44  ;;  %v867_v17 = vld [vmem:[%s9885_s7 + $0xf90] sm:$0xff] }
 0x1bf   : > { %v8658_v5 = vcombine.high %v772_v62, %v780_v63  ;;  %v875_v53 = vld [vmem:[%s9885_s7 + $0xfd0] sm:$0xff] }
 0x1c1   : > { %6887 = vmatpush1.bf16.msra.mxu0 %v8543_v8  ;;  %7051 = vmatpush1.bf16.msra.mxu1 %v8545_v9  ;;  %v788_v8 = vld [vmem:[%s9885_s7 + $0xd18] sm:$0xff] }
 0x1c2   : > { %6888 = vmatprep.subr.bf16.mxu0 %v8560_v11  ;;  %7052 = vmatprep.subr.bf16.mxu1 %v8562_v12  ;;  %v796_v9 = vld [vmem:[%s9885_s7 + $0xd58] sm:$0xff]  ;;  %v8655_v11 = vcombine.low %v771_v59, %v779_v61  ;;  %v8657_v12 = vcombine.low %v772_v62, %v780_v63  ;;  %v8752_v59 = vcombine.high %v867_v17, %v875_v53  ;;  %v883_v62 = vld [vmem:[%s9885_s7 + $0x1010] sm:$0xff] }
 0x1c3   : > { %v8674_v14 = vcombine.high %v788_v8, %v796_v9  ;;  %v891_v63 = vld [vmem:[%s9885_s7 + $0x1050] sm:$0xff] }
 0x1c5   : > { %6889 = vmatpush1.bf16.msra.mxu0 %v8559_v60  ;;  %7053 = vmatpush1.bf16.msra.mxu1 %v8561_v18  ;;  %v804_v60 = vld [vmem:[%s9885_s7 + $0xd98] sm:$0xff] }
 0x1c6   : > { %6890 = vmatprep.subr.bf16.mxu0 %v8576_v19  ;;  %7054 = vmatprep.subr.bf16.mxu1 %v8578_v20  ;;  %v812_v18 = vld [vmem:[%s9885_s7 + $0xdd8] sm:$0xff]  ;;  %v8671_v19 = vcombine.low %v787_v6, %v795_v7  ;;  %v8673_v20 = vcombine.low %v788_v8, %v796_v9  ;;  %v8768_v6 = vcombine.high %v883_v62, %v891_v63  ;;  %v899_v8 = vld [vmem:[%s9885_s7 + $0x1090] sm:$0xff] }
 0x1c7   : > { %v8690_v22 = vcombine.high %v804_v60, %v812_v18  ;;  %v907_v9 = vld [vmem:[%s9885_s7 + $0x10d0] sm:$0xff] }
 0x1c9   : > { %6891 = vmatpush1.bf16.msra.mxu0 %v8575_v28  ;;  %7055 = vmatpush1.bf16.msra.mxu1 %v8577_v29  ;;  %v820_v28 = vld [vmem:[%s9885_s7 + $0xe18] sm:$0xff] }
 0x1ca   : > { %6892 = vmatprep.subr.bf16.mxu0 %v8592_v30  ;;  %7056 = vmatprep.subr.bf16.mxu1 %v8594_v31  ;;  %v828_v29 = vld [vmem:[%s9885_s7 + $0xe58] sm:$0xff]  ;;  %v8687_v30 = vcombine.low %v803_v15, %v811_v16  ;;  %v8689_v31 = vcombine.low %v804_v60, %v812_v18  ;;  %v8784_v15 = vcombine.high %v899_v8, %v907_v9  ;;  %v915_v60 = vld [vmem:[%s9885_s7 + $0x1110] sm:$0xff] }
 0x1cb   : > { %v8706_v34 = vcombine.high %v820_v28, %v828_v29  ;;  %v923_v18 = vld [vmem:[%s9885_s7 + $0x1150] sm:$0xff] }
 0x1cd   : > { %6893 = vmatpush1.bf16.msra.mxu0 %v8591_v56  ;;  %7057 = vmatpush1.bf16.msra.mxu1 %v8593_v37  ;;  %v836_v56 = vld [vmem:[%s9885_s7 + $0xe98] sm:$0xff] }
 0x1ce   : > { %6894 = vmatprep.subr.bf16.mxu0 %v8608_v38  ;;  %7058 = vmatprep.subr.bf16.mxu1 %v8610_v39  ;;  %v844_v37 = vld [vmem:[%s9885_s7 + $0xed8] sm:$0xff]  ;;  %v8703_v38 = vcombine.low %v819_v23, %v827_v25  ;;  %v8705_v39 = vcombine.low %v820_v28, %v828_v29  ;;  %v8800_v23 = vcombine.high %v915_v60, %v923_v18  ;;  %v931_v28 = vld [vmem:[%s9885_s7 + $0x1190] sm:$0xff] }
 0x1cf   : > { %v8722_v41 = vcombine.high %v836_v56, %v844_v37  ;;  %v939_v29 = vld [vmem:[%s9885_s7 + $0x11d0] sm:$0xff] }
 0x1d1   : > { %6895 = vmatpush1.bf16.msra.mxu0 %v8607_v46  ;;  %7059 = vmatpush1.bf16.msra.mxu1 %v8609_v47  ;;  %v852_v46 = vld [vmem:[%s9885_s7 + $0xf18] sm:$0xff] }
 0x1d2   : > { %6896 = vmatprep.subr.bf16.mxu0 %v8624_v48  ;;  %7060 = vmatprep.subr.bf16.mxu1 %v8626_v49  ;;  %v860_v47 = vld [vmem:[%s9885_s7 + $0xf58] sm:$0xff]  ;;  %v8719_v48 = vcombine.low %v835_v0, %v843_v36  ;;  %v8721_v49 = vcombine.low %v836_v56, %v844_v37  ;;  %v8816_v0 = vcombine.high %v931_v28, %v939_v29  ;;  %v947_v56 = vld [vmem:[%s9885_s7 + $0x1210] sm:$0xff] }
 0x1d3   : > { %v8738_v51 = vcombine.high %v852_v46, %v860_v47  ;;  %v955_v37 = vld [vmem:[%s9885_s7 + $0x1250] sm:$0xff] }
 0x1d5   : > { %6897 = vmatpush1.bf16.msra.mxu0 %v8623_v55  ;;  %7061 = vmatpush1.bf16.msra.mxu1 %v8625_v24  ;;  %v868_v55 = vld [vmem:[%s9885_s7 + $0xf98] sm:$0xff] }
 0x1d6   : > { %6898 = vmatprep.subr.bf16.mxu0 %v8640_v57  ;;  %7062 = vmatprep.subr.bf16.mxu1 %v8642_v58  ;;  %v876_v24 = vld [vmem:[%s9885_s7 + $0xfd8] sm:$0xff]  ;;  %v8735_v57 = vcombine.low %v851_v43, %v859_v44  ;;  %v8737_v58 = vcombine.low %v852_v46, %v860_v47  ;;  %v8832_v43 = vcombine.high %v947_v56, %v955_v37  ;;  %v963_v46 = vld [vmem:[%s9885_s7 + $0x1290] sm:$0xff] }
 0x1d7   : > { %v8754_v61 = vcombine.high %v868_v55, %v876_v24  ;;  %v971_v47 = vld [vmem:[%s9885_s7 + $0x12d0] sm:$0xff] }
 0x1d9   : > { %6899 = vmatpush1.bf16.msra.mxu0 %v8639_v1  ;;  %7063 = vmatpush1.bf16.msra.mxu1 %v8641_v2  ;;  %v884_v1 = vld [vmem:[%s9885_s7 + $0x1018] sm:$0xff] }
 0x1da   : > { %6900 = vmatprep.subr.bf16.mxu0 %v8656_v4  ;;  %7064 = vmatprep.subr.bf16.mxu1 %v8658_v5  ;;  %v892_v2 = vld [vmem:[%s9885_s7 + $0x1058] sm:$0xff]  ;;  %v8751_v4 = vcombine.low %v867_v17, %v875_v53  ;;  %v8753_v5 = vcombine.low %v868_v55, %v876_v24  ;;  %v8848_v17 = vcombine.high %v963_v46, %v971_v47  ;;  %v979_v55 = vld [vmem:[%s9885_s7 + $0x1310] sm:$0xff] }
 0x1db   : > { %v8770_v7 = vcombine.high %v884_v1, %v892_v2  ;;  %v987_v24 = vld [vmem:[%s9885_s7 + $0x1350] sm:$0xff] }
 0x1dd   : > { %6901 = vmatpush1.bf16.msra.mxu0 %v8655_v11  ;;  %7065 = vmatpush1.bf16.msra.mxu1 %v8657_v12  ;;  %v900_v11 = vld [vmem:[%s9885_s7 + $0x1098] sm:$0xff] }
 0x1de   : > { %6902 = vmatprep.subr.bf16.mxu0 %v8672_v32  ;;  %7066 = vmatprep.subr.bf16.mxu1 %v8674_v14  ;;  %v908_v12 = vld [vmem:[%s9885_s7 + $0x10d8] sm:$0xff]  ;;  %v8767_v32 = vcombine.low %v883_v62, %v891_v63  ;;  %v8769_v14 = vcombine.low %v884_v1, %v892_v2  ;;  %v8864_v62 = vcombine.high %v979_v55, %v987_v24  ;;  %v995_v1 = vld [vmem:[%s9885_s7 + $0x1390] sm:$0xff] }
 0x1df   : > { %v8786_v16 = vcombine.high %v900_v11, %v908_v12  ;;  %v1003_v2 = vld [vmem:[%s9885_s7 + $0x13d0] sm:$0xff] }
 0x1e1   : > { %6903 = vmatpush1.bf16.msra.mxu0 %v8671_v19  ;;  %7067 = vmatpush1.bf16.msra.mxu1 %v8673_v20  ;;  %v916_v19 = vld [vmem:[%s9885_s7 + $0x1118] sm:$0xff] }
 0x1e2   : > { %6904 = vmatprep.subr.bf16.mxu0 %v8688_v21  ;;  %7068 = vmatprep.subr.bf16.mxu1 %v8690_v22  ;;  %v924_v20 = vld [vmem:[%s9885_s7 + $0x1158] sm:$0xff]  ;;  %v8783_v21 = vcombine.low %v899_v8, %v907_v9  ;;  %v8785_v22 = vcombine.low %v900_v11, %v908_v12  ;;  %v8880_v8 = vcombine.high %v995_v1, %v1003_v2  ;;  %v1011_v11 = vld [vmem:[%s9885_s7 + $0x1410] sm:$0xff] }
 0x1e3   : > { %v8802_v25 = vcombine.high %v916_v19, %v924_v20  ;;  %v1019_v12 = vld [vmem:[%s9885_s7 + $0x1450] sm:$0xff] }
 0x1e5   : > { %6905 = vmatpush1.bf16.msra.mxu0 %v8687_v30  ;;  %7069 = vmatpush1.bf16.msra.mxu1 %v8689_v31  ;;  %v932_v30 = vld [vmem:[%s9885_s7 + $0x1198] sm:$0xff] }
 0x1e6   : > { %6906 = vmatprep.subr.bf16.mxu0 %v8704_v33  ;;  %7070 = vmatprep.subr.bf16.mxu1 %v8706_v34  ;;  %v940_v31 = vld [vmem:[%s9885_s7 + $0x11d8] sm:$0xff]  ;;  %v8799_v33 = vcombine.low %v915_v60, %v923_v18  ;;  %v8801_v34 = vcombine.low %v916_v19, %v924_v20  ;;  %v8896_v60 = vcombine.high %v1011_v11, %v1019_v12  ;;  %v1027_v19 = vld [vmem:[%s9885_s7 + $0x1490] sm:$0xff] }
 0x1e7   : > { %v8818_v36 = vcombine.high %v932_v30, %v940_v31  ;;  %v1035_v20 = vld [vmem:[%s9885_s7 + $0x14d0] sm:$0xff] }
 0x1e9   : > { %6907 = vmatpush1.bf16.msra.mxu0 %v8703_v38  ;;  %7071 = vmatpush1.bf16.msra.mxu1 %v8705_v39  ;;  %v948_v38 = vld [vmem:[%s9885_s7 + $0x1218] sm:$0xff] }
 0x1ea   : > { %6908 = vmatprep.subr.bf16.mxu0 %v8720_v40  ;;  %7072 = vmatprep.subr.bf16.mxu1 %v8722_v41  ;;  %v956_v39 = vld [vmem:[%s9885_s7 + $0x1258] sm:$0xff]  ;;  %v8815_v40 = vcombine.low %v931_v28, %v939_v29  ;;  %v8817_v41 = vcombine.low %v932_v30, %v940_v31  ;;  %v8912_v28 = vcombine.high %v1027_v19, %v1035_v20  ;;  %v1043_v30 = vld [vmem:[%s9885_s7 + $0x1510] sm:$0xff] }
 0x1eb   : > { %v8834_v44 = vcombine.high %v948_v38, %v956_v39  ;;  %v1051_v31 = vld [vmem:[%s9885_s7 + $0x1550] sm:$0xff] }
 0x1ed   : > { %6909 = vmatpush1.bf16.msra.mxu0 %v8719_v48  ;;  %7073 = vmatpush1.bf16.msra.mxu1 %v8721_v49  ;;  %v964_v48 = vld [vmem:[%s9885_s7 + $0x1298] sm:$0xff] }
 0x1ee   : > { %6910 = vmatprep.subr.bf16.mxu0 %v8736_v50  ;;  %7074 = vmatprep.subr.bf16.mxu1 %v8738_v51  ;;  %v972_v49 = vld [vmem:[%s9885_s7 + $0x12d8] sm:$0xff]  ;;  %v8831_v50 = vcombine.low %v947_v56, %v955_v37  ;;  %v8833_v51 = vcombine.low %v948_v38, %v956_v39  ;;  %v8928_v56 = vcombine.high %v1043_v30, %v1051_v31  ;;  %v1059_v38 = vld [vmem:[%s9885_s7 + $0x1590] sm:$0xff] }
 0x1ef   : > { %v8850_v53 = vcombine.high %v964_v48, %v972_v49  ;;  %v1067_v39 = vld [vmem:[%s9885_s7 + $0x15d0] sm:$0xff] }
 0x1f1   : > { %6911 = vmatpush1.bf16.msra.mxu0 %v8735_v57  ;;  %7075 = vmatpush1.bf16.msra.mxu1 %v8737_v58  ;;  %v980_v57 = vld [vmem:[%s9885_s7 + $0x1318] sm:$0xff] }
 0x1f2   : > { %6912 = vmatprep.subr.bf16.mxu0 %v8752_v59  ;;  %7076 = vmatprep.subr.bf16.mxu1 %v8754_v61  ;;  %v988_v58 = vld [vmem:[%s9885_s7 + $0x1358] sm:$0xff]  ;;  %v8847_v59 = vcombine.low %v963_v46, %v971_v47  ;;  %v8849_v61 = vcombine.low %v964_v48, %v972_v49  ;;  %v8944_v46 = vcombine.high %v1059_v38, %v1067_v39  ;;  %v1075_v48 = vld [vmem:[%s9885_s7 + $0x1610] sm:$0xff] }
 0x1f3   : > { %v8866_v63 = vcombine.high %v980_v57, %v988_v58  ;;  %v1083_v49 = vld [vmem:[%s9885_s7 + $0x1650] sm:$0xff] }
 0x1f5   : > { %6913 = vmatpush1.bf16.msra.mxu0 %v8751_v4  ;;  %7077 = vmatpush1.bf16.msra.mxu1 %v8753_v5  ;;  %v996_v4 = vld [vmem:[%s9885_s7 + $0x1398] sm:$0xff] }
 0x1f6   : > { %6923 = vmatprep.subr.bf16.mxu0 %v8768_v6  ;;  %7087 = vmatprep.subr.bf16.mxu1 %v8770_v7  ;;  %v1004_v5 = vld [vmem:[%s9885_s7 + $0x13d8] sm:$0xff]  ;;  %v8863_v6 = vcombine.low %v979_v55, %v987_v24  ;;  %v8865_v7 = vcombine.low %v980_v57, %v988_v58  ;;  %v8960_v55 = vcombine.high %v1075_v48, %v1083_v49  ;;  %v1091_v57 = vld [vmem:[%s9885_s7 + $0x1690] sm:$0xff] }
 0x1f7   : > { %v8882_v9 = vcombine.high %v996_v4, %v1004_v5  ;;  %v1099_v58 = vld [vmem:[%s9885_s7 + $0x16d0] sm:$0xff] }
 0x1f8   : > { %6915 = vmatmul.mubr.bf16.vlgmr.msra.gmra.mrb[4].mxu0 %v10092_v42  ;;  %7079 = vmatmul.mubr.bf16.vlgmr.msra.gmra.mrb[4].mxu1 %v10092_v42 }
 0x1f9   : > { %6924 = vmatpush1.bf16.msra.mxu0 %v8767_v32  ;;  %7088 = vmatpush1.bf16.msra.mxu1 %v8769_v14  ;;  %v1012_v32 = vld [vmem:[%s9885_s7 + $0x1418] sm:$0xff] }
 0x1fa   : > { %6925 = vmatprep.subr.bf16.mxu0 %v8784_v15  ;;  %7089 = vmatprep.subr.bf16.mxu1 %v8786_v16  ;;  %v1020_v14 = vld [vmem:[%s9885_s7 + $0x1458] sm:$0xff]  ;;  %v8879_v15 = vcombine.low %v995_v1, %v1003_v2  ;;  %v8881_v16 = vcombine.low %v996_v4, %v1004_v5  ;;  %v8976_v1 = vcombine.high %v1091_v57, %v1099_v58  ;;  %v1107_v4 = vld [vmem:[%s9885_s7 + $0x1710] sm:$0xff] }
 0x1fb   : > { %6955 = vmatprep.mubr.bf16.mxu0 %v10098_v52  ;;  %7119 = vmatprep.mubr.bf16.mxu1 %v10098_v52  ;;  %v8898_v18 = vcombine.high %v1012_v32, %v1020_v14  ;;  %v1115_v5 = vld [vmem:[%s9885_s7 + $0x1750] sm:$0xff] }
 0x1fd   : > { %6926 = vmatpush1.bf16.msra.mxu0 %v8783_v21  ;;  %7090 = vmatpush1.bf16.msra.mxu1 %v8785_v22  ;;  %v1028_v21 = vld [vmem:[%s9885_s7 + $0x1498] sm:$0xff] }
 0x1fe   : > { %6927 = vmatprep.subr.bf16.mxu0 %v8800_v23  ;;  %7091 = vmatprep.subr.bf16.mxu1 %v8802_v25  ;;  %v1036_v22 = vld [vmem:[%s9885_s7 + $0x14d8] sm:$0xff]  ;;  %v8895_v23 = vcombine.low %v1011_v11, %v1019_v12  ;;  %v8897_v25 = vcombine.low %v1012_v32, %v1020_v14  ;;  %v8992_v11 = vcombine.high %v1107_v4, %v1115_v5  ;;  %v1123_v32 = vld [vmem:[%s9885_s7 + $0x1790] sm:$0xff] }
 0x1ff   : > { %v8914_v29 = vcombine.high %v1028_v21, %v1036_v22  ;;  %v1131_v14 = vld [vmem:[%s9885_s7 + $0x17d0] sm:$0xff] }
 0x201   : > { %6928 = vmatpush1.bf16.msra.mxu0 %v8799_v33  ;;  %7092 = vmatpush1.bf16.msra.mxu1 %v8801_v34  ;;  %v1044_v33 = vld [vmem:[%s9885_s7 + $0x1518] sm:$0xff] }
 0x202   : > { %6929 = vmatprep.subr.bf16.mxu0 %v8816_v0  ;;  %7093 = vmatprep.subr.bf16.mxu1 %v8818_v36  ;;  %v1052_v34 = vld [vmem:[%s9885_s7 + $0x1558] sm:$0xff]  ;;  %v8911_v0 = vcombine.low %v1027_v19, %v1035_v20  ;;  %v8913_v36 = vcombine.low %v1028_v21, %v1036_v22  ;;  %v9008_v19 = vcombine.high %v1123_v32, %v1131_v14  ;;  %v1139_v21 = vld [vmem:[%s9885_s7 + $0x1810] sm:$0xff] }
 0x203   : > { %v8930_v37 = vcombine.high %v1044_v33, %v1052_v34  ;;  %v1147_v22 = vld [vmem:[%s9885_s7 + $0x1850] sm:$0xff] }
 0x205   : > { %6930 = vmatpush1.bf16.msra.mxu0 %v8815_v40  ;;  %7094 = vmatpush1.bf16.msra.mxu1 %v8817_v41  ;;  %v1060_v40 = vld [vmem:[%s9885_s7 + $0x1598] sm:$0xff] }
 0x206   : > { %6931 = vmatprep.subr.bf16.mxu0 %v8832_v43  ;;  %7095 = vmatprep.subr.bf16.mxu1 %v8834_v44  ;;  %v1068_v41 = vld [vmem:[%s9885_s7 + $0x15d8] sm:$0xff]  ;;  %v8927_v43 = vcombine.low %v1043_v30, %v1051_v31  ;;  %v8929_v44 = vcombine.low %v1044_v33, %v1052_v34  ;;  %v9024_v30 = vcombine.high %v1139_v21, %v1147_v22  ;;  %v1155_v33 = vld [vmem:[%s9885_s7 + $0x1890] sm:$0xff] }
 0x207   : > { %v8946_v47 = vcombine.high %v1060_v40, %v1068_v41  ;;  %v1163_v34 = vld [vmem:[%s9885_s7 + $0x18d0] sm:$0xff] }
 0x209   : > { %6932 = vmatpush1.bf16.msra.mxu0 %v8831_v50  ;;  %7096 = vmatpush1.bf16.msra.mxu1 %v8833_v51  ;;  %v1076_v50 = vld [vmem:[%s9885_s7 + $0x1618] sm:$0xff] }
 0x20a   : > { %6933 = vmatprep.subr.bf16.mxu0 %v8848_v17  ;;  %7097 = vmatprep.subr.bf16.mxu1 %v8850_v53  ;;  %v1084_v51 = vld [vmem:[%s9885_s7 + $0x1658] sm:$0xff]  ;;  %v8943_v17 = vcombine.low %v1059_v38, %v1067_v39  ;;  %v8945_v53 = vcombine.low %v1060_v40, %v1068_v41  ;;  %v9040_v38 = vcombine.high %v1155_v33, %v1163_v34  ;;  %v1171_v40 = vld [vmem:[%s9885_s7 + $0x1910] sm:$0xff] }
 0x20b   : > { %v8962_v24 = vcombine.high %v1076_v50, %v1084_v51  ;;  %v1179_v41 = vld [vmem:[%s9885_s7 + $0x1950] sm:$0xff] }
 0x20d   : > { %6934 = vmatpush1.bf16.msra.mxu0 %v8847_v59  ;;  %7098 = vmatpush1.bf16.msra.mxu1 %v8849_v61  ;;  %v1092_v59 = vld [vmem:[%s9885_s7 + $0x1698] sm:$0xff] }
 0x20e   : > { %6935 = vmatprep.subr.bf16.mxu0 %v8864_v62  ;;  %7099 = vmatprep.subr.bf16.mxu1 %v8866_v63  ;;  %v1100_v61 = vld [vmem:[%s9885_s7 + $0x16d8] sm:$0xff]  ;;  %v8959_v62 = vcombine.low %v1075_v48, %v1083_v49  ;;  %v8961_v63 = vcombine.low %v1076_v50, %v1084_v51  ;;  %v9056_v48 = vcombine.high %v1171_v40, %v1179_v41  ;;  %v1187_v50 = vld [vmem:[%s9885_s7 + $0x1990] sm:$0xff] }
 0x20f   : > { %v8978_v2 = vcombine.high %v1092_v59, %v1100_v61  ;;  %v1195_v51 = vld [vmem:[%s9885_s7 + $0x19d0] sm:$0xff] }
 0x211   : > { %6936 = vmatpush1.bf16.msra.mxu0 %v8863_v6  ;;  %7100 = vmatpush1.bf16.msra.mxu1 %v8865_v7  ;;  %v1108_v6 = vld [vmem:[%s9885_s7 + $0x1718] sm:$0xff] }
 0x212   : > { %6937 = vmatprep.subr.bf16.mxu0 %v8880_v8  ;;  %7101 = vmatprep.subr.bf16.mxu1 %v8882_v9  ;;  %v1116_v7 = vld [vmem:[%s9885_s7 + $0x1758] sm:$0xff]  ;;  %v8975_v8 = vcombine.low %v1091_v57, %v1099_v58  ;;  %v8977_v9 = vcombine.low %v1092_v59, %v1100_v61  ;;  %v9072_v57 = vcombine.high %v1187_v50, %v1195_v51  ;;  %v1203_v59 = vld [vmem:[%s9885_s7 + $0x1a10] sm:$0xff] }
 0x213   : > { %v8994_v12 = vcombine.high %v1108_v6, %v1116_v7  ;;  %v1211_v61 = vld [vmem:[%s9885_s7 + $0x1a50] sm:$0xff] }
 0x215   : > { %6938 = vmatpush1.bf16.msra.mxu0 %v8879_v15  ;;  %7102 = vmatpush1.bf16.msra.mxu1 %v8881_v16  ;;  %v1124_v15 = vld [vmem:[%s9885_s7 + $0x1798] sm:$0xff] }
 0x216   : > { %6939 = vmatprep.subr.bf16.mxu0 %v8896_v60  ;;  %7103 = vmatprep.subr.bf16.mxu1 %v8898_v18  ;;  %v1132_v16 = vld [vmem:[%s9885_s7 + $0x17d8] sm:$0xff]  ;;  %v8991_v60 = vcombine.low %v1107_v4, %v1115_v5  ;;  %v8993_v18 = vcombine.low %v1108_v6, %v1116_v7  ;;  %v9088_v4 = vcombine.high %v1203_v59, %v1211_v61  ;;  %v1219_v6 = vld [vmem:[%s9885_s7 + $0x1a90] sm:$0xff] }
 0x217   : > { %v9010_v20 = vcombine.high %v1124_v15, %v1132_v16  ;;  %v1227_v7 = vld [vmem:[%s9885_s7 + $0x1ad0] sm:$0xff] }
 0x219   : > { %6940 = vmatpush1.bf16.msra.mxu0 %v8895_v23  ;;  %7104 = vmatpush1.bf16.msra.mxu1 %v8897_v25  ;;  %v1140_v23 = vld [vmem:[%s9885_s7 + $0x1818] sm:$0xff] }
 0x21a   : > { %6941 = vmatprep.subr.bf16.mxu0 %v8912_v28  ;;  %7105 = vmatprep.subr.bf16.mxu1 %v8914_v29  ;;  %v1148_v25 = vld [vmem:[%s9885_s7 + $0x1858] sm:$0xff]  ;;  %v9007_v28 = vcombine.low %v1123_v32, %v1131_v14  ;;  %v9009_v29 = vcombine.low %v1124_v15, %v1132_v16  ;;  %v9104_v32 = vcombine.high %v1219_v6, %v1227_v7  ;;  %v1235_v15 = vld [vmem:[%s9885_s7 + $0x1b10] sm:$0xff] }
 0x21b   : > { %v9026_v31 = vcombine.high %v1140_v23, %v1148_v25  ;;  %v1243_v16 = vld [vmem:[%s9885_s7 + $0x1b50] sm:$0xff] }
 0x21d   : > { %6942 = vmatpush1.bf16.msra.mxu0 %v8911_v0  ;;  %7106 = vmatpush1.bf16.msra.mxu1 %v8913_v36  ;;  %v1156_v0 = vld [vmem:[%s9885_s7 + $0x1898] sm:$0xff] }
 0x21e   : > { %6943 = vmatprep.subr.bf16.mxu0 %v8928_v56  ;;  %7107 = vmatprep.subr.bf16.mxu1 %v8930_v37  ;;  %v1164_v36 = vld [vmem:[%s9885_s7 + $0x18d8] sm:$0xff]  ;;  %v9023_v56 = vcombine.low %v1139_v21, %v1147_v22  ;;  %v9025_v37 = vcombine.low %v1140_v23, %v1148_v25  ;;  %v9120_v21 = vcombine.high %v1235_v15, %v1243_v16  ;;  %v1251_v25 = vld [vmem:[%s9885_s7 + $0x1b90] sm:$0xff] }
 0x21f   : > { %v9042_v39 = vcombine.high %v1156_v0, %v1164_v36 }
 0x221   : > { %6944 = vmatpush1.bf16.msra.mxu0 %v8927_v43  ;;  %7108 = vmatpush1.bf16.msra.mxu1 %v8929_v44  ;;  %v1172_v43 = vld [vmem:[%s9885_s7 + $0x1918] sm:$0xff] }
 0x222   : > { %6945 = vmatprep.subr.bf16.mxu0 %v8944_v46  ;;  %7109 = vmatprep.subr.bf16.mxu1 %v8946_v47  ;;  %v1180_v44 = vld [vmem:[%s9885_s7 + $0x1958] sm:$0xff]  ;;  %v9039_v46 = vcombine.low %v1155_v33, %v1163_v34  ;;  %v9041_v47 = vcombine.low %v1156_v0, %v1164_v36 }
 0x223   : > { %v9058_v49 = vcombine.high %v1172_v43, %v1180_v44  ;;  %v1260_v33 = vld [vmem:[%s9885_s7 + $0x1bd8] sm:$0xff] }
 0x225   : > { %6946 = vmatpush1.bf16.msra.mxu0 %v8943_v17  ;;  %7110 = vmatpush1.bf16.msra.mxu1 %v8945_v53  ;;  %v1188_v17 = vld [vmem:[%s9885_s7 + $0x1998] sm:$0xff] }
 0x226   : > { %6947 = vmatprep.subr.bf16.mxu0 %v8960_v55  ;;  %7111 = vmatprep.subr.bf16.mxu1 %v8962_v24  ;;  %v1196_v53 = vld [vmem:[%s9885_s7 + $0x19d8] sm:$0xff]  ;;  %v9055_v55 = vcombine.low %v1171_v40, %v1179_v41  ;;  %v9057_v24 = vcombine.low %v1172_v43, %v1180_v44 }
 0x227   : > { %v9074_v58 = vcombine.high %v1188_v17, %v1196_v53 }
 0x229   : > { %6948 = vmatpush1.bf16.msra.mxu0 %v8959_v62  ;;  %7112 = vmatpush1.bf16.msra.mxu1 %v8961_v63  ;;  %v1204_v62 = vld [vmem:[%s9885_s7 + $0x1a18] sm:$0xff] }
 0x22a   : > { %6949 = vmatprep.subr.bf16.mxu0 %v8976_v1  ;;  %7113 = vmatprep.subr.bf16.mxu1 %v8978_v2  ;;  %v1212_v63 = vld [vmem:[%s9885_s7 + $0x1a58] sm:$0xff]  ;;  %v9071_v1 = vcombine.low %v1187_v50, %v1195_v51  ;;  %v9073_v2 = vcombine.low %v1188_v17, %v1196_v53  ;;  %v311_v17 = vld [vmem:[#allocation2] sm:$0xff] }
 0x22b   : > { %v9090_v5 = vcombine.high %v1204_v62, %v1212_v63  ;;  %v1268_v50 = vld [vmem:[%s9885_s7 + $0x1c18] sm:$0xff] }
 0x22c   : > { %v1276_v51 = vld [vmem:[%s9885_s7 + $0x1c58] sm:$0xff] }
 0x22d   : > { %6950 = vmatpush1.bf16.msra.mxu0 %v8975_v8  ;;  %7114 = vmatpush1.bf16.msra.mxu1 %v8977_v9  ;;  %v1220_v8 = vld [vmem:[%s9885_s7 + $0x1a98] sm:$0xff] }
 0x22e   : > { %6951 = vmatprep.subr.bf16.mxu0 %v8992_v11  ;;  %7115 = vmatprep.subr.bf16.mxu1 %v8994_v12  ;;  %v1228_v9 = vld [vmem:[%s9885_s7 + $0x1ad8] sm:$0xff]  ;;  %v9087_v11 = vcombine.low %v1203_v59, %v1211_v61  ;;  %v9089_v12 = vcombine.low %v1204_v62, %v1212_v63  ;;  %v1283_v59 = vld [vmem:[%s9885_s7 + $0x1c90] sm:$0xff] }
 0x22f   : > { %v9106_v14 = vcombine.high %v1220_v8, %v1228_v9  ;;  %v1291_v61 = vld [vmem:[%s9885_s7 + $0x1cd0] sm:$0xff]  ;;  %v1284_v63 = vld [vmem:[%s9885_s7 + $0x1c98] sm:$0xff] }
 0x231   : > { %6952 = vmatpush1.bf16.msra.mxu0 %v8991_v60  ;;  %7116 = vmatpush1.bf16.msra.mxu1 %v8993_v18  ;;  %v1236_v60 = vld [vmem:[%s9885_s7 + $0x1b18] sm:$0xff] }
 0x232   : > { %6953 = vmatprep.subr.bf16.mxu0 %v9008_v19  ;;  %7117 = vmatprep.subr.bf16.mxu1 %v9010_v20  ;;  %v1244_v18 = vld [vmem:[%s9885_s7 + $0x1b58] sm:$0xff]  ;;  %v9103_v19 = vcombine.low %v1219_v6, %v1227_v7  ;;  %v9105_v20 = vcombine.low %v1220_v8, %v1228_v9  ;;  %v1299_v7 = vld [vmem:[%s9885_s7 + $0x1d10] sm:$0xff] }
 0x233   : > { %v9122_v23 = vcombine.high %v1236_v60, %v1244_v18  ;;  %v9121_v40 = vcombine.low %v1236_v60, %v1244_v18  ;;  %v1307_v8 = vld [vmem:[%s9885_s7 + $0x1d50] sm:$0xff]  ;;  %v1300_v9 = vld [vmem:[%s9885_s7 + $0x1d18] sm:$0xff] }
 0x234   : > { %v1323_v60 = vld [vmem:[%s9885_s7 + $0x1dd0] sm:$0xff]  ;;  %v1316_v18 = vld [vmem:[%s9885_s7 + $0x1d98] sm:$0xff] }
 0x235   : > { %6954 = vmatpush1.bf16.msra.mxu0 %v9007_v28  ;;  %7118 = vmatpush1.bf16.msra.mxu1 %v9009_v29  ;;  %v1259_v28 = vld [vmem:[%s9885_s7 + $0x1bd0] sm:$0xff] }
 0x236   : > { %6964 = vmatprep.subr.bf16.mxu0 %v9024_v30  ;;  %7128 = vmatprep.subr.bf16.mxu1 %v9026_v31  ;;  %v1252_v31 = vld [vmem:[%s9885_s7 + $0x1b98] sm:$0xff]  ;;  %v9136_v41 = vcombine.high %v1251_v25, %v1259_v28  ;;  %v9135_v53 = vcombine.low %v1251_v25, %v1259_v28  ;;  %v1331_v25 = vld [vmem:[%s9885_s7 + $0x1e10] sm:$0xff] }
 0x237   : > { %v1339_v28 = vld [vmem:[%s9885_s7 + $0x1e50] sm:$0xff] }
 0x238   : > { %6956 = vmatmul.mubr.bf16.vlgmr.msra.gmra.mrb[4].mxu0 %v10173_v3  ;;  %7120 = vmatmul.mubr.bf16.vlgmr.msra.gmra.mrb[4].mxu1 %v10173_v3 }
 0x239   : > { %6965 = vmatpush1.bf16.msra.mxu0 %v9023_v56  ;;  %7129 = vmatpush1.bf16.msra.mxu1 %v9025_v37  ;;  %v9119_v56 = vcombine.low %v1235_v15, %v1243_v16  ;;  %v1315_v16 = vld [vmem:[%s9885_s7 + $0x1d90] sm:$0xff] }
 0x23a   : > { %6966 = vmatprep.subr.bf16.mxu0 %v9040_v38  ;;  %7130 = vmatprep.subr.bf16.mxu1 %v9042_v39 }
 0x23b   : > { %6996 = vmatprep.mubr.bf16.mxu0 %v10179_v13  ;;  %7160 = vmatprep.mubr.bf16.mxu1 %v10179_v13 }
 0x23d   : > { %6967 = vmatpush1.bf16.msra.mxu0 %v9039_v46  ;;  %7131 = vmatpush1.bf16.msra.mxu1 %v9041_v47  ;;  %v9138_v46 = vcombine.high %v1252_v31, %v1260_v33  ;;  %v1267_v47 = vld [vmem:[%s9885_s7 + $0x1c10] sm:$0xff] }
 0x23e   : > { %6968 = vmatprep.subr.bf16.mxu0 %v9056_v48  ;;  %7132 = vmatprep.subr.bf16.mxu1 %v9058_v49  ;;  %v1275_v48 = vld [vmem:[%s9885_s7 + $0x1c50] sm:$0xff] }
 0x241   : > { %6969 = vmatpush1.bf16.msra.mxu0 %v9055_v55  ;;  %7133 = vmatpush1.bf16.msra.mxu1 %v9057_v24  ;;  %v9137_v24 = vcombine.low %v1252_v31, %v1260_v33  ;;  %v9199_v31 = vcombine.low %v1315_v16, %v1323_v60 }
 0x242   : > { %6970 = vmatprep.subr.bf16.mxu0 %v9072_v57  ;;  %7134 = vmatprep.subr.bf16.mxu1 %v9074_v58  ;;  %v9152_v57 = vcombine.high %v1267_v47, %v1275_v48  ;;  %v9154_v58 = vcombine.high %v1268_v50, %v1276_v51 }
 0x245   : > { %6971 = vmatpush1.bf16.msra.mxu0 %v9071_v1  ;;  %7135 = vmatpush1.bf16.msra.mxu1 %v9073_v2  ;;  %v1292_v1 = vld [vmem:[%s9885_s7 + $0x1cd8] sm:$0xff]  ;;  %v9151_v2 = vcombine.low %v1267_v47, %v1275_v48 }
 0x246   : > { %6972 = vmatprep.subr.bf16.mxu0 %v9088_v4  ;;  %7136 = vmatprep.subr.bf16.mxu1 %v9090_v5  ;;  %v9153_v4 = vcombine.low %v1268_v50, %v1276_v51  ;;  %v9168_v5 = vcombine.high %v1283_v59, %v1291_v61  ;;  %v9170_v6 = vcombine.high %v1284_v63, %v1292_v1  ;;  %v1364_v47 = vld [vmem:[%s9885_s7 + $0x1f18] sm:$0xff] }
 0x247   : > { %v1372_v48 = vld [vmem:[%s9885_s7 + $0x1f58] sm:$0xff] }
 0x249   : > { %6973 = vmatpush1.bf16.msra.mxu0 %v9087_v11  ;;  %7137 = vmatpush1.bf16.msra.mxu1 %v9089_v12  ;;  %v1308_v11 = vld [vmem:[%s9885_s7 + $0x1d58] sm:$0xff]  ;;  %v9167_v12 = vcombine.low %v1283_v59, %v1291_v61  ;;  %v9249_v59 = vcombine.low %v1364_v47, %v1372_v48 }
 0x24a   : > { %6974 = vmatprep.subr.bf16.mxu0 %v9104_v32  ;;  %7138 = vmatprep.subr.bf16.mxu1 %v9106_v14  ;;  %v9169_v32 = vcombine.low %v1284_v63, %v1292_v1  ;;  %v9184_v14 = vcombine.high %v1299_v7, %v1307_v8  ;;  %v9186_v15 = vcombine.high %v1300_v9, %v1308_v11  ;;  %v373_v63 = vld [vmem:[%s9885_s7 + $0x20] sm:$0xff] }
 0x24b   : > { %v6670_v22 = vpop.f32.mrb[0].mxu0  ;;  %v6834_v29 = vpop.f32.mrb[0].mxu1  ;;  %v381_v1 = vld [vmem:[%s9885_s7 + $0x60] sm:$0xff] }
 0x24c   : > { %v6672_v30 = vpop.f32.mrb[1].mxu0  ;;  %v6836_v0 = vpop.f32.mrb[1].mxu1 }
 0x24d   : > { %v7841_v34 = vcombine.low %v6670_v22, %v6672_v30  ;;  %v6674_v36 = vpop.f32.mrb[2].mxu0  ;;  %6975 = vmatpush1.bf16.msra.mxu0 %v9103_v19  ;;  %v7842_v37 = vcombine.low %v6834_v29, %v6836_v0  ;;  %v6838_v38 = vpop.f32.mrb[2].mxu1  ;;  %7139 = vmatpush1.bf16.msra.mxu1 %v9105_v20  ;;  %v1324_v19 = vld [vmem:[%s9885_s7 + $0x1dd8] sm:$0xff]  ;;  %v9183_v20 = vcombine.low %v1299_v7, %v1307_v8 }
 0x24e   : > { %v6675_v39 = vpop.f32.mrb[3].mxu0  ;;  %6976 = vmatprep.subr.bf16.mxu0 %v9120_v21  ;;  %v6839_v44 = vpop.f32.mrb[3].mxu1  ;;  %7140 = vmatprep.subr.bf16.mxu1 %v9122_v23  ;;  %v9185_v21 = vcombine.low %v1300_v9, %v1308_v11  ;;  %v9200_v22 = vcombine.high %v1315_v16, %v1323_v60  ;;  %v9202_v23 = vcombine.high %v1316_v18, %v1324_v19  ;;  %v1332_v29 = vld [vmem:[%s9885_s7 + $0x1e18] sm:$0xff]  ;;  %v1347_v36 = vld [vmem:[%s9885_s7 + $0x1e90] sm:$0xff]  ;;  %v389_v9 = vld [vmem:[%s9885_s7 + $0xa0] sm:$0xff] }
 0x24f   : > { %v7849_v43 = vrot.slane %v7841_v34, %v9941_v54  ;;  %v7856_v49 = vrot.slane %v7842_v37, %v9941_v54  ;;  %v1340_v30 = vld [vmem:[%s9885_s7 + $0x1e58] sm:$0xff]  ;;  %v9201_v33 = vcombine.low %v1316_v18, %v1324_v19  ;;  %v9216_v34 = vcombine.high %v1331_v25, %v1339_v28  ;;  %v1363_v44 = vld [vmem:[%s9885_s7 + $0x1f10] sm:$0xff]  ;;  %v397_v11 = vld [vmem:[%s9885_s7 + $0xe0] sm:$0xff] }
 0x250   : > { %v9218_v0 = vcombine.high %v1332_v29, %v1340_v30  ;;  %v1348_v37 = vld [vmem:[%s9885_s7 + $0x1e98] sm:$0xff]  ;;  %v9215_v39 = vcombine.low %v1331_v25, %v1339_v28  ;;  %v8260_v7 = vcombine.high %v373_v63, %v381_v1  ;;  %v8276_v16 = vcombine.high %v389_v9, %v397_v11  ;;  %v405_v18 = vld [vmem:[%s9885_s7 + $0x120] sm:$0xff] }
 0x251   : > { %6977 = vmatpush1.bf16.msra.mxu0 %v9119_v56  ;;  %v7857_v55 = vcombine.low %v7849_v43, %v7856_v49  ;;  %7141 = vmatpush1.bf16.msra.mxu1 %v9121_v40  ;;  %v1355_v56 = vld [vmem:[%s9885_s7 + $0x1ed0] sm:$0xff]  ;;  %v1356_v38 = vld [vmem:[%s9885_s7 + $0x1ed8] sm:$0xff]  ;;  %v9217_v40 = vcombine.low %v1332_v29, %v1340_v30  ;;  %v413_v19 = vld [vmem:[%s9885_s7 + $0x160] sm:$0xff] }
 0x252   : > { %6978 = vmatprep.subr.bf16.mxu0 %v9136_v41  ;;  %7142 = vmatprep.subr.bf16.mxu1 %v9138_v46  ;;  %v9232_v41 = vcombine.high %v1347_v36, %v1355_v56  ;;  %v9234_v43 = vcombine.high %v1348_v37, %v1356_v38  ;;  %v1371_v46 = vld [vmem:[%s9885_s7 + $0x1f50] sm:$0xff]  ;;  %v9231_v49 = vcombine.low %v1347_v36, %v1355_v56  ;;  %v421_v29 = vld [vmem:[%s9885_s7 + $0x1a0] sm:$0xff] }
 0x253   : > { %v7913_v62 = vadd.f32 %v7857_v55, %v311_v17  ;;  %v9233_v50 = vcombine.low %v1348_v37, %v1356_v38  ;;  %v9248_v51 = vcombine.high %v1363_v44, %v1371_v46  ;;  %v9250_v17 = vcombine.high %v1364_v47, %v1372_v48  ;;  %v1387_v55 = vld [vmem:[%s9885_s7 + $0x1fd0] sm:$0xff]  ;;  %v429_v30 = vld [vmem:[%s9885_s7 + $0x1e0] sm:$0xff] }
 0x254   : > { %v8292_v25 = vcombine.high %v405_v18, %v413_v19  ;;  %v8308_v36 = vcombine.high %v421_v29, %v429_v30  ;;  %v437_v37 = vld [vmem:[%s9885_s7 + $0x220] sm:$0xff] }
 0x255   : > { %6979 = vmatpush1.bf16.msra.mxu0 %v9135_v53  ;;  %7917 = vst [vmem:[#allocation2] sm:$0xff] %v7913_v62  ;;  %7143 = vmatpush1.bf16.msra.mxu1 %v9137_v24  ;;  %v1379_v53 = vld [vmem:[%s9885_s7 + $0x1f90] sm:$0xff]  ;;  %v1380_v24 = vld [vmem:[%s9885_s7 + $0x1f98] sm:$0xff]  ;;  %v445_v38 = vld [vmem:[%s9885_s7 + $0x260] sm:$0xff] }
 0x256   : > { %6980 = vmatprep.subr.bf16.mxu0 %v9152_v57  ;;  %7144 = vmatprep.subr.bf16.mxu1 %v9154_v58  ;;  %v1388_v57 = vld [vmem:[%s9885_s7 + $0x1fd8] sm:$0xff]  ;;  %v9247_v58 = vcombine.low %v1363_v44, %v1371_v46  ;;  %v9264_v61 = vcombine.high %v1379_v53, %v1387_v55  ;;  %v8324_v44 = vcombine.high %v437_v37, %v445_v38  ;;  %v453_v47 = vld [vmem:[%s9885_s7 + $0x2a0] sm:$0xff] }
 0x257   : > { %v9266_v62 = vcombine.high %v1380_v24, %v1388_v57  ;;  %v461_v48 = vld [vmem:[%s9885_s7 + $0x2e0] sm:$0xff] }
 0x259   : > { %6981 = vmatpush1.bf16.msra.mxu0 %v9151_v2  ;;  %7145 = vmatpush1.bf16.msra.mxu1 %v9153_v4  ;;  %v374_v2 = vld [vmem:[%s9885_s7 + $0x28] sm:$0xff] }
 0x25a   : > { %6982 = vmatprep.subr.bf16.mxu0 %v9168_v5  ;;  %7146 = vmatprep.subr.bf16.mxu1 %v9170_v6  ;;  %v382_v4 = vld [vmem:[%s9885_s7 + $0x68] sm:$0xff]  ;;  %v9263_v5 = vcombine.low %v1379_v53, %v1387_v55  ;;  %v9265_v6 = vcombine.low %v1380_v24, %v1388_v57  ;;  %v8340_v53 = vcombine.high %v453_v47, %v461_v48  ;;  %v469_v24 = vld [vmem:[%s9885_s7 + $0x320] sm:$0xff] }
 0x25b   : > { %v8262_v8 = vcombine.high %v374_v2, %v382_v4  ;;  %v477_v57 = vld [vmem:[%s9885_s7 + $0x360] sm:$0xff] }
 0x25d   : > { %6983 = vmatpush1.bf16.msra.mxu0 %v9167_v12  ;;  %7147 = vmatpush1.bf16.msra.mxu1 %v9169_v32  ;;  %v390_v12 = vld [vmem:[%s9885_s7 + $0xa8] sm:$0xff] }
 0x25e   : > { %6984 = vmatprep.subr.bf16.mxu0 %v9184_v14  ;;  %7148 = vmatprep.subr.bf16.mxu1 %v9186_v15  ;;  %v398_v32 = vld [vmem:[%s9885_s7 + $0xe8] sm:$0xff]  ;;  %v8259_v14 = vcombine.low %v373_v63, %v381_v1  ;;  %v8261_v15 = vcombine.low %v374_v2, %v382_v4  ;;  %v8356_v63 = vcombine.high %v469_v24, %v477_v57  ;;  %v485_v2 = vld [vmem:[%s9885_s7 + $0x3a0] sm:$0xff] }
 0x25f   : > { %v8278_v60 = vcombine.high %v390_v12, %v398_v32  ;;  %v493_v4 = vld [vmem:[%s9885_s7 + $0x3e0] sm:$0xff] }
 0x261   : > { %6985 = vmatpush1.bf16.msra.mxu0 %v9183_v20  ;;  %7149 = vmatpush1.bf16.msra.mxu1 %v9185_v21  ;;  %v406_v20 = vld [vmem:[%s9885_s7 + $0x128] sm:$0xff] }
 0x262   : > { %6986 = vmatprep.subr.bf16.mxu0 %v9200_v22  ;;  %7150 = vmatprep.subr.bf16.mxu1 %v9202_v23  ;;  %v414_v21 = vld [vmem:[%s9885_s7 + $0x168] sm:$0xff]  ;;  %v8275_v22 = vcombine.low %v389_v9, %v397_v11  ;;  %v8277_v23 = vcombine.low %v390_v12, %v398_v32  ;;  %v8372_v9 = vcombine.high %v485_v2, %v493_v4  ;;  %v501_v12 = vld [vmem:[%s9885_s7 + $0x420] sm:$0xff] }
 0x263   : > { %v8294_v28 = vcombine.high %v406_v20, %v414_v21  ;;  %v509_v32 = vld [vmem:[%s9885_s7 + $0x460] sm:$0xff] }
 0x265   : > { %6987 = vmatpush1.bf16.msra.mxu0 %v9199_v31  ;;  %7151 = vmatpush1.bf16.msra.mxu1 %v9201_v33  ;;  %v422_v31 = vld [vmem:[%s9885_s7 + $0x1a8] sm:$0xff] }
 0x266   : > { %6988 = vmatprep.subr.bf16.mxu0 %v9216_v34  ;;  %7152 = vmatprep.subr.bf16.mxu1 %v9218_v0  ;;  %v430_v33 = vld [vmem:[%s9885_s7 + $0x1e8] sm:$0xff]  ;;  %v8291_v34 = vcombine.low %v405_v18, %v413_v19  ;;  %v8293_v0 = vcombine.low %v406_v20, %v414_v21  ;;  %v8388_v18 = vcombine.high %v501_v12, %v509_v32  ;;  %v517_v20 = vld [vmem:[%s9885_s7 + $0x4a0] sm:$0xff] }
 0x267   : > { %v8310_v56 = vcombine.high %v422_v31, %v430_v33  ;;  %v525_v21 = vld [vmem:[%s9885_s7 + $0x4e0] sm:$0xff] }
 0x269   : > { %6989 = vmatpush1.bf16.msra.mxu0 %v9215_v39  ;;  %7153 = vmatpush1.bf16.msra.mxu1 %v9217_v40  ;;  %v438_v39 = vld [vmem:[%s9885_s7 + $0x228] sm:$0xff] }
 0x26a   : > { %6990 = vmatprep.subr.bf16.mxu0 %v9232_v41  ;;  %7154 = vmatprep.subr.bf16.mxu1 %v9234_v43  ;;  %v446_v40 = vld [vmem:[%s9885_s7 + $0x268] sm:$0xff]  ;;  %v8307_v41 = vcombine.low %v421_v29, %v429_v30  ;;  %v8309_v43 = vcombine.low %v422_v31, %v430_v33  ;;  %v8404_v29 = vcombine.high %v517_v20, %v525_v21  ;;  %v533_v31 = vld [vmem:[%s9885_s7 + $0x520] sm:$0xff] }
 0x26b   : > { %v8326_v46 = vcombine.high %v438_v39, %v446_v40  ;;  %v541_v33 = vld [vmem:[%s9885_s7 + $0x560] sm:$0xff] }
 0x26d   : > { %6991 = vmatpush1.bf16.msra.mxu0 %v9231_v49  ;;  %7155 = vmatpush1.bf16.msra.mxu1 %v9233_v50  ;;  %v454_v49 = vld [vmem:[%s9885_s7 + $0x2a8] sm:$0xff] }
 0x26e   : > { %6992 = vmatprep.subr.bf16.mxu0 %v9248_v51  ;;  %7156 = vmatprep.subr.bf16.mxu1 %v9250_v17  ;;  %v462_v50 = vld [vmem:[%s9885_s7 + $0x2e8] sm:$0xff]  ;;  %v8323_v51 = vcombine.low %v437_v37, %v445_v38  ;;  %v8325_v17 = vcombine.low %v438_v39, %v446_v40  ;;  %v8420_v37 = vcombine.high %v533_v31, %v541_v33  ;;  %v549_v39 = vld [vmem:[%s9885_s7 + $0x5a0] sm:$0xff] }
 0x26f   : > { %v8342_v55 = vcombine.high %v454_v49, %v462_v50  ;;  %v557_v40 = vld [vmem:[%s9885_s7 + $0x5e0] sm:$0xff] }
 0x271   : > { %6993 = vmatpush1.bf16.msra.mxu0 %v9247_v58  ;;  %7157 = vmatpush1.bf16.msra.mxu1 %v9249_v59  ;;  %v470_v58 = vld [vmem:[%s9885_s7 + $0x328] sm:$0xff] }
 0x272   : > { %6994 = vmatprep.subr.bf16.mxu0 %v9264_v61  ;;  %7158 = vmatprep.subr.bf16.mxu1 %v9266_v62  ;;  %v478_v59 = vld [vmem:[%s9885_s7 + $0x368] sm:$0xff]  ;;  %v8339_v61 = vcombine.low %v453_v47, %v461_v48  ;;  %v8341_v62 = vcombine.low %v454_v49, %v462_v50  ;;  %v8436_v47 = vcombine.high %v549_v39, %v557_v40  ;;  %v565_v49 = vld [vmem:[%s9885_s7 + $0x620] sm:$0xff] }
 0x273   : > { %v8358_v1 = vcombine.high %v470_v58, %v478_v59  ;;  %v573_v50 = vld [vmem:[%s9885_s7 + $0x660] sm:$0xff] }
 0x275   : > { %6995 = vmatpush1.bf16.msra.mxu0 %v9263_v5  ;;  %7159 = vmatpush1.bf16.msra.mxu1 %v9265_v6  ;;  %v486_v5 = vld [vmem:[%s9885_s7 + $0x3a8] sm:$0xff] }
 0x276   : > { %7169 = vmatprep.subr.bf16.mxu0 %v8260_v7  ;;  %7333 = vmatprep.subr.bf16.mxu1 %v8262_v8  ;;  %v494_v6 = vld [vmem:[%s9885_s7 + $0x3e8] sm:$0xff]  ;;  %v8355_v7 = vcombine.low %v469_v24, %v477_v57  ;;  %v8357_v8 = vcombine.low %v470_v58, %v478_v59  ;;  %v8452_v24 = vcombine.high %v565_v49, %v573_v50  ;;  %v581_v58 = vld [vmem:[%s9885_s7 + $0x6a0] sm:$0xff] }
 0x277   : > { %v8374_v11 = vcombine.high %v486_v5, %v494_v6  ;;  %v589_v59 = vld [vmem:[%s9885_s7 + $0x6e0] sm:$0xff] }
 0x278   : > { %6997 = vmatmul.mubr.bf16.vlgmr.msra.gmra.mrb[4].mxu0 %v10247_v27  ;;  %7161 = vmatmul.mubr.bf16.vlgmr.msra.gmra.mrb[4].mxu1 %v10247_v27 }
 0x279   : > { %7170 = vmatpush1.bf16.msra.mxu0 %v8259_v14  ;;  %7334 = vmatpush1.bf16.msra.mxu1 %v8261_v15  ;;  %v502_v14 = vld [vmem:[%s9885_s7 + $0x428] sm:$0xff] }
 0x27a   : > { %7171 = vmatprep.subr.bf16.mxu0 %v8276_v16  ;;  %7335 = vmatprep.subr.bf16.mxu1 %v8278_v60  ;;  %v510_v15 = vld [vmem:[%s9885_s7 + $0x468] sm:$0xff]  ;;  %v8371_v16 = vcombine.low %v485_v2, %v493_v4  ;;  %v8373_v60 = vcombine.low %v486_v5, %v494_v6  ;;  %v8468_v2 = vcombine.high %v581_v58, %v589_v59  ;;  %v597_v5 = vld [vmem:[%s9885_s7 + $0x720] sm:$0xff] }
 0x27b   : > { %7201 = vmatprep.mubr.bf16.mxu0 %v9960_v10  ;;  %7365 = vmatprep.mubr.bf16.mxu1 %v9960_v10  ;;  %v8390_v19 = vcombine.high %v502_v14, %v510_v15  ;;  %v605_v6 = vld [vmem:[%s9885_s7 + $0x760] sm:$0xff] }
 0x27d   : > { %7172 = vmatpush1.bf16.msra.mxu0 %v8275_v22  ;;  %7336 = vmatpush1.bf16.msra.mxu1 %v8277_v23  ;;  %v518_v22 = vld [vmem:[%s9885_s7 + $0x4a8] sm:$0xff] }
 0x27e   : > { %7173 = vmatprep.subr.bf16.mxu0 %v8292_v25  ;;  %7337 = vmatprep.subr.bf16.mxu1 %v8294_v28  ;;  %v526_v23 = vld [vmem:[%s9885_s7 + $0x4e8] sm:$0xff]  ;;  %v8387_v25 = vcombine.low %v501_v12, %v509_v32  ;;  %v8389_v28 = vcombine.low %v502_v14, %v510_v15  ;;  %v8484_v12 = vcombine.high %v597_v5, %v605_v6  ;;  %v613_v14 = vld [vmem:[%s9885_s7 + $0x7a0] sm:$0xff] }
 0x27f   : > { %v8406_v30 = vcombine.high %v518_v22, %v526_v23  ;;  %v621_v15 = vld [vmem:[%s9885_s7 + $0x7e0] sm:$0xff] }
 0x281   : > { %7174 = vmatpush1.bf16.msra.mxu0 %v8291_v34  ;;  %7338 = vmatpush1.bf16.msra.mxu1 %v8293_v0  ;;  %v534_v34 = vld [vmem:[%s9885_s7 + $0x528] sm:$0xff] }
 0x282   : > { %7175 = vmatprep.subr.bf16.mxu0 %v8308_v36  ;;  %7339 = vmatprep.subr.bf16.mxu1 %v8310_v56  ;;  %v542_v0 = vld [vmem:[%s9885_s7 + $0x568] sm:$0xff]  ;;  %v8403_v36 = vcombine.low %v517_v20, %v525_v21  ;;  %v8405_v56 = vcombine.low %v518_v22, %v526_v23  ;;  %v8500_v20 = vcombine.high %v613_v14, %v621_v15  ;;  %v629_v22 = vld [vmem:[%s9885_s7 + $0x820] sm:$0xff] }
 0x283   : > { %v8422_v38 = vcombine.high %v534_v34, %v542_v0  ;;  %v637_v23 = vld [vmem:[%s9885_s7 + $0x860] sm:$0xff] }
 0x285   : > { %7176 = vmatpush1.bf16.msra.mxu0 %v8307_v41  ;;  %7340 = vmatpush1.bf16.msra.mxu1 %v8309_v43  ;;  %v550_v41 = vld [vmem:[%s9885_s7 + $0x5a8] sm:$0xff] }
 0x286   : > { %7177 = vmatprep.subr.bf16.mxu0 %v8324_v44  ;;  %7341 = vmatprep.subr.bf16.mxu1 %v8326_v46  ;;  %v558_v43 = vld [vmem:[%s9885_s7 + $0x5e8] sm:$0xff]  ;;  %v8419_v44 = vcombine.low %v533_v31, %v541_v33  ;;  %v8421_v46 = vcombine.low %v534_v34, %v542_v0  ;;  %v8516_v31 = vcombine.high %v629_v22, %v637_v23  ;;  %v645_v34 = vld [vmem:[%s9885_s7 + $0x8a0] sm:$0xff] }
 0x287   : > { %v8438_v48 = vcombine.high %v550_v41, %v558_v43  ;;  %v653_v0 = vld [vmem:[%s9885_s7 + $0x8e0] sm:$0xff] }
 0x289   : > { %7178 = vmatpush1.bf16.msra.mxu0 %v8323_v51  ;;  %7342 = vmatpush1.bf16.msra.mxu1 %v8325_v17  ;;  %v566_v51 = vld [vmem:[%s9885_s7 + $0x628] sm:$0xff] }
 0x28a   : > { %7179 = vmatprep.subr.bf16.mxu0 %v8340_v53  ;;  %7343 = vmatprep.subr.bf16.mxu1 %v8342_v55  ;;  %v574_v17 = vld [vmem:[%s9885_s7 + $0x668] sm:$0xff]  ;;  %v8435_v53 = vcombine.low %v549_v39, %v557_v40  ;;  %v8437_v55 = vcombine.low %v550_v41, %v558_v43  ;;  %v8532_v39 = vcombine.high %v645_v34, %v653_v0  ;;  %v661_v41 = vld [vmem:[%s9885_s7 + $0x920] sm:$0xff] }
 0x28b   : > { %v8454_v57 = vcombine.high %v566_v51, %v574_v17  ;;  %v669_v43 = vld [vmem:[%s9885_s7 + $0x960] sm:$0xff] }
 0x28d   : > { %7180 = vmatpush1.bf16.msra.mxu0 %v8339_v61  ;;  %7344 = vmatpush1.bf16.msra.mxu1 %v8341_v62  ;;  %v582_v61 = vld [vmem:[%s9885_s7 + $0x6a8] sm:$0xff] }
 0x28e   : > { %7181 = vmatprep.subr.bf16.mxu0 %v8356_v63  ;;  %7345 = vmatprep.subr.bf16.mxu1 %v8358_v1  ;;  %v590_v62 = vld [vmem:[%s9885_s7 + $0x6e8] sm:$0xff]  ;;  %v8451_v63 = vcombine.low %v565_v49, %v573_v50  ;;  %v8453_v1 = vcombine.low %v566_v51, %v574_v17  ;;  %v8548_v49 = vcombine.high %v661_v41, %v669_v43  ;;  %v677_v51 = vld [vmem:[%s9885_s7 + $0x9a0] sm:$0xff] }
 0x28f   : > { %v8470_v4 = vcombine.high %v582_v61, %v590_v62  ;;  %v685_v17 = vld [vmem:[%s9885_s7 + $0x9e0] sm:$0xff] }
 0x291   : > { %7182 = vmatpush1.bf16.msra.mxu0 %v8355_v7  ;;  %7346 = vmatpush1.bf16.msra.mxu1 %v8357_v8  ;;  %v598_v7 = vld [vmem:[%s9885_s7 + $0x728] sm:$0xff] }
 0x292   : > { %7183 = vmatprep.subr.bf16.mxu0 %v8372_v9  ;;  %7347 = vmatprep.subr.bf16.mxu1 %v8374_v11  ;;  %v606_v8 = vld [vmem:[%s9885_s7 + $0x768] sm:$0xff]  ;;  %v8467_v9 = vcombine.low %v581_v58, %v589_v59  ;;  %v8469_v11 = vcombine.low %v582_v61, %v590_v62  ;;  %v8564_v58 = vcombine.high %v677_v51, %v685_v17  ;;  %v693_v61 = vld [vmem:[%s9885_s7 + $0xa20] sm:$0xff] }
 0x293   : > { %v8486_v32 = vcombine.high %v598_v7, %v606_v8  ;;  %v701_v62 = vld [vmem:[%s9885_s7 + $0xa60] sm:$0xff] }
 0x295   : > { %7184 = vmatpush1.bf16.msra.mxu0 %v8371_v16  ;;  %7348 = vmatpush1.bf16.msra.mxu1 %v8373_v60  ;;  %v614_v16 = vld [vmem:[%s9885_s7 + $0x7a8] sm:$0xff] }
 0x296   : > { %7185 = vmatprep.subr.bf16.mxu0 %v8388_v18  ;;  %7349 = vmatprep.subr.bf16.mxu1 %v8390_v19  ;;  %v622_v60 = vld [vmem:[%s9885_s7 + $0x7e8] sm:$0xff]  ;;  %v8483_v18 = vcombine.low %v597_v5, %v605_v6  ;;  %v8485_v19 = vcombine.low %v598_v7, %v606_v8  ;;  %v8580_v5 = vcombine.high %v693_v61, %v701_v62  ;;  %v709_v7 = vld [vmem:[%s9885_s7 + $0xaa0] sm:$0xff] }
 0x297   : > { %v8502_v21 = vcombine.high %v614_v16, %v622_v60  ;;  %v717_v8 = vld [vmem:[%s9885_s7 + $0xae0] sm:$0xff] }
 0x299   : > { %7186 = vmatpush1.bf16.msra.mxu0 %v8387_v25  ;;  %7350 = vmatpush1.bf16.msra.mxu1 %v8389_v28  ;;  %v630_v25 = vld [vmem:[%s9885_s7 + $0x828] sm:$0xff] }
 0x29a   : > { %7187 = vmatprep.subr.bf16.mxu0 %v8404_v29  ;;  %7351 = vmatprep.subr.bf16.mxu1 %v8406_v30  ;;  %v638_v28 = vld [vmem:[%s9885_s7 + $0x868] sm:$0xff]  ;;  %v8499_v29 = vcombine.low %v613_v14, %v621_v15  ;;  %v8501_v30 = vcombine.low %v614_v16, %v622_v60  ;;  %v8596_v14 = vcombine.high %v709_v7, %v717_v8  ;;  %v725_v16 = vld [vmem:[%s9885_s7 + $0xb20] sm:$0xff] }
 0x29b   : > { %v8518_v33 = vcombine.high %v630_v25, %v638_v28  ;;  %v733_v60 = vld [vmem:[%s9885_s7 + $0xb60] sm:$0xff] }
 0x29d   : > { %7188 = vmatpush1.bf16.msra.mxu0 %v8403_v36  ;;  %7352 = vmatpush1.bf16.msra.mxu1 %v8405_v56  ;;  %v646_v36 = vld [vmem:[%s9885_s7 + $0x8a8] sm:$0xff] }
 0x29e   : > { %7189 = vmatprep.subr.bf16.mxu0 %v8420_v37  ;;  %7353 = vmatprep.subr.bf16.mxu1 %v8422_v38  ;;  %v654_v56 = vld [vmem:[%s9885_s7 + $0x8e8] sm:$0xff]  ;;  %v8515_v37 = vcombine.low %v629_v22, %v637_v23  ;;  %v8517_v38 = vcombine.low %v630_v25, %v638_v28  ;;  %v8612_v22 = vcombine.high %v725_v16, %v733_v60  ;;  %v741_v25 = vld [vmem:[%s9885_s7 + $0xba0] sm:$0xff] }
 0x29f   : > { %v8534_v40 = vcombine.high %v646_v36, %v654_v56  ;;  %v749_v28 = vld [vmem:[%s9885_s7 + $0xbe0] sm:$0xff] }
 0x2a1   : > { %7190 = vmatpush1.bf16.msra.mxu0 %v8419_v44  ;;  %7354 = vmatpush1.bf16.msra.mxu1 %v8421_v46  ;;  %v662_v44 = vld [vmem:[%s9885_s7 + $0x928] sm:$0xff] }
 0x2a2   : > { %7191 = vmatprep.subr.bf16.mxu0 %v8436_v47  ;;  %7355 = vmatprep.subr.bf16.mxu1 %v8438_v48  ;;  %v670_v46 = vld [vmem:[%s9885_s7 + $0x968] sm:$0xff]  ;;  %v8531_v47 = vcombine.low %v645_v34, %v653_v0  ;;  %v8533_v48 = vcombine.low %v646_v36, %v654_v56  ;;  %v8628_v34 = vcombine.high %v741_v25, %v749_v28  ;;  %v757_v36 = vld [vmem:[%s9885_s7 + $0xc20] sm:$0xff] }
 0x2a3   : > { %v8550_v50 = vcombine.high %v662_v44, %v670_v46  ;;  %v765_v56 = vld [vmem:[%s9885_s7 + $0xc60] sm:$0xff] }
 0x2a5   : > { %7192 = vmatpush1.bf16.msra.mxu0 %v8435_v53  ;;  %7356 = vmatpush1.bf16.msra.mxu1 %v8437_v55  ;;  %v678_v53 = vld [vmem:[%s9885_s7 + $0x9a8] sm:$0xff] }
 0x2a6   : > { %7193 = vmatprep.subr.bf16.mxu0 %v8452_v24  ;;  %7357 = vmatprep.subr.bf16.mxu1 %v8454_v57  ;;  %v686_v55 = vld [vmem:[%s9885_s7 + $0x9e8] sm:$0xff]  ;;  %v8547_v24 = vcombine.low %v661_v41, %v669_v43  ;;  %v8549_v57 = vcombine.low %v662_v44, %v670_v46  ;;  %v8644_v41 = vcombine.high %v757_v36, %v765_v56  ;;  %v773_v44 = vld [vmem:[%s9885_s7 + $0xca0] sm:$0xff] }
 0x2a7   : > { %v8566_v59 = vcombine.high %v678_v53, %v686_v55  ;;  %v781_v46 = vld [vmem:[%s9885_s7 + $0xce0] sm:$0xff] }
 0x2a9   : > { %7194 = vmatpush1.bf16.msra.mxu0 %v8451_v63  ;;  %7358 = vmatpush1.bf16.msra.mxu1 %v8453_v1  ;;  %v694_v63 = vld [vmem:[%s9885_s7 + $0xa28] sm:$0xff] }
 0x2aa   : > { %7195 = vmatprep.subr.bf16.mxu0 %v8468_v2  ;;  %7359 = vmatprep.subr.bf16.mxu1 %v8470_v4  ;;  %v702_v1 = vld [vmem:[%s9885_s7 + $0xa68] sm:$0xff]  ;;  %v8563_v2 = vcombine.low %v677_v51, %v685_v17  ;;  %v8565_v4 = vcombine.low %v678_v53, %v686_v55  ;;  %v8660_v51 = vcombine.high %v773_v44, %v781_v46  ;;  %v789_v53 = vld [vmem:[%s9885_s7 + $0xd20] sm:$0xff] }
 0x2ab   : > { %v8582_v6 = vcombine.high %v694_v63, %v702_v1  ;;  %v797_v55 = vld [vmem:[%s9885_s7 + $0xd60] sm:$0xff] }
 0x2ad   : > { %7196 = vmatpush1.bf16.msra.mxu0 %v8467_v9  ;;  %7360 = vmatpush1.bf16.msra.mxu1 %v8469_v11  ;;  %v710_v9 = vld [vmem:[%s9885_s7 + $0xaa8] sm:$0xff] }
 0x2ae   : > { %7197 = vmatprep.subr.bf16.mxu0 %v8484_v12  ;;  %7361 = vmatprep.subr.bf16.mxu1 %v8486_v32  ;;  %v718_v11 = vld [vmem:[%s9885_s7 + $0xae8] sm:$0xff]  ;;  %v8579_v12 = vcombine.low %v693_v61, %v701_v62  ;;  %v8581_v32 = vcombine.low %v694_v63, %v702_v1  ;;  %v8676_v61 = vcombine.high %v789_v53, %v797_v55  ;;  %v805_v63 = vld [vmem:[%s9885_s7 + $0xda0] sm:$0xff] }
 0x2af   : > { %v8598_v15 = vcombine.high %v710_v9, %v718_v11  ;;  %v813_v1 = vld [vmem:[%s9885_s7 + $0xde0] sm:$0xff] }
 0x2b1   : > { %7198 = vmatpush1.bf16.msra.mxu0 %v8483_v18  ;;  %7362 = vmatpush1.bf16.msra.mxu1 %v8485_v19  ;;  %v726_v18 = vld [vmem:[%s9885_s7 + $0xb28] sm:$0xff] }
 0x2b2   : > { %7199 = vmatprep.subr.bf16.mxu0 %v8500_v20  ;;  %7363 = vmatprep.subr.bf16.mxu1 %v8502_v21  ;;  %v734_v19 = vld [vmem:[%s9885_s7 + $0xb68] sm:$0xff]  ;;  %v8595_v20 = vcombine.low %v709_v7, %v717_v8  ;;  %v8597_v21 = vcombine.low %v710_v9, %v718_v11  ;;  %v8692_v7 = vcombine.high %v805_v63, %v813_v1  ;;  %v821_v9 = vld [vmem:[%s9885_s7 + $0xe20] sm:$0xff] }
 0x2b3   : > { %v8614_v23 = vcombine.high %v726_v18, %v734_v19  ;;  %v829_v11 = vld [vmem:[%s9885_s7 + $0xe60] sm:$0xff] }
 0x2b5   : > { %7200 = vmatpush1.bf16.msra.mxu0 %v8499_v29  ;;  %7364 = vmatpush1.bf16.msra.mxu1 %v8501_v30  ;;  %v742_v29 = vld [vmem:[%s9885_s7 + $0xba8] sm:$0xff] }
 0x2b6   : > { %7210 = vmatprep.subr.bf16.mxu0 %v8516_v31  ;;  %7374 = vmatprep.subr.bf16.mxu1 %v8518_v33  ;;  %v750_v30 = vld [vmem:[%s9885_s7 + $0xbe8] sm:$0xff]  ;;  %v8611_v31 = vcombine.low %v725_v16, %v733_v60  ;;  %v8613_v33 = vcombine.low %v726_v18, %v734_v19  ;;  %v8708_v16 = vcombine.high %v821_v9, %v829_v11  ;;  %v837_v18 = vld [vmem:[%s9885_s7 + $0xea0] sm:$0xff] }
 0x2b7   : > { %v8630_v0 = vcombine.high %v742_v29, %v750_v30  ;;  %v845_v19 = vld [vmem:[%s9885_s7 + $0xee0] sm:$0xff] }
 0x2b8   : > { %7202 = vmatmul.mubr.bf16.vlgmr.msra.gmra.mrb[8].mxu0 %v10009_v26  ;;  %7366 = vmatmul.mubr.bf16.vlgmr.msra.gmra.mrb[8].mxu1 %v10009_v26 }
 0x2b9   : > { %7211 = vmatpush1.bf16.msra.mxu0 %v8515_v37  ;;  %7375 = vmatpush1.bf16.msra.mxu1 %v8517_v38  ;;  %v758_v37 = vld [vmem:[%s9885_s7 + $0xc28] sm:$0xff] }
 0x2ba   : > { %7212 = vmatprep.subr.bf16.mxu0 %v8532_v39  ;;  %7376 = vmatprep.subr.bf16.mxu1 %v8534_v40  ;;  %v766_v38 = vld [vmem:[%s9885_s7 + $0xc68] sm:$0xff]  ;;  %v8627_v39 = vcombine.low %v741_v25, %v749_v28  ;;  %v8629_v40 = vcombine.low %v742_v29, %v750_v30  ;;  %v8724_v25 = vcombine.high %v837_v18, %v845_v19  ;;  %v853_v29 = vld [vmem:[%s9885_s7 + $0xf20] sm:$0xff] }
 0x2bb   : > { %7242 = vmatprep.mubr.bf16.mxu0 %v10015_v35  ;;  %7406 = vmatprep.mubr.bf16.mxu1 %v10015_v35  ;;  %v8646_v43 = vcombine.high %v758_v37, %v766_v38  ;;  %v861_v30 = vld [vmem:[%s9885_s7 + $0xf60] sm:$0xff] }
 0x2bd   : > { %7213 = vmatpush1.bf16.msra.mxu0 %v8531_v47  ;;  %7377 = vmatpush1.bf16.msra.mxu1 %v8533_v48  ;;  %v774_v47 = vld [vmem:[%s9885_s7 + $0xca8] sm:$0xff] }
 0x2be   : > { %7214 = vmatprep.subr.bf16.mxu0 %v8548_v49  ;;  %7378 = vmatprep.subr.bf16.mxu1 %v8550_v50  ;;  %v782_v48 = vld [vmem:[%s9885_s7 + $0xce8] sm:$0xff]  ;;  %v8643_v49 = vcombine.low %v757_v36, %v765_v56  ;;  %v8645_v50 = vcombine.low %v758_v37, %v766_v38  ;;  %v8740_v36 = vcombine.high %v853_v29, %v861_v30  ;;  %v869_v37 = vld [vmem:[%s9885_s7 + $0xfa0] sm:$0xff] }
 0x2bf   : > { %v8662_v17 = vcombine.high %v774_v47, %v782_v48  ;;  %v877_v38 = vld [vmem:[%s9885_s7 + $0xfe0] sm:$0xff] }
 0x2c1   : > { %7215 = vmatpush1.bf16.msra.mxu0 %v8547_v24  ;;  %7379 = vmatpush1.bf16.msra.mxu1 %v8549_v57  ;;  %v790_v24 = vld [vmem:[%s9885_s7 + $0xd28] sm:$0xff] }
 0x2c2   : > { %7216 = vmatprep.subr.bf16.mxu0 %v8564_v58  ;;  %7380 = vmatprep.subr.bf16.mxu1 %v8566_v59  ;;  %v798_v57 = vld [vmem:[%s9885_s7 + $0xd68] sm:$0xff]  ;;  %v8659_v58 = vcombine.low %v773_v44, %v781_v46  ;;  %v8661_v59 = vcombine.low %v774_v47, %v782_v48  ;;  %v8756_v44 = vcombine.high %v869_v37, %v877_v38  ;;  %v885_v47 = vld [vmem:[%s9885_s7 + $0x1020] sm:$0xff] }
 0x2c3   : > { %v8678_v62 = vcombine.high %v790_v24, %v798_v57  ;;  %v893_v48 = vld [vmem:[%s9885_s7 + $0x1060] sm:$0xff] }
 0x2c5   : > { %7217 = vmatpush1.bf16.msra.mxu0 %v8563_v2  ;;  %7381 = vmatpush1.bf16.msra.mxu1 %v8565_v4  ;;  %v806_v2 = vld [vmem:[%s9885_s7 + $0xda8] sm:$0xff] }
 0x2c6   : > { %7218 = vmatprep.subr.bf16.mxu0 %v8580_v5  ;;  %7382 = vmatprep.subr.bf16.mxu1 %v8582_v6  ;;  %v814_v4 = vld [vmem:[%s9885_s7 + $0xde8] sm:$0xff]  ;;  %v8675_v5 = vcombine.low %v789_v53, %v797_v55  ;;  %v8677_v6 = vcombine.low %v790_v24, %v798_v57  ;;  %v8772_v53 = vcombine.high %v885_v47, %v893_v48  ;;  %v901_v24 = vld [vmem:[%s9885_s7 + $0x10a0] sm:$0xff] }
 0x2c7   : > { %v8694_v8 = vcombine.high %v806_v2, %v814_v4  ;;  %v909_v57 = vld [vmem:[%s9885_s7 + $0x10e0] sm:$0xff] }
 0x2c9   : > { %7219 = vmatpush1.bf16.msra.mxu0 %v8579_v12  ;;  %7383 = vmatpush1.bf16.msra.mxu1 %v8581_v32  ;;  %v822_v12 = vld [vmem:[%s9885_s7 + $0xe28] sm:$0xff] }
 0x2ca   : > { %7220 = vmatprep.subr.bf16.mxu0 %v8596_v14  ;;  %7384 = vmatprep.subr.bf16.mxu1 %v8598_v15  ;;  %v830_v32 = vld [vmem:[%s9885_s7 + $0xe68] sm:$0xff]  ;;  %v8691_v14 = vcombine.low %v805_v63, %v813_v1  ;;  %v8693_v15 = vcombine.low %v806_v2, %v814_v4  ;;  %v8788_v63 = vcombine.high %v901_v24, %v909_v57  ;;  %v917_v2 = vld [vmem:[%s9885_s7 + $0x1120] sm:$0xff] }
 0x2cb   : > { %v8710_v60 = vcombine.high %v822_v12, %v830_v32  ;;  %v925_v4 = vld [vmem:[%s9885_s7 + $0x1160] sm:$0xff] }
 0x2cd   : > { %7221 = vmatpush1.bf16.msra.mxu0 %v8595_v20  ;;  %7385 = vmatpush1.bf16.msra.mxu1 %v8597_v21  ;;  %v838_v20 = vld [vmem:[%s9885_s7 + $0xea8] sm:$0xff] }
 0x2ce   : > { %7222 = vmatprep.subr.bf16.mxu0 %v8612_v22  ;;  %7386 = vmatprep.subr.bf16.mxu1 %v8614_v23  ;;  %v846_v21 = vld [vmem:[%s9885_s7 + $0xee8] sm:$0xff]  ;;  %v8707_v22 = vcombine.low %v821_v9, %v829_v11  ;;  %v8709_v23 = vcombine.low %v822_v12, %v830_v32  ;;  %v8804_v9 = vcombine.high %v917_v2, %v925_v4  ;;  %v933_v12 = vld [vmem:[%s9885_s7 + $0x11a0] sm:$0xff] }
 0x2cf   : > { %v8726_v28 = vcombine.high %v838_v20, %v846_v21  ;;  %v941_v32 = vld [vmem:[%s9885_s7 + $0x11e0] sm:$0xff] }
 0x2d1   : > { %7223 = vmatpush1.bf16.msra.mxu0 %v8611_v31  ;;  %7387 = vmatpush1.bf16.msra.mxu1 %v8613_v33  ;;  %v854_v31 = vld [vmem:[%s9885_s7 + $0xf28] sm:$0xff] }
 0x2d2   : > { %7224 = vmatprep.subr.bf16.mxu0 %v8628_v34  ;;  %7388 = vmatprep.subr.bf16.mxu1 %v8630_v0  ;;  %v862_v33 = vld [vmem:[%s9885_s7 + $0xf68] sm:$0xff]  ;;  %v8723_v34 = vcombine.low %v837_v18, %v845_v19  ;;  %v8725_v0 = vcombine.low %v838_v20, %v846_v21  ;;  %v8820_v18 = vcombine.high %v933_v12, %v941_v32  ;;  %v949_v20 = vld [vmem:[%s9885_s7 + $0x1220] sm:$0xff] }
 0x2d3   : > { %v8742_v56 = vcombine.high %v854_v31, %v862_v33  ;;  %v957_v21 = vld [vmem:[%s9885_s7 + $0x1260] sm:$0xff] }
 0x2d5   : > { %7225 = vmatpush1.bf16.msra.mxu0 %v8627_v39  ;;  %7389 = vmatpush1.bf16.msra.mxu1 %v8629_v40  ;;  %v870_v39 = vld [vmem:[%s9885_s7 + $0xfa8] sm:$0xff] }
 0x2d6   : > { %7226 = vmatprep.subr.bf16.mxu0 %v8644_v41  ;;  %7390 = vmatprep.subr.bf16.mxu1 %v8646_v43  ;;  %v878_v40 = vld [vmem:[%s9885_s7 + $0xfe8] sm:$0xff]  ;;  %v8739_v41 = vcombine.low %v853_v29, %v861_v30  ;;  %v8741_v43 = vcombine.low %v854_v31, %v862_v33  ;;  %v8836_v29 = vcombine.high %v949_v20, %v957_v21  ;;  %v965_v31 = vld [vmem:[%s9885_s7 + $0x12a0] sm:$0xff] }
 0x2d7   : > { %v8758_v46 = vcombine.high %v870_v39, %v878_v40  ;;  %v973_v33 = vld [vmem:[%s9885_s7 + $0x12e0] sm:$0xff] }
 0x2d9   : > { %7227 = vmatpush1.bf16.msra.mxu0 %v8643_v49  ;;  %7391 = vmatpush1.bf16.msra.mxu1 %v8645_v50  ;;  %v886_v49 = vld [vmem:[%s9885_s7 + $0x1028] sm:$0xff] }
 0x2da   : > { %7228 = vmatprep.subr.bf16.mxu0 %v8660_v51  ;;  %7392 = vmatprep.subr.bf16.mxu1 %v8662_v17  ;;  %v894_v50 = vld [vmem:[%s9885_s7 + $0x1068] sm:$0xff]  ;;  %v8755_v51 = vcombine.low %v869_v37, %v877_v38  ;;  %v8757_v17 = vcombine.low %v870_v39, %v878_v40  ;;  %v8852_v37 = vcombine.high %v965_v31, %v973_v33  ;;  %v981_v39 = vld [vmem:[%s9885_s7 + $0x1320] sm:$0xff] }
 0x2db   : > { %v8774_v55 = vcombine.high %v886_v49, %v894_v50  ;;  %v989_v40 = vld [vmem:[%s9885_s7 + $0x1360] sm:$0xff] }
 0x2dd   : > { %7229 = vmatpush1.bf16.msra.mxu0 %v8659_v58  ;;  %7393 = vmatpush1.bf16.msra.mxu1 %v8661_v59  ;;  %v902_v58 = vld [vmem:[%s9885_s7 + $0x10a8] sm:$0xff] }
 0x2de   : > { %7230 = vmatprep.subr.bf16.mxu0 %v8676_v61  ;;  %7394 = vmatprep.subr.bf16.mxu1 %v8678_v62  ;;  %v910_v59 = vld [vmem:[%s9885_s7 + $0x10e8] sm:$0xff]  ;;  %v8771_v61 = vcombine.low %v885_v47, %v893_v48  ;;  %v8773_v62 = vcombine.low %v886_v49, %v894_v50  ;;  %v8868_v47 = vcombine.high %v981_v39, %v989_v40  ;;  %v997_v49 = vld [vmem:[%s9885_s7 + $0x13a0] sm:$0xff] }
 0x2df   : > { %v8790_v1 = vcombine.high %v902_v58, %v910_v59  ;;  %v1005_v50 = vld [vmem:[%s9885_s7 + $0x13e0] sm:$0xff] }
 0x2e1   : > { %7231 = vmatpush1.bf16.msra.mxu0 %v8675_v5  ;;  %7395 = vmatpush1.bf16.msra.mxu1 %v8677_v6  ;;  %v918_v5 = vld [vmem:[%s9885_s7 + $0x1128] sm:$0xff] }
 0x2e2   : > { %7232 = vmatprep.subr.bf16.mxu0 %v8692_v7  ;;  %7396 = vmatprep.subr.bf16.mxu1 %v8694_v8  ;;  %v926_v6 = vld [vmem:[%s9885_s7 + $0x1168] sm:$0xff]  ;;  %v8787_v7 = vcombine.low %v901_v24, %v909_v57  ;;  %v8789_v8 = vcombine.low %v902_v58, %v910_v59  ;;  %v8884_v24 = vcombine.high %v997_v49, %v1005_v50  ;;  %v1013_v58 = vld [vmem:[%s9885_s7 + $0x1420] sm:$0xff] }
 0x2e3   : > { %v8806_v11 = vcombine.high %v918_v5, %v926_v6  ;;  %v1021_v59 = vld [vmem:[%s9885_s7 + $0x1460] sm:$0xff] }
 0x2e5   : > { %7233 = vmatpush1.bf16.msra.mxu0 %v8691_v14  ;;  %7397 = vmatpush1.bf16.msra.mxu1 %v8693_v15  ;;  %v934_v14 = vld [vmem:[%s9885_s7 + $0x11a8] sm:$0xff] }
 0x2e6   : > { %7234 = vmatprep.subr.bf16.mxu0 %v8708_v16  ;;  %7398 = vmatprep.subr.bf16.mxu1 %v8710_v60  ;;  %v942_v15 = vld [vmem:[%s9885_s7 + $0x11e8] sm:$0xff]  ;;  %v8803_v16 = vcombine.low %v917_v2, %v925_v4  ;;  %v8805_v60 = vcombine.low %v918_v5, %v926_v6  ;;  %v8900_v2 = vcombine.high %v1013_v58, %v1021_v59  ;;  %v1029_v5 = vld [vmem:[%s9885_s7 + $0x14a0] sm:$0xff] }
 0x2e7   : > { %v8822_v19 = vcombine.high %v934_v14, %v942_v15  ;;  %v1037_v6 = vld [vmem:[%s9885_s7 + $0x14e0] sm:$0xff] }
 0x2e9   : > { %7235 = vmatpush1.bf16.msra.mxu0 %v8707_v22  ;;  %7399 = vmatpush1.bf16.msra.mxu1 %v8709_v23  ;;  %v950_v22 = vld [vmem:[%s9885_s7 + $0x1228] sm:$0xff] }
 0x2ea   : > { %7236 = vmatprep.subr.bf16.mxu0 %v8724_v25  ;;  %7400 = vmatprep.subr.bf16.mxu1 %v8726_v28  ;;  %v958_v23 = vld [vmem:[%s9885_s7 + $0x1268] sm:$0xff]  ;;  %v8819_v25 = vcombine.low %v933_v12, %v941_v32  ;;  %v8821_v28 = vcombine.low %v934_v14, %v942_v15  ;;  %v8916_v12 = vcombine.high %v1029_v5, %v1037_v6  ;;  %v1045_v14 = vld [vmem:[%s9885_s7 + $0x1520] sm:$0xff] }
 0x2eb   : > { %v8838_v30 = vcombine.high %v950_v22, %v958_v23  ;;  %v1053_v15 = vld [vmem:[%s9885_s7 + $0x1560] sm:$0xff] }
 0x2ed   : > { %7237 = vmatpush1.bf16.msra.mxu0 %v8723_v34  ;;  %7401 = vmatpush1.bf16.msra.mxu1 %v8725_v0  ;;  %v966_v34 = vld [vmem:[%s9885_s7 + $0x12a8] sm:$0xff] }
 0x2ee   : > { %7238 = vmatprep.subr.bf16.mxu0 %v8740_v36  ;;  %7402 = vmatprep.subr.bf16.mxu1 %v8742_v56  ;;  %v974_v0 = vld [vmem:[%s9885_s7 + $0x12e8] sm:$0xff]  ;;  %v8835_v36 = vcombine.low %v949_v20, %v957_v21  ;;  %v8837_v56 = vcombine.low %v950_v22, %v958_v23  ;;  %v8932_v20 = vcombine.high %v1045_v14, %v1053_v15  ;;  %v1061_v22 = vld [vmem:[%s9885_s7 + $0x15a0] sm:$0xff] }
 0x2ef   : > { %v8854_v38 = vcombine.high %v966_v34, %v974_v0  ;;  %v1069_v23 = vld [vmem:[%s9885_s7 + $0x15e0] sm:$0xff] }
 0x2f1   : > { %7239 = vmatpush1.bf16.msra.mxu0 %v8739_v41  ;;  %7403 = vmatpush1.bf16.msra.mxu1 %v8741_v43  ;;  %v982_v41 = vld [vmem:[%s9885_s7 + $0x1328] sm:$0xff] }
 0x2f2   : > { %7240 = vmatprep.subr.bf16.mxu0 %v8756_v44  ;;  %7404 = vmatprep.subr.bf16.mxu1 %v8758_v46  ;;  %v990_v43 = vld [vmem:[%s9885_s7 + $0x1368] sm:$0xff]  ;;  %v8851_v44 = vcombine.low %v965_v31, %v973_v33  ;;  %v8853_v46 = vcombine.low %v966_v34, %v974_v0  ;;  %v8948_v31 = vcombine.high %v1061_v22, %v1069_v23  ;;  %v1077_v34 = vld [vmem:[%s9885_s7 + $0x1620] sm:$0xff] }
 0x2f3   : > { %v8870_v48 = vcombine.high %v982_v41, %v990_v43  ;;  %v1085_v0 = vld [vmem:[%s9885_s7 + $0x1660] sm:$0xff] }
 0x2f5   : > { %7241 = vmatpush1.bf16.msra.mxu0 %v8755_v51  ;;  %7405 = vmatpush1.bf16.msra.mxu1 %v8757_v17  ;;  %v998_v51 = vld [vmem:[%s9885_s7 + $0x13a8] sm:$0xff] }
 0x2f6   : > { %7251 = vmatprep.subr.bf16.mxu0 %v8772_v53  ;;  %7415 = vmatprep.subr.bf16.mxu1 %v8774_v55  ;;  %v1006_v17 = vld [vmem:[%s9885_s7 + $0x13e8] sm:$0xff]  ;;  %v8867_v53 = vcombine.low %v981_v39, %v989_v40  ;;  %v8869_v55 = vcombine.low %v982_v41, %v990_v43  ;;  %v8964_v39 = vcombine.high %v1077_v34, %v1085_v0  ;;  %v1093_v41 = vld [vmem:[%s9885_s7 + $0x16a0] sm:$0xff] }
 0x2f7   : > { %v8886_v57 = vcombine.high %v998_v51, %v1006_v17  ;;  %v1101_v43 = vld [vmem:[%s9885_s7 + $0x16e0] sm:$0xff] }
 0x2f8   : > { %7243 = vmatmul.mubr.bf16.vlgmr.msra.gmra.mrb[8].mxu0 %v10092_v42  ;;  %7407 = vmatmul.mubr.bf16.vlgmr.msra.gmra.mrb[8].mxu1 %v10092_v42 }
 0x2f9   : > { %7252 = vmatpush1.bf16.msra.mxu0 %v8771_v61  ;;  %7416 = vmatpush1.bf16.msra.mxu1 %v8773_v62  ;;  %v1014_v61 = vld [vmem:[%s9885_s7 + $0x1428] sm:$0xff] }
 0x2fa   : > { %7253 = vmatprep.subr.bf16.mxu0 %v8788_v63  ;;  %7417 = vmatprep.subr.bf16.mxu1 %v8790_v1  ;;  %v1022_v62 = vld [vmem:[%s9885_s7 + $0x1468] sm:$0xff]  ;;  %v8883_v63 = vcombine.low %v997_v49, %v1005_v50  ;;  %v8885_v1 = vcombine.low %v998_v51, %v1006_v17  ;;  %v8980_v49 = vcombine.high %v1093_v41, %v1101_v43  ;;  %v1109_v51 = vld [vmem:[%s9885_s7 + $0x1720] sm:$0xff] }
 0x2fb   : > { %7283 = vmatprep.mubr.bf16.mxu0 %v10098_v52  ;;  %7447 = vmatprep.mubr.bf16.mxu1 %v10098_v52  ;;  %v8902_v4 = vcombine.high %v1014_v61, %v1022_v62  ;;  %v1117_v17 = vld [vmem:[%s9885_s7 + $0x1760] sm:$0xff] }
 0x2fd   : > { %7254 = vmatpush1.bf16.msra.mxu0 %v8787_v7  ;;  %7418 = vmatpush1.bf16.msra.mxu1 %v8789_v8  ;;  %v1030_v7 = vld [vmem:[%s9885_s7 + $0x14a8] sm:$0xff] }
 0x2fe   : > { %7255 = vmatprep.subr.bf16.mxu0 %v8804_v9  ;;  %7419 = vmatprep.subr.bf16.mxu1 %v8806_v11  ;;  %v1038_v8 = vld [vmem:[%s9885_s7 + $0x14e8] sm:$0xff]  ;;  %v8899_v9 = vcombine.low %v1013_v58, %v1021_v59  ;;  %v8901_v11 = vcombine.low %v1014_v61, %v1022_v62  ;;  %v8996_v58 = vcombine.high %v1109_v51, %v1117_v17  ;;  %v1125_v61 = vld [vmem:[%s9885_s7 + $0x17a0] sm:$0xff] }
 0x2ff   : > { %v8918_v32 = vcombine.high %v1030_v7, %v1038_v8  ;;  %v1133_v62 = vld [vmem:[%s9885_s7 + $0x17e0] sm:$0xff] }
 0x301   : > { %7256 = vmatpush1.bf16.msra.mxu0 %v8803_v16  ;;  %7420 = vmatpush1.bf16.msra.mxu1 %v8805_v60  ;;  %v1046_v16 = vld [vmem:[%s9885_s7 + $0x1528] sm:$0xff] }
 0x302   : > { %7257 = vmatprep.subr.bf16.mxu0 %v8820_v18  ;;  %7421 = vmatprep.subr.bf16.mxu1 %v8822_v19  ;;  %v1054_v60 = vld [vmem:[%s9885_s7 + $0x1568] sm:$0xff]  ;;  %v8915_v18 = vcombine.low %v1029_v5, %v1037_v6  ;;  %v8917_v19 = vcombine.low %v1030_v7, %v1038_v8  ;;  %v9012_v5 = vcombine.high %v1125_v61, %v1133_v62  ;;  %v1141_v7 = vld [vmem:[%s9885_s7 + $0x1820] sm:$0xff] }
 0x303   : > { %v8934_v21 = vcombine.high %v1046_v16, %v1054_v60  ;;  %v1149_v8 = vld [vmem:[%s9885_s7 + $0x1860] sm:$0xff] }
 0x305   : > { %7258 = vmatpush1.bf16.msra.mxu0 %v8819_v25  ;;  %7422 = vmatpush1.bf16.msra.mxu1 %v8821_v28  ;;  %v1062_v25 = vld [vmem:[%s9885_s7 + $0x15a8] sm:$0xff] }
 0x306   : > { %7259 = vmatprep.subr.bf16.mxu0 %v8836_v29  ;;  %7423 = vmatprep.subr.bf16.mxu1 %v8838_v30  ;;  %v1070_v28 = vld [vmem:[%s9885_s7 + $0x15e8] sm:$0xff]  ;;  %v8931_v29 = vcombine.low %v1045_v14, %v1053_v15  ;;  %v8933_v30 = vcombine.low %v1046_v16, %v1054_v60  ;;  %v9028_v14 = vcombine.high %v1141_v7, %v1149_v8  ;;  %v1157_v16 = vld [vmem:[%s9885_s7 + $0x18a0] sm:$0xff] }
 0x307   : > { %v8950_v33 = vcombine.high %v1062_v25, %v1070_v28  ;;  %v1165_v60 = vld [vmem:[%s9885_s7 + $0x18e0] sm:$0xff] }
 0x309   : > { %7260 = vmatpush1.bf16.msra.mxu0 %v8835_v36  ;;  %7424 = vmatpush1.bf16.msra.mxu1 %v8837_v56  ;;  %v1078_v36 = vld [vmem:[%s9885_s7 + $0x1628] sm:$0xff] }
 0x30a   : > { %7261 = vmatprep.subr.bf16.mxu0 %v8852_v37  ;;  %7425 = vmatprep.subr.bf16.mxu1 %v8854_v38  ;;  %v1086_v56 = vld [vmem:[%s9885_s7 + $0x1668] sm:$0xff]  ;;  %v8947_v37 = vcombine.low %v1061_v22, %v1069_v23  ;;  %v8949_v38 = vcombine.low %v1062_v25, %v1070_v28  ;;  %v9044_v22 = vcombine.high %v1157_v16, %v1165_v60  ;;  %v1173_v25 = vld [vmem:[%s9885_s7 + $0x1920] sm:$0xff] }
 0x30b   : > { %v8966_v40 = vcombine.high %v1078_v36, %v1086_v56  ;;  %v1181_v28 = vld [vmem:[%s9885_s7 + $0x1960] sm:$0xff] }
 0x30d   : > { %7262 = vmatpush1.bf16.msra.mxu0 %v8851_v44  ;;  %7426 = vmatpush1.bf16.msra.mxu1 %v8853_v46  ;;  %v1094_v44 = vld [vmem:[%s9885_s7 + $0x16a8] sm:$0xff] }
 0x30e   : > { %7263 = vmatprep.subr.bf16.mxu0 %v8868_v47  ;;  %7427 = vmatprep.subr.bf16.mxu1 %v8870_v48  ;;  %v1102_v46 = vld [vmem:[%s9885_s7 + $0x16e8] sm:$0xff]  ;;  %v8963_v47 = vcombine.low %v1077_v34, %v1085_v0  ;;  %v8965_v48 = vcombine.low %v1078_v36, %v1086_v56  ;;  %v9060_v34 = vcombine.high %v1173_v25, %v1181_v28  ;;  %v1189_v36 = vld [vmem:[%s9885_s7 + $0x19a0] sm:$0xff] }
 0x30f   : > { %v8982_v50 = vcombine.high %v1094_v44, %v1102_v46  ;;  %v1197_v56 = vld [vmem:[%s9885_s7 + $0x19e0] sm:$0xff] }
 0x311   : > { %7264 = vmatpush1.bf16.msra.mxu0 %v8867_v53  ;;  %7428 = vmatpush1.bf16.msra.mxu1 %v8869_v55  ;;  %v1110_v53 = vld [vmem:[%s9885_s7 + $0x1728] sm:$0xff] }
 0x312   : > { %7265 = vmatprep.subr.bf16.mxu0 %v8884_v24  ;;  %7429 = vmatprep.subr.bf16.mxu1 %v8886_v57  ;;  %v1118_v55 = vld [vmem:[%s9885_s7 + $0x1768] sm:$0xff]  ;;  %v8979_v24 = vcombine.low %v1093_v41, %v1101_v43  ;;  %v8981_v57 = vcombine.low %v1094_v44, %v1102_v46  ;;  %v9076_v41 = vcombine.high %v1189_v36, %v1197_v56  ;;  %v1205_v44 = vld [vmem:[%s9885_s7 + $0x1a20] sm:$0xff] }
 0x313   : > { %v8998_v59 = vcombine.high %v1110_v53, %v1118_v55  ;;  %v1213_v46 = vld [vmem:[%s9885_s7 + $0x1a60] sm:$0xff] }
 0x315   : > { %7266 = vmatpush1.bf16.msra.mxu0 %v8883_v63  ;;  %7430 = vmatpush1.bf16.msra.mxu1 %v8885_v1  ;;  %v1126_v63 = vld [vmem:[%s9885_s7 + $0x17a8] sm:$0xff] }
 0x316   : > { %7267 = vmatprep.subr.bf16.mxu0 %v8900_v2  ;;  %7431 = vmatprep.subr.bf16.mxu1 %v8902_v4  ;;  %v1134_v1 = vld [vmem:[%s9885_s7 + $0x17e8] sm:$0xff]  ;;  %v8995_v2 = vcombine.low %v1109_v51, %v1117_v17  ;;  %v8997_v4 = vcombine.low %v1110_v53, %v1118_v55  ;;  %v9092_v51 = vcombine.high %v1205_v44, %v1213_v46  ;;  %v1221_v53 = vld [vmem:[%s9885_s7 + $0x1aa0] sm:$0xff] }
 0x317   : > { %v9014_v6 = vcombine.high %v1126_v63, %v1134_v1  ;;  %v1229_v55 = vld [vmem:[%s9885_s7 + $0x1ae0] sm:$0xff] }
 0x319   : > { %7268 = vmatpush1.bf16.msra.mxu0 %v8899_v9  ;;  %7432 = vmatpush1.bf16.msra.mxu1 %v8901_v11  ;;  %v1142_v9 = vld [vmem:[%s9885_s7 + $0x1828] sm:$0xff] }
 0x31a   : > { %7269 = vmatprep.subr.bf16.mxu0 %v8916_v12  ;;  %7433 = vmatprep.subr.bf16.mxu1 %v8918_v32  ;;  %v1150_v11 = vld [vmem:[%s9885_s7 + $0x1868] sm:$0xff]  ;;  %v9011_v12 = vcombine.low %v1125_v61, %v1133_v62  ;;  %v9013_v32 = vcombine.low %v1126_v63, %v1134_v1  ;;  %v9108_v61 = vcombine.high %v1221_v53, %v1229_v55  ;;  %v1237_v63 = vld [vmem:[%s9885_s7 + $0x1b20] sm:$0xff] }
 0x31b   : > { %v9030_v15 = vcombine.high %v1142_v9, %v1150_v11  ;;  %v1245_v1 = vld [vmem:[%s9885_s7 + $0x1b60] sm:$0xff] }
 0x31d   : > { %7270 = vmatpush1.bf16.msra.mxu0 %v8915_v18  ;;  %7434 = vmatpush1.bf16.msra.mxu1 %v8917_v19  ;;  %v1158_v18 = vld [vmem:[%s9885_s7 + $0x18a8] sm:$0xff] }
 0x31e   : > { %7271 = vmatprep.subr.bf16.mxu0 %v8932_v20  ;;  %7435 = vmatprep.subr.bf16.mxu1 %v8934_v21  ;;  %v1166_v19 = vld [vmem:[%s9885_s7 + $0x18e8] sm:$0xff]  ;;  %v9027_v20 = vcombine.low %v1141_v7, %v1149_v8  ;;  %v9029_v21 = vcombine.low %v1142_v9, %v1150_v11  ;;  %v9124_v7 = vcombine.high %v1237_v63, %v1245_v1  ;;  %v1253_v11 = vld [vmem:[%s9885_s7 + $0x1ba0] sm:$0xff] }
 0x31f   : > { %v9046_v23 = vcombine.high %v1158_v18, %v1166_v19 }
 0x321   : > { %7272 = vmatpush1.bf16.msra.mxu0 %v8931_v29  ;;  %7436 = vmatpush1.bf16.msra.mxu1 %v8933_v30  ;;  %v1174_v29 = vld [vmem:[%s9885_s7 + $0x1928] sm:$0xff] }
 0x322   : > { %7273 = vmatprep.subr.bf16.mxu0 %v8948_v31  ;;  %7437 = vmatprep.subr.bf16.mxu1 %v8950_v33  ;;  %v1182_v30 = vld [vmem:[%s9885_s7 + $0x1968] sm:$0xff]  ;;  %v9043_v31 = vcombine.low %v1157_v16, %v1165_v60  ;;  %v9045_v33 = vcombine.low %v1158_v18, %v1166_v19 }
 0x323   : > { %v9062_v0 = vcombine.high %v1174_v29, %v1182_v30  ;;  %v1262_v16 = vld [vmem:[%s9885_s7 + $0x1be8] sm:$0xff] }
 0x325   : > { %7274 = vmatpush1.bf16.msra.mxu0 %v8947_v37  ;;  %7438 = vmatpush1.bf16.msra.mxu1 %v8949_v38  ;;  %v1190_v37 = vld [vmem:[%s9885_s7 + $0x19a8] sm:$0xff] }
 0x326   : > { %7275 = vmatprep.subr.bf16.mxu0 %v8964_v39  ;;  %7439 = vmatprep.subr.bf16.mxu1 %v8966_v40  ;;  %v1198_v38 = vld [vmem:[%s9885_s7 + $0x19e8] sm:$0xff]  ;;  %v9059_v39 = vcombine.low %v1173_v25, %v1181_v28  ;;  %v9061_v40 = vcombine.low %v1174_v29, %v1182_v30 }
 0x327   : > { %v9078_v43 = vcombine.high %v1190_v37, %v1198_v38 }
 0x329   : > { %7276 = vmatpush1.bf16.msra.mxu0 %v8963_v47  ;;  %7440 = vmatpush1.bf16.msra.mxu1 %v8965_v48  ;;  %v1206_v47 = vld [vmem:[%s9885_s7 + $0x1a28] sm:$0xff] }
 0x32a   : > { %7277 = vmatprep.subr.bf16.mxu0 %v8980_v49  ;;  %7441 = vmatprep.subr.bf16.mxu1 %v8982_v50  ;;  %v1214_v48 = vld [vmem:[%s9885_s7 + $0x1a68] sm:$0xff]  ;;  %v9075_v49 = vcombine.low %v1189_v36, %v1197_v56  ;;  %v9077_v50 = vcombine.low %v1190_v37, %v1198_v38 }
 0x32b   : > { %v9094_v17 = vcombine.high %v1206_v47, %v1214_v48  ;;  %v1270_v36 = vld [vmem:[%s9885_s7 + $0x1c28] sm:$0xff] }
 0x32c   : > { %v1278_v56 = vld [vmem:[%s9885_s7 + $0x1c68] sm:$0xff] }
 0x32d   : > { %7278 = vmatpush1.bf16.msra.mxu0 %v8979_v24  ;;  %7442 = vmatpush1.bf16.msra.mxu1 %v8981_v57  ;;  %v1222_v24 = vld [vmem:[%s9885_s7 + $0x1aa8] sm:$0xff] }
 0x32e   : > { %7279 = vmatprep.subr.bf16.mxu0 %v8996_v58  ;;  %7443 = vmatprep.subr.bf16.mxu1 %v8998_v59  ;;  %v1230_v57 = vld [vmem:[%s9885_s7 + $0x1ae8] sm:$0xff]  ;;  %v9091_v58 = vcombine.low %v1205_v44, %v1213_v46  ;;  %v9093_v59 = vcombine.low %v1206_v47, %v1214_v48  ;;  %v1285_v44 = vld [vmem:[%s9885_s7 + $0x1ca0] sm:$0xff] }
 0x32f   : > { %v9110_v62 = vcombine.high %v1222_v24, %v1230_v57  ;;  %v312_v37 = vld [vmem:[#allocation2 + $0x8] sm:$0xff]  ;;  %v1293_v46 = vld [vmem:[%s9885_s7 + $0x1ce0] sm:$0xff] }
 0x330   : > { %v1286_v48 = vld [vmem:[%s9885_s7 + $0x1ca8] sm:$0xff] }
 0x331   : > { %7280 = vmatpush1.bf16.msra.mxu0 %v8995_v2  ;;  %7444 = vmatpush1.bf16.msra.mxu1 %v8997_v4  ;;  %v1238_v2 = vld [vmem:[%s9885_s7 + $0x1b28] sm:$0xff] }
 0x332   : > { %7281 = vmatprep.subr.bf16.mxu0 %v9012_v5  ;;  %7445 = vmatprep.subr.bf16.mxu1 %v9014_v6  ;;  %v1246_v4 = vld [vmem:[%s9885_s7 + $0x1b68] sm:$0xff]  ;;  %v9107_v5 = vcombine.low %v1221_v53, %v1229_v55  ;;  %v9109_v6 = vcombine.low %v1222_v24, %v1230_v57  ;;  %v1301_v55 = vld [vmem:[%s9885_s7 + $0x1d20] sm:$0xff] }
 0x333   : > { %v9126_v9 = vcombine.high %v1238_v2, %v1246_v4  ;;  %v9125_v25 = vcombine.low %v1238_v2, %v1246_v4  ;;  %v1309_v24 = vld [vmem:[%s9885_s7 + $0x1d60] sm:$0xff]  ;;  %v1302_v57 = vld [vmem:[%s9885_s7 + $0x1d28] sm:$0xff] }
 0x334   : > { %v1325_v2 = vld [vmem:[%s9885_s7 + $0x1de0] sm:$0xff]  ;;  %v1318_v4 = vld [vmem:[%s9885_s7 + $0x1da8] sm:$0xff] }
 0x335   : > { %7282 = vmatpush1.bf16.msra.mxu0 %v9011_v12  ;;  %7446 = vmatpush1.bf16.msra.mxu1 %v9013_v32  ;;  %v1261_v12 = vld [vmem:[%s9885_s7 + $0x1be0] sm:$0xff] }
 0x336   : > { %7292 = vmatprep.subr.bf16.mxu0 %v9028_v14  ;;  %7456 = vmatprep.subr.bf16.mxu1 %v9030_v15  ;;  %v1254_v15 = vld [vmem:[%s9885_s7 + $0x1ba8] sm:$0xff]  ;;  %v9140_v28 = vcombine.high %v1253_v11, %v1261_v12  ;;  %v9139_v38 = vcombine.low %v1253_v11, %v1261_v12  ;;  %v1333_v11 = vld [vmem:[%s9885_s7 + $0x1e20] sm:$0xff] }
 0x337   : > { %v1341_v12 = vld [vmem:[%s9885_s7 + $0x1e60] sm:$0xff] }
 0x338   : > { %7284 = vmatmul.mubr.bf16.vlgmr.msra.gmra.mrb[8].mxu0 %v10173_v3  ;;  %7448 = vmatmul.mubr.bf16.vlgmr.msra.gmra.mrb[8].mxu1 %v10173_v3 }
 0x339   : > { %7293 = vmatpush1.bf16.msra.mxu0 %v9027_v20  ;;  %7457 = vmatpush1.bf16.msra.mxu1 %v9029_v21  ;;  %v9123_v20 = vcombine.low %v1237_v63, %v1245_v1  ;;  %v1317_v1 = vld [vmem:[%s9885_s7 + $0x1da0] sm:$0xff] }
 0x33a   : > { %7294 = vmatprep.subr.bf16.mxu0 %v9044_v22  ;;  %7458 = vmatprep.subr.bf16.mxu1 %v9046_v23 }
 0x33b   : > { %7324 = vmatprep.mubr.bf16.mxu0 %v10179_v13  ;;  %7488 = vmatprep.mubr.bf16.mxu1 %v10179_v13 }
 0x33d   : > { %7295 = vmatpush1.bf16.msra.mxu0 %v9043_v31  ;;  %7459 = vmatpush1.bf16.msra.mxu1 %v9045_v33  ;;  %v9142_v31 = vcombine.high %v1254_v15, %v1262_v16  ;;  %v1269_v33 = vld [vmem:[%s9885_s7 + $0x1c20] sm:$0xff] }
 0x33e   : > { %7296 = vmatprep.subr.bf16.mxu0 %v9060_v34  ;;  %7460 = vmatprep.subr.bf16.mxu1 %v9062_v0  ;;  %v1277_v34 = vld [vmem:[%s9885_s7 + $0x1c60] sm:$0xff] }
 0x341   : > { %7297 = vmatpush1.bf16.msra.mxu0 %v9059_v39  ;;  %7461 = vmatpush1.bf16.msra.mxu1 %v9061_v40  ;;  %v9141_v40 = vcombine.low %v1254_v15, %v1262_v16  ;;  %v9203_v15 = vcombine.low %v1317_v1, %v1325_v2 }
 0x342   : > { %7298 = vmatprep.subr.bf16.mxu0 %v9076_v41  ;;  %7462 = vmatprep.subr.bf16.mxu1 %v9078_v43  ;;  %v9156_v41 = vcombine.high %v1269_v33, %v1277_v34  ;;  %v9158_v43 = vcombine.high %v1270_v36, %v1278_v56 }
 0x345   : > { %7299 = vmatpush1.bf16.msra.mxu0 %v9075_v49  ;;  %7463 = vmatpush1.bf16.msra.mxu1 %v9077_v50  ;;  %v1294_v49 = vld [vmem:[%s9885_s7 + $0x1ce8] sm:$0xff]  ;;  %v9155_v50 = vcombine.low %v1269_v33, %v1277_v34 }
 0x346   : > { %7300 = vmatprep.subr.bf16.mxu0 %v9092_v51  ;;  %7464 = vmatprep.subr.bf16.mxu1 %v9094_v17  ;;  %v9157_v51 = vcombine.low %v1270_v36, %v1278_v56  ;;  %v9172_v17 = vcombine.high %v1285_v44, %v1293_v46  ;;  %v9174_v53 = vcombine.high %v1286_v48, %v1294_v49  ;;  %v1366_v33 = vld [vmem:[%s9885_s7 + $0x1f28] sm:$0xff] }
 0x347   : > { %v1374_v34 = vld [vmem:[%s9885_s7 + $0x1f68] sm:$0xff] }
 0x349   : > { %7301 = vmatpush1.bf16.msra.mxu0 %v9091_v58  ;;  %7465 = vmatpush1.bf16.msra.mxu1 %v9093_v59  ;;  %v1310_v58 = vld [vmem:[%s9885_s7 + $0x1d68] sm:$0xff]  ;;  %v9171_v59 = vcombine.low %v1285_v44, %v1293_v46  ;;  %v9253_v44 = vcombine.low %v1366_v33, %v1374_v34 }
 0x34a   : > { %7302 = vmatprep.subr.bf16.mxu0 %v9108_v61  ;;  %7466 = vmatprep.subr.bf16.mxu1 %v9110_v62  ;;  %v9173_v61 = vcombine.low %v1286_v48, %v1294_v49  ;;  %v9188_v62 = vcombine.high %v1301_v55, %v1309_v24  ;;  %v9190_v63 = vcombine.high %v1302_v57, %v1310_v58  ;;  %v375_v48 = vld [vmem:[%s9885_s7 + $0x30] sm:$0xff] }
 0x34b   : > { %v6998_v8 = vpop.f32.mrb[4].mxu0  ;;  %v7162_v32 = vpop.f32.mrb[4].mxu1  ;;  %v383_v49 = vld [vmem:[%s9885_s7 + $0x70] sm:$0xff] }
 0x34c   : > { %v7000_v14 = vpop.f32.mrb[5].mxu0  ;;  %v7164_v18 = vpop.f32.mrb[5].mxu1 }
 0x34d   : > { %v7858_v60 = vcombine.low %v6998_v8, %v7000_v14  ;;  %v7002_v19 = vpop.f32.mrb[6].mxu0  ;;  %7303 = vmatpush1.bf16.msra.mxu0 %v9107_v5  ;;  %v7859_v21 = vcombine.low %v7162_v32, %v7164_v18  ;;  %v7166_v22 = vpop.f32.mrb[6].mxu1  ;;  %7467 = vmatpush1.bf16.msra.mxu1 %v9109_v6  ;;  %v1326_v5 = vld [vmem:[%s9885_s7 + $0x1de8] sm:$0xff]  ;;  %v9187_v6 = vcombine.low %v1301_v55, %v1309_v24 }
 0x34e   : > { %v7003_v23 = vpop.f32.mrb[7].mxu0  ;;  %7304 = vmatprep.subr.bf16.mxu0 %v9124_v7  ;;  %v7167_v30 = vpop.f32.mrb[7].mxu1  ;;  %7468 = vmatprep.subr.bf16.mxu1 %v9126_v9  ;;  %v9189_v7 = vcombine.low %v1302_v57, %v1310_v58  ;;  %v9204_v8 = vcombine.high %v1317_v1, %v1325_v2  ;;  %v9206_v9 = vcombine.high %v1318_v4, %v1326_v5  ;;  %v1334_v32 = vld [vmem:[%s9885_s7 + $0x1e28] sm:$0xff]  ;;  %v1349_v19 = vld [vmem:[%s9885_s7 + $0x1ea0] sm:$0xff]  ;;  %v391_v57 = vld [vmem:[%s9885_s7 + $0xb0] sm:$0xff] }
 0x34f   : > { %v7866_v29 = vrot.slane %v7858_v60, %v9941_v54  ;;  %v7873_v0 = vrot.slane %v7859_v21, %v9941_v54  ;;  %v1342_v14 = vld [vmem:[%s9885_s7 + $0x1e68] sm:$0xff]  ;;  %v9205_v16 = vcombine.low %v1318_v4, %v1326_v5  ;;  %v9220_v60 = vcombine.high %v1333_v11, %v1341_v12  ;;  %v1365_v30 = vld [vmem:[%s9885_s7 + $0x1f20] sm:$0xff]  ;;  %v399_v58 = vld [vmem:[%s9885_s7 + $0xf0] sm:$0xff] }
 0x350   : > { %v9222_v18 = vcombine.high %v1334_v32, %v1342_v14  ;;  %v1350_v21 = vld [vmem:[%s9885_s7 + $0x1ea8] sm:$0xff]  ;;  %v9219_v23 = vcombine.low %v1333_v11, %v1341_v12  ;;  %v8264_v55 = vcombine.high %v375_v48, %v383_v49  ;;  %v8280_v1 = vcombine.high %v391_v57, %v399_v58  ;;  %v407_v4 = vld [vmem:[%s9885_s7 + $0x130] sm:$0xff] }
 0x351   : > { %7305 = vmatpush1.bf16.msra.mxu0 %v9123_v20  ;;  %v7874_v39 = vcombine.low %v7866_v29, %v7873_v0  ;;  %7469 = vmatpush1.bf16.msra.mxu1 %v9125_v25  ;;  %v1357_v20 = vld [vmem:[%s9885_s7 + $0x1ee0] sm:$0xff]  ;;  %v1358_v22 = vld [vmem:[%s9885_s7 + $0x1ee8] sm:$0xff]  ;;  %v9221_v25 = vcombine.low %v1334_v32, %v1342_v14  ;;  %v415_v5 = vld [vmem:[%s9885_s7 + $0x170] sm:$0xff] }
 0x352   : > { %7306 = vmatprep.subr.bf16.mxu0 %v9140_v28  ;;  %7470 = vmatprep.subr.bf16.mxu1 %v9142_v31  ;;  %v9236_v28 = vcombine.high %v1349_v19, %v1357_v20  ;;  %v9238_v29 = vcombine.high %v1350_v21, %v1358_v22  ;;  %v1373_v31 = vld [vmem:[%s9885_s7 + $0x1f60] sm:$0xff]  ;;  %v9235_v0 = vcombine.low %v1349_v19, %v1357_v20  ;;  %v423_v32 = vld [vmem:[%s9885_s7 + $0x1b0] sm:$0xff] }
 0x353   : > { %v7914_v47 = vadd.f32 %v7874_v39, %v312_v37  ;;  %v9237_v36 = vcombine.low %v1350_v21, %v1358_v22  ;;  %v9252_v56 = vcombine.high %v1365_v30, %v1373_v31  ;;  %v9254_v37 = vcombine.high %v1366_v33, %v1374_v34  ;;  %v1389_v39 = vld [vmem:[%s9885_s7 + $0x1fe0] sm:$0xff]  ;;  %v431_v14 = vld [vmem:[%s9885_s7 + $0x1f0] sm:$0xff]  ;;  %v456_v34 = vld [vmem:[%s9885_s7 + $0x2b8] sm:$0xff] }
 0x354   : > { %v8296_v11 = vcombine.high %v407_v4, %v415_v5  ;;  %v8312_v19 = vcombine.high %v423_v32, %v431_v14  ;;  %v439_v21 = vld [vmem:[%s9885_s7 + $0x230] sm:$0xff] }
 0x355   : > { %7307 = vmatpush1.bf16.msra.mxu0 %v9139_v38  ;;  %7918 = vst [vmem:[#allocation2 + $0x8] sm:$0xff] %v7914_v47  ;;  %7471 = vmatpush1.bf16.msra.mxu1 %v9141_v40  ;;  %v1381_v38 = vld [vmem:[%s9885_s7 + $0x1fa0] sm:$0xff]  ;;  %v1382_v40 = vld [vmem:[%s9885_s7 + $0x1fa8] sm:$0xff]  ;;  %v447_v22 = vld [vmem:[%s9885_s7 + $0x270] sm:$0xff] }
 0x356   : > { %7308 = vmatprep.subr.bf16.mxu0 %v9156_v41  ;;  %7472 = vmatprep.subr.bf16.mxu1 %v9158_v43  ;;  %v1390_v41 = vld [vmem:[%s9885_s7 + $0x1fe8] sm:$0xff]  ;;  %v9251_v43 = vcombine.low %v1365_v30, %v1373_v31  ;;  %v9268_v46 = vcombine.high %v1381_v38, %v1389_v39  ;;  %v455_v31 = vld [vmem:[%s9885_s7 + $0x2b0] sm:$0xff] }
 0x357   : > { %v9270_v47 = vcombine.high %v1382_v40, %v1390_v41  ;;  %v463_v33 = vld [vmem:[%s9885_s7 + $0x2f0] sm:$0xff] }
 0x359   : > { %7309 = vmatpush1.bf16.msra.mxu0 %v9155_v50  ;;  %7473 = vmatpush1.bf16.msra.mxu1 %v9157_v51  ;;  %v376_v50 = vld [vmem:[%s9885_s7 + $0x38] sm:$0xff] }
 0x35a   : > { %7310 = vmatprep.subr.bf16.mxu0 %v9172_v17  ;;  %7474 = vmatprep.subr.bf16.mxu1 %v9174_v53  ;;  %v384_v51 = vld [vmem:[%s9885_s7 + $0x78] sm:$0xff]  ;;  %v9267_v17 = vcombine.low %v1381_v38, %v1389_v39  ;;  %v9269_v53 = vcombine.low %v1382_v40, %v1390_v41  ;;  %v471_v39 = vld [vmem:[%s9885_s7 + $0x330] sm:$0xff] }
 0x35b   : > { %v8266_v24 = vcombine.high %v376_v50, %v384_v51  ;;  %v479_v40 = vld [vmem:[%s9885_s7 + $0x370] sm:$0xff]  ;;  %v472_v41 = vld [vmem:[%s9885_s7 + $0x338] sm:$0xff] }
 0x35d   : > { %7311 = vmatpush1.bf16.msra.mxu0 %v9171_v59  ;;  %7475 = vmatpush1.bf16.msra.mxu1 %v9173_v61  ;;  %v392_v59 = vld [vmem:[%s9885_s7 + $0xb8] sm:$0xff] }
 0x35e   : > { %7312 = vmatprep.subr.bf16.mxu0 %v9188_v62  ;;  %7476 = vmatprep.subr.bf16.mxu1 %v9190_v63  ;;  %v400_v61 = vld [vmem:[%s9885_s7 + $0xf8] sm:$0xff]  ;;  %v8263_v62 = vcombine.low %v375_v48, %v383_v49  ;;  %v8265_v63 = vcombine.low %v376_v50, %v384_v51  ;;  %v487_v49 = vld [vmem:[%s9885_s7 + $0x3b0] sm:$0xff] }
 0x35f   : > { %v8282_v2 = vcombine.high %v392_v59, %v400_v61  ;;  %v495_v50 = vld [vmem:[%s9885_s7 + $0x3f0] sm:$0xff]  ;;  %v488_v51 = vld [vmem:[%s9885_s7 + $0x3b8] sm:$0xff] }
 0x361   : > { %7313 = vmatpush1.bf16.msra.mxu0 %v9187_v6  ;;  %7477 = vmatpush1.bf16.msra.mxu1 %v9189_v7  ;;  %v408_v6 = vld [vmem:[%s9885_s7 + $0x138] sm:$0xff] }
 0x362   : > { %7314 = vmatprep.subr.bf16.mxu0 %v9204_v8  ;;  %7478 = vmatprep.subr.bf16.mxu1 %v9206_v9  ;;  %v416_v7 = vld [vmem:[%s9885_s7 + $0x178] sm:$0xff]  ;;  %v8279_v8 = vcombine.low %v391_v57, %v399_v58  ;;  %v8281_v9 = vcombine.low %v392_v59, %v400_v61  ;;  %v503_v58 = vld [vmem:[%s9885_s7 + $0x430] sm:$0xff] }
 0x363   : > { %v8298_v12 = vcombine.high %v408_v6, %v416_v7  ;;  %v511_v59 = vld [vmem:[%s9885_s7 + $0x470] sm:$0xff]  ;;  %v504_v61 = vld [vmem:[%s9885_s7 + $0x438] sm:$0xff] }
 0x365   : > { %7315 = vmatpush1.bf16.msra.mxu0 %v9203_v15  ;;  %7479 = vmatpush1.bf16.msra.mxu1 %v9205_v16  ;;  %v424_v15 = vld [vmem:[%s9885_s7 + $0x1b8] sm:$0xff] }
 0x366   : > { %7316 = vmatprep.subr.bf16.mxu0 %v9220_v60  ;;  %7480 = vmatprep.subr.bf16.mxu1 %v9222_v18  ;;  %v432_v16 = vld [vmem:[%s9885_s7 + $0x1f8] sm:$0xff]  ;;  %v8295_v60 = vcombine.low %v407_v4, %v415_v5  ;;  %v8297_v18 = vcombine.low %v408_v6, %v416_v7  ;;  %v519_v5 = vld [vmem:[%s9885_s7 + $0x4b0] sm:$0xff] }
 0x367   : > { %v8314_v20 = vcombine.high %v424_v15, %v432_v16  ;;  %v527_v6 = vld [vmem:[%s9885_s7 + $0x4f0] sm:$0xff]  ;;  %v520_v7 = vld [vmem:[%s9885_s7 + $0x4b8] sm:$0xff] }
 0x369   : > { %7317 = vmatpush1.bf16.msra.mxu0 %v9219_v23  ;;  %7481 = vmatpush1.bf16.msra.mxu1 %v9221_v25  ;;  %v440_v23 = vld [vmem:[%s9885_s7 + $0x238] sm:$0xff] }
 0x36a   : > { %7318 = vmatprep.subr.bf16.mxu0 %v9236_v28  ;;  %7482 = vmatprep.subr.bf16.mxu1 %v9238_v29  ;;  %v448_v25 = vld [vmem:[%s9885_s7 + $0x278] sm:$0xff]  ;;  %v8311_v28 = vcombine.low %v423_v32, %v431_v14  ;;  %v8328_v29 = vcombine.high %v439_v21, %v447_v22  ;;  %v535_v14 = vld [vmem:[%s9885_s7 + $0x530] sm:$0xff] }
 0x36b   : > { %v8330_v30 = vcombine.high %v440_v23, %v448_v25 }
 0x36d   : > { %7319 = vmatpush1.bf16.msra.mxu0 %v9235_v0  ;;  %7483 = vmatpush1.bf16.msra.mxu1 %v9237_v36  ;;  %v464_v0 = vld [vmem:[%s9885_s7 + $0x2f8] sm:$0xff]  ;;  %v8327_v36 = vcombine.low %v439_v21, %v447_v22  ;;  %v551_v22 = vld [vmem:[%s9885_s7 + $0x5b0] sm:$0xff] }
 0x36e   : > { %7320 = vmatprep.subr.bf16.mxu0 %v9252_v56  ;;  %7484 = vmatprep.subr.bf16.mxu1 %v9254_v37  ;;  %v8329_v56 = vcombine.low %v440_v23, %v448_v25  ;;  %v8344_v37 = vcombine.high %v455_v31, %v463_v33  ;;  %v8346_v38 = vcombine.high %v456_v34, %v464_v0  ;;  %v559_v23 = vld [vmem:[%s9885_s7 + $0x5f0] sm:$0xff]  ;;  %v552_v25 = vld [vmem:[%s9885_s7 + $0x5b8] sm:$0xff] }
 0x371   : > { %7321 = vmatpush1.bf16.msra.mxu0 %v9251_v43  ;;  %7485 = vmatpush1.bf16.msra.mxu1 %v9253_v44  ;;  %v480_v43 = vld [vmem:[%s9885_s7 + $0x378] sm:$0xff]  ;;  %v8343_v44 = vcombine.low %v455_v31, %v463_v33  ;;  %v567_v33 = vld [vmem:[%s9885_s7 + $0x630] sm:$0xff] }
 0x372   : > { %7322 = vmatprep.subr.bf16.mxu0 %v9268_v46  ;;  %7486 = vmatprep.subr.bf16.mxu1 %v9270_v47  ;;  %v8345_v46 = vcombine.low %v456_v34, %v464_v0  ;;  %v8360_v47 = vcombine.high %v471_v39, %v479_v40  ;;  %v8362_v48 = vcombine.high %v472_v41, %v480_v43  ;;  %v575_v34 = vld [vmem:[%s9885_s7 + $0x670] sm:$0xff]  ;;  %v568_v0 = vld [vmem:[%s9885_s7 + $0x638] sm:$0xff] }
 0x375   : > { %7323 = vmatpush1.bf16.msra.mxu0 %v9267_v17  ;;  %7487 = vmatpush1.bf16.msra.mxu1 %v9269_v53  ;;  %v496_v17 = vld [vmem:[%s9885_s7 + $0x3f8] sm:$0xff]  ;;  %v8359_v53 = vcombine.low %v471_v39, %v479_v40  ;;  %v583_v40 = vld [vmem:[%s9885_s7 + $0x6b0] sm:$0xff] }
 0x376   : > { %7497 = vmatprep.subr.bf16.mxu0 %v8264_v55  ;;  %7661 = vmatprep.subr.bf16.mxu1 %v8266_v24  ;;  %v8361_v55 = vcombine.low %v472_v41, %v480_v43  ;;  %v8376_v24 = vcombine.high %v487_v49, %v495_v50  ;;  %v8378_v57 = vcombine.high %v488_v51, %v496_v17  ;;  %v591_v41 = vld [vmem:[%s9885_s7 + $0x6f0] sm:$0xff]  ;;  %v584_v43 = vld [vmem:[%s9885_s7 + $0x6b8] sm:$0xff] }
 0x378   : > { %7325 = vmatmul.mubr.bf16.vlgmr.msra.gmra.mrb[8].mxu0 %v10247_v27  ;;  %7489 = vmatmul.mubr.bf16.vlgmr.msra.gmra.mrb[8].mxu1 %v10247_v27 }
 0x379   : > { %7498 = vmatpush1.bf16.msra.mxu0 %v8263_v62  ;;  %7662 = vmatpush1.bf16.msra.mxu1 %v8265_v63  ;;  %v512_v62 = vld [vmem:[%s9885_s7 + $0x478] sm:$0xff]  ;;  %v8375_v63 = vcombine.low %v487_v49, %v495_v50  ;;  %v599_v50 = vld [vmem:[%s9885_s7 + $0x730] sm:$0xff] }
 0x37a   : > { %7499 = vmatprep.subr.bf16.mxu0 %v8280_v1  ;;  %7663 = vmatprep.subr.bf16.mxu1 %v8282_v2  ;;  %v8377_v1 = vcombine.low %v488_v51, %v496_v17  ;;  %v8392_v2 = vcombine.high %v503_v58, %v511_v59  ;;  %v8394_v4 = vcombine.high %v504_v61, %v512_v62  ;;  %v607_v51 = vld [vmem:[%s9885_s7 + $0x770] sm:$0xff]  ;;  %v600_v17 = vld [vmem:[%s9885_s7 + $0x738] sm:$0xff] }
 0x37b   : > { %7529 = vmatprep.mubr.bf16.mxu0 %v9960_v10  ;;  %7693 = vmatprep.mubr.bf16.mxu1 %v9960_v10  ;;  %v8313_v10 = vcombine.low %v424_v15, %v432_v16  ;;  %v543_v15 = vld [vmem:[%s9885_s7 + $0x570] sm:$0xff]  ;;  %v536_v16 = vld [vmem:[%s9885_s7 + $0x538] sm:$0xff] }
 0x37d   : > { %7500 = vmatpush1.bf16.msra.mxu0 %v8279_v8  ;;  %7664 = vmatpush1.bf16.msra.mxu1 %v8281_v9  ;;  %v528_v8 = vld [vmem:[%s9885_s7 + $0x4f8] sm:$0xff]  ;;  %v8391_v9 = vcombine.low %v503_v58, %v511_v59  ;;  %v615_v59 = vld [vmem:[%s9885_s7 + $0x7b0] sm:$0xff] }
 0x37e   : > { %7501 = vmatprep.subr.bf16.mxu0 %v8296_v11  ;;  %7665 = vmatprep.subr.bf16.mxu1 %v8298_v12  ;;  %v8393_v11 = vcombine.low %v504_v61, %v512_v62  ;;  %v8408_v12 = vcombine.high %v519_v5, %v527_v6  ;;  %v8410_v32 = vcombine.high %v520_v7, %v528_v8  ;;  %v623_v61 = vld [vmem:[%s9885_s7 + $0x7f0] sm:$0xff]  ;;  %v616_v62 = vld [vmem:[%s9885_s7 + $0x7b8] sm:$0xff] }
 0x381   : > { %7502 = vmatpush1.bf16.msra.mxu0 %v8295_v60  ;;  %7666 = vmatpush1.bf16.msra.mxu1 %v8297_v18  ;;  %v544_v60 = vld [vmem:[%s9885_s7 + $0x578] sm:$0xff]  ;;  %v8407_v18 = vcombine.low %v519_v5, %v527_v6  ;;  %v631_v6 = vld [vmem:[%s9885_s7 + $0x830] sm:$0xff] }
 0x382   : > { %7503 = vmatprep.subr.bf16.mxu0 %v8312_v19  ;;  %7667 = vmatprep.subr.bf16.mxu1 %v8314_v20  ;;  %v8409_v19 = vcombine.low %v520_v7, %v528_v8  ;;  %v8424_v20 = vcombine.high %v535_v14, %v543_v15  ;;  %v8426_v21 = vcombine.high %v536_v16, %v544_v60  ;;  %v639_v7 = vld [vmem:[%s9885_s7 + $0x870] sm:$0xff]  ;;  %v632_v8 = vld [vmem:[%s9885_s7 + $0x838] sm:$0xff] }
 0x385   : > { %7504 = vmatpush1.bf16.msra.mxu0 %v8311_v28  ;;  %7668 = vmatpush1.bf16.msra.mxu1 %v8313_v10  ;;  %v560_v28 = vld [vmem:[%s9885_s7 + $0x5f8] sm:$0xff]  ;;  %v8423_v10 = vcombine.low %v535_v14, %v543_v15  ;;  %v647_v15 = vld [vmem:[%s9885_s7 + $0x8b0] sm:$0xff] }
 0x386   : > { %7505 = vmatprep.subr.bf16.mxu0 %v8328_v29  ;;  %7669 = vmatprep.subr.bf16.mxu1 %v8330_v30  ;;  %v8425_v29 = vcombine.low %v536_v16, %v544_v60  ;;  %v8440_v30 = vcombine.high %v551_v22, %v559_v23  ;;  %v8442_v31 = vcombine.high %v552_v25, %v560_v28  ;;  %v655_v16 = vld [vmem:[%s9885_s7 + $0x8f0] sm:$0xff]  ;;  %v648_v60 = vld [vmem:[%s9885_s7 + $0x8b8] sm:$0xff] }
 0x389   : > { %7506 = vmatpush1.bf16.msra.mxu0 %v8327_v36  ;;  %7670 = vmatpush1.bf16.msra.mxu1 %v8329_v56  ;;  %v576_v36 = vld [vmem:[%s9885_s7 + $0x678] sm:$0xff]  ;;  %v8439_v56 = vcombine.low %v551_v22, %v559_v23  ;;  %v663_v23 = vld [vmem:[%s9885_s7 + $0x930] sm:$0xff] }
 0x38a   : > { %7507 = vmatprep.subr.bf16.mxu0 %v8344_v37  ;;  %7671 = vmatprep.subr.bf16.mxu1 %v8346_v38  ;;  %v8441_v37 = vcombine.low %v552_v25, %v560_v28  ;;  %v8456_v38 = vcombine.high %v567_v33, %v575_v34  ;;  %v8458_v39 = vcombine.high %v568_v0, %v576_v36  ;;  %v671_v25 = vld [vmem:[%s9885_s7 + $0x970] sm:$0xff]  ;;  %v664_v28 = vld [vmem:[%s9885_s7 + $0x938] sm:$0xff] }
 0x38d   : > { %7508 = vmatpush1.bf16.msra.mxu0 %v8343_v44  ;;  %7672 = vmatpush1.bf16.msra.mxu1 %v8345_v46  ;;  %v592_v44 = vld [vmem:[%s9885_s7 + $0x6f8] sm:$0xff]  ;;  %v8455_v46 = vcombine.low %v567_v33, %v575_v34  ;;  %v679_v34 = vld [vmem:[%s9885_s7 + $0x9b0] sm:$0xff] }
 0x38e   : > { %7509 = vmatprep.subr.bf16.mxu0 %v8360_v47  ;;  %7673 = vmatprep.subr.bf16.mxu1 %v8362_v48  ;;  %v8457_v47 = vcombine.low %v568_v0, %v576_v36  ;;  %v8472_v48 = vcombine.high %v583_v40, %v591_v41  ;;  %v8474_v49 = vcombine.high %v584_v43, %v592_v44  ;;  %v687_v0 = vld [vmem:[%s9885_s7 + $0x9f0] sm:$0xff]  ;;  %v680_v36 = vld [vmem:[%s9885_s7 + $0x9b8] sm:$0xff] }
 0x391   : > { %7510 = vmatpush1.bf16.msra.mxu0 %v8359_v53  ;;  %7674 = vmatpush1.bf16.msra.mxu1 %v8361_v55  ;;  %v608_v53 = vld [vmem:[%s9885_s7 + $0x778] sm:$0xff]  ;;  %v8471_v55 = vcombine.low %v583_v40, %v591_v41  ;;  %v695_v40 = vld [vmem:[%s9885_s7 + $0xa30] sm:$0xff] }
 0x392   : > { %7511 = vmatprep.subr.bf16.mxu0 %v8376_v24  ;;  %7675 = vmatprep.subr.bf16.mxu1 %v8378_v57  ;;  %v8473_v24 = vcombine.low %v584_v43, %v592_v44  ;;  %v8488_v57 = vcombine.high %v599_v50, %v607_v51  ;;  %v8490_v58 = vcombine.high %v600_v17, %v608_v53  ;;  %v703_v41 = vld [vmem:[%s9885_s7 + $0xa70] sm:$0xff]  ;;  %v696_v43 = vld [vmem:[%s9885_s7 + $0xa38] sm:$0xff] }
 0x393   : > { %v704_v44 = vld [vmem:[%s9885_s7 + $0xa78] sm:$0xff] }
 0x395   : > { %7512 = vmatpush1.bf16.msra.mxu0 %v8375_v63  ;;  %7676 = vmatpush1.bf16.msra.mxu1 %v8377_v1  ;;  %v624_v63 = vld [vmem:[%s9885_s7 + $0x7f8] sm:$0xff]  ;;  %v8487_v1 = vcombine.low %v599_v50, %v607_v51  ;;  %v719_v50 = vld [vmem:[%s9885_s7 + $0xaf0] sm:$0xff] }
 0x396   : > { %7513 = vmatprep.subr.bf16.mxu0 %v8392_v2  ;;  %7677 = vmatprep.subr.bf16.mxu1 %v8394_v4  ;;  %v8489_v2 = vcombine.low %v600_v17, %v608_v53  ;;  %v8504_v4 = vcombine.high %v615_v59, %v623_v61  ;;  %v8506_v5 = vcombine.high %v616_v62, %v624_v63  ;;  %v712_v51 = vld [vmem:[%s9885_s7 + $0xab8] sm:$0xff] }
 0x397   : > { %v720_v17 = vld [vmem:[%s9885_s7 + $0xaf8] sm:$0xff]  ;;  %v8583_v53 = vcombine.low %v695_v40, %v703_v41 }
 0x399   : > { %7514 = vmatpush1.bf16.msra.mxu0 %v8391_v9  ;;  %7678 = vmatpush1.bf16.msra.mxu1 %v8393_v11  ;;  %v640_v9 = vld [vmem:[%s9885_s7 + $0x878] sm:$0xff]  ;;  %v8503_v11 = vcombine.low %v615_v59, %v623_v61  ;;  %v735_v59 = vld [vmem:[%s9885_s7 + $0xb70] sm:$0xff] }
 0x39a   : > { %7515 = vmatprep.subr.bf16.mxu0 %v8408_v12  ;;  %7679 = vmatprep.subr.bf16.mxu1 %v8410_v32  ;;  %v8505_v12 = vcombine.low %v616_v62, %v624_v63  ;;  %v8520_v32 = vcombine.high %v631_v6, %v639_v7  ;;  %v8522_v14 = vcombine.high %v632_v8, %v640_v9  ;;  %v728_v61 = vld [vmem:[%s9885_s7 + $0xb38] sm:$0xff] }
 0x39b   : > { %v736_v62 = vld [vmem:[%s9885_s7 + $0xb78] sm:$0xff] }
 0x39d   : > { %7516 = vmatpush1.bf16.msra.mxu0 %v8407_v18  ;;  %7680 = vmatpush1.bf16.msra.mxu1 %v8409_v19  ;;  %v656_v18 = vld [vmem:[%s9885_s7 + $0x8f8] sm:$0xff]  ;;  %v8519_v19 = vcombine.low %v631_v6, %v639_v7  ;;  %v751_v6 = vld [vmem:[%s9885_s7 + $0xbf0] sm:$0xff] }
 0x39e   : > { %7517 = vmatprep.subr.bf16.mxu0 %v8424_v20  ;;  %7681 = vmatprep.subr.bf16.mxu1 %v8426_v21  ;;  %v8521_v20 = vcombine.low %v632_v8, %v640_v9  ;;  %v8536_v21 = vcombine.high %v647_v15, %v655_v16  ;;  %v8538_v22 = vcombine.high %v648_v60, %v656_v18  ;;  %v744_v7 = vld [vmem:[%s9885_s7 + $0xbb8] sm:$0xff] }
 0x39f   : > { %v752_v8 = vld [vmem:[%s9885_s7 + $0xbf8] sm:$0xff] }
 0x3a1   : > { %7518 = vmatpush1.bf16.msra.mxu0 %v8423_v10  ;;  %7682 = vmatpush1.bf16.msra.mxu1 %v8425_v29  ;;  %v672_v10 = vld [vmem:[%s9885_s7 + $0x978] sm:$0xff]  ;;  %v8535_v29 = vcombine.low %v647_v15, %v655_v16  ;;  %v767_v15 = vld [vmem:[%s9885_s7 + $0xc70] sm:$0xff] }
 0x3a2   : > { %7519 = vmatprep.subr.bf16.mxu0 %v8440_v30  ;;  %7683 = vmatprep.subr.bf16.mxu1 %v8442_v31  ;;  %v8537_v30 = vcombine.low %v648_v60, %v656_v18  ;;  %v8552_v31 = vcombine.high %v663_v23, %v671_v25  ;;  %v8554_v33 = vcombine.high %v664_v28, %v672_v10  ;;  %v760_v16 = vld [vmem:[%s9885_s7 + $0xc38] sm:$0xff] }
 0x3a3   : > { %v768_v60 = vld [vmem:[%s9885_s7 + $0xc78] sm:$0xff] }
 0x3a5   : > { %7520 = vmatpush1.bf16.msra.mxu0 %v8439_v56  ;;  %7684 = vmatpush1.bf16.msra.mxu1 %v8441_v37  ;;  %v688_v56 = vld [vmem:[%s9885_s7 + $0x9f8] sm:$0xff]  ;;  %v8553_v37 = vcombine.low %v664_v28, %v672_v10 }
 0x3a6   : > { %7521 = vmatprep.subr.bf16.mxu0 %v8456_v38  ;;  %7685 = vmatprep.subr.bf16.mxu1 %v8458_v39  ;;  %v8568_v38 = vcombine.high %v679_v34, %v687_v0  ;;  %v8570_v39 = vcombine.high %v680_v36, %v688_v56  ;;  %v784_v28 = vld [vmem:[%s9885_s7 + $0xcf8] sm:$0xff] }
 0x3a9   : > { %7522 = vmatpush1.bf16.msra.mxu0 %v8455_v46  ;;  %7686 = vmatpush1.bf16.msra.mxu1 %v8457_v47  ;;  %v8567_v46 = vcombine.low %v679_v34, %v687_v0  ;;  %v8584_v47 = vcombine.high %v695_v40, %v703_v41  ;;  %v799_v34 = vld [vmem:[%s9885_s7 + $0xd70] sm:$0xff]  ;;  %v792_v0 = vld [vmem:[%s9885_s7 + $0xd38] sm:$0xff] }
 0x3aa   : > { %7523 = vmatprep.subr.bf16.mxu0 %v8472_v48  ;;  %7687 = vmatprep.subr.bf16.mxu1 %v8474_v49  ;;  %v8586_v48 = vcombine.high %v696_v43, %v704_v44  ;;  %v711_v49 = vld [vmem:[%s9885_s7 + $0xab0] sm:$0xff]  ;;  %v808_v41 = vld [vmem:[%s9885_s7 + $0xdb8] sm:$0xff] }
 0x3ab   : > { %v8599_v63 = vcombine.low %v711_v49, %v719_v50  ;;  %v815_v40 = vld [vmem:[%s9885_s7 + $0xdf0] sm:$0xff] }
 0x3ad   : > { %7524 = vmatpush1.bf16.msra.mxu0 %v8471_v55  ;;  %7688 = vmatpush1.bf16.msra.mxu1 %v8473_v24  ;;  %v8585_v55 = vcombine.low %v696_v43, %v704_v44  ;;  %v8600_v24 = vcombine.high %v711_v49, %v719_v50  ;;  %v816_v43 = vld [vmem:[%s9885_s7 + $0xdf8] sm:$0xff]  ;;  %v831_v49 = vld [vmem:[%s9885_s7 + $0xe70] sm:$0xff] }
 0x3ae   : > { %7525 = vmatprep.subr.bf16.mxu0 %v8488_v57  ;;  %7689 = vmatprep.subr.bf16.mxu1 %v8490_v58  ;;  %v8602_v57 = vcombine.high %v712_v51, %v720_v17  ;;  %v727_v58 = vld [vmem:[%s9885_s7 + $0xb30] sm:$0xff]  ;;  %v824_v50 = vld [vmem:[%s9885_s7 + $0xe38] sm:$0xff] }
 0x3af   : > { %v8615_v9 = vcombine.low %v727_v58, %v735_v59 }
 0x3b1   : > { %7526 = vmatpush1.bf16.msra.mxu0 %v8487_v1  ;;  %7690 = vmatpush1.bf16.msra.mxu1 %v8489_v2  ;;  %v8601_v1 = vcombine.low %v712_v51, %v720_v17  ;;  %v8616_v2 = vcombine.high %v727_v58, %v735_v59  ;;  %v832_v51 = vld [vmem:[%s9885_s7 + $0xe78] sm:$0xff]  ;;  %v847_v58 = vld [vmem:[%s9885_s7 + $0xef0] sm:$0xff] }
 0x3b2   : > { %7527 = vmatprep.subr.bf16.mxu0 %v8504_v4  ;;  %7691 = vmatprep.subr.bf16.mxu1 %v8506_v5  ;;  %v8618_v4 = vcombine.high %v728_v61, %v736_v62  ;;  %v743_v5 = vld [vmem:[%s9885_s7 + $0xbb0] sm:$0xff]  ;;  %v840_v59 = vld [vmem:[%s9885_s7 + $0xeb8] sm:$0xff] }
 0x3b3   : > { %v8631_v18 = vcombine.low %v743_v5, %v751_v6 }
 0x3b5   : > { %7528 = vmatpush1.bf16.msra.mxu0 %v8503_v11  ;;  %7692 = vmatpush1.bf16.msra.mxu1 %v8505_v12  ;;  %v8617_v11 = vcombine.low %v728_v61, %v736_v62  ;;  %v8632_v12 = vcombine.high %v743_v5, %v751_v6  ;;  %v848_v61 = vld [vmem:[%s9885_s7 + $0xef8] sm:$0xff]  ;;  %v863_v5 = vld [vmem:[%s9885_s7 + $0xf70] sm:$0xff] }
 0x3b6   : > { %7538 = vmatprep.subr.bf16.mxu0 %v8520_v32  ;;  %7702 = vmatprep.subr.bf16.mxu1 %v8522_v14  ;;  %v8634_v32 = vcombine.high %v744_v7, %v752_v8  ;;  %v759_v14 = vld [vmem:[%s9885_s7 + $0xc30] sm:$0xff]  ;;  %v856_v6 = vld [vmem:[%s9885_s7 + $0xf38] sm:$0xff] }
 0x3b7   : > { %v8647_v10 = vcombine.low %v759_v14, %v767_v15 }
 0x3b8   : > { %7530 = vmatmul.mubr.bf16.vlgmr.msra.gmra.mrb[12].mxu0 %v10009_v26  ;;  %7694 = vmatmul.mubr.bf16.vlgmr.msra.gmra.mrb[12].mxu1 %v10009_v26  ;;  %v8551_v26 = vcombine.low %v663_v23, %v671_v25  ;;  %v783_v23 = vld [vmem:[%s9885_s7 + $0xcf0] sm:$0xff]  ;;  %v776_v25 = vld [vmem:[%s9885_s7 + $0xcb8] sm:$0xff] }
 0x3b9   : > { %7539 = vmatpush1.bf16.msra.mxu0 %v8519_v19  ;;  %7703 = vmatpush1.bf16.msra.mxu1 %v8521_v20  ;;  %v8633_v19 = vcombine.low %v744_v7, %v752_v8  ;;  %v8648_v20 = vcombine.high %v759_v14, %v767_v15  ;;  %v864_v7 = vld [vmem:[%s9885_s7 + $0xf78] sm:$0xff]  ;;  %v879_v14 = vld [vmem:[%s9885_s7 + $0xff0] sm:$0xff] }
 0x3ba   : > { %7540 = vmatprep.subr.bf16.mxu0 %v8536_v21  ;;  %7704 = vmatprep.subr.bf16.mxu1 %v8538_v22  ;;  %v8650_v21 = vcombine.high %v760_v16, %v768_v60  ;;  %v775_v22 = vld [vmem:[%s9885_s7 + $0xcb0] sm:$0xff]  ;;  %v872_v15 = vld [vmem:[%s9885_s7 + $0xfb8] sm:$0xff] }
 0x3bb   : > { %7570 = vmatprep.mubr.bf16.mxu0 %v10015_v35  ;;  %7734 = vmatprep.mubr.bf16.mxu1 %v10015_v35  ;;  %v8569_v35 = vcombine.low %v680_v36, %v688_v56  ;;  %v800_v36 = vld [vmem:[%s9885_s7 + $0xd78] sm:$0xff]  ;;  %v8663_v56 = vcombine.low %v775_v22, %v783_v23 }
 0x3bd   : > { %7541 = vmatpush1.bf16.msra.mxu0 %v8535_v29  ;;  %7705 = vmatpush1.bf16.msra.mxu1 %v8537_v30  ;;  %v8649_v29 = vcombine.low %v760_v16, %v768_v60  ;;  %v8664_v30 = vcombine.high %v775_v22, %v783_v23  ;;  %v880_v16 = vld [vmem:[%s9885_s7 + $0xff8] sm:$0xff]  ;;  %v895_v22 = vld [vmem:[%s9885_s7 + $0x1070] sm:$0xff] }
 0x3be   : > { %7542 = vmatprep.subr.bf16.mxu0 %v8552_v31  ;;  %7706 = vmatprep.subr.bf16.mxu1 %v8554_v33  ;;  %v8666_v31 = vcombine.high %v776_v25, %v784_v28  ;;  %v791_v33 = vld [vmem:[%s9885_s7 + $0xd30] sm:$0xff]  ;;  %v888_v23 = vld [vmem:[%s9885_s7 + $0x1038] sm:$0xff] }
 0x3bf   : > { %v8679_v44 = vcombine.low %v791_v33, %v799_v34 }
 0x3c1   : > { %7543 = vmatpush1.bf16.msra.mxu0 %v8551_v26  ;;  %7707 = vmatpush1.bf16.msra.mxu1 %v8553_v37  ;;  %v8665_v26 = vcombine.low %v776_v25, %v784_v28  ;;  %v8680_v37 = vcombine.high %v791_v33, %v799_v34  ;;  %v896_v25 = vld [vmem:[%s9885_s7 + $0x1078] sm:$0xff]  ;;  %v911_v33 = vld [vmem:[%s9885_s7 + $0x10f0] sm:$0xff] }
 0x3c2   : > { %7544 = vmatprep.subr.bf16.mxu0 %v8568_v38  ;;  %7708 = vmatprep.subr.bf16.mxu1 %v8570_v39  ;;  %v8682_v38 = vcombine.high %v792_v0, %v800_v36  ;;  %v807_v39 = vld [vmem:[%s9885_s7 + $0xdb0] sm:$0xff]  ;;  %v904_v34 = vld [vmem:[%s9885_s7 + $0x10b8] sm:$0xff] }
 0x3c3   : > { %v8695_v17 = vcombine.low %v807_v39, %v815_v40 }
 0x3c5   : > { %7545 = vmatpush1.bf16.msra.mxu0 %v8567_v46  ;;  %7709 = vmatpush1.bf16.msra.mxu1 %v8569_v35  ;;  %v8681_v46 = vcombine.low %v792_v0, %v800_v36  ;;  %v8696_v35 = vcombine.high %v807_v39, %v815_v40  ;;  %v912_v0 = vld [vmem:[%s9885_s7 + $0x10f8] sm:$0xff]  ;;  %v927_v39 = vld [vmem:[%s9885_s7 + $0x1170] sm:$0xff] }
 0x3c6   : > { %7546 = vmatprep.subr.bf16.mxu0 %v8584_v47  ;;  %7710 = vmatprep.subr.bf16.mxu1 %v8586_v48  ;;  %v8698_v47 = vcombine.high %v808_v41, %v816_v43  ;;  %v823_v48 = vld [vmem:[%s9885_s7 + $0xe30] sm:$0xff]  ;;  %v920_v40 = vld [vmem:[%s9885_s7 + $0x1138] sm:$0xff] }
 0x3c7   : > { %v8711_v62 = vcombine.low %v823_v48, %v831_v49 }
 0x3c9   : > { %7547 = vmatpush1.bf16.msra.mxu0 %v8583_v53  ;;  %7711 = vmatpush1.bf16.msra.mxu1 %v8585_v55  ;;  %v8697_v53 = vcombine.low %v808_v41, %v816_v43  ;;  %v8712_v55 = vcombine.high %v823_v48, %v831_v49  ;;  %v928_v41 = vld [vmem:[%s9885_s7 + $0x1178] sm:$0xff]  ;;  %v943_v48 = vld [vmem:[%s9885_s7 + $0x11f0] sm:$0xff] }
 0x3ca   : > { %7548 = vmatprep.subr.bf16.mxu0 %v8600_v24  ;;  %7712 = vmatprep.subr.bf16.mxu1 %v8602_v57  ;;  %v8714_v24 = vcombine.high %v824_v50, %v832_v51  ;;  %v839_v57 = vld [vmem:[%s9885_s7 + $0xeb0] sm:$0xff]  ;;  %v936_v49 = vld [vmem:[%s9885_s7 + $0x11b8] sm:$0xff] }
 0x3cb   : > { %v8727_v8 = vcombine.low %v839_v57, %v847_v58 }
 0x3cd   : > { %7549 = vmatpush1.bf16.msra.mxu0 %v8599_v63  ;;  %7713 = vmatpush1.bf16.msra.mxu1 %v8601_v1  ;;  %v8713_v63 = vcombine.low %v824_v50, %v832_v51  ;;  %v8728_v1 = vcombine.high %v839_v57, %v847_v58  ;;  %v944_v50 = vld [vmem:[%s9885_s7 + $0x11f8] sm:$0xff]  ;;  %v8809_v51 = vcombine.low %v920_v40, %v928_v41 }
 0x3ce   : > { %7550 = vmatprep.subr.bf16.mxu0 %v8616_v2  ;;  %7714 = vmatprep.subr.bf16.mxu1 %v8618_v4  ;;  %v8730_v2 = vcombine.high %v840_v59, %v848_v61  ;;  %v855_v4 = vld [vmem:[%s9885_s7 + $0xf30] sm:$0xff]  ;;  %v952_v57 = vld [vmem:[%s9885_s7 + $0x1238] sm:$0xff] }
 0x3cf   : > { %v8743_v60 = vcombine.low %v855_v4, %v863_v5  ;;  %v960_v58 = vld [vmem:[%s9885_s7 + $0x1278] sm:$0xff] }
 0x3d1   : > { %7551 = vmatpush1.bf16.msra.mxu0 %v8615_v9  ;;  %7715 = vmatpush1.bf16.msra.mxu1 %v8617_v11  ;;  %v8729_v9 = vcombine.low %v840_v59, %v848_v61  ;;  %v8744_v11 = vcombine.high %v855_v4, %v863_v5  ;;  %v976_v4 = vld [vmem:[%s9885_s7 + $0x12f8] sm:$0xff] }
 0x3d2   : > { %7552 = vmatprep.subr.bf16.mxu0 %v8632_v12  ;;  %7716 = vmatprep.subr.bf16.mxu1 %v8634_v32  ;;  %v8746_v12 = vcombine.high %v856_v6, %v864_v7  ;;  %v871_v32 = vld [vmem:[%s9885_s7 + $0xfb0] sm:$0xff] }
 0x3d3   : > { %v8759_v28 = vcombine.low %v871_v32, %v879_v14 }
 0x3d5   : > { %7553 = vmatpush1.bf16.msra.mxu0 %v8631_v18  ;;  %7717 = vmatpush1.bf16.msra.mxu1 %v8633_v19  ;;  %v8745_v18 = vcombine.low %v856_v6, %v864_v7  ;;  %v8760_v19 = vcombine.high %v871_v32, %v879_v14  ;;  %v8841_v6 = vcombine.low %v952_v57, %v960_v58  ;;  %v992_v32 = vld [vmem:[%s9885_s7 + $0x1378] sm:$0xff] }
 0x3d6   : > { %7554 = vmatprep.subr.bf16.mxu0 %v8648_v20  ;;  %7718 = vmatprep.subr.bf16.mxu1 %v8650_v21  ;;  %v8762_v20 = vcombine.high %v872_v15, %v880_v16  ;;  %v887_v21 = vld [vmem:[%s9885_s7 + $0x1030] sm:$0xff] }
 0x3d7   : > { %v8775_v36 = vcombine.low %v887_v21, %v895_v22 }
 0x3d9   : > { %7555 = vmatpush1.bf16.msra.mxu0 %v8647_v10  ;;  %7719 = vmatpush1.bf16.msra.mxu1 %v8649_v29  ;;  %v8761_v10 = vcombine.low %v872_v15, %v880_v16  ;;  %v8776_v29 = vcombine.high %v887_v21, %v895_v22  ;;  %v1008_v21 = vld [vmem:[%s9885_s7 + $0x13f8] sm:$0xff] }
 0x3da   : > { %7556 = vmatprep.subr.bf16.mxu0 %v8664_v30  ;;  %7720 = vmatprep.subr.bf16.mxu1 %v8666_v31  ;;  %v8778_v30 = vcombine.high %v888_v23, %v896_v25  ;;  %v903_v31 = vld [vmem:[%s9885_s7 + $0x10b0] sm:$0xff] }
 0x3db   : > { %v8791_v43 = vcombine.low %v903_v31, %v911_v33 }
 0x3dd   : > { %7557 = vmatpush1.bf16.msra.mxu0 %v8663_v56  ;;  %7721 = vmatpush1.bf16.msra.mxu1 %v8665_v26  ;;  %v8777_v56 = vcombine.low %v888_v23, %v896_v25  ;;  %v8792_v26 = vcombine.high %v903_v31, %v911_v33  ;;  %v1024_v31 = vld [vmem:[%s9885_s7 + $0x1478] sm:$0xff] }
 0x3de   : > { %7558 = vmatprep.subr.bf16.mxu0 %v8680_v37  ;;  %7722 = vmatprep.subr.bf16.mxu1 %v8682_v38  ;;  %v8794_v37 = vcombine.high %v904_v34, %v912_v0  ;;  %v919_v38 = vld [vmem:[%s9885_s7 + $0x1130] sm:$0xff] }
 0x3e1   : > { %7559 = vmatpush1.bf16.msra.mxu0 %v8679_v44  ;;  %7723 = vmatpush1.bf16.msra.mxu1 %v8681_v46  ;;  %v8793_v44 = vcombine.low %v904_v34, %v912_v0  ;;  %v8808_v46 = vcombine.high %v919_v38, %v927_v39 }
 0x3e2   : > { %7560 = vmatprep.subr.bf16.mxu0 %v8696_v35  ;;  %7724 = vmatprep.subr.bf16.mxu1 %v8698_v47  ;;  %v8810_v35 = vcombine.high %v920_v40, %v928_v41  ;;  %v935_v47 = vld [vmem:[%s9885_s7 + $0x11b0] sm:$0xff] }
 0x3e3   : > { %v8823_v59 = vcombine.low %v935_v47, %v943_v48 }
 0x3e5   : > { %7561 = vmatpush1.bf16.msra.mxu0 %v8695_v17  ;;  %7725 = vmatpush1.bf16.msra.mxu1 %v8697_v53  ;;  %v8824_v17 = vcombine.high %v935_v47, %v943_v48  ;;  %v8826_v53 = vcombine.high %v936_v49, %v944_v50  ;;  %v1056_v47 = vld [vmem:[%s9885_s7 + $0x1578] sm:$0xff] }
 0x3e6   : > { %7562 = vmatprep.subr.bf16.mxu0 %v8712_v55  ;;  %7726 = vmatprep.subr.bf16.mxu1 %v8714_v24  ;;  %v951_v55 = vld [vmem:[%s9885_s7 + $0x1230] sm:$0xff] }
 0x3e7   : > { %v959_v24 = vld [vmem:[%s9885_s7 + $0x1270] sm:$0xff] }
 0x3e8   : > { %v8840_v61 = vcombine.high %v951_v55, %v959_v24  ;;  %v8839_v5 = vcombine.low %v951_v55, %v959_v24  ;;  %v1072_v55 = vld [vmem:[%s9885_s7 + $0x15f8] sm:$0xff] }
 0x3e9   : > { %7563 = vmatpush1.bf16.msra.mxu0 %v8711_v62  ;;  %7727 = vmatpush1.bf16.msra.mxu1 %v8713_v63  ;;  %v8842_v62 = vcombine.high %v952_v57, %v960_v58  ;;  %v967_v63 = vld [vmem:[%s9885_s7 + $0x12b0] sm:$0xff] }
 0x3ea   : > { %7564 = vmatprep.subr.bf16.mxu0 %v8728_v1  ;;  %7728 = vmatprep.subr.bf16.mxu1 %v8730_v2  ;;  %v975_v1 = vld [vmem:[%s9885_s7 + $0x12f0] sm:$0xff]  ;;  %v968_v2 = vld [vmem:[%s9885_s7 + $0x12b8] sm:$0xff] }
 0x3eb   : > { %v8856_v7 = vcombine.high %v967_v63, %v975_v1  ;;  %v8855_v14 = vcombine.low %v967_v63, %v975_v1  ;;  %v8857_v15 = vcombine.low %v968_v2, %v976_v4  ;;  %v1088_v63 = vld [vmem:[%s9885_s7 + $0x1678] sm:$0xff] }
 0x3ed   : > { %7565 = vmatpush1.bf16.msra.mxu0 %v8727_v8  ;;  %7729 = vmatpush1.bf16.msra.mxu1 %v8729_v9  ;;  %v8858_v8 = vcombine.high %v968_v2, %v976_v4  ;;  %v983_v9 = vld [vmem:[%s9885_s7 + $0x1330] sm:$0xff] }
 0x3ee   : > { %7566 = vmatprep.subr.bf16.mxu0 %v8744_v11  ;;  %7730 = vmatprep.subr.bf16.mxu1 %v8746_v12  ;;  %v991_v11 = vld [vmem:[%s9885_s7 + $0x1370] sm:$0xff]  ;;  %v984_v12 = vld [vmem:[%s9885_s7 + $0x1338] sm:$0xff] }
 0x3ef   : > { %v8872_v16 = vcombine.high %v983_v9, %v991_v11  ;;  %v8871_v22 = vcombine.low %v983_v9, %v991_v11  ;;  %v8873_v23 = vcombine.low %v984_v12, %v992_v32  ;;  %v1104_v9 = vld [vmem:[%s9885_s7 + $0x16f8] sm:$0xff] }
 0x3f1   : > { %7567 = vmatpush1.bf16.msra.mxu0 %v8743_v60  ;;  %7731 = vmatpush1.bf16.msra.mxu1 %v8745_v18  ;;  %v8874_v60 = vcombine.high %v984_v12, %v992_v32  ;;  %v999_v18 = vld [vmem:[%s9885_s7 + $0x13b0] sm:$0xff] }
 0x3f2   : > { %7568 = vmatprep.subr.bf16.mxu0 %v8760_v19  ;;  %7732 = vmatprep.subr.bf16.mxu1 %v8762_v20  ;;  %v1007_v19 = vld [vmem:[%s9885_s7 + $0x13f0] sm:$0xff]  ;;  %v1000_v20 = vld [vmem:[%s9885_s7 + $0x13b8] sm:$0xff] }
 0x3f3   : > { %v8888_v25 = vcombine.high %v999_v18, %v1007_v19  ;;  %v8887_v33 = vcombine.low %v999_v18, %v1007_v19  ;;  %v8889_v34 = vcombine.low %v1000_v20, %v1008_v21  ;;  %v1120_v18 = vld [vmem:[%s9885_s7 + $0x1778] sm:$0xff] }
 0x3f5   : > { %7569 = vmatpush1.bf16.msra.mxu0 %v8759_v28  ;;  %7733 = vmatpush1.bf16.msra.mxu1 %v8761_v10  ;;  %v8890_v28 = vcombine.high %v1000_v20, %v1008_v21  ;;  %v1015_v10 = vld [vmem:[%s9885_s7 + $0x1430] sm:$0xff] }
 0x3f6   : > { %7579 = vmatprep.subr.bf16.mxu0 %v8776_v29  ;;  %7743 = vmatprep.subr.bf16.mxu1 %v8778_v30  ;;  %v1023_v29 = vld [vmem:[%s9885_s7 + $0x1470] sm:$0xff]  ;;  %v1016_v30 = vld [vmem:[%s9885_s7 + $0x1438] sm:$0xff] }
 0x3f7   : > { %v8904_v0 = vcombine.high %v1015_v10, %v1023_v29  ;;  %v8905_v40 = vcombine.low %v1016_v30, %v1024_v31 }
 0x3f8   : > { %7571 = vmatmul.mubr.bf16.vlgmr.msra.gmra.mrb[12].mxu0 %v10092_v42  ;;  %7735 = vmatmul.mubr.bf16.vlgmr.msra.gmra.mrb[12].mxu1 %v10092_v42  ;;  %v8807_v42 = vcombine.low %v919_v38, %v927_v39  ;;  %v1040_v38 = vld [vmem:[%s9885_s7 + $0x14f8] sm:$0xff]  ;;  %v8903_v39 = vcombine.low %v1015_v10, %v1023_v29 }
 0x3f9   : > { %7580 = vmatpush1.bf16.msra.mxu0 %v8775_v36  ;;  %7744 = vmatpush1.bf16.msra.mxu1 %v8777_v56  ;;  %v8906_v36 = vcombine.high %v1016_v30, %v1024_v31  ;;  %v1031_v56 = vld [vmem:[%s9885_s7 + $0x14b0] sm:$0xff]  ;;  %v1136_v10 = vld [vmem:[%s9885_s7 + $0x17f8] sm:$0xff] }
 0x3fa   : > { %7581 = vmatprep.subr.bf16.mxu0 %v8792_v26  ;;  %7745 = vmatprep.subr.bf16.mxu1 %v8794_v37  ;;  %v1039_v26 = vld [vmem:[%s9885_s7 + $0x14f0] sm:$0xff]  ;;  %v1032_v37 = vld [vmem:[%s9885_s7 + $0x14b8] sm:$0xff] }
 0x3fb   : > { %7611 = vmatprep.mubr.bf16.mxu0 %v10098_v52  ;;  %7775 = vmatprep.mubr.bf16.mxu1 %v10098_v52  ;;  %v8825_v52 = vcombine.low %v936_v49, %v944_v50  ;;  %v8920_v41 = vcombine.high %v1031_v56, %v1039_v26  ;;  %v8919_v48 = vcombine.low %v1031_v56, %v1039_v26  ;;  %v1152_v56 = vld [vmem:[%s9885_s7 + $0x1878] sm:$0xff] }
 0x3fc   : > { %v8921_v49 = vcombine.low %v1032_v37, %v1040_v38 }
 0x3fd   : > { %7582 = vmatpush1.bf16.msra.mxu0 %v8791_v43  ;;  %7746 = vmatpush1.bf16.msra.mxu1 %v8793_v44  ;;  %v8922_v43 = vcombine.high %v1032_v37, %v1040_v38  ;;  %v1047_v44 = vld [vmem:[%s9885_s7 + $0x1530] sm:$0xff] }
 0x3fe   : > { %7583 = vmatprep.subr.bf16.mxu0 %v8808_v46  ;;  %7747 = vmatprep.subr.bf16.mxu1 %v8810_v35  ;;  %v1055_v46 = vld [vmem:[%s9885_s7 + $0x1570] sm:$0xff]  ;;  %v1048_v35 = vld [vmem:[%s9885_s7 + $0x1538] sm:$0xff] }
 0x3ff   : > { %v8936_v50 = vcombine.high %v1047_v44, %v1055_v46  ;;  %v8935_v24 = vcombine.low %v1047_v44, %v1055_v46  ;;  %v8937_v57 = vcombine.low %v1048_v35, %v1056_v47  ;;  %v1168_v44 = vld [vmem:[%s9885_s7 + $0x18f8] sm:$0xff] }
 0x401   : > { %7584 = vmatpush1.bf16.msra.mxu0 %v8807_v42  ;;  %7748 = vmatpush1.bf16.msra.mxu1 %v8809_v51  ;;  %v8938_v42 = vcombine.high %v1048_v35, %v1056_v47  ;;  %v1063_v51 = vld [vmem:[%s9885_s7 + $0x15b0] sm:$0xff] }
 0x402   : > { %7585 = vmatprep.subr.bf16.mxu0 %v8824_v17  ;;  %7749 = vmatprep.subr.bf16.mxu1 %v8826_v53  ;;  %v1071_v17 = vld [vmem:[%s9885_s7 + $0x15f0] sm:$0xff]  ;;  %v1064_v53 = vld [vmem:[%s9885_s7 + $0x15b8] sm:$0xff] }
 0x403   : > { %v8952_v58 = vcombine.high %v1063_v51, %v1071_v17  ;;  %v8951_v1 = vcombine.low %v1063_v51, %v1071_v17  ;;  %v8953_v2 = vcombine.low %v1064_v53, %v1072_v55  ;;  %v1184_v51 = vld [vmem:[%s9885_s7 + $0x1978] sm:$0xff] }
 0x405   : > { %7586 = vmatpush1.bf16.msra.mxu0 %v8823_v59  ;;  %7750 = vmatpush1.bf16.msra.mxu1 %v8825_v52  ;;  %v8954_v59 = vcombine.high %v1064_v53, %v1072_v55  ;;  %v1079_v52 = vld [vmem:[%s9885_s7 + $0x1630] sm:$0xff] }
 0x406   : > { %7587 = vmatprep.subr.bf16.mxu0 %v8840_v61  ;;  %7751 = vmatprep.subr.bf16.mxu1 %v8842_v62  ;;  %v1087_v61 = vld [vmem:[%s9885_s7 + $0x1670] sm:$0xff]  ;;  %v1080_v62 = vld [vmem:[%s9885_s7 + $0x1638] sm:$0xff] }
 0x407   : > { %v8968_v4 = vcombine.high %v1079_v52, %v1087_v61  ;;  %v8967_v11 = vcombine.low %v1079_v52, %v1087_v61  ;;  %v8969_v12 = vcombine.low %v1080_v62, %v1088_v63  ;;  %v1200_v52 = vld [vmem:[%s9885_s7 + $0x19f8] sm:$0xff] }
 0x409   : > { %7588 = vmatpush1.bf16.msra.mxu0 %v8839_v5  ;;  %7752 = vmatpush1.bf16.msra.mxu1 %v8841_v6  ;;  %v8970_v5 = vcombine.high %v1080_v62, %v1088_v63  ;;  %v1095_v6 = vld [vmem:[%s9885_s7 + $0x16b0] sm:$0xff] }
 0x40a   : > { %7589 = vmatprep.subr.bf16.mxu0 %v8856_v7  ;;  %7753 = vmatprep.subr.bf16.mxu1 %v8858_v8  ;;  %v1103_v7 = vld [vmem:[%s9885_s7 + $0x16f0] sm:$0xff]  ;;  %v1096_v8 = vld [vmem:[%s9885_s7 + $0x16b8] sm:$0xff] }
 0x40b   : > { %v8984_v32 = vcombine.high %v1095_v6, %v1103_v7  ;;  %v8983_v19 = vcombine.low %v1095_v6, %v1103_v7  ;;  %v8985_v20 = vcombine.low %v1096_v8, %v1104_v9 }
 0x40d   : > { %7590 = vmatpush1.bf16.msra.mxu0 %v8855_v14  ;;  %7754 = vmatpush1.bf16.msra.mxu1 %v8857_v15  ;;  %v8986_v14 = vcombine.high %v1096_v8, %v1104_v9  ;;  %v1111_v15 = vld [vmem:[%s9885_s7 + $0x1730] sm:$0xff] }
 0x40e   : > { %7591 = vmatprep.subr.bf16.mxu0 %v8872_v16  ;;  %7755 = vmatprep.subr.bf16.mxu1 %v8874_v60  ;;  %v1119_v16 = vld [vmem:[%s9885_s7 + $0x1770] sm:$0xff]  ;;  %v1112_v60 = vld [vmem:[%s9885_s7 + $0x1738] sm:$0xff] }
 0x40f   : > { %v9000_v21 = vcombine.high %v1111_v15, %v1119_v16  ;;  %v8999_v29 = vcombine.low %v1111_v15, %v1119_v16  ;;  %v9001_v30 = vcombine.low %v1112_v60, %v1120_v18  ;;  %v1223_v9 = vld [vmem:[%s9885_s7 + $0x1ab0] sm:$0xff] }
 0x411   : > { %7592 = vmatpush1.bf16.msra.mxu0 %v8871_v22  ;;  %7756 = vmatpush1.bf16.msra.mxu1 %v8873_v23  ;;  %v9002_v22 = vcombine.high %v1112_v60, %v1120_v18  ;;  %v1127_v23 = vld [vmem:[%s9885_s7 + $0x17b0] sm:$0xff] }
 0x412   : > { %7593 = vmatprep.subr.bf16.mxu0 %v8888_v25  ;;  %7757 = vmatprep.subr.bf16.mxu1 %v8890_v28  ;;  %v1135_v25 = vld [vmem:[%s9885_s7 + $0x17f0] sm:$0xff]  ;;  %v1128_v28 = vld [vmem:[%s9885_s7 + $0x17b8] sm:$0xff] }
 0x413   : > { %v9016_v31 = vcombine.high %v1127_v23, %v1135_v25  ;;  %v9015_v26 = vcombine.low %v1127_v23, %v1135_v25  ;;  %v9017_v37 = vcombine.low %v1128_v28, %v1136_v10  ;;  %v1239_v18 = vld [vmem:[%s9885_s7 + $0x1b30] sm:$0xff] }
 0x415   : > { %7594 = vmatpush1.bf16.msra.mxu0 %v8887_v33  ;;  %7758 = vmatpush1.bf16.msra.mxu1 %v8889_v34  ;;  %v9018_v33 = vcombine.high %v1128_v28, %v1136_v10  ;;  %v1143_v34 = vld [vmem:[%s9885_s7 + $0x1830] sm:$0xff] }
 0x416   : > { %7595 = vmatprep.subr.bf16.mxu0 %v8904_v0  ;;  %7759 = vmatprep.subr.bf16.mxu1 %v8906_v36  ;;  %v1151_v0 = vld [vmem:[%s9885_s7 + $0x1870] sm:$0xff]  ;;  %v1144_v36 = vld [vmem:[%s9885_s7 + $0x1838] sm:$0xff] }
 0x417   : > { %v9032_v38 = vcombine.high %v1143_v34, %v1151_v0  ;;  %v9031_v46 = vcombine.low %v1143_v34, %v1151_v0  ;;  %v9033_v35 = vcombine.low %v1144_v36, %v1152_v56  ;;  %v1256_v34 = vld [vmem:[%s9885_s7 + $0x1bb8] sm:$0xff] }
 0x418   : > { %v1264_v0 = vld [vmem:[%s9885_s7 + $0x1bf8] sm:$0xff] }
 0x419   : > { %7596 = vmatpush1.bf16.msra.mxu0 %v8903_v39  ;;  %7760 = vmatpush1.bf16.msra.mxu1 %v8905_v40  ;;  %v9034_v39 = vcombine.high %v1144_v36, %v1152_v56  ;;  %v1159_v40 = vld [vmem:[%s9885_s7 + $0x18b0] sm:$0xff] }
 0x41a   : > { %7597 = vmatprep.subr.bf16.mxu0 %v8920_v41  ;;  %7761 = vmatprep.subr.bf16.mxu1 %v8922_v43  ;;  %v1167_v41 = vld [vmem:[%s9885_s7 + $0x18f0] sm:$0xff]  ;;  %v1160_v43 = vld [vmem:[%s9885_s7 + $0x18b8] sm:$0xff] }
 0x41b   : > { %v9048_v47 = vcombine.high %v1159_v40, %v1167_v41  ;;  %v9047_v17 = vcombine.low %v1159_v40, %v1167_v41  ;;  %v9049_v53 = vcombine.low %v1160_v43, %v1168_v44 }
 0x41d   : > { %7598 = vmatpush1.bf16.msra.mxu0 %v8919_v48  ;;  %7762 = vmatpush1.bf16.msra.mxu1 %v8921_v49  ;;  %v9050_v48 = vcombine.high %v1160_v43, %v1168_v44  ;;  %v1175_v49 = vld [vmem:[%s9885_s7 + $0x1930] sm:$0xff] }
 0x41e   : > { %7599 = vmatprep.subr.bf16.mxu0 %v8936_v50  ;;  %7763 = vmatprep.subr.bf16.mxu1 %v8938_v42  ;;  %v1183_v50 = vld [vmem:[%s9885_s7 + $0x1970] sm:$0xff]  ;;  %v1176_v42 = vld [vmem:[%s9885_s7 + $0x1938] sm:$0xff] }
 0x41f   : > { %v9064_v55 = vcombine.high %v1175_v49, %v1183_v50  ;;  %v9065_v61 = vcombine.low %v1176_v42, %v1184_v51 }
 0x421   : > { %7600 = vmatpush1.bf16.msra.mxu0 %v8935_v24  ;;  %7764 = vmatpush1.bf16.msra.mxu1 %v8937_v57  ;;  %v9066_v24 = vcombine.high %v1176_v42, %v1184_v51  ;;  %v1191_v57 = vld [vmem:[%s9885_s7 + $0x19b0] sm:$0xff]  ;;  %v1280_v42 = vld [vmem:[%s9885_s7 + $0x1c78] sm:$0xff] }
 0x422   : > { %7601 = vmatprep.subr.bf16.mxu0 %v8952_v58  ;;  %7765 = vmatprep.subr.bf16.mxu1 %v8954_v59  ;;  %v1199_v58 = vld [vmem:[%s9885_s7 + $0x19f0] sm:$0xff]  ;;  %v1192_v59 = vld [vmem:[%s9885_s7 + $0x19b8] sm:$0xff] }
 0x423   : > { %v9080_v62 = vcombine.high %v1191_v57, %v1199_v58  ;;  %v9082_v63 = vcombine.high %v1192_v59, %v1200_v52  ;;  %v9079_v6 = vcombine.low %v1191_v57, %v1199_v58  ;;  %v313_v51 = vld [vmem:[#allocation2 + $0x10] sm:$0xff] }
 0x424   : > { %v1287_v58 = vld [vmem:[%s9885_s7 + $0x1cb0] sm:$0xff] }
 0x425   : > { %7602 = vmatpush1.bf16.msra.mxu0 %v8951_v1  ;;  %7766 = vmatpush1.bf16.msra.mxu1 %v8953_v2  ;;  %v1207_v1 = vld [vmem:[%s9885_s7 + $0x1a30] sm:$0xff] }
 0x426   : > { %7603 = vmatprep.subr.bf16.mxu0 %v8968_v4  ;;  %7767 = vmatprep.subr.bf16.mxu1 %v8970_v5  ;;  %v1215_v2 = vld [vmem:[%s9885_s7 + $0x1a70] sm:$0xff]  ;;  %v1208_v4 = vld [vmem:[%s9885_s7 + $0x1a38] sm:$0xff] }
 0x427   : > { %v1216_v5 = vld [vmem:[%s9885_s7 + $0x1a78] sm:$0xff]  ;;  %v9096_v7 = vcombine.high %v1207_v1, %v1215_v2 }
 0x428   : > { %v9098_v8 = vcombine.high %v1208_v4, %v1216_v5  ;;  %v9097_v15 = vcombine.low %v1208_v4, %v1216_v5  ;;  %v1303_v4 = vld [vmem:[%s9885_s7 + $0x1d30] sm:$0xff] }
 0x429   : > { %7604 = vmatpush1.bf16.msra.mxu0 %v8967_v11  ;;  %7768 = vmatpush1.bf16.msra.mxu1 %v8969_v12  ;;  %v1231_v11 = vld [vmem:[%s9885_s7 + $0x1af0] sm:$0xff]  ;;  %v1224_v12 = vld [vmem:[%s9885_s7 + $0x1ab8] sm:$0xff] }
 0x42a   : > { %7605 = vmatprep.subr.bf16.mxu0 %v8984_v32  ;;  %7769 = vmatprep.subr.bf16.mxu1 %v8986_v14  ;;  %v1232_v32 = vld [vmem:[%s9885_s7 + $0x1af8] sm:$0xff]  ;;  %v9095_v14 = vcombine.low %v1207_v1, %v1215_v2  ;;  %v9112_v16 = vcombine.high %v1223_v9, %v1231_v11  ;;  %v1311_v5 = vld [vmem:[%s9885_s7 + $0x1d70] sm:$0xff] }
 0x42b   : > { %v9114_v60 = vcombine.high %v1224_v12, %v1232_v32  ;;  %v9113_v23 = vcombine.low %v1224_v12, %v1232_v32  ;;  %v1319_v12 = vld [vmem:[%s9885_s7 + $0x1db0] sm:$0xff] }
 0x42c   : > { %v1327_v32 = vld [vmem:[%s9885_s7 + $0x1df0] sm:$0xff] }
 0x42d   : > { %7606 = vmatpush1.bf16.msra.mxu0 %v8983_v19  ;;  %7770 = vmatpush1.bf16.msra.mxu1 %v8985_v20  ;;  %v1247_v19 = vld [vmem:[%s9885_s7 + $0x1b70] sm:$0xff]  ;;  %v1240_v20 = vld [vmem:[%s9885_s7 + $0x1b38] sm:$0xff] }
 0x42e   : > { %7607 = vmatprep.subr.bf16.mxu0 %v9000_v21  ;;  %7771 = vmatprep.subr.bf16.mxu1 %v9002_v22  ;;  %v1248_v21 = vld [vmem:[%s9885_s7 + $0x1b78] sm:$0xff]  ;;  %v9111_v22 = vcombine.low %v1223_v9, %v1231_v11  ;;  %v9128_v25 = vcombine.high %v1239_v18, %v1247_v19  ;;  %v9192_v9 = vcombine.high %v1303_v4, %v1311_v5 }
 0x42f   : > { %v9130_v10 = vcombine.high %v1240_v20, %v1248_v21  ;;  %v9129_v41 = vcombine.low %v1240_v20, %v1248_v21  ;;  %v1335_v20 = vld [vmem:[%s9885_s7 + $0x1e30] sm:$0xff] }
 0x430   : > { %v1343_v21 = vld [vmem:[%s9885_s7 + $0x1e70] sm:$0xff] }
 0x431   : > { %7608 = vmatpush1.bf16.msra.mxu0 %v8999_v29  ;;  %7772 = vmatpush1.bf16.msra.mxu1 %v9001_v30  ;;  %v1255_v29 = vld [vmem:[%s9885_s7 + $0x1bb0] sm:$0xff] }
 0x432   : > { %7609 = vmatprep.subr.bf16.mxu0 %v9016_v31  ;;  %7773 = vmatprep.subr.bf16.mxu1 %v9018_v33  ;;  %v1263_v30 = vld [vmem:[%s9885_s7 + $0x1bf0] sm:$0xff] }
 0x433   : > { %v9144_v43 = vcombine.high %v1255_v29, %v1263_v30 }
 0x435   : > { %7610 = vmatpush1.bf16.msra.mxu0 %v9015_v26  ;;  %7774 = vmatpush1.bf16.msra.mxu1 %v9017_v37  ;;  %v9127_v37 = vcombine.low %v1239_v18, %v1247_v19  ;;  %v9208_v18 = vcombine.high %v1319_v12, %v1327_v32 }
 0x436   : > { %7620 = vmatprep.subr.bf16.mxu0 %v9032_v38  ;;  %7784 = vmatprep.subr.bf16.mxu1 %v9034_v39 }
 0x438   : > { %7612 = vmatmul.mubr.bf16.vlgmr.msra.gmra.mrb[12].mxu0 %v10173_v3  ;;  %7776 = vmatmul.mubr.bf16.vlgmr.msra.gmra.mrb[12].mxu1 %v10173_v3  ;;  %v9063_v3 = vcombine.low %v1175_v49, %v1183_v50  ;;  %v1272_v50 = vld [vmem:[%s9885_s7 + $0x1c38] sm:$0xff] }
 0x439   : > { %7621 = vmatpush1.bf16.msra.mxu0 %v9031_v46  ;;  %7785 = vmatpush1.bf16.msra.mxu1 %v9033_v35  ;;  %v9146_v35 = vcombine.high %v1256_v34, %v1264_v0  ;;  %v9162_v57 = vcombine.high %v1272_v50, %v1280_v42 }
 0x43a   : > { %7622 = vmatprep.subr.bf16.mxu0 %v9048_v47  ;;  %7786 = vmatprep.subr.bf16.mxu1 %v9050_v48  ;;  %v1271_v47 = vld [vmem:[%s9885_s7 + $0x1c30] sm:$0xff] }
 0x43b   : > { %7652 = vmatprep.mubr.bf16.mxu0 %v10179_v13  ;;  %7816 = vmatprep.mubr.bf16.mxu1 %v10179_v13  ;;  %v9081_v13 = vcombine.low %v1192_v59, %v1200_v52  ;;  %v1279_v48 = vld [vmem:[%s9885_s7 + $0x1c70] sm:$0xff] }
 0x43c   : > { %v1295_v59 = vld [vmem:[%s9885_s7 + $0x1cf0] sm:$0xff] }
 0x43d   : > { %7623 = vmatpush1.bf16.msra.mxu0 %v9047_v17  ;;  %7787 = vmatpush1.bf16.msra.mxu1 %v9049_v53  ;;  %v9143_v17 = vcombine.low %v1255_v29, %v1263_v30  ;;  %v9176_v1 = vcombine.high %v1287_v58, %v1295_v59  ;;  %v1351_v30 = vld [vmem:[%s9885_s7 + $0x1eb0] sm:$0xff] }
 0x43e   : > { %7624 = vmatprep.subr.bf16.mxu0 %v9064_v55  ;;  %7788 = vmatprep.subr.bf16.mxu1 %v9066_v24  ;;  %v9145_v55 = vcombine.low %v1256_v34, %v1264_v0  ;;  %v9160_v24 = vcombine.high %v1271_v47, %v1279_v48  ;;  %v1360_v34 = vld [vmem:[%s9885_s7 + $0x1ef8] sm:$0xff]  ;;  %v9223_v0 = vcombine.low %v1335_v20, %v1343_v21 }
 0x441   : > { %7625 = vmatpush1.bf16.msra.mxu0 %v9063_v3  ;;  %7789 = vmatpush1.bf16.msra.mxu1 %v9065_v61  ;;  %v1288_v3 = vld [vmem:[%s9885_s7 + $0x1cb8] sm:$0xff] }
 0x442   : > { %7626 = vmatprep.subr.bf16.mxu0 %v9080_v62  ;;  %7790 = vmatprep.subr.bf16.mxu1 %v9082_v63  ;;  %v1296_v61 = vld [vmem:[%s9885_s7 + $0x1cf8] sm:$0xff]  ;;  %v9159_v62 = vcombine.low %v1271_v47, %v1279_v48  ;;  %v9161_v63 = vcombine.low %v1272_v50, %v1280_v42  ;;  %v1391_v47 = vld [vmem:[%s9885_s7 + $0x1ff0] sm:$0xff] }
 0x443   : > { %v9178_v2 = vcombine.high %v1288_v3, %v1296_v61  ;;  %v1384_v48 = vld [vmem:[%s9885_s7 + $0x1fb8] sm:$0xff] }
 0x445   : > { %7627 = vmatpush1.bf16.msra.mxu0 %v9079_v6  ;;  %7791 = vmatpush1.bf16.msra.mxu1 %v9081_v13  ;;  %v1304_v6 = vld [vmem:[%s9885_s7 + $0x1d38] sm:$0xff] }
 0x446   : > { %7628 = vmatprep.subr.bf16.mxu0 %v9096_v7  ;;  %7792 = vmatprep.subr.bf16.mxu1 %v9098_v8  ;;  %v1312_v13 = vld [vmem:[%s9885_s7 + $0x1d78] sm:$0xff]  ;;  %v9175_v7 = vcombine.low %v1287_v58, %v1295_v59  ;;  %v9177_v8 = vcombine.low %v1288_v3, %v1296_v61 }
 0x447   : > { %v9194_v11 = vcombine.high %v1304_v6, %v1312_v13 }
 0x449   : > { %7629 = vmatpush1.bf16.msra.mxu0 %v9095_v14  ;;  %7793 = vmatpush1.bf16.msra.mxu1 %v9097_v15  ;;  %v1320_v14 = vld [vmem:[%s9885_s7 + $0x1db8] sm:$0xff] }
 0x44a   : > { %7630 = vmatprep.subr.bf16.mxu0 %v9112_v16  ;;  %7794 = vmatprep.subr.bf16.mxu1 %v9114_v60  ;;  %v1328_v15 = vld [vmem:[%s9885_s7 + $0x1df8] sm:$0xff]  ;;  %v9191_v16 = vcombine.low %v1303_v4, %v1311_v5  ;;  %v9193_v60 = vcombine.low %v1304_v6, %v1312_v13 }
 0x44b   : > { %v7326_v28 = vpop.f32.mrb[8].mxu0  ;;  %v7490_v31 = vpop.f32.mrb[8].mxu1  ;;  %v9210_v19 = vcombine.high %v1320_v14, %v1328_v15  ;;  %v314_v5 = vld [vmem:[#allocation2 + $0x18] sm:$0xff] }
 0x44c   : > { %v7328_v33 = vpop.f32.mrb[9].mxu0  ;;  %v7492_v56 = vpop.f32.mrb[9].mxu1 }
 0x44d   : > { %v7875_v36 = vcombine.low %v7326_v28, %v7328_v33  ;;  %v7330_v26 = vpop.f32.mrb[10].mxu0  ;;  %7631 = vmatpush1.bf16.msra.mxu0 %v9111_v22  ;;  %v7876_v38 = vcombine.low %v7490_v31, %v7492_v56  ;;  %v7494_v39 = vpop.f32.mrb[10].mxu1  ;;  %7795 = vmatpush1.bf16.msra.mxu1 %v9113_v23  ;;  %v1336_v22 = vld [vmem:[%s9885_s7 + $0x1e38] sm:$0xff]  ;;  %v9209_v28 = vcombine.low %v1320_v14, %v1328_v15  ;;  %v1359_v31 = vld [vmem:[%s9885_s7 + $0x1ef0] sm:$0xff]  ;;  %v7959_v14 = vsub.s32 (!%p9275_p3), 6, %v9934_v45 }
 0x44e   : > { %v7331_v40 = vpop.f32.mrb[11].mxu0  ;;  %7632 = vmatprep.subr.bf16.mxu0 %v9128_v25  ;;  %v7495_v46 = vpop.f32.mrb[11].mxu1  ;;  %7796 = vmatprep.subr.bf16.mxu1 %v9130_v10  ;;  %v1344_v23 = vld [vmem:[%s9885_s7 + $0x1e78] sm:$0xff]  ;;  %v9207_v25 = vcombine.low %v1319_v12, %v1327_v32  ;;  %v9224_v10 = vcombine.high %v1335_v20, %v1343_v21  ;;  %v9240_v56 = vcombine.high %v1351_v30, %v1359_v31  ;;  %v7951_v12 = vsub.s32 (!%p9275_p3), 4, %v9934_v45 }
 0x44f   : > { %v7883_v44 = vrot.slane %v7875_v36, %v9941_v54  ;;  %v7890_v49 = vrot.slane %v7876_v38, %v9941_v54  ;;  %v9226_v29 = vcombine.high %v1336_v22, %v1344_v23  ;;  %v1352_v33 = vld [vmem:[%s9885_s7 + $0x1eb8] sm:$0xff]  ;;  %v9225_v36 = vcombine.low %v1336_v22, %v1344_v23  ;;  %v1375_v38 = vld [vmem:[%s9885_s7 + $0x1f70] sm:$0xff] }
 0x450   : > { %v9242_v26 = vcombine.high %v1352_v33, %v1360_v34  ;;  %v1368_v39 = vld [vmem:[%s9885_s7 + $0x1f38] sm:$0xff]  ;;  %v7955_v32 = vsub.s32 (!%p9275_p3), 5, %v9934_v45  ;;  %v7963_v15 = vsub.s32 (!%p9275_p3), 7, %v9934_v45 }
 0x451   : > { %7633 = vmatpush1.bf16.msra.mxu0 %v9127_v37  ;;  %v7891_v53 = vcombine.low %v7883_v44, %v7890_v49  ;;  %7797 = vmatpush1.bf16.msra.mxu1 %v9129_v41  ;;  %v1367_v37 = vld [vmem:[%s9885_s7 + $0x1f30] sm:$0xff]  ;;  %v1376_v40 = vld [vmem:[%s9885_s7 + $0x1f78] sm:$0xff]  ;;  %v9239_v41 = vcombine.low %v1351_v30, %v1359_v31 }
 0x452   : > { %7634 = vmatprep.subr.bf16.mxu0 %v9144_v43  ;;  %7798 = vmatprep.subr.bf16.mxu1 %v9146_v35  ;;  %v9241_v43 = vcombine.low %v1352_v33, %v1360_v34  ;;  %v9256_v44 = vcombine.high %v1367_v37, %v1375_v38  ;;  %v9258_v46 = vcombine.high %v1368_v39, %v1376_v40  ;;  %v1383_v35 = vld [vmem:[%s9885_s7 + $0x1fb0] sm:$0xff]  ;;  %v1392_v49 = vld [vmem:[%s9885_s7 + $0x1ff8] sm:$0xff] }
 0x453   : > { %v7915_v52 = vadd.f32 %v7891_v53, %v313_v51  ;;  %v9255_v50 = vcombine.low %v1367_v37, %v1375_v38  ;;  %v9257_v42 = vcombine.low %v1368_v39, %v1376_v40  ;;  %v9272_v51 = vcombine.high %v1383_v35, %v1391_v47  ;;  %v7930_v20 = vld [vmem:[%s239_s10 + $0x8] sm:$0xff] (!%p9275_p3)  ;;  %v7925_v37 = vld [vmem:[#allocation2] sm:$0xff] (!%p9275_p3) }
 0x454   : > { %v9271_v53 = vcombine.low %v1383_v35, %v1391_v47  ;;  %v7992_v35 = vrot.slane (!%p9275_p3), %v7930_v20, %v7959_v14  ;;  %v7996_v47 = vrot.slane (!%p9275_p3), %v7930_v20, %v7963_v15 }
 0x455   : > { %7635 = vmatpush1.bf16.msra.mxu0 %v9143_v17  ;;  %7919 = vst [vmem:[#allocation2 + $0x10] sm:$0xff] %v7915_v52  ;;  %7799 = vmatpush1.bf16.msra.mxu1 %v9145_v55  ;;  %v9274_v17 = vcombine.high %v1384_v48, %v1392_v49  ;;  %v9273_v55 = vcombine.low %v1384_v48, %v1392_v49 }
 0x456   : > { %7636 = vmatprep.subr.bf16.mxu0 %v9160_v24  ;;  %7800 = vmatprep.subr.bf16.mxu1 %v9162_v57 }
 0x459   : > { %7637 = vmatpush1.bf16.msra.mxu0 %v9159_v62  ;;  %7801 = vmatpush1.bf16.msra.mxu1 %v9161_v63 }
 0x45a   : > { %7638 = vmatprep.subr.bf16.mxu0 %v9176_v1  ;;  %7802 = vmatprep.subr.bf16.mxu1 %v9178_v2 }
 0x45d   : > { %7639 = vmatpush1.bf16.msra.mxu0 %v9175_v7  ;;  %7803 = vmatpush1.bf16.msra.mxu1 %v9177_v8  ;;  %v7935_v7 = vsub.s32 (!%p9275_p3), 0, %v9934_v45  ;;  %v7939_v8 = vsub.s32 (!%p9275_p3), 1, %v9934_v45 }
 0x45e   : > { %7640 = vmatprep.subr.bf16.mxu0 %v9192_v9  ;;  %7804 = vmatprep.subr.bf16.mxu1 %v9194_v11  ;;  %v7943_v9 = vsub.s32 (!%p9275_p3), 2, %v9934_v45  ;;  %v7947_v11 = vsub.s32 (!%p9275_p3), 3, %v9934_v45 }
 0x45f   : > { %v7972_v30 = vrot.slane (!%p9275_p3), %v7930_v20, %v7939_v8 }
 0x460   : > { %v7976_v34 = vrot.slane (!%p9275_p3), %v7930_v20, %v7943_v9 }
 0x461   : > { %7641 = vmatpush1.bf16.msra.mxu0 %v9191_v16  ;;  %7805 = vmatpush1.bf16.msra.mxu1 %v9193_v60 }
 0x462   : > { %7642 = vmatprep.subr.bf16.mxu0 %v9208_v18  ;;  %7806 = vmatprep.subr.bf16.mxu1 %v9210_v19 }
 0x465   : > { %7643 = vmatpush1.bf16.msra.mxu0 %v9207_v25  ;;  %7807 = vmatpush1.bf16.msra.mxu1 %v9209_v28 }
 0x466   : > { %7644 = vmatprep.subr.bf16.mxu0 %v9224_v10  ;;  %7808 = vmatprep.subr.bf16.mxu1 %v9226_v29  ;;  %v7968_v29 = vrot.slane (!%p9275_p3), %v7930_v20, %v7935_v7 }
 0x469   : > { %7645 = vmatpush1.bf16.msra.mxu0 %v9223_v0  ;;  %7809 = vmatpush1.bf16.msra.mxu1 %v9225_v36  ;;  %v7980_v0 = vrot.slane (!%p9275_p3), %v7930_v20, %v7947_v11 }
 0x46a   : > { %7646 = vmatprep.subr.bf16.mxu0 %v9240_v56  ;;  %7810 = vmatprep.subr.bf16.mxu1 %v9242_v26  ;;  %v8031_v56 = vcombine.low (!%p9275_p3), %v7968_v29, %v7972_v30  ;;  %v7984_v26 = vrot.slane (!%p9275_p3), %v7930_v20, %v7951_v12 }
 0x46b   : > { %v8032_v40 = vcombine.low (!%p9275_p3), %v7976_v34, %v7980_v0 }
 0x46d   : > { %7647 = vmatpush1.bf16.msra.mxu0 %v9239_v41  ;;  %7811 = vmatpush1.bf16.msra.mxu1 %v9241_v43  ;;  %v7988_v41 = vrot.slane (!%p9275_p3), %v7930_v20, %v7955_v32  ;;  %v8046_v49 = vrot.slane (!%p9275_p3), %v8032_v40, %v9941_v54 }
 0x46e   : > { %7648 = vmatprep.subr.bf16.mxu0 %v9256_v44  ;;  %7812 = vmatprep.subr.bf16.mxu1 %v9258_v46  ;;  %v7926_v44 = vld [vmem:[#allocation2 + $0x8] sm:$0xff] (!%p9275_p3)  ;;  %v8039_v46 = vrot.slane (!%p9275_p3), %v8031_v56, %v9941_v54 }
 0x471   : > { %7649 = vmatpush1.bf16.msra.mxu0 %v9255_v50  ;;  %7813 = vmatpush1.bf16.msra.mxu1 %v9257_v42  ;;  %v8048_v50 = vcombine.low (!%p9275_p3), %v7984_v26, %v7988_v41 }
 0x472   : > { %7650 = vmatprep.subr.bf16.mxu0 %v9272_v51  ;;  %7814 = vmatprep.subr.bf16.mxu1 %v9274_v17  ;;  %v7927_v51 = vld [vmem:[#allocation2 + $0x10] sm:$0xff] (!%p9275_p3)  ;;  %v8049_v17 = vcombine.low (!%p9275_p3), %v7992_v35, %v7996_v47 }
 0x475   : > { %7651 = vmatpush1.bf16.msra.mxu0 %v9271_v53  ;;  %7815 = vmatpush1.bf16.msra.mxu1 %v9273_v55  ;;  %v8047_v55 = vcombine.low (!%p9275_p3), %v8039_v46, %v8046_v49 }
 0x478   : > { %7653 = vmatmul.mubr.bf16.vlgmr.msra.gmra.mrb[12].mxu0 %v10247_v27  ;;  %7817 = vmatmul.mubr.bf16.vlgmr.msra.gmra.mrb[12].mxu1 %v10247_v27  ;;  %v7929_v27 = vld [vmem:[%s239_s10] sm:$0xff] (!%p9275_p3) }
 0x479   : > { %v7936_v16 = vrot.slane (!%p9275_p3), %v7929_v27, %v7935_v7  ;;  %v7940_v60 = vrot.slane (!%p9275_p3), %v7929_v27, %v7939_v8  ;;  %v7944_v18 = vrot.slane (!%p9275_p3), %v7929_v27, %v7943_v9  ;;  %v7948_v19 = vrot.slane (!%p9275_p3), %v7929_v27, %v7947_v11 }
 0x47a   : > { %v7952_v21 = vrot.slane (!%p9275_p3), %v7929_v27, %v7951_v12  ;;  %v7956_v22 = vrot.slane (!%p9275_p3), %v7929_v27, %v7955_v32  ;;  %v7960_v23 = vrot.slane (!%p9275_p3), %v7929_v27, %v7959_v14  ;;  %v7964_v25 = vrot.slane (!%p9275_p3), %v7929_v27, %v7963_v15 }
 0x47b   : > { %v7997_v28 = vcombine.low (!%p9275_p3), %v7936_v16, %v7940_v60  ;;  %v7998_v10 = vcombine.low (!%p9275_p3), %v7944_v18, %v7948_v19 }
 0x47c   : > { %v8014_v31 = vcombine.low (!%p9275_p3), %v7952_v21, %v7956_v22  ;;  %v8015_v33 = vcombine.low (!%p9275_p3), %v7960_v23, %v7964_v25 }
 0x47d   : > { %v8005_v45 = vrot.slane (!%p9275_p3), %v7997_v28, %v9941_v54  ;;  %v8012_v36 = vrot.slane (!%p9275_p3), %v7998_v10, %v9941_v54 }
 0x47e   : > { %v8022_v38 = vrot.slane (!%p9275_p3), %v8014_v31, %v9941_v54  ;;  %v8029_v39 = vrot.slane (!%p9275_p3), %v8015_v33, %v9941_v54 }
 0x47f   : > { %v8013_v43 = vcombine.low (!%p9275_p3), %v8005_v45, %v8012_v36 }
 0x480   : > { %v8030_v48 = vcombine.low (!%p9275_p3), %v8022_v38, %v8029_v39 }
 0x481   : > { %v8069_v42 = vadd.f32 (!%p9275_p3), %v8013_v43, %v7925_v37 }
 0x482   : > { %v8070_v53 = vadd.f32 (!%p9275_p3), %v8030_v48, %v7926_v44 }
 0x483   : > { %vm8073_vm0 = vcmp.ge.f32.partialorder (!%p9275_p3), %v8069_v42, 0.0 }
 0x484   : > { %vm8074_vm1 = vcmp.ge.f32.partialorder (!%p9275_p3), %v8070_v53, 0.0 }
 0x54b   : > { %v7654_v24 = vpop.f32.mrb[12].mxu0  ;;  %v7818_v57 = vpop.f32.mrb[12].mxu1 }
 0x54c   : > { %v7656_v58 = vpop.f32.mrb[13].mxu0  ;;  %v7820_v52 = vpop.f32.mrb[13].mxu1 }
 0x54d   : > { %v7892_v59 = vcombine.low %v7654_v24, %v7656_v58  ;;  %v7658_v3 = vpop.f32.mrb[14].mxu0  ;;  %v7893_v61 = vcombine.low %v7818_v57, %v7820_v52  ;;  %v7822_v62 = vpop.f32.mrb[14].mxu1  ;;  %v8056_v24 = vrot.slane (!%p9275_p3), %v8048_v50, %v9941_v54  ;;  %v8077_v57 = vmul.f32 (!%p9275_p3), 0.2, %v8069_v42 }
 0x54e   : > { %v7659_v63 = vpop.f32.mrb[15].mxu0  ;;  %v7823_v2 = vpop.f32.mrb[15].mxu1  ;;  %v8063_v58 = vrot.slane (!%p9275_p3), %v8049_v17, %v9941_v54  ;;  %v8071_v52 = vadd.f32 (!%p9275_p3), %v8047_v55, %v7927_v51 }
 0x54f   : > { %v7900_v1 = vrot.slane %v7892_v59, %v9941_v54  ;;  %v7907_v4 = vrot.slane %v7893_v61, %v9941_v54  ;;  %7924 = sbr.rel (%p9275_p3) target bundleno = 1379 (0x563), region = 48  ;;  %v8078_v59 = vmul.f32 (!%p9275_p3), 0.2, %v8070_v53  ;;  %v8081_v61 = vsel (!%p9275_p3), %vm8073_vm0, %v8069_v42, %v8077_v57 }
 0x550   : > { %v8064_v62 = vcombine.low (!%p9275_p3), %v8056_v24, %v8063_v58  ;;  %8085 = vst [vmem:[%s9909_s4] sm:$0xff] (!%p9275_p3), %v8081_v61  ;;  %vm8075_vm2 = vcmp.ge.f32.partialorder (!%p9275_p3), %v8071_v52, 0.0 }
 0x551   : > { %v7908_v6 = vcombine.low %v7900_v1, %v7907_v4  ;;  %v8082_v63 = vsel (!%p9275_p3), %vm8074_vm1, %v8070_v53, %v8078_v59  ;;  %v8079_v1 = vmul.f32 (!%p9275_p3), 0.2, %v8071_v52 }
 0x552   : > { %8086 = vst [vmem:[%s9909_s4 + $0x8] sm:$0xff] (!%p9275_p3), %v8082_v63 }
 0x553   : > { %v7916_v13 = vadd.f32 %v7908_v6, %v314_v5  ;;  %v8083_v4 = vsel (!%p9275_p3), %vm8075_vm2, %v8071_v52, %v8079_v1 }
 0x554   : > { %8087 = vst [vmem:[%s9909_s4 + $0x10] sm:$0xff] (!%p9275_p3), %v8083_v4 }
 0x555   : > { %7920 = vst [vmem:[#allocation2 + $0x18] sm:$0xff] %v7916_v13 }
 0x55c   : > { %v7928_v3 = vld [vmem:[#allocation2 + $0x18] sm:$0xff] }
 0x55d   : > { %v8072_v2 = vadd.f32 %v8064_v62, %v7928_v3 }
 0x55f   : > { %vm8076_vm3 = vcmp.ge.f32.partialorder %v8072_v2, 0.0  ;;  %v8080_v5 = vmul.f32 0.2, %v8072_v2 }
 0x561   : > { %v8084_v6 = vsel %vm8076_vm3, %v8072_v2, %v8080_v5 }
 0x562   : > { %8088 = vst [vmem:[%s9909_s4 + $0x18] sm:$0xff] %v8084_v6 }
 0x563 PF: > { %s19_s22 = sadd.s32 1, %s9637_s22   ;;  %s11152_s7 = sld [smem:[#allocation9_spill]] }
 0x564   : > { %p16_p11 = scmp.ge.s32.totalorder %s19_s22, 78   ;;  %s11153_s12 = smov %s9601_s13 }
 0x565   : > { %s11154_s13 = smov %s9605_s14  ;;  %s11155_s14 = smov %s9834_s29 }
 0x566   : > { %s11156_s15 = smov %s9613_s16  ;;  %s11157_s16 = smov %s9617_s17 }
 0x567   : > { %s11158_s17 = smov %s9839_s6  ;;  %s11159_s18 = smov %s9629_s20 }
 0x568   : > { %s11160_s19 = smov %s9633_s21  ;;  %s11161_s20 = smov %s11164_s23 }
 0x569   : > { %s11162_s21 = smov %s11152_s7  ;;  %18 = sbr.rel (!%p16_p11) target bundleno = 11 (0xb), region = 96 }
 0x570   :  { %8119 = vsyncpa [#allocation4], 1 }
 0x571   :  { %8121 = vsyncpa [#allocation4 + $0x1], 1 }
 0x572   :  { %8122 = vsyncpa [#allocation6], 1 }
 0x573   :  { %8124 = vsyncpa [#allocation6 + $0x1], 1 }

</bundles_post_ra>
